<compile_context>
chip_gen: v7x
topology: tpu7x:2x2x1
jax: 0.10.0
libtpu: 0.0.40
codegen_flags: <defaults>
</compile_context>

<pallas_src>
import jax
import jax.numpy as jnp
from jax.experimental import pallas as pl
from jax.experimental.pallas import tpu as pltpu

KSIZE = 4
BN_EPS = 1e-5

# Shrunk sizes for the runnable example (original module: ng=64, nz=1000).
# The kernels are size-generic (M/K tiling), so the real sizes also work.
NG = 8
NZ = 16
BATCH = 2

COUT_PAD_LAST = 128                 # lane-dense final matmul output width
_VMEM_LIMIT = 64 * 1024 * 1024      # <= v7x physical VMEM; plenty on v5e/v6e

# (Cin, Cout, stride, padding, has_batchnorm, activation) — mirrors the module.
LAYER_CFG = [
    (NZ,     NG * 8, 1, 0, True,  "relu"),
    (NG * 8, NG * 4, 2, 1, True,  "relu"),
    (NG * 4, NG * 2, 2, 1, True,  "relu"),
    (NG * 2, NG,     2, 1, True,  "relu"),
    (NG,     3,      2, 1, False, "tanh"),
]


# ------------------------------ tiling helpers -------------------------------

def _row_tile(m, cap=1024):
    for t in (1024, 512, 256, 128, 64, 32, 16, 8):
        if t <= cap and t <= m and m % t == 0:
            return t
    return m            # tiny / odd M: single full block


def _k_tile(k):
    for t in (512, 384, 256, 128):
        if t <= k and k % t == 0:
            return t
    return k             # small K: keep the full reduction resident


def _pad_rows(x, mult=8):
    pad = (-x.shape[0]) % mult
    if pad:
        x = jnp.pad(x, ((0, pad), (0, 0)))   # zero rows: BN sums unaffected
    return x


# ------------------------------ Pallas kernels -------------------------------

def _mm_stats_kernel(x_ref, w_ref, y_ref, psum_ref, psq_ref, acc_ref):
    """K-tiled bf16 matmul with fused BatchNorm partial-statistics epilogue."""
    @pl.when(pl.program_id(1) == 0)
    def _():
        acc_ref[...] = jnp.zeros_like(acc_ref)

    acc_ref[...] += jnp.dot(x_ref[...], w_ref[...],
                            preferred_element_type=jnp.float32)

    @pl.when(pl.program_id(1) == pl.num_programs(1) - 1)
    def _():
        y = acc_ref[...]
        y_ref[...] = y
        s = jnp.sum(y, axis=0, keepdims=True)        # per-tile column sums
        sq = jnp.sum(y * y, axis=0, keepdims=True)
        psum_ref[...] = jnp.broadcast_to(s, psum_ref.shape)
        psq_ref[...] = jnp.broadcast_to(sq, psq_ref.shape)


def _mm_bias_tanh_kernel(x_ref, w_ref, b_ref, y_ref, acc_ref):
    """K-tiled bf16 matmul with fused bias + tanh epilogue (final layer)."""
    @pl.when(pl.program_id(1) == 0)
    def _():
        acc_ref[...] = jnp.zeros_like(acc_ref)

    acc_ref[...] += jnp.dot(x_ref[...], w_ref[...],
                            preferred_element_type=jnp.float32)

    @pl.when(pl.program_id(1) == pl.num_programs(1) - 1)
    def _():
        y_ref[...] = jnp.tanh(acc_ref[...] + b_ref[...])


def _bn_relu_kernel(y_ref, mean_ref, var_ref, gamma_ref, beta_ref, o_ref):
    """Lane-dense BatchNorm-normalize + ReLU (f32 math, bf16 store)."""
    inv = jax.lax.rsqrt(var_ref[...] + BN_EPS)
    yn = (y_ref[...] - mean_ref[...]) * inv * gamma_ref[...] + beta_ref[...]
    o_ref[...] = jnp.maximum(yn, 0.0).astype(o_ref.dtype)


# ------------------------------ Pallas wrappers -------------------------------

def _matmul_stats(x, w):
    """(M,K)bf16 @ (K,C)bf16 -> y:(M,C)f32, plus BN sum/sumsq over rows (C,)."""
    m0 = x.shape[0]
    x = _pad_rows(x)
    m, k = x.shape
    c = w.shape[1]
    tm, tk = _row_tile(m), _k_tile(k)
    n_m = m // tm
    y, psum, psq = pl.pallas_call(
        _mm_stats_kernel,
        out_shape=(
            jax.ShapeDtypeStruct((m, c), jnp.float32),
            jax.ShapeDtypeStruct((n_m * 8, c), jnp.float32),
            jax.ShapeDtypeStruct((n_m * 8, c), jnp.float32),
        ),
        grid=(n_m, k // tk),
        in_specs=[
            pl.BlockSpec((tm, tk), lambda i, kk: (i, kk)),
            pl.BlockSpec((tk, c), lambda i, kk: (kk, 0)),
        ],
        out_specs=(
            pl.BlockSpec((tm, c), lambda i, kk: (i, 0)),
            pl.BlockSpec((8, c), lambda i, kk: (i, 0)),
            pl.BlockSpec((8, c), lambda i, kk: (i, 0)),
        ),
        scratch_shapes=[pltpu.VMEM((tm, c), jnp.float32)],
        compiler_params=pltpu.CompilerParams(
            dimension_semantics=("parallel", "arbitrary"),
            vmem_limit_bytes=_VMEM_LIMIT,
        ),
    )(x, w)
    # Rows inside a tile are broadcast duplicates; take one row per M-tile.
    return y[:m0], psum[::8, :].sum(axis=0), psq[::8, :].sum(axis=0)


def _matmul_bias_tanh(x, w, b_row):
    """(M,K)bf16 @ (K,C)bf16 + b, tanh fused in the epilogue. Returns f32."""
    m0 = x.shape[0]
    x = _pad_rows(x)
    m, k = x.shape
    c = w.shape[1]
    tm, tk = _row_tile(m), _k_tile(k)
    y = pl.pallas_call(
        _mm_bias_tanh_kernel,
        out_shape=jax.ShapeDtypeStruct((m, c), jnp.float32),
        grid=(m // tm, k // tk),
        in_specs=[
            pl.BlockSpec((tm, tk), lambda i, kk: (i, kk)),
            pl.BlockSpec((tk, c), lambda i, kk: (kk, 0)),
            pl.BlockSpec((1, c), lambda i, kk: (0, 0)),
        ],
        out_specs=pl.BlockSpec((tm, c), lambda i, kk: (i, 0)),
        scratch_shapes=[pltpu.VMEM((tm, c), jnp.float32)],
        compiler_params=pltpu.CompilerParams(
            dimension_semantics=("parallel", "arbitrary"),
            vmem_limit_bytes=_VMEM_LIMIT,
        ),
    )(x, w, b_row)
    return y[:m0]


def _bn_relu(y2d, mean, var, gamma, beta):
    """Training-mode BN normalize + ReLU on an (M, C) slab; bf16 output.

    Views the slab as (M/k, C*k == 128) with per-channel params tiled k times
    so all vector stores are unmasked full-lane vst (lane-dense out_spec).
    """
    m, c = y2d.shape
    k = 1
    if c < 128 and 128 % c == 0 and m % (128 // c) == 0:
        k = 128 // c
    rows, cols = m // k, c * k

    def prep(p):
        return jnp.tile(p.reshape(1, c).astype(jnp.float32), (1, k))

    tm = _row_tile(rows, cap=512)
    out = pl.pallas_call(
        _bn_relu_kernel,
        out_shape=jax.ShapeDtypeStruct((rows, cols), jnp.bfloat16),
        grid=(rows // tm,),
        in_specs=[
            pl.BlockSpec((tm, cols), lambda i: (i, 0)),
            pl.BlockSpec((1, cols), lambda i: (0, 0)),
            pl.BlockSpec((1, cols), lambda i: (0, 0)),
            pl.BlockSpec((1, cols), lambda i: (0, 0)),
            pl.BlockSpec((1, cols), lambda i: (0, 0)),
        ],
        out_specs=pl.BlockSpec((tm, cols), lambda i: (i, 0)),
        compiler_params=pltpu.CompilerParams(
            dimension_semantics=("parallel",),
            vmem_limit_bytes=_VMEM_LIMIT,
        ),
    )(y2d.reshape(rows, cols), prep(mean), prep(var), prep(gamma), prep(beta))
    return out.reshape(m, c)


# ---------------------- transposed-conv layer (stride 2) ---------------------

def _parity_patches(xp, h, w, r, c):
    """bf16 patch matrix (N*H*W, 4*Cin) for output parity (r, c)."""
    # TODO(synk): patch window slicing + parity interleave are XLA glue; a
    # manual-DMA Pallas variant could stream the taps straight from HBM.
    n, cin = xp.shape[0], xp.shape[-1]
    taps = [xp[:, r + th:r + th + h, c + tw:c + tw + w, :]
            for th in (0, 1) for tw in (0, 1)]
    return jnp.concatenate(taps, axis=-1).reshape(n * h * w, 4 * cin)


def _conv_transpose_s2(x_nhwc, w_mats, cout, bias_row=None):
    """ConvTranspose2d(k=4, s=2, p=1) as 4 output-parity 2x2-tap sub-matmuls.

    bias_row is None  -> BN layer: returns (y_f32, bn_sum, bn_sumsq, count).
    bias_row not None -> final layer: returns tanh(conv + bias) as f32.
    """
    n, h, w, _ = x_nhwc.shape
    xp = jnp.pad(x_nhwc, ((0, 0), (1, 1), (1, 1), (0, 0)))
    s_tot = jnp.zeros((cout,), jnp.float32)
    sq_tot = jnp.zeros((cout,), jnp.float32)
    rows = []
    for r in (0, 1):
        cols = []
        for c in (0, 1):
            patches = _parity_patches(xp, h, w, r, c)
            wm = w_mats[2 * r + c]
            if bias_row is None:
                y_rc, s, sq = _matmul_stats(patches, wm)
                s_tot = s_tot + s
                sq_tot = sq_tot + sq
            else:
                y_rc = _matmul_bias_tanh(patches, wm, bias_row)
                y_rc = y_rc[:, :cout]              # drop padded channels
            cols.append(y_rc.reshape(n, h, w, cout))
        rows.append(jnp.stack(cols, axis=3))       # (n, h, w, 2c, cout)
    y = jnp.stack(rows, axis=3)                    # (n, h, w, 2r, 2c, cout)
    y = jnp.transpose(y, (0, 1, 3, 2, 4, 5)).reshape(n, 2 * h, 2 * w, cout)
    if bias_row is None:
        return y, s_tot, sq_tot, 4 * n * h * w
    return y


# ------------------------- parameter preprocessing ---------------------------

def _prep_parity_wmats(w, cout_pad=None):
    """ConvT weight (Cin,Cout,4,4) -> four bf16 (4*Cin, Cout[_pad]) parity mats.

    For output parity (r, c):
      out[n, 2i+r, 2j+c] = sum_{th,tw in {0,1}}
          x_pad[n, i+r+th, j+c+tw] @ W[:, :, 3-r-2*th, 3-c-2*tw]
    with x_pad = x zero-padded by 1 on each spatial side.
    """
    cout = w.shape[1]
    mats = []
    for r in (0, 1):
        for c in (0, 1):
            blocks = [w[:, :, 3 - r - 2 * th, 3 - c - 2 * tw]
                      for th in (0, 1) for tw in (0, 1)]
            m = jnp.concatenate(blocks, axis=0)              # (4*Cin, Cout)
            if cout_pad is not None and cout_pad > cout:
                m = jnp.pad(m, ((0, 0), (0, cout_pad - cout)))
            mats.append(m.astype(jnp.bfloat16))
    return mats


def init_params(key):
    """Random params, preprocessed once into kernel-friendly bf16 layouts."""
    params = []
    for li, (cin, cout, _, _, has_bn, act) in enumerate(LAYER_CFG):
        key, k1, k2, k3, k4 = jax.random.split(key, 5)
        # PyTorch ConvTranspose2d weight layout: (Cin, Cout, kH, kW)
        w = 0.02 * jax.random.normal(k1, (cin, cout, KSIZE, KSIZE), jnp.float32)
        b = 0.01 * jax.random.normal(k2, (cout,), jnp.float32)
        p = {}
        if li == 0:
            # 1x1 input, stride 1, pad 0: ConvT == x @ W viewed as (Cin, 16*Cout).
            p["w_mat"] = (jnp.transpose(w, (0, 2, 3, 1))
                          .reshape(cin, KSIZE * KSIZE * cout)
                          .astype(jnp.bfloat16))
        else:
            p["w_par"] = _prep_parity_wmats(
                w, cout_pad=(COUT_PAD_LAST if act == "tanh" else None))
        if has_bn:
            # Conv bias is absorbed exactly by training-mode BN mean subtraction
            # -> intentionally dropped from the forward pass.
            p["gamma"] = 1.0 + 0.1 * jax.random.normal(k3, (cout,), jnp.float32)
            p["beta"] = 0.05 * jax.random.normal(k4, (cout,), jnp.float32)
        else:
            p["b_pad"] = jnp.pad(b, (0, COUT_PAD_LAST - cout)).reshape(1, -1)
        params.append(p)
    return params


# -------------------------------- forward ------------------------------------

@jax.jit
def generator_forward(x_nchw, params):
    n = x_nchw.shape[0]

    # ---- layer 0: ConvTranspose(nz, ng*8, 4, 1, 0) on a 1x1 input ----------
    cout = LAYER_CFG[0][1]
    x0 = x_nchw.reshape(n, NZ).astype(jnp.bfloat16)
    y, s, sq = _matmul_stats(x0, params[0]["w_mat"])       # y: (n, 16*cout)
    # output columns are ordered (kh, kw, co): fold the 16 spatial positions.
    s = s.reshape(KSIZE * KSIZE, cout).sum(axis=0)
    sq = sq.reshape(KSIZE * KSIZE, cout).sum(axis=0)
    count = n * KSIZE * KSIZE
    mean = s / count
    var = jnp.maximum(sq / count - mean * mean, 0.0)        # biased (BN train)
    a = _bn_relu(y.reshape(n * KSIZE * KSIZE, cout), mean, var,
                 params[0]["gamma"], params[0]["beta"])
    x = a.reshape(n, KSIZE, KSIZE, cout)                    # NHWC, bf16

    # ---- layers 1..3: stride-2 deconv + BatchNorm + ReLU -------------------
    for li in (1, 2, 3):
        cout = LAYER_CFG[li][1]
        y, s, sq, count = _conv_transpose_s2(x, params[li]["w_par"], cout)
        mean = s / count
        var = jnp.maximum(sq / count - mean * mean, 0.0)
        a = _bn_relu(y.reshape(-1, cout), mean, var,
                     params[li]["gamma"], params[li]["beta"])
        x = a.reshape(y.shape)                              # NHWC, bf16

    # ---- layer 4: stride-2 deconv + bias + tanh (fused in epilogue) --------
    y = _conv_transpose_s2(x, params[4]["w_par"], 3, bias_row=params[4]["b_pad"])
    return jnp.transpose(y, (0, 3, 1, 2))                   # NCHW, f32


if __name__ == "__main__":
    key = jax.random.PRNGKey(0)
    key, pkey, xkey = jax.random.split(key, 3)
    params = init_params(pkey)
    # Generator input: latent vector as (N, nz, 1, 1), NCHW like PyTorch.
    x = jax.random.normal(xkey, (BATCH, NZ, 1, 1), jnp.float32)

    out = generator_forward(x, params)
    out = jax.block_until_ready(out)

    expected = (BATCH, 3, 64, 64)          # 1 -> 4 -> 8 -> 16 -> 32 -> 64
    assert out.shape == expected, (out.shape, expected)
    assert out.dtype == jnp.float32
    assert bool(jnp.all(jnp.isfinite(out)))
    assert bool(jnp.all(jnp.abs(out) <= 1.0 + 1e-5))        # tanh output range
    print("KERNEL_OK")
</pallas_src>

<mosaic_0001>
module attributes {stable_mosaic.version = 11 : i64} {
  func.func @_mm_stats_kernel(%arg0: i32, %arg1: i32, %arg2: memref<8x16xbf16, #tpu.memory_space<vmem>>, %arg3: memref<16x1024xbf16, #tpu.memory_space<vmem>>, %arg4: memref<8x1024xf32, #tpu.memory_space<vmem>>, %arg5: memref<8x1024xf32, #tpu.memory_space<vmem>>, %arg6: memref<8x1024xf32, #tpu.memory_space<vmem>>, %arg7: memref<8x1024xf32, #tpu.memory_space<vmem>>) attributes {dimension_semantics = [#tpu.dimension_semantics<parallel>, #tpu.dimension_semantics<arbitrary>], iteration_bounds = array<i64: 1, 1>, scalar_prefetch = 0 : i64, scratch_operands = 1 : i64, tpu.core_type = #tpu.core_type<tc>, window_params = [{transform_indices = @transform_0, window_bounds = array<i64: 8, 16>}, {transform_indices = @transform_1, window_bounds = array<i64: 16, 1024>}, {transform_indices = @transform_2, window_bounds = array<i64: 8, 1024>}, {transform_indices = @transform_3, window_bounds = array<i64: 8, 1024>}, {transform_indices = @transform_4, window_bounds = array<i64: 8, 1024>}]} {
    %c0_i32 = arith.constant 0 : i32
    %0 = arith.cmpi eq, %arg1, %c0_i32 : i32
    %1 = arith.extui %0 : i1 to i32
    %c0_i32_0 = arith.constant 0 : i32
    %2 = arith.cmpi ne, %1, %c0_i32_0 : i32
    scf.if %2 {
      %cst_10 = arith.constant 0.000000e+00 : f32
      %12 = vector.broadcast %cst_10 : f32 to vector<8x1024xf32>
      %c0_11 = arith.constant 0 : index
      %c0_12 = arith.constant 0 : index
      %13 = vector.load %arg7[%c0_11, %c0_12] : memref<8x1024xf32, #tpu.memory_space<vmem>>, vector<8x1024xf32>
      tpu.vector_store %arg7[%c0_11, %c0_12], %12 {strides = array<i32>} : memref<8x1024xf32, #tpu.memory_space<vmem>>, vector<8x1024xf32>,
    } else {
    }
    %c0 = arith.constant 0 : index
    %c0_1 = arith.constant 0 : index
    %3 = vector.load %arg7[%c0, %c0_1] : memref<8x1024xf32, #tpu.memory_space<vmem>>, vector<8x1024xf32>
    %c0_2 = arith.constant 0 : index
    %c0_3 = arith.constant 0 : index
    %4 = vector.load %arg2[%c0_2, %c0_3] : memref<8x16xbf16, #tpu.memory_space<vmem>>, vector<8x16xbf16>
    %c0_4 = arith.constant 0 : index
    %c0_5 = arith.constant 0 : index
    %5 = vector.load %arg3[%c0_4, %c0_5] : memref<16x1024xbf16, #tpu.memory_space<vmem>>, vector<16x1024xbf16>
    %cst = arith.constant dense<0.000000e+00> : vector<8x1024xf32>
    %6 = tpu.matmul %4, %5, %cst {dimension_numbers = #tpu.dot_dimension_numbers<[1], [0], [0], [1], [0, 0, 1, 1], [], []>} : vector<8x16xbf16>, vector<16x1024xbf16>, vector<8x1024xf32> -> vector<8x1024xf32>
    %7 = arith.addf %3, %6 : vector<8x1024xf32>
    %c0_6 = arith.constant 0 : index
    %c0_7 = arith.constant 0 : index
    %8 = vector.load %arg7[%c0_6, %c0_7] : memref<8x1024xf32, #tpu.memory_space<vmem>>, vector<8x1024xf32>
    tpu.vector_store %arg7[%c0_6, %c0_7], %7 {strides = array<i32>} : memref<8x1024xf32, #tpu.memory_space<vmem>>, vector<8x1024xf32>,
    %c0_i32_8 = arith.constant 0 : i32
    %9 = arith.cmpi eq, %arg1, %c0_i32_8 : i32
    %10 = arith.extui %9 : i1 to i32
    %c0_i32_9 = arith.constant 0 : i32
    %11 = arith.cmpi ne, %10, %c0_i32_9 : i32
    scf.if %11 {
      %c0_10 = arith.constant 0 : index
      %c0_11 = arith.constant 0 : index
      %12 = vector.load %arg7[%c0_10, %c0_11] : memref<8x1024xf32, #tpu.memory_space<vmem>>, vector<8x1024xf32>
      %c0_12 = arith.constant 0 : index
      %c0_13 = arith.constant 0 : index
      %13 = vector.load %arg4[%c0_12, %c0_13] : memref<8x1024xf32, #tpu.memory_space<vmem>>, vector<8x1024xf32>
      tpu.vector_store %arg4[%c0_12, %c0_13], %12 {strides = array<i32>} : memref<8x1024xf32, #tpu.memory_space<vmem>>, vector<8x1024xf32>,
      %cst_14 = arith.constant dense<0.000000e+00> : vector<1024xf32>
      %14 = vector.multi_reduction <add>, %12, %cst_14 [0] : vector<8x1024xf32> to vector<1024xf32>
      %15 = vector.shape_cast %14 : vector<1024xf32> to vector<1x1024xf32>
      %16 = arith.mulf %12, %12 : vector<8x1024xf32>
      %cst_15 = arith.constant dense<0.000000e+00> : vector<1024xf32>
      %17 = vector.multi_reduction <add>, %16, %cst_15 [0] : vector<8x1024xf32> to vector<1024xf32>
      %18 = vector.shape_cast %17 : vector<1024xf32> to vector<1x1024xf32>
      %19 = vector.shape_cast %15 : vector<1x1024xf32> to vector<1x1024xf32>
      %20 = vector.broadcast %19 : vector<1x1024xf32> to vector<8x1024xf32>
      %c0_16 = arith.constant 0 : index
      %c0_17 = arith.constant 0 : index
      %21 = vector.load %arg5[%c0_16, %c0_17] : memref<8x1024xf32, #tpu.memory_space<vmem>>, vector<8x1024xf32>
      tpu.vector_store %arg5[%c0_16, %c0_17], %20 {strides = array<i32>} : memref<8x1024xf32, #tpu.memory_space<vmem>>, vector<8x1024xf32>,
      %22 = vector.shape_cast %18 : vector<1x1024xf32> to vector<1x1024xf32>
      %23 = vector.broadcast %22 : vector<1x1024xf32> to vector<8x1024xf32>
      %c0_18 = arith.constant 0 : index
      %c0_19 = arith.constant 0 : index
      %24 = vector.load %arg6[%c0_18, %c0_19] : memref<8x1024xf32, #tpu.memory_space<vmem>>, vector<8x1024xf32>
      tpu.vector_store %arg6[%c0_18, %c0_19], %23 {strides = array<i32>} : memref<8x1024xf32, #tpu.memory_space<vmem>>, vector<8x1024xf32>,
    } else {
    }
    return
  }
  func.func @transform_0(%arg0: i32, %arg1: i32) -> (i32, i32) {
    %c0_i32 = arith.constant 0 : i32
    return %arg0, %arg1 : i32, i32
  }
  func.func @transform_1(%arg0: i32, %arg1: i32) -> (i32, i32) {
    %c0_i32 = arith.constant 0 : i32
    %c0_i32_0 = arith.constant 0 : i32
    return %arg1, %c0_i32 : i32, i32
  }
  func.func @transform_2(%arg0: i32, %arg1: i32) -> (i32, i32) {
    %c0_i32 = arith.constant 0 : i32
    %c0_i32_0 = arith.constant 0 : i32
    return %arg0, %c0_i32 : i32, i32
  }
  func.func @transform_3(%arg0: i32, %arg1: i32) -> (i32, i32) {
    %c0_i32 = arith.constant 0 : i32
    %c0_i32_0 = arith.constant 0 : i32
    return %arg0, %c0_i32 : i32, i32
  }
  func.func @transform_4(%arg0: i32, %arg1: i32) -> (i32, i32) {
    %c0_i32 = arith.constant 0 : i32
    %c0_i32_0 = arith.constant 0 : i32
    return %arg0, %c0_i32 : i32, i32
  }
}

module attributes {stable_mosaic.version = 11 : i64} {
  func.func @_bn_relu_kernel(%arg0: i32, %arg1: memref<16x128xf32, #tpu.memory_space<vmem>>, %arg2: memref<1x128xf32, #tpu.memory_space<vmem>>, %arg3: memref<1x128xf32, #tpu.memory_space<vmem>>, %arg4: memref<1x128xf32, #tpu.memory_space<vmem>>, %arg5: memref<1x128xf32, #tpu.memory_space<vmem>>, %arg6: memref<16x128xbf16, #tpu.memory_space<vmem>>) attributes {dimension_semantics = [#tpu.dimension_semantics<parallel>], iteration_bounds = array<i64: 1>, scalar_prefetch = 0 : i64, scratch_operands = 0 : i64, tpu.core_type = #tpu.core_type<tc>, window_params = [{transform_indices = @transform_0, window_bounds = array<i64: 16, 128>}, {pipeline_mode = #tpu.pipeline_mode<synchronous>, transform_indices = @transform_1, window_bounds = array<i64: 1, 128>}, {pipeline_mode = #tpu.pipeline_mode<synchronous>, transform_indices = @transform_2, window_bounds = array<i64: 1, 128>}, {pipeline_mode = #tpu.pipeline_mode<synchronous>, transform_indices = @transform_3, window_bounds = array<i64: 1, 128>}, {pipeline_mode = #tpu.pipeline_mode<synchronous>, transform_indices = @transform_4, window_bounds = array<i64: 1, 128>}, {transform_indices = @transform_5, window_bounds = array<i64: 16, 128>}]} {
    %c0 = arith.constant 0 : index
    %c0_0 = arith.constant 0 : index
    %0 = vector.load %arg3[%c0, %c0_0] : memref<1x128xf32, #tpu.memory_space<vmem>>, vector<1x128xf32>
    %cst = arith.constant 9.99999974E-6 : f32
    %1 = vector.broadcast %cst : f32 to vector<1x128xf32>
    %2 = arith.addf %0, %1 : vector<1x128xf32>
    %3 = math.rsqrt %2 : vector<1x128xf32>
    %c0_1 = arith.constant 0 : index
    %c0_2 = arith.constant 0 : index
    %4 = vector.load %arg1[%c0_1, %c0_2] : memref<16x128xf32, #tpu.memory_space<vmem>>, vector<16x128xf32>
    %c0_3 = arith.constant 0 : index
    %c0_4 = arith.constant 0 : index
    %5 = vector.load %arg2[%c0_3, %c0_4] : memref<1x128xf32, #tpu.memory_space<vmem>>, vector<1x128xf32>
    %6 = vector.broadcast %5 : vector<1x128xf32> to vector<16x128xf32>
    %7 = arith.subf %4, %6 : vector<16x128xf32>
    %8 = vector.broadcast %3 : vector<1x128xf32> to vector<16x128xf32>
    %9 = arith.mulf %7, %8 : vector<16x128xf32>
    %c0_5 = arith.constant 0 : index
    %c0_6 = arith.constant 0 : index
    %10 = vector.load %arg4[%c0_5, %c0_6] : memref<1x128xf32, #tpu.memory_space<vmem>>, vector<1x128xf32>
    %11 = vector.broadcast %10 : vector<1x128xf32> to vector<16x128xf32>
    %12 = arith.mulf %9, %11 : vector<16x128xf32>
    %c0_7 = arith.constant 0 : index
    %c0_8 = arith.constant 0 : index
    %13 = vector.load %arg5[%c0_7, %c0_8] : memref<1x128xf32, #tpu.memory_space<vmem>>, vector<1x128xf32>
    %14 = vector.broadcast %13 : vector<1x128xf32> to vector<16x128xf32>
    %15 = arith.addf %12, %14 : vector<16x128xf32>
    %cst_9 = arith.constant 0.000000e+00 : f32
    %16 = vector.broadcast %cst_9 : f32 to vector<16x128xf32>
    %17 = arith.maximumf %15, %16 : vector<16x128xf32>
    %18 = arith.truncf %17 : vector<16x128xf32> to vector<16x128xbf16>
    %c0_10 = arith.constant 0 : index
    %c0_11 = arith.constant 0 : index
    %19 = vector.load %arg6[%c0_10, %c0_11] : memref<16x128xbf16, #tpu.memory_space<vmem>>, vector<16x128xbf16>
    tpu.vector_store %arg6[%c0_10, %c0_11], %18 {strides = array<i32>} : memref<16x128xbf16, #tpu.memory_space<vmem>>, vector<16x128xbf16>,
    return
  }
  func.func @transform_0(%arg0: i32) -> (i32, i32) {
    %c0_i32 = arith.constant 0 : i32
    %c0_i32_0 = arith.constant 0 : i32
    return %arg0, %c0_i32 : i32, i32
  }
  func.func @transform_1(%arg0: i32) -> (i32, i32) {
    %c0_i32 = arith.constant 0 : i32
    %c0_i32_0 = arith.constant 0 : i32
    %c0_i32_1 = arith.constant 0 : i32
    return %c0_i32, %c0_i32_0 : i32, i32
  }
  func.func @transform_2(%arg0: i32) -> (i32, i32) {
    %c0_i32 = arith.constant 0 : i32
    %c0_i32_0 = arith.constant 0 : i32
    %c0_i32_1 = arith.constant 0 : i32
    return %c0_i32, %c0_i32_0 : i32, i32
  }
  func.func @transform_3(%arg0: i32) -> (i32, i32) {
    %c0_i32 = arith.constant 0 : i32
    %c0_i32_0 = arith.constant 0 : i32
    %c0_i32_1 = arith.constant 0 : i32
    return %c0_i32, %c0_i32_0 : i32, i32
  }
  func.func @transform_4(%arg0: i32) -> (i32, i32) {
    %c0_i32 = arith.constant 0 : i32
    %c0_i32_0 = arith.constant 0 : i32
    %c0_i32_1 = arith.constant 0 : i32
    return %c0_i32, %c0_i32_0 : i32, i32
  }
  func.func @transform_5(%arg0: i32) -> (i32, i32) {
    %c0_i32 = arith.constant 0 : i32
    %c0_i32_0 = arith.constant 0 : i32
    return %arg0, %c0_i32 : i32, i32
  }
}

module attributes {stable_mosaic.version = 11 : i64} {
  func.func @_mm_stats_kernel(%arg0: i32, %arg1: i32, %arg2: memref<32x256xbf16, #tpu.memory_space<vmem>>, %arg3: memref<256x32xbf16, #tpu.memory_space<vmem>>, %arg4: memref<32x32xf32, #tpu.memory_space<vmem>>, %arg5: memref<8x32xf32, #tpu.memory_space<vmem>>, %arg6: memref<8x32xf32, #tpu.memory_space<vmem>>, %arg7: memref<32x32xf32, #tpu.memory_space<vmem>>) attributes {dimension_semantics = [#tpu.dimension_semantics<parallel>, #tpu.dimension_semantics<arbitrary>], iteration_bounds = array<i64: 1, 1>, scalar_prefetch = 0 : i64, scratch_operands = 1 : i64, tpu.core_type = #tpu.core_type<tc>, window_params = [{transform_indices = @transform_0, window_bounds = array<i64: 32, 256>}, {transform_indices = @transform_1, window_bounds = array<i64: 256, 32>}, {transform_indices = @transform_2, window_bounds = array<i64: 32, 32>}, {transform_indices = @transform_3, window_bounds = array<i64: 8, 32>}, {transform_indices = @transform_4, window_bounds = array<i64: 8, 32>}]} {
    %c0_i32 = arith.constant 0 : i32
    %0 = arith.cmpi eq, %arg1, %c0_i32 : i32
    %1 = arith.extui %0 : i1 to i32
    %c0_i32_0 = arith.constant 0 : i32
    %2 = arith.cmpi ne, %1, %c0_i32_0 : i32
    scf.if %2 {
      %cst_10 = arith.constant 0.000000e+00 : f32
      %12 = vector.broadcast %cst_10 : f32 to vector<32x32xf32>
      %c0_11 = arith.constant 0 : index
      %c0_12 = arith.constant 0 : index
      %13 = vector.load %arg7[%c0_11, %c0_12] : memref<32x32xf32, #tpu.memory_space<vmem>>, vector<32x32xf32>
      tpu.vector_store %arg7[%c0_11, %c0_12], %12 {strides = array<i32>} : memref<32x32xf32, #tpu.memory_space<vmem>>, vector<32x32xf32>,
    } else {
    }
    %c0 = arith.constant 0 : index
    %c0_1 = arith.constant 0 : index
    %3 = vector.load %arg7[%c0, %c0_1] : memref<32x32xf32, #tpu.memory_space<vmem>>, vector<32x32xf32>
    %c0_2 = arith.constant 0 : index
    %c0_3 = arith.constant 0 : index
    %4 = vector.load %arg2[%c0_2, %c0_3] : memref<32x256xbf16, #tpu.memory_space<vmem>>, vector<32x256xbf16>
    %c0_4 = arith.constant 0 : index
    %c0_5 = arith.constant 0 : index
    %5 = vector.load %arg3[%c0_4, %c0_5] : memref<256x32xbf16, #tpu.memory_space<vmem>>, vector<256x32xbf16>
    %cst = arith.constant dense<0.000000e+00> : vector<32x32xf32>
    %6 = tpu.matmul %4, %5, %cst {dimension_numbers = #tpu.dot_dimension_numbers<[1], [0], [0], [1], [0, 0, 1, 1], [], []>} : vector<32x256xbf16>, vector<256x32xbf16>, vector<32x32xf32> -> vector<32x32xf32>
    %7 = arith.addf %3, %6 : vector<32x32xf32>
    %c0_6 = arith.constant 0 : index
    %c0_7 = arith.constant 0 : index
    %8 = vector.load %arg7[%c0_6, %c0_7] : memref<32x32xf32, #tpu.memory_space<vmem>>, vector<32x32xf32>
    tpu.vector_store %arg7[%c0_6, %c0_7], %7 {strides = array<i32>} : memref<32x32xf32, #tpu.memory_space<vmem>>, vector<32x32xf32>,
    %c0_i32_8 = arith.constant 0 : i32
    %9 = arith.cmpi eq, %arg1, %c0_i32_8 : i32
    %10 = arith.extui %9 : i1 to i32
    %c0_i32_9 = arith.constant 0 : i32
    %11 = arith.cmpi ne, %10, %c0_i32_9 : i32
    scf.if %11 {
      %c0_10 = arith.constant 0 : index
      %c0_11 = arith.constant 0 : index
      %12 = vector.load %arg7[%c0_10, %c0_11] : memref<32x32xf32, #tpu.memory_space<vmem>>, vector<32x32xf32>
      %c0_12 = arith.constant 0 : index
      %c0_13 = arith.constant 0 : index
      %13 = vector.load %arg4[%c0_12, %c0_13] : memref<32x32xf32, #tpu.memory_space<vmem>>, vector<32x32xf32>
      tpu.vector_store %arg4[%c0_12, %c0_13], %12 {strides = array<i32>} : memref<32x32xf32, #tpu.memory_space<vmem>>, vector<32x32xf32>,
      %cst_14 = arith.constant dense<0.000000e+00> : vector<32xf32>
      %14 = vector.multi_reduction <add>, %12, %cst_14 [0] : vector<32x32xf32> to vector<32xf32>
      %15 = vector.shape_cast %14 : vector<32xf32> to vector<1x32xf32>
      %16 = arith.mulf %12, %12 : vector<32x32xf32>
      %cst_15 = arith.constant dense<0.000000e+00> : vector<32xf32>
      %17 = vector.multi_reduction <add>, %16, %cst_15 [0] : vector<32x32xf32> to vector<32xf32>
      %18 = vector.shape_cast %17 : vector<32xf32> to vector<1x32xf32>
      %19 = vector.shape_cast %15 : vector<1x32xf32> to vector<1x32xf32>
      %20 = vector.broadcast %19 : vector<1x32xf32> to vector<8x32xf32>
      %c0_16 = arith.constant 0 : index
      %c0_17 = arith.constant 0 : index
      %21 = vector.load %arg5[%c0_16, %c0_17] : memref<8x32xf32, #tpu.memory_space<vmem>>, vector<8x32xf32>
      tpu.vector_store %arg5[%c0_16, %c0_17], %20 {strides = array<i32>} : memref<8x32xf32, #tpu.memory_space<vmem>>, vector<8x32xf32>,
      %22 = vector.shape_cast %18 : vector<1x32xf32> to vector<1x32xf32>
      %23 = vector.broadcast %22 : vector<1x32xf32> to vector<8x32xf32>
      %c0_18 = arith.constant 0 : index
      %c0_19 = arith.constant 0 : index
      %24 = vector.load %arg6[%c0_18, %c0_19] : memref<8x32xf32, #tpu.memory_space<vmem>>, vector<8x32xf32>
      tpu.vector_store %arg6[%c0_18, %c0_19], %23 {strides = array<i32>} : memref<8x32xf32, #tpu.memory_space<vmem>>, vector<8x32xf32>,
    } else {
    }
    return
  }
  func.func @transform_0(%arg0: i32, %arg1: i32) -> (i32, i32) {
    %c0_i32 = arith.constant 0 : i32
    return %arg0, %arg1 : i32, i32
  }
  func.func @transform_1(%arg0: i32, %arg1: i32) -> (i32, i32) {
    %c0_i32 = arith.constant 0 : i32
    %c0_i32_0 = arith.constant 0 : i32
    return %arg1, %c0_i32 : i32, i32
  }
  func.func @transform_2(%arg0: i32, %arg1: i32) -> (i32, i32) {
    %c0_i32 = arith.constant 0 : i32
    %c0_i32_0 = arith.constant 0 : i32
    return %arg0, %c0_i32 : i32, i32
  }
  func.func @transform_3(%arg0: i32, %arg1: i32) -> (i32, i32) {
    %c0_i32 = arith.constant 0 : i32
    %c0_i32_0 = arith.constant 0 : i32
    return %arg0, %c0_i32 : i32, i32
  }
  func.func @transform_4(%arg0: i32, %arg1: i32) -> (i32, i32) {
    %c0_i32 = arith.constant 0 : i32
    %c0_i32_0 = arith.constant 0 : i32
    return %arg0, %c0_i32 : i32, i32
  }
}

module attributes {stable_mosaic.version = 11 : i64} {
  func.func @_bn_relu_kernel(%arg0: i32, %arg1: memref<32x128xf32, #tpu.memory_space<vmem>>, %arg2: memref<1x128xf32, #tpu.memory_space<vmem>>, %arg3: memref<1x128xf32, #tpu.memory_space<vmem>>, %arg4: memref<1x128xf32, #tpu.memory_space<vmem>>, %arg5: memref<1x128xf32, #tpu.memory_space<vmem>>, %arg6: memref<32x128xbf16, #tpu.memory_space<vmem>>) attributes {dimension_semantics = [#tpu.dimension_semantics<parallel>], iteration_bounds = array<i64: 1>, scalar_prefetch = 0 : i64, scratch_operands = 0 : i64, tpu.core_type = #tpu.core_type<tc>, window_params = [{transform_indices = @transform_0, window_bounds = array<i64: 32, 128>}, {pipeline_mode = #tpu.pipeline_mode<synchronous>, transform_indices = @transform_1, window_bounds = array<i64: 1, 128>}, {pipeline_mode = #tpu.pipeline_mode<synchronous>, transform_indices = @transform_2, window_bounds = array<i64: 1, 128>}, {pipeline_mode = #tpu.pipeline_mode<synchronous>, transform_indices = @transform_3, window_bounds = array<i64: 1, 128>}, {pipeline_mode = #tpu.pipeline_mode<synchronous>, transform_indices = @transform_4, window_bounds = array<i64: 1, 128>}, {transform_indices = @transform_5, window_bounds = array<i64: 32, 128>}]} {
    %c0 = arith.constant 0 : index
    %c0_0 = arith.constant 0 : index
    %0 = vector.load %arg3[%c0, %c0_0] : memref<1x128xf32, #tpu.memory_space<vmem>>, vector<1x128xf32>
    %cst = arith.constant 9.99999974E-6 : f32
    %1 = vector.broadcast %cst : f32 to vector<1x128xf32>
    %2 = arith.addf %0, %1 : vector<1x128xf32>
    %3 = math.rsqrt %2 : vector<1x128xf32>
    %c0_1 = arith.constant 0 : index
    %c0_2 = arith.constant 0 : index
    %4 = vector.load %arg1[%c0_1, %c0_2] : memref<32x128xf32, #tpu.memory_space<vmem>>, vector<32x128xf32>
    %c0_3 = arith.constant 0 : index
    %c0_4 = arith.constant 0 : index
    %5 = vector.load %arg2[%c0_3, %c0_4] : memref<1x128xf32, #tpu.memory_space<vmem>>, vector<1x128xf32>
    %6 = vector.broadcast %5 : vector<1x128xf32> to vector<32x128xf32>
    %7 = arith.subf %4, %6 : vector<32x128xf32>
    %8 = vector.broadcast %3 : vector<1x128xf32> to vector<32x128xf32>
    %9 = arith.mulf %7, %8 : vector<32x128xf32>
    %c0_5 = arith.constant 0 : index
    %c0_6 = arith.constant 0 : index
    %10 = vector.load %arg4[%c0_5, %c0_6] : memref<1x128xf32, #tpu.memory_space<vmem>>, vector<1x128xf32>
    %11 = vector.broadcast %10 : vector<1x128xf32> to vector<32x128xf32>
    %12 = arith.mulf %9, %11 : vector<32x128xf32>
    %c0_7 = arith.constant 0 : index
    %c0_8 = arith.constant 0 : index
    %13 = vector.load %arg5[%c0_7, %c0_8] : memref<1x128xf32, #tpu.memory_space<vmem>>, vector<1x128xf32>
    %14 = vector.broadcast %13 : vector<1x128xf32> to vector<32x128xf32>
    %15 = arith.addf %12, %14 : vector<32x128xf32>
    %cst_9 = arith.constant 0.000000e+00 : f32
    %16 = vector.broadcast %cst_9 : f32 to vector<32x128xf32>
    %17 = arith.maximumf %15, %16 : vector<32x128xf32>
    %18 = arith.truncf %17 : vector<32x128xf32> to vector<32x128xbf16>
    %c0_10 = arith.constant 0 : index
    %c0_11 = arith.constant 0 : index
    %19 = vector.load %arg6[%c0_10, %c0_11] : memref<32x128xbf16, #tpu.memory_space<vmem>>, vector<32x128xbf16>
    tpu.vector_store %arg6[%c0_10, %c0_11], %18 {strides = array<i32>} : memref<32x128xbf16, #tpu.memory_space<vmem>>, vector<32x128xbf16>,
    return
  }
  func.func @transform_0(%arg0: i32) -> (i32, i32) {
    %c0_i32 = arith.constant 0 : i32
    %c0_i32_0 = arith.constant 0 : i32
    return %arg0, %c0_i32 : i32, i32
  }
  func.func @transform_1(%arg0: i32) -> (i32, i32) {
    %c0_i32 = arith.constant 0 : i32
    %c0_i32_0 = arith.constant 0 : i32
    %c0_i32_1 = arith.constant 0 : i32
    return %c0_i32, %c0_i32_0 : i32, i32
  }
  func.func @transform_2(%arg0: i32) -> (i32, i32) {
    %c0_i32 = arith.constant 0 : i32
    %c0_i32_0 = arith.constant 0 : i32
    %c0_i32_1 = arith.constant 0 : i32
    return %c0_i32, %c0_i32_0 : i32, i32
  }
  func.func @transform_3(%arg0: i32) -> (i32, i32) {
    %c0_i32 = arith.constant 0 : i32
    %c0_i32_0 = arith.constant 0 : i32
    %c0_i32_1 = arith.constant 0 : i32
    return %c0_i32, %c0_i32_0 : i32, i32
  }
  func.func @transform_4(%arg0: i32) -> (i32, i32) {
    %c0_i32 = arith.constant 0 : i32
    %c0_i32_0 = arith.constant 0 : i32
    %c0_i32_1 = arith.constant 0 : i32
    return %c0_i32, %c0_i32_0 : i32, i32
  }
  func.func @transform_5(%arg0: i32) -> (i32, i32) {
    %c0_i32 = arith.constant 0 : i32
    %c0_i32_0 = arith.constant 0 : i32
    return %arg0, %c0_i32 : i32, i32
  }
}

module attributes {stable_mosaic.version = 11 : i64} {
  func.func @_mm_stats_kernel(%arg0: i32, %arg1: i32, %arg2: memref<128x128xbf16, #tpu.memory_space<vmem>>, %arg3: memref<128x16xbf16, #tpu.memory_space<vmem>>, %arg4: memref<128x16xf32, #tpu.memory_space<vmem>>, %arg5: memref<8x16xf32, #tpu.memory_space<vmem>>, %arg6: memref<8x16xf32, #tpu.memory_space<vmem>>, %arg7: memref<128x16xf32, #tpu.memory_space<vmem>>) attributes {dimension_semantics = [#tpu.dimension_semantics<parallel>, #tpu.dimension_semantics<arbitrary>], iteration_bounds = array<i64: 1, 1>, scalar_prefetch = 0 : i64, scratch_operands = 1 : i64, tpu.core_type = #tpu.core_type<tc>, window_params = [{transform_indices = @transform_0, window_bounds = array<i64: 128, 128>}, {transform_indices = @transform_1, window_bounds = array<i64: 128, 16>}, {transform_indices = @transform_2, window_bounds = array<i64: 128, 16>}, {transform_indices = @transform_3, window_bounds = array<i64: 8, 16>}, {transform_indices = @transform_4, window_bounds = array<i64: 8, 16>}]} {
    %c0_i32 = arith.constant 0 : i32
    %0 = arith.cmpi eq, %arg1, %c0_i32 : i32
    %1 = arith.extui %0 : i1 to i32
    %c0_i32_0 = arith.constant 0 : i32
    %2 = arith.cmpi ne, %1, %c0_i32_0 : i32
    scf.if %2 {
      %cst_10 = arith.constant 0.000000e+00 : f32
      %12 = vector.broadcast %cst_10 : f32 to vector<128x16xf32>
      %c0_11 = arith.constant 0 : index
      %c0_12 = arith.constant 0 : index
      %13 = vector.load %arg7[%c0_11, %c0_12] : memref<128x16xf32, #tpu.memory_space<vmem>>, vector<128x16xf32>
      tpu.vector_store %arg7[%c0_11, %c0_12], %12 {strides = array<i32>} : memref<128x16xf32, #tpu.memory_space<vmem>>, vector<128x16xf32>,
    } else {
    }
    %c0 = arith.constant 0 : index
    %c0_1 = arith.constant 0 : index
    %3 = vector.load %arg7[%c0, %c0_1] : memref<128x16xf32, #tpu.memory_space<vmem>>, vector<128x16xf32>
    %c0_2 = arith.constant 0 : index
    %c0_3 = arith.constant 0 : index
    %4 = vector.load %arg2[%c0_2, %c0_3] : memref<128x128xbf16, #tpu.memory_space<vmem>>, vector<128x128xbf16>
    %c0_4 = arith.constant 0 : index
    %c0_5 = arith.constant 0 : index
    %5 = vector.load %arg3[%c0_4, %c0_5] : memref<128x16xbf16, #tpu.memory_space<vmem>>, vector<128x16xbf16>
    %cst = arith.constant dense<0.000000e+00> : vector<128x16xf32>
    %6 = tpu.matmul %4, %5, %cst {dimension_numbers = #tpu.dot_dimension_numbers<[1], [0], [0], [1], [0, 0, 1, 1], [], []>} : vector<128x128xbf16>, vector<128x16xbf16>, vector<128x16xf32> -> vector<128x16xf32>
    %7 = arith.addf %3, %6 : vector<128x16xf32>
    %c0_6 = arith.constant 0 : index
    %c0_7 = arith.constant 0 : index
    %8 = vector.load %arg7[%c0_6, %c0_7] : memref<128x16xf32, #tpu.memory_space<vmem>>, vector<128x16xf32>
    tpu.vector_store %arg7[%c0_6, %c0_7], %7 {strides = array<i32>} : memref<128x16xf32, #tpu.memory_space<vmem>>, vector<128x16xf32>,
    %c0_i32_8 = arith.constant 0 : i32
    %9 = arith.cmpi eq, %arg1, %c0_i32_8 : i32
    %10 = arith.extui %9 : i1 to i32
    %c0_i32_9 = arith.constant 0 : i32
    %11 = arith.cmpi ne, %10, %c0_i32_9 : i32
    scf.if %11 {
      %c0_10 = arith.constant 0 : index
      %c0_11 = arith.constant 0 : index
      %12 = vector.load %arg7[%c0_10, %c0_11] : memref<128x16xf32, #tpu.memory_space<vmem>>, vector<128x16xf32>
      %c0_12 = arith.constant 0 : index
      %c0_13 = arith.constant 0 : index
      %13 = vector.load %arg4[%c0_12, %c0_13] : memref<128x16xf32, #tpu.memory_space<vmem>>, vector<128x16xf32>
      tpu.vector_store %arg4[%c0_12, %c0_13], %12 {strides = array<i32>} : memref<128x16xf32, #tpu.memory_space<vmem>>, vector<128x16xf32>,
      %cst_14 = arith.constant dense<0.000000e+00> : vector<16xf32>
      %14 = vector.multi_reduction <add>, %12, %cst_14 [0] : vector<128x16xf32> to vector<16xf32>
      %15 = vector.shape_cast %14 : vector<16xf32> to vector<1x16xf32>
      %16 = arith.mulf %12, %12 : vector<128x16xf32>
      %cst_15 = arith.constant dense<0.000000e+00> : vector<16xf32>
      %17 = vector.multi_reduction <add>, %16, %cst_15 [0] : vector<128x16xf32> to vector<16xf32>
      %18 = vector.shape_cast %17 : vector<16xf32> to vector<1x16xf32>
      %19 = vector.shape_cast %15 : vector<1x16xf32> to vector<1x16xf32>
      %20 = vector.broadcast %19 : vector<1x16xf32> to vector<8x16xf32>
      %c0_16 = arith.constant 0 : index
      %c0_17 = arith.constant 0 : index
      %21 = vector.load %arg5[%c0_16, %c0_17] : memref<8x16xf32, #tpu.memory_space<vmem>>, vector<8x16xf32>
      tpu.vector_store %arg5[%c0_16, %c0_17], %20 {strides = array<i32>} : memref<8x16xf32, #tpu.memory_space<vmem>>, vector<8x16xf32>,
      %22 = vector.shape_cast %18 : vector<1x16xf32> to vector<1x16xf32>
      %23 = vector.broadcast %22 : vector<1x16xf32> to vector<8x16xf32>
      %c0_18 = arith.constant 0 : index
      %c0_19 = arith.constant 0 : index
      %24 = vector.load %arg6[%c0_18, %c0_19] : memref<8x16xf32, #tpu.memory_space<vmem>>, vector<8x16xf32>
      tpu.vector_store %arg6[%c0_18, %c0_19], %23 {strides = array<i32>} : memref<8x16xf32, #tpu.memory_space<vmem>>, vector<8x16xf32>,
    } else {
    }
    return
  }
  func.func @transform_0(%arg0: i32, %arg1: i32) -> (i32, i32) {
    %c0_i32 = arith.constant 0 : i32
    return %arg0, %arg1 : i32, i32
  }
  func.func @transform_1(%arg0: i32, %arg1: i32) -> (i32, i32) {
    %c0_i32 = arith.constant 0 : i32
    %c0_i32_0 = arith.constant 0 : i32
    return %arg1, %c0_i32 : i32, i32
  }
  func.func @transform_2(%arg0: i32, %arg1: i32) -> (i32, i32) {
    %c0_i32 = arith.constant 0 : i32
    %c0_i32_0 = arith.constant 0 : i32
    return %arg0, %c0_i32 : i32, i32
  }
  func.func @transform_3(%arg0: i32, %arg1: i32) -> (i32, i32) {
    %c0_i32 = arith.constant 0 : i32
    %c0_i32_0 = arith.constant 0 : i32
    return %arg0, %c0_i32 : i32, i32
  }
  func.func @transform_4(%arg0: i32, %arg1: i32) -> (i32, i32) {
    %c0_i32 = arith.constant 0 : i32
    %c0_i32_0 = arith.constant 0 : i32
    return %arg0, %c0_i32 : i32, i32
  }
}

module attributes {stable_mosaic.version = 11 : i64} {
  func.func @_bn_relu_kernel(%arg0: i32, %arg1: memref<64x128xf32, #tpu.memory_space<vmem>>, %arg2: memref<1x128xf32, #tpu.memory_space<vmem>>, %arg3: memref<1x128xf32, #tpu.memory_space<vmem>>, %arg4: memref<1x128xf32, #tpu.memory_space<vmem>>, %arg5: memref<1x128xf32, #tpu.memory_space<vmem>>, %arg6: memref<64x128xbf16, #tpu.memory_space<vmem>>) attributes {dimension_semantics = [#tpu.dimension_semantics<parallel>], iteration_bounds = array<i64: 1>, scalar_prefetch = 0 : i64, scratch_operands = 0 : i64, tpu.core_type = #tpu.core_type<tc>, window_params = [{transform_indices = @transform_0, window_bounds = array<i64: 64, 128>}, {pipeline_mode = #tpu.pipeline_mode<synchronous>, transform_indices = @transform_1, window_bounds = array<i64: 1, 128>}, {pipeline_mode = #tpu.pipeline_mode<synchronous>, transform_indices = @transform_2, window_bounds = array<i64: 1, 128>}, {pipeline_mode = #tpu.pipeline_mode<synchronous>, transform_indices = @transform_3, window_bounds = array<i64: 1, 128>}, {pipeline_mode = #tpu.pipeline_mode<synchronous>, transform_indices = @transform_4, window_bounds = array<i64: 1, 128>}, {transform_indices = @transform_5, window_bounds = array<i64: 64, 128>}]} {
    %c0 = arith.constant 0 : index
    %c0_0 = arith.constant 0 : index
    %0 = vector.load %arg3[%c0, %c0_0] : memref<1x128xf32, #tpu.memory_space<vmem>>, vector<1x128xf32>
    %cst = arith.constant 9.99999974E-6 : f32
    %1 = vector.broadcast %cst : f32 to vector<1x128xf32>
    %2 = arith.addf %0, %1 : vector<1x128xf32>
    %3 = math.rsqrt %2 : vector<1x128xf32>
    %c0_1 = arith.constant 0 : index
    %c0_2 = arith.constant 0 : index
    %4 = vector.load %arg1[%c0_1, %c0_2] : memref<64x128xf32, #tpu.memory_space<vmem>>, vector<64x128xf32>
    %c0_3 = arith.constant 0 : index
    %c0_4 = arith.constant 0 : index
    %5 = vector.load %arg2[%c0_3, %c0_4] : memref<1x128xf32, #tpu.memory_space<vmem>>, vector<1x128xf32>
    %6 = vector.broadcast %5 : vector<1x128xf32> to vector<64x128xf32>
    %7 = arith.subf %4, %6 : vector<64x128xf32>
    %8 = vector.broadcast %3 : vector<1x128xf32> to vector<64x128xf32>
    %9 = arith.mulf %7, %8 : vector<64x128xf32>
    %c0_5 = arith.constant 0 : index
    %c0_6 = arith.constant 0 : index
    %10 = vector.load %arg4[%c0_5, %c0_6] : memref<1x128xf32, #tpu.memory_space<vmem>>, vector<1x128xf32>
    %11 = vector.broadcast %10 : vector<1x128xf32> to vector<64x128xf32>
    %12 = arith.mulf %9, %11 : vector<64x128xf32>
    %c0_7 = arith.constant 0 : index
    %c0_8 = arith.constant 0 : index
    %13 = vector.load %arg5[%c0_7, %c0_8] : memref<1x128xf32, #tpu.memory_space<vmem>>, vector<1x128xf32>
    %14 = vector.broadcast %13 : vector<1x128xf32> to vector<64x128xf32>
    %15 = arith.addf %12, %14 : vector<64x128xf32>
    %cst_9 = arith.constant 0.000000e+00 : f32
    %16 = vector.broadcast %cst_9 : f32 to vector<64x128xf32>
    %17 = arith.maximumf %15, %16 : vector<64x128xf32>
    %18 = arith.truncf %17 : vector<64x128xf32> to vector<64x128xbf16>
    %c0_10 = arith.constant 0 : index
    %c0_11 = arith.constant 0 : index
    %19 = vector.load %arg6[%c0_10, %c0_11] : memref<64x128xbf16, #tpu.memory_space<vmem>>, vector<64x128xbf16>
    tpu.vector_store %arg6[%c0_10, %c0_11], %18 {strides = array<i32>} : memref<64x128xbf16, #tpu.memory_space<vmem>>, vector<64x128xbf16>,
    return
  }
  func.func @transform_0(%arg0: i32) -> (i32, i32) {
    %c0_i32 = arith.constant 0 : i32
    %c0_i32_0 = arith.constant 0 : i32
    return %arg0, %c0_i32 : i32, i32
  }
  func.func @transform_1(%arg0: i32) -> (i32, i32) {
    %c0_i32 = arith.constant 0 : i32
    %c0_i32_0 = arith.constant 0 : i32
    %c0_i32_1 = arith.constant 0 : i32
    return %c0_i32, %c0_i32_0 : i32, i32
  }
  func.func @transform_2(%arg0: i32) -> (i32, i32) {
    %c0_i32 = arith.constant 0 : i32
    %c0_i32_0 = arith.constant 0 : i32
    %c0_i32_1 = arith.constant 0 : i32
    return %c0_i32, %c0_i32_0 : i32, i32
  }
  func.func @transform_3(%arg0: i32) -> (i32, i32) {
    %c0_i32 = arith.constant 0 : i32
    %c0_i32_0 = arith.constant 0 : i32
    %c0_i32_1 = arith.constant 0 : i32
    return %c0_i32, %c0_i32_0 : i32, i32
  }
  func.func @transform_4(%arg0: i32) -> (i32, i32) {
    %c0_i32 = arith.constant 0 : i32
    %c0_i32_0 = arith.constant 0 : i32
    %c0_i32_1 = arith.constant 0 : i32
    return %c0_i32, %c0_i32_0 : i32, i32
  }
  func.func @transform_5(%arg0: i32) -> (i32, i32) {
    %c0_i32 = arith.constant 0 : i32
    %c0_i32_0 = arith.constant 0 : i32
    return %arg0, %c0_i32 : i32, i32
  }
}

module attributes {stable_mosaic.version = 11 : i64} {
  func.func @_mm_stats_kernel(%arg0: i32, %arg1: i32, %arg2: memref<512x64xbf16, #tpu.memory_space<vmem>>, %arg3: memref<64x8xbf16, #tpu.memory_space<vmem>>, %arg4: memref<512x8xf32, #tpu.memory_space<vmem>>, %arg5: memref<8x8xf32, #tpu.memory_space<vmem>>, %arg6: memref<8x8xf32, #tpu.memory_space<vmem>>, %arg7: memref<512x8xf32, #tpu.memory_space<vmem>>) attributes {dimension_semantics = [#tpu.dimension_semantics<parallel>, #tpu.dimension_semantics<arbitrary>], iteration_bounds = array<i64: 1, 1>, scalar_prefetch = 0 : i64, scratch_operands = 1 : i64, tpu.core_type = #tpu.core_type<tc>, window_params = [{transform_indices = @transform_0, window_bounds = array<i64: 512, 64>}, {transform_indices = @transform_1, window_bounds = array<i64: 64, 8>}, {transform_indices = @transform_2, window_bounds = array<i64: 512, 8>}, {transform_indices = @transform_3, window_bounds = array<i64: 8, 8>}, {transform_indices = @transform_4, window_bounds = array<i64: 8, 8>}]} {
    %c0_i32 = arith.constant 0 : i32
    %0 = arith.cmpi eq, %arg1, %c0_i32 : i32
    %1 = arith.extui %0 : i1 to i32
    %c0_i32_0 = arith.constant 0 : i32
    %2 = arith.cmpi ne, %1, %c0_i32_0 : i32
    scf.if %2 {
      %cst_10 = arith.constant 0.000000e+00 : f32
      %12 = vector.broadcast %cst_10 : f32 to vector<512x8xf32>
      %c0_11 = arith.constant 0 : index
      %c0_12 = arith.constant 0 : index
      %13 = vector.load %arg7[%c0_11, %c0_12] : memref<512x8xf32, #tpu.memory_space<vmem>>, vector<512x8xf32>
      tpu.vector_store %arg7[%c0_11, %c0_12], %12 {strides = array<i32>} : memref<512x8xf32, #tpu.memory_space<vmem>>, vector<512x8xf32>,
    } else {
    }
    %c0 = arith.constant 0 : index
    %c0_1 = arith.constant 0 : index
    %3 = vector.load %arg7[%c0, %c0_1] : memref<512x8xf32, #tpu.memory_space<vmem>>, vector<512x8xf32>
    %c0_2 = arith.constant 0 : index
    %c0_3 = arith.constant 0 : index
    %4 = vector.load %arg2[%c0_2, %c0_3] : memref<512x64xbf16, #tpu.memory_space<vmem>>, vector<512x64xbf16>
    %c0_4 = arith.constant 0 : index
    %c0_5 = arith.constant 0 : index
    %5 = vector.load %arg3[%c0_4, %c0_5] : memref<64x8xbf16, #tpu.memory_space<vmem>>, vector<64x8xbf16>
    %cst = arith.constant dense<0.000000e+00> : vector<512x8xf32>
    %6 = tpu.matmul %4, %5, %cst {dimension_numbers = #tpu.dot_dimension_numbers<[1], [0], [0], [1], [0, 0, 1, 1], [], []>} : vector<512x64xbf16>, vector<64x8xbf16>, vector<512x8xf32> -> vector<512x8xf32>
    %7 = arith.addf %3, %6 : vector<512x8xf32>
    %c0_6 = arith.constant 0 : index
    %c0_7 = arith.constant 0 : index
    %8 = vector.load %arg7[%c0_6, %c0_7] : memref<512x8xf32, #tpu.memory_space<vmem>>, vector<512x8xf32>
    tpu.vector_store %arg7[%c0_6, %c0_7], %7 {strides = array<i32>} : memref<512x8xf32, #tpu.memory_space<vmem>>, vector<512x8xf32>,
    %c0_i32_8 = arith.constant 0 : i32
    %9 = arith.cmpi eq, %arg1, %c0_i32_8 : i32
    %10 = arith.extui %9 : i1 to i32
    %c0_i32_9 = arith.constant 0 : i32
    %11 = arith.cmpi ne, %10, %c0_i32_9 : i32
    scf.if %11 {
      %c0_10 = arith.constant 0 : index
      %c0_11 = arith.constant 0 : index
      %12 = vector.load %arg7[%c0_10, %c0_11] : memref<512x8xf32, #tpu.memory_space<vmem>>, vector<512x8xf32>
      %c0_12 = arith.constant 0 : index
      %c0_13 = arith.constant 0 : index
      %13 = vector.load %arg4[%c0_12, %c0_13] : memref<512x8xf32, #tpu.memory_space<vmem>>, vector<512x8xf32>
      tpu.vector_store %arg4[%c0_12, %c0_13], %12 {strides = array<i32>} : memref<512x8xf32, #tpu.memory_space<vmem>>, vector<512x8xf32>,
      %cst_14 = arith.constant dense<0.000000e+00> : vector<8xf32>
      %14 = vector.multi_reduction <add>, %12, %cst_14 [0] : vector<512x8xf32> to vector<8xf32>
      %15 = vector.shape_cast %14 : vector<8xf32> to vector<1x8xf32>
      %16 = arith.mulf %12, %12 : vector<512x8xf32>
      %cst_15 = arith.constant dense<0.000000e+00> : vector<8xf32>
      %17 = vector.multi_reduction <add>, %16, %cst_15 [0] : vector<512x8xf32> to vector<8xf32>
      %18 = vector.shape_cast %17 : vector<8xf32> to vector<1x8xf32>
      %19 = vector.shape_cast %15 : vector<1x8xf32> to vector<1x8xf32>
      %20 = vector.broadcast %19 : vector<1x8xf32> to vector<8x8xf32>
      %c0_16 = arith.constant 0 : index
      %c0_17 = arith.constant 0 : index
      %21 = vector.load %arg5[%c0_16, %c0_17] : memref<8x8xf32, #tpu.memory_space<vmem>>, vector<8x8xf32>
      tpu.vector_store %arg5[%c0_16, %c0_17], %20 {strides = array<i32>} : memref<8x8xf32, #tpu.memory_space<vmem>>, vector<8x8xf32>,
      %22 = vector.shape_cast %18 : vector<1x8xf32> to vector<1x8xf32>
      %23 = vector.broadcast %22 : vector<1x8xf32> to vector<8x8xf32>
      %c0_18 = arith.constant 0 : index
      %c0_19 = arith.constant 0 : index
      %24 = vector.load %arg6[%c0_18, %c0_19] : memref<8x8xf32, #tpu.memory_space<vmem>>, vector<8x8xf32>
      tpu.vector_store %arg6[%c0_18, %c0_19], %23 {strides = array<i32>} : memref<8x8xf32, #tpu.memory_space<vmem>>, vector<8x8xf32>,
    } else {
    }
    return
  }
  func.func @transform_0(%arg0: i32, %arg1: i32) -> (i32, i32) {
    %c0_i32 = arith.constant 0 : i32
    return %arg0, %arg1 : i32, i32
  }
  func.func @transform_1(%arg0: i32, %arg1: i32) -> (i32, i32) {
    %c0_i32 = arith.constant 0 : i32
    %c0_i32_0 = arith.constant 0 : i32
    return %arg1, %c0_i32 : i32, i32
  }
  func.func @transform_2(%arg0: i32, %arg1: i32) -> (i32, i32) {
    %c0_i32 = arith.constant 0 : i32
    %c0_i32_0 = arith.constant 0 : i32
    return %arg0, %c0_i32 : i32, i32
  }
  func.func @transform_3(%arg0: i32, %arg1: i32) -> (i32, i32) {
    %c0_i32 = arith.constant 0 : i32
    %c0_i32_0 = arith.constant 0 : i32
    return %arg0, %c0_i32 : i32, i32
  }
  func.func @transform_4(%arg0: i32, %arg1: i32) -> (i32, i32) {
    %c0_i32 = arith.constant 0 : i32
    %c0_i32_0 = arith.constant 0 : i32
    return %arg0, %c0_i32 : i32, i32
  }
}

module attributes {stable_mosaic.version = 11 : i64} {
  func.func @_bn_relu_kernel(%arg0: i32, %arg1: memref<128x128xf32, #tpu.memory_space<vmem>>, %arg2: memref<1x128xf32, #tpu.memory_space<vmem>>, %arg3: memref<1x128xf32, #tpu.memory_space<vmem>>, %arg4: memref<1x128xf32, #tpu.memory_space<vmem>>, %arg5: memref<1x128xf32, #tpu.memory_space<vmem>>, %arg6: memref<128x128xbf16, #tpu.memory_space<vmem>>) attributes {dimension_semantics = [#tpu.dimension_semantics<parallel>], iteration_bounds = array<i64: 1>, scalar_prefetch = 0 : i64, scratch_operands = 0 : i64, tpu.core_type = #tpu.core_type<tc>, window_params = [{transform_indices = @transform_0, window_bounds = array<i64: 128, 128>}, {pipeline_mode = #tpu.pipeline_mode<synchronous>, transform_indices = @transform_1, window_bounds = array<i64: 1, 128>}, {pipeline_mode = #tpu.pipeline_mode<synchronous>, transform_indices = @transform_2, window_bounds = array<i64: 1, 128>}, {pipeline_mode = #tpu.pipeline_mode<synchronous>, transform_indices = @transform_3, window_bounds = array<i64: 1, 128>}, {pipeline_mode = #tpu.pipeline_mode<synchronous>, transform_indices = @transform_4, window_bounds = array<i64: 1, 128>}, {transform_indices = @transform_5, window_bounds = array<i64: 128, 128>}]} {
    %c0 = arith.constant 0 : index
    %c0_0 = arith.constant 0 : index
    %0 = vector.load %arg3[%c0, %c0_0] : memref<1x128xf32, #tpu.memory_space<vmem>>, vector<1x128xf32>
    %cst = arith.constant 9.99999974E-6 : f32
    %1 = vector.broadcast %cst : f32 to vector<1x128xf32>
    %2 = arith.addf %0, %1 : vector<1x128xf32>
    %3 = math.rsqrt %2 : vector<1x128xf32>
    %c0_1 = arith.constant 0 : index
    %c0_2 = arith.constant 0 : index
    %4 = vector.load %arg1[%c0_1, %c0_2] : memref<128x128xf32, #tpu.memory_space<vmem>>, vector<128x128xf32>
    %c0_3 = arith.constant 0 : index
    %c0_4 = arith.constant 0 : index
    %5 = vector.load %arg2[%c0_3, %c0_4] : memref<1x128xf32, #tpu.memory_space<vmem>>, vector<1x128xf32>
    %6 = vector.broadcast %5 : vector<1x128xf32> to vector<128x128xf32>
    %7 = arith.subf %4, %6 : vector<128x128xf32>
    %8 = vector.broadcast %3 : vector<1x128xf32> to vector<128x128xf32>
    %9 = arith.mulf %7, %8 : vector<128x128xf32>
    %c0_5 = arith.constant 0 : index
    %c0_6 = arith.constant 0 : index
    %10 = vector.load %arg4[%c0_5, %c0_6] : memref<1x128xf32, #tpu.memory_space<vmem>>, vector<1x128xf32>
    %11 = vector.broadcast %10 : vector<1x128xf32> to vector<128x128xf32>
    %12 = arith.mulf %9, %11 : vector<128x128xf32>
    %c0_7 = arith.constant 0 : index
    %c0_8 = arith.constant 0 : index
    %13 = vector.load %arg5[%c0_7, %c0_8] : memref<1x128xf32, #tpu.memory_space<vmem>>, vector<1x128xf32>
    %14 = vector.broadcast %13 : vector<1x128xf32> to vector<128x128xf32>
    %15 = arith.addf %12, %14 : vector<128x128xf32>
    %cst_9 = arith.constant 0.000000e+00 : f32
    %16 = vector.broadcast %cst_9 : f32 to vector<128x128xf32>
    %17 = arith.maximumf %15, %16 : vector<128x128xf32>
    %18 = arith.truncf %17 : vector<128x128xf32> to vector<128x128xbf16>
    %c0_10 = arith.constant 0 : index
    %c0_11 = arith.constant 0 : index
    %19 = vector.load %arg6[%c0_10, %c0_11] : memref<128x128xbf16, #tpu.memory_space<vmem>>, vector<128x128xbf16>
    tpu.vector_store %arg6[%c0_10, %c0_11], %18 {strides = array<i32>} : memref<128x128xbf16, #tpu.memory_space<vmem>>, vector<128x128xbf16>,
    return
  }
  func.func @transform_0(%arg0: i32) -> (i32, i32) {
    %c0_i32 = arith.constant 0 : i32
    %c0_i32_0 = arith.constant 0 : i32
    return %arg0, %c0_i32 : i32, i32
  }
  func.func @transform_1(%arg0: i32) -> (i32, i32) {
    %c0_i32 = arith.constant 0 : i32
    %c0_i32_0 = arith.constant 0 : i32
    %c0_i32_1 = arith.constant 0 : i32
    return %c0_i32, %c0_i32_0 : i32, i32
  }
  func.func @transform_2(%arg0: i32) -> (i32, i32) {
    %c0_i32 = arith.constant 0 : i32
    %c0_i32_0 = arith.constant 0 : i32
    %c0_i32_1 = arith.constant 0 : i32
    return %c0_i32, %c0_i32_0 : i32, i32
  }
  func.func @transform_3(%arg0: i32) -> (i32, i32) {
    %c0_i32 = arith.constant 0 : i32
    %c0_i32_0 = arith.constant 0 : i32
    %c0_i32_1 = arith.constant 0 : i32
    return %c0_i32, %c0_i32_0 : i32, i32
  }
  func.func @transform_4(%arg0: i32) -> (i32, i32) {
    %c0_i32 = arith.constant 0 : i32
    %c0_i32_0 = arith.constant 0 : i32
    %c0_i32_1 = arith.constant 0 : i32
    return %c0_i32, %c0_i32_0 : i32, i32
  }
  func.func @transform_5(%arg0: i32) -> (i32, i32) {
    %c0_i32 = arith.constant 0 : i32
    %c0_i32_0 = arith.constant 0 : i32
    return %arg0, %c0_i32 : i32, i32
  }
}

module attributes {stable_mosaic.version = 11 : i64} {
  func.func @_mm_bias_tanh_kernel(%arg0: i32, %arg1: i32, %arg2: memref<1024x32xbf16, #tpu.memory_space<vmem>>, %arg3: memref<32x128xbf16, #tpu.memory_space<vmem>>, %arg4: memref<1x128xf32, #tpu.memory_space<vmem>>, %arg5: memref<1024x128xf32, #tpu.memory_space<vmem>>, %arg6: memref<1024x128xf32, #tpu.memory_space<vmem>>) attributes {dimension_semantics = [#tpu.dimension_semantics<parallel>, #tpu.dimension_semantics<arbitrary>], iteration_bounds = array<i64: 2, 1>, scalar_prefetch = 0 : i64, scratch_operands = 1 : i64, tpu.core_type = #tpu.core_type<tc>, window_params = [{transform_indices = @transform_0, window_bounds = array<i64: 1024, 32>}, {transform_indices = @transform_1, window_bounds = array<i64: 32, 128>}, {pipeline_mode = #tpu.pipeline_mode<synchronous>, transform_indices = @transform_2, window_bounds = array<i64: 1, 128>}, {transform_indices = @transform_3, window_bounds = array<i64: 1024, 128>}]} {
    %c0_i32 = arith.constant 0 : i32
    %0 = arith.cmpi eq, %arg1, %c0_i32 : i32
    %1 = arith.extui %0 : i1 to i32
    %c0_i32_0 = arith.constant 0 : i32
    %2 = arith.cmpi ne, %1, %c0_i32_0 : i32
    scf.if %2 {
      %cst_10 = arith.constant 0.000000e+00 : f32
      %12 = vector.broadcast %cst_10 : f32 to vector<1024x128xf32>
      %c0_11 = arith.constant 0 : index
      %c0_12 = arith.constant 0 : index
      %13 = vector.load %arg6[%c0_11, %c0_12] : memref<1024x128xf32, #tpu.memory_space<vmem>>, vector<1024x128xf32>
      tpu.vector_store %arg6[%c0_11, %c0_12], %12 {strides = array<i32>} : memref<1024x128xf32, #tpu.memory_space<vmem>>, vector<1024x128xf32>,
    } else {
    }
    %c0 = arith.constant 0 : index
    %c0_1 = arith.constant 0 : index
    %3 = vector.load %arg6[%c0, %c0_1] : memref<1024x128xf32, #tpu.memory_space<vmem>>, vector<1024x128xf32>
    %c0_2 = arith.constant 0 : index
    %c0_3 = arith.constant 0 : index
    %4 = vector.load %arg2[%c0_2, %c0_3] : memref<1024x32xbf16, #tpu.memory_space<vmem>>, vector<1024x32xbf16>
    %c0_4 = arith.constant 0 : index
    %c0_5 = arith.constant 0 : index
    %5 = vector.load %arg3[%c0_4, %c0_5] : memref<32x128xbf16, #tpu.memory_space<vmem>>, vector<32x128xbf16>
    %cst = arith.constant dense<0.000000e+00> : vector<1024x128xf32>
    %6 = tpu.matmul %4, %5, %cst {dimension_numbers = #tpu.dot_dimension_numbers<[1], [0], [0], [1], [0, 0, 1, 1], [], []>} : vector<1024x32xbf16>, vector<32x128xbf16>, vector<1024x128xf32> -> vector<1024x128xf32>
    %7 = arith.addf %3, %6 : vector<1024x128xf32>
    %c0_6 = arith.constant 0 : index
    %c0_7 = arith.constant 0 : index
    %8 = vector.load %arg6[%c0_6, %c0_7] : memref<1024x128xf32, #tpu.memory_space<vmem>>, vector<1024x128xf32>
    tpu.vector_store %arg6[%c0_6, %c0_7], %7 {strides = array<i32>} : memref<1024x128xf32, #tpu.memory_space<vmem>>, vector<1024x128xf32>,
    %c0_i32_8 = arith.constant 0 : i32
    %9 = arith.cmpi eq, %arg1, %c0_i32_8 : i32
    %10 = arith.extui %9 : i1 to i32
    %c0_i32_9 = arith.constant 0 : i32
    %11 = arith.cmpi ne, %10, %c0_i32_9 : i32
    scf.if %11 {
      %c0_10 = arith.constant 0 : index
      %c0_11 = arith.constant 0 : index
      %12 = vector.load %arg6[%c0_10, %c0_11] : memref<1024x128xf32, #tpu.memory_space<vmem>>, vector<1024x128xf32>
      %c0_12 = arith.constant 0 : index
      %c0_13 = arith.constant 0 : index
      %13 = vector.load %arg4[%c0_12, %c0_13] : memref<1x128xf32, #tpu.memory_space<vmem>>, vector<1x128xf32>
      %14 = vector.broadcast %13 : vector<1x128xf32> to vector<1024x128xf32>
      %15 = arith.addf %12, %14 : vector<1024x128xf32>
      %16 = math.tanh %15 : vector<1024x128xf32>
      %c0_14 = arith.constant 0 : index
      %c0_15 = arith.constant 0 : index
      %17 = vector.load %arg5[%c0_14, %c0_15] : memref<1024x128xf32, #tpu.memory_space<vmem>>, vector<1024x128xf32>
      tpu.vector_store %arg5[%c0_14, %c0_15], %16 {strides = array<i32>} : memref<1024x128xf32, #tpu.memory_space<vmem>>, vector<1024x128xf32>,
    } else {
    }
    return
  }
  func.func @transform_0(%arg0: i32, %arg1: i32) -> (i32, i32) {
    %c0_i32 = arith.constant 0 : i32
    return %arg0, %arg1 : i32, i32
  }
  func.func @transform_1(%arg0: i32, %arg1: i32) -> (i32, i32) {
    %c0_i32 = arith.constant 0 : i32
    %c0_i32_0 = arith.constant 0 : i32
    return %arg1, %c0_i32 : i32, i32
  }
  func.func @transform_2(%arg0: i32, %arg1: i32) -> (i32, i32) {
    %c0_i32 = arith.constant 0 : i32
    %c0_i32_0 = arith.constant 0 : i32
    %c0_i32_1 = arith.constant 0 : i32
    return %c0_i32, %c0_i32_0 : i32, i32
  }
  func.func @transform_3(%arg0: i32, %arg1: i32) -> (i32, i32) {
    %c0_i32 = arith.constant 0 : i32
    %c0_i32_0 = arith.constant 0 : i32
    return %arg0, %c0_i32 : i32, i32
  }
}

</mosaic_0001>

<bundles_post_ra>
// kernel: generator_forward.22
= control target key start
LH: loop header
LB: loop body
LE: loop exit
PB: predicated region body
PF: predicated region fallthrough
CT: control target
= control target key end

     0   :  { %10 = vsyncpa [#allocation3], 0  ;;  %s428_s0 = inlined_call_operand.hbm [shape: f32[16,128], index: 0, kind: input, shape index: {}]   ;;  %s429_s1 = inlined_call_operand.hbm [shape: f32[1,128], index: 1, kind: input, shape index: {}]   ;;  %s430_s2 = inlined_call_operand.hbm [shape: f32[1,128], index: 2, kind: input, shape index: {}]   ;;  %s431_s3 = inlined_call_operand.hbm [shape: f32[1,128], index: 3, kind: input, shape index: {}]   ;;  %s432_s4 = inlined_call_operand.hbm [shape: f32[1,128], index: 4, kind: input, shape index: {}]   ;;  %s433_s5 = inlined_call_operand.hbm [shape: bf16[16,128], index: 5, kind: output, shape index: {}]  }
   0x1   :  { %11 = vsyncpa [#allocation6], 0 }
   0x2   :  { %12 = vsyncpa [#allocation9], 0 }
   0x3   :  { %13 = vsyncpa [#allocation4], 0  ;;  %s316_s18 = smov [#allocation5]   ;;  %s317_s20 = smov [#allocation8]  }
   0x4   :  { %s32_s19 = sshll.u32 %s316_s18, 4  ;;  %s52_s21 = sshll.u32 %s317_s20, 4  ;;  %s33_s19 = int_to_ptr.vmem [resolvable:$true] %s32_s19  ;;  %s53_s21 = int_to_ptr.vmem [resolvable:$true] %s52_s21 }
   0x5   :  { %s176_s24 = scalar_lea.hbm %s429_s1, 16 }
   0x6   :  { %p177_p0 = scmp.ne.s32.totalorder %s429_s1, %s176_s24  ;;  %p180_p1 = scmp.lt.u32.totalorder %s176_s24, %s429_s1 }
   0x8   :  { %p182_p2 = pnand %p180_p1, %p177_p0 }
   0xa   :  { %185 = shalt.err (!%p182_p2)
}
   0xb   :  { %s186_s29 = scalar_lea.vmem %s33_s19, 16  ;;  %s190_s30 = scalar_lea.vmem %s33_s19, 32 }
   0xc   :  { %p187_p3 = scmp.ne.s32.totalorder %s33_s19, %s186_s29  ;;  %p191_p4 = scmp.lt.s32.totalorder %s33_s19, %s33_s19 }
   0xd   :  { %p192_p5 = scmp.lt.s32.totalorder %s190_s30, %s186_s29 }
   0xf   :  { %p193_p6 = por %p192_p5, %p191_p4 }
  0x11   :  { %p194_p7 = pnand %p193_p6, %p187_p3 }
  0x13   :  { %197 = shalt.err (!%p194_p7)
}
  0x14   :  { %35 = dma.hbm_to_vmem [thread:$0]  %s429_s1, 16, %s33_s19, [#allocation6]  }
  0x15   :  { %s198_s10 = scalar_lea.hbm %s431_s3, 16 }
  0x16   :  { %p199_p8 = scmp.ne.s32.totalorder %s431_s3, %s198_s10  ;;  %p202_p9 = scmp.lt.u32.totalorder %s198_s10, %s431_s3 }
  0x18   :  { %p204_p10 = pnand %p202_p9, %p199_p8 }
  0x1a   :  { %207 = shalt.err (!%p204_p10)
}
  0x1b   :  { %s208_s15 = scalar_lea.vmem %s53_s21, 16  ;;  %s212_s16 = scalar_lea.vmem %s53_s21, 32 }
  0x1c   :  { %p209_p11 = scmp.ne.s32.totalorder %s53_s21, %s208_s15  ;;  %p213_p12 = scmp.lt.s32.totalorder %s53_s21, %s53_s21 }
  0x1d   :  { %p214_p13 = scmp.lt.s32.totalorder %s212_s16, %s208_s15 }
  0x1f   :  { %p215_p0 = por %p214_p13, %p213_p12 }
  0x21   :  { %p216_p1 = pnand %p215_p0, %p209_p11 }
  0x23   :  { %219 = shalt.err (!%p216_p1)
}
  0x24   :  { %55 = dma.hbm_to_vmem [thread:$0]  %s431_s3, 16, %s53_s21, [#allocation9]  }
  0x25   :  { %s318_s18 = smov [#allocation2]   ;;  %s220_s23 = scalar_lea.hbm %s428_s0, 256 }
  0x26   :  { %s19_s19 = sshll.u32 %s318_s18, 4  ;;  %p221_p2 = scmp.ne.s32.totalorder %s428_s0, %s220_s23  ;;  %s20_s19 = int_to_ptr.vmem [resolvable:$true] %s19_s19 }
  0x27   :  { %p224_p3 = scmp.lt.u32.totalorder %s220_s23, %s428_s0 }
  0x29   :  { %p226_p4 = pnand %p224_p3, %p221_p2 }
  0x2b   :  { %229 = shalt.err (!%p226_p4)
}
  0x2c   :  { %s230_s28 = scalar_lea.vmem %s20_s19, 256  ;;  %p235_p6 = scmp.lt.s32.totalorder %s20_s19, %s20_s19 }
  0x2d   :  { %p231_p5 = scmp.ne.s32.totalorder %s20_s19, %s230_s28  ;;  %p236_p7 = scmp.lt.s32.totalorder %s230_s28, %s230_s28 }
  0x2f   :  { %p237_p8 = por %p236_p7, %p235_p6 }
  0x31   :  { %p238_p9 = pnand %p237_p8, %p231_p5 }
  0x33   :  { %241 = shalt.err (!%p238_p9)
}
  0x34   :  { %s319_s3 = smov 128   ;;  %s320_s21 = smov 8  }
  0x35   :  { %25 = dma.hbm_to_vmem [thread:$0]  %s428_s0, 256, %s20_s19, [#allocation3], %s319_s3, %s319_s3, %s320_s21  }
  0x36   :  { %s321_s6 = smov [#allocation7]   ;;  %s322_s8 = smov [#allocation10]  }
  0x37   :  { %s42_s7 = sshll.u32 %s321_s6, 4  ;;  %s62_s9 = sshll.u32 %s322_s8, 4  ;;  %s43_s7 = int_to_ptr.vmem [resolvable:$true] %s42_s7  ;;  %s63_s9 = int_to_ptr.vmem [resolvable:$true] %s62_s9 }
  0x38   :  { %s242_s12 = scalar_lea.hbm %s430_s2, 16 }
  0x39   :  { %p243_p10 = scmp.ne.s32.totalorder %s430_s2, %s242_s12  ;;  %p246_p11 = scmp.lt.u32.totalorder %s242_s12, %s430_s2 }
  0x3b   :  { %p248_p12 = pnand %p246_p11, %p243_p10 }
  0x3d   :  { %251 = shalt.err (!%p248_p12)
}
  0x3e   :  { %s252_s0 = scalar_lea.vmem %s43_s7, 16  ;;  %s256_s1 = scalar_lea.vmem %s43_s7, 32 }
  0x3f   :  { %p253_p13 = scmp.ne.s32.totalorder %s43_s7, %s252_s0  ;;  %p257_p0 = scmp.lt.s32.totalorder %s43_s7, %s43_s7 }
  0x40   :  { %p258_p1 = scmp.lt.s32.totalorder %s256_s1, %s252_s0 }
  0x42   :  { %p259_p2 = por %p258_p1, %p257_p0 }
  0x44   :  { %p260_p3 = pnand %p259_p2, %p253_p13 }
  0x46   :  { %263 = shalt.err (!%p260_p3)
}
  0x47   :  { %45 = dma.hbm_to_vmem [thread:$0]  %s430_s2, 16, %s43_s7, [#allocation6]  }
  0x48   :  { %s264_s22 = scalar_lea.hbm %s432_s4, 16 }
  0x49   :  { %p265_p4 = scmp.ne.s32.totalorder %s432_s4, %s264_s22  ;;  %p268_p5 = scmp.lt.u32.totalorder %s264_s22, %s432_s4 }
  0x4b   :  { %p270_p6 = pnand %p268_p5, %p265_p4 }
  0x4d   :  { %273 = shalt.err (!%p270_p6)
}
  0x4e   :  { %s274_s27 = scalar_lea.vmem %s63_s9, 16  ;;  %s278_s28 = scalar_lea.vmem %s63_s9, 32 }
  0x4f   :  { %p275_p7 = scmp.ne.s32.totalorder %s63_s9, %s274_s27  ;;  %p279_p8 = scmp.lt.s32.totalorder %s63_s9, %s63_s9 }
  0x50   :  { %p280_p9 = scmp.lt.s32.totalorder %s278_s28, %s274_s27 }
  0x52   :  { %p281_p10 = por %p280_p9, %p279_p8 }
  0x54   :  { %p282_p11 = pnand %p281_p10, %p275_p7 }
  0x56   :  { %285 = shalt.err (!%p282_p11)
}
  0x57   :  { %65 = dma.hbm_to_vmem [thread:$0]  %s432_s4, 16, %s63_s9, [#allocation9]  }
  0x58   :  { %308 = dma.done.wait [#allocation3], 256  }
  0x59   :  { %309 = vsyncadd [#allocation3], 4294967040 }
  0x5a   :  { %310 = dma.done.wait [#allocation6], 32  }
  0x5b   :  { %311 = vsyncadd [#allocation6], 4294967264 }
  0x5c   :  { %312 = dma.done.wait [#allocation9], 32  }
  0x5d   :  { %313 = vsyncadd [#allocation9], 4294967264  ;;  %v81_v0 = vld [vmem:[#allocation7] sm:$0x1]  ;;  %v96_v2 = vlaneseq  ;;  %v84_v4 = vld [vmem:[#allocation2] sm:$0xff]  ;;  %s323_s4 = smov [#allocation11]  }
  0x5e   :  { %v82_v1 = vadd.f32 1e-05, %v81_v0  ;;  %v85_v5 = vld [vmem:[#allocation2 + $0x8] sm:$0xff]  ;;  %v152_v6 = vld [vmem:[#allocation5] ss:$0 sm:$0xff]  ;;  %s138_s21 = sshll.u32 %s323_s4, 4  ;;  %s139_s21 = int_to_ptr.vmem [resolvable:$true] %s138_s21 }
  0x5f   :  { %v97_v3 = vshrl.u32 %v96_v2, 7  ;;  %v93_v8 = vsub.f32 %v84_v4, %v152_v6  ;;  %v94_v9 = vsub.f32 %v85_v5, %v152_v6  ;;  %v153_v12 = vld [vmem:[#allocation8] ss:$0 sm:$0xff]  ;;  %v154_v15 = vld [vmem:[#allocation10] ss:$0 sm:$0xff]  ;;  %s286_s29 = scalar_lea.vmem %s139_s21, 128  ;;  %p291_p13 = scmp.lt.s32.totalorder %s139_s21, %s139_s21 }
  0x60   :  { %174 = vrsqrt.f32 %v82_v1  ;;  %p287_p12 = scmp.ne.s32.totalorder %s139_s21, %s286_s29  ;;  %p292_p0 = scmp.lt.s32.totalorder %s286_s29, %s286_s29 }
  0x61   :  { %v98_v7 = vsub.s32 0, %v97_v3 }
  0x62   :  { %p293_p1 = por %p292_p0, %p291_p13 }
  0x64   :  { %p294_p2 = pnand %p293_p1, %p287_p12 }
  0x6a   :  { %v175_v10 = vpop.eup %174 }
  0x6b   :  { %v99_v11 = vrot.slane %v175_v10, %v98_v7 }
  0x6d   :  { %v101_v13 = vmul.f32 %v99_v11, %v93_v8  ;;  %v102_v14 = vmul.f32 %v99_v11, %v94_v9 }
  0x6f   :  { %v110_v16 = vmul.f32 %v153_v12, %v101_v13  ;;  %v111_v17 = vmul.f32 %v153_v12, %v102_v14 }
  0x71   :  { %v119_v18 = vadd.f32 %v154_v15, %v110_v16  ;;  %v120_v19 = vadd.f32 %v154_v15, %v111_v17 }
  0x73   :  { %v121_v20 = vmax.f32 %v119_v18, 0.0  ;;  %v122_v21 = vmax.f32 %v120_v19, 0.0 }
  0x75   :  { %v162_v22 = vpack.c.bf16 %v122_v21, %v121_v20 }
  0x77   :  { %163 = vst [vmem:[#allocation11] sm:$0xff] %v162_v22  }
  0x78   :  { %297 = shalt.err (!%p294_p2)
}
  0x79   :  { %s298_s7 = scalar_lea.hbm %s433_s5, 128 }
  0x7a   :  { %p299_p3 = scmp.ne.s32.totalorder %s433_s5, %s298_s7  ;;  %p302_p4 = scmp.lt.u32.totalorder %s298_s7, %s433_s5 }
  0x7c   :  { %p304_p5 = pnand %p302_p4, %p299_p3 }
  0x7e   :  { %307 = shalt.err (!%p304_p5)
}
  0x7f   :  { %s324_s12 = smov 64   ;;  %s325_s13 = smov 4  }
  0x80   :  { %144 = dma.vmem_to_hbm [thread:$0]  %s139_s21, 128, %s433_s5, [#allocation4], %s324_s12, %s324_s12, %s325_s13  }
  0x81   :  { %314 = dma.done.wait [#allocation4], 128  }
  0x82   :  { %315 = vsyncadd [#allocation4], 4294967168 }
  0x83   :  { %148 = vsyncpa [#allocation3], 1 }
  0x84   :  { %149 = vsyncpa [#allocation6], 1 }
  0x85   :  { %150 = vsyncpa [#allocation9], 1 }
  0x86   :  { %151 = vsyncpa [#allocation4], 1 }

// kernel: generator_forward.21
= control target key start
LH: loop header
LB: loop body
LE: loop exit
PB: predicated region body
PF: predicated region fallthrough
CT: control target
= control target key end

     0   :  { %10 = vsyncpa [#allocation4], 0  ;;  %s730_s0 = inlined_call_operand.hbm [shape: bf16[8,16], index: 0, kind: input, shape index: {}]   ;;  %s731_s1 = inlined_call_operand.hbm [shape: bf16[16,1024], index: 1, kind: input, shape index: {}]   ;;  %s732_s2 = inlined_call_operand.hbm [shape: f32[8,1024], index: 2, kind: output, shape index: {0}]   ;;  %s733_s3 = inlined_call_operand.hbm [shape: f32[8,1024], index: 3, kind: output, shape index: {1}]   ;;  %s734_s4 = inlined_call_operand.hbm [shape: f32[8,1024], index: 4, kind: output, shape index: {2}]  }
   0x1   :  { %11 = vsyncpa [#allocation7], 0 }
   0x2   :  { %12 = vsyncpa [#allocation5], 0 }
   0x3   :  { %13 = vsyncpa [#allocation10], 0  ;;  %s616_s15 = smov [#allocation3]   ;;  %s617_s17 = smov [#allocation6]  }
   0x4   :  { %s20_s16 = sshll.u32 %s616_s15, 4  ;;  %s29_s18 = sshll.u32 %s617_s17, 4  ;;  %s21_s16 = int_to_ptr.vmem [resolvable:$true] %s20_s16  ;;  %s649_s18 = int_to_ptr.vmem [resolvable:$true] %s29_s18 }
   0x5   :  { %s498_s21 = scalar_lea.hbm %s730_s0, 64 }
   0x6   :  { %p499_p0 = scmp.ne.s32.totalorder %s730_s0, %s498_s21  ;;  %p502_p1 = scmp.lt.u32.totalorder %s498_s21, %s730_s0 }
   0x8   :  { %p504_p2 = pnand %p502_p1, %p499_p0 }
   0xa   :  { %507 = shalt.err (!%p504_p2)
}
   0xb   :  { %s508_s26 = scalar_lea.vmem %s21_s16, 64  ;;  %p513_p4 = scmp.lt.s32.totalorder %s21_s16, %s21_s16 }
   0xc   :  { %p509_p3 = scmp.ne.s32.totalorder %s21_s16, %s508_s26  ;;  %p514_p5 = scmp.lt.s32.totalorder %s508_s26, %s508_s26 }
   0xe   :  { %p515_p6 = por %p514_p5, %p513_p4 }
  0x10   :  { %p516_p7 = pnand %p515_p6, %p509_p3 }
  0x12   :  { %519 = shalt.err (!%p516_p7)
}
  0x13   :  { %23 = dma.hbm_to_vmem [thread:$0]  %s730_s0, 64, %s21_s16, [#allocation4]  }
  0x14   :  { %s520_s5 = scalar_lea.hbm %s731_s1, 1024 }
  0x15   :  { %p521_p8 = scmp.ne.s32.totalorder %s731_s1, %s520_s5  ;;  %p524_p9 = scmp.lt.u32.totalorder %s520_s5, %s731_s1 }
  0x17   :  { %p526_p10 = pnand %p524_p9, %p521_p8 }
  0x19   :  { %529 = shalt.err (!%p526_p10)
}
  0x1a   :  { %s530_s10 = scalar_lea.vmem %s649_s18, 1024  ;;  %p535_p12 = scmp.lt.s32.totalorder %s649_s18, %s649_s18 }
  0x1b   :  { %p531_p11 = scmp.ne.s32.totalorder %s649_s18, %s530_s10  ;;  %p536_p13 = scmp.lt.s32.totalorder %s530_s10, %s530_s10 }
  0x1d   :  { %p537_p0 = por %p536_p13, %p535_p12 }
  0x1f   :  { %p538_p1 = pnand %p537_p0, %p531_p11 }
  0x21   :  { %541 = shalt.err (!%p538_p1)
}
  0x22   :  { %s618_s0 = smov 512   ;;  %s619_s11 = smov 32  }
  0x23   :  { %35 = dma.hbm_to_vmem [thread:$0]  %s731_s1, 1024, %s649_s18, [#allocation7], %s618_s0, %s618_s0, %s619_s11  }
  0x24   :  { %608 = dma.done.wait [#allocation4], 64  }
  0x25   :  { %609 = vsyncadd [#allocation4], 4294967232 }
  0x26   :  { %610 = dma.done.wait [#allocation7], 1024  }
  0x27   :  { %611 = vsyncadd [#allocation7], 4294966272  ;;  %v620_v0 = vmov 0   ;;  %v64_v1 = vld [vmem:[#allocation6] sm:$0xff]  ;;  %v65_v3 = vld [vmem:[#allocation6 + $0x8] sm:$0xff]  ;;  %vm112_vm0 = vcmask 130048  }
  0x28   :  { %148 = vmatprep.mubr.bf16.mxu0 %v620_v0  ;;  %189 = vmatprep.mubr.bf16.mxu1 %v620_v0  ;;  %v68_v2 = vld [vmem:[#allocation6 + $0x20] sm:$0xff]  ;;  %v69_v5 = vld [vmem:[#allocation6 + $0x28] sm:$0xff]  ;;  %v66_v7 = vld [vmem:[#allocation6 + $0x10] sm:$0xff]  ;;  %s621_s1 = smov [#allocation8]  }
  0x29   :  { %v479_v4 = vcombine.high %v64_v1, %v68_v2  ;;  %v478_v6 = vcombine.low %v64_v1, %v68_v2  ;;  %v481_v8 = vcombine.high %v65_v3, %v69_v5  ;;  %v480_v9 = vcombine.low %v65_v3, %v69_v5  ;;  %v70_v10 = vld [vmem:[#allocation6 + $0x30] sm:$0xff]  ;;  %v67_v11 = vld [vmem:[#allocation6 + $0x18] sm:$0xff]  ;;  %s441_s14 = sshll.u32 %s621_s1, 4  ;;  %s680_s14 = int_to_ptr.vmem [resolvable:$true] %s441_s14 }
  0x2a   :  { %v71_v12 = vld [vmem:[#allocation6 + $0x38] sm:$0xff]  ;;  %v483_v13 = vcombine.high %v66_v7, %v70_v10  ;;  %v482_v16 = vcombine.low %v66_v7, %v70_v10  ;;  %s542_s15 = scalar_lea.vmem %s680_s14, 1024  ;;  %p547_p3 = scmp.lt.s32.totalorder %s680_s14, %s680_s14 }
  0x2b   :  { %116 = vmatprep.subr.bf16.mxu0 %v479_v4  ;;  %v485_v14 = vcombine.high %v67_v11, %v71_v12  ;;  %157 = vmatprep.subr.bf16.mxu1 %v481_v8  ;;  %v63_v15 = vld [vmem:[#allocation3] sm:$0xf]  ;;  %v484_v17 = vcombine.low %v67_v11, %v71_v12  ;;  %p543_p2 = scmp.ne.s32.totalorder %s680_s14, %s542_s15  ;;  %p548_p4 = scmp.lt.s32.totalorder %s542_s15, %s542_s15 }
  0x2c   :  { %117 = vmatpush1.bf16.msra.mxu0 %v478_v6  ;;  %158 = vmatpush1.bf16.msra.mxu1 %v480_v9 }
  0x2d   :  { %198 = vmatprep.subr.bf16.mxu0 %v483_v13  ;;  %239 = vmatprep.subr.bf16.mxu1 %v485_v14  ;;  %p549_p5 = por %p548_p4, %p547_p3 }
  0x2f   :  { %486 = vmatmul.mubr.msk.bf16.vlgmr.msra.gmra.mrb[0].mxu0 %vm112_vm0, %v63_v15  ;;  %487 = vmatmul.mubr.msk.bf16.vlgmr.msra.gmra.mrb[0].mxu1 %vm112_vm0, %v63_v15  ;;  %p550_p6 = pnand %p549_p5, %p543_p2 }
  0x30   :  { %199 = vmatpush1.bf16.msra.mxu0 %v482_v16  ;;  %240 = vmatpush1.bf16.msra.mxu1 %v484_v17 }
  0x31   :  { %230 = vmatprep.mubr.bf16.mxu0 %v620_v0  ;;  %271 = vmatprep.mubr.bf16.mxu1 %v620_v0 }
  0x37   :  { %488 = vmatmul.mubr.msk.bf16.vlgmr.msra.gmra.mrb[4].mxu0 %vm112_vm0, %v63_v15  ;;  %489 = vmatmul.mubr.msk.bf16.vlgmr.msra.gmra.mrb[4].mxu1 %vm112_vm0, %v63_v15 }
 0x102   :  { %v150_v18 = vpop.f32.mrb[0].mxu0  ;;  %v191_v21 = vpop.f32.mrb[0].mxu1 }
 0x103   :  { %307 = vst [vmem:[#allocation8] sm:$0xff] %v150_v18  ;;  %v315_v19 = vrot.slane %v150_v18, 4  ;;  %v363_v20 = vmul.f32 %v150_v18, %v150_v18  ;;  %v152_v22 = vpop.f32.mrb[1].mxu0  ;;  %309 = vst [vmem:[#allocation8 + $0x10] sm:$0xff] %v191_v21  ;;  %v327_v23 = vrot.slane %v191_v21, 4  ;;  %v365_v24 = vmul.f32 %v191_v21, %v191_v21  ;;  %v193_v27 = vpop.f32.mrb[1].mxu1 }
 0x104   :  { %308 = vst [vmem:[#allocation8 + $0x8] sm:$0xff] %v152_v22  ;;  %v321_v25 = vrot.slane %v152_v22, 4  ;;  %v364_v26 = vmul.f32 %v152_v22, %v152_v22  ;;  %v154_v28 = vpop.f32.mrb[2].mxu0  ;;  %310 = vst [vmem:[#allocation8 + $0x18] sm:$0xff] %v193_v27  ;;  %v333_v31 = vrot.slane %v193_v27, 4  ;;  %v366_v32 = vmul.f32 %v193_v27, %v193_v27  ;;  %v195_v33 = vpop.f32.mrb[2].mxu1 }
 0x105   :  { %v316_v29 = vadd.f32 %v315_v19, %v150_v18  ;;  %v371_v30 = vrot.slane %v363_v20, 4  ;;  %v155_v34 = vpop.f32.mrb[3].mxu0  ;;  %v328_v35 = vadd.f32 %v327_v23, %v191_v21  ;;  %v383_v36 = vrot.slane %v365_v24, 4  ;;  %v196_v39 = vpop.f32.mrb[3].mxu1 }
 0x106   :  { %v322_v37 = vadd.f32 %v321_v25, %v152_v22  ;;  %v377_v38 = vrot.slane %v364_v26, 4  ;;  %v334_v42 = vadd.f32 %v333_v31, %v193_v27  ;;  %v389_v43 = vrot.slane %v366_v32, 4 }
 0x107   :  { %v317_v40 = vrot.slane %v316_v29, 2  ;;  %v372_v41 = vadd.f32 %v371_v30, %v363_v20  ;;  %v329_v44 = vrot.slane %v328_v35, 2  ;;  %v384_v45 = vadd.f32 %v383_v36, %v365_v24 }
 0x108   :  { %v323_v46 = vrot.slane %v322_v37, 2  ;;  %v378_v47 = vadd.f32 %v377_v38, %v364_v26  ;;  %v335_v50 = vrot.slane %v334_v42, 2  ;;  %v390_v51 = vadd.f32 %v389_v43, %v366_v32 }
 0x109   :  { %v318_v48 = vadd.f32 %v317_v40, %v316_v29  ;;  %v373_v49 = vrot.slane %v372_v41, 2  ;;  %v330_v52 = vadd.f32 %v329_v44, %v328_v35  ;;  %v385_v53 = vrot.slane %v384_v45, 2 }
 0x10a   :  { %v324_v54 = vadd.f32 %v323_v46, %v322_v37  ;;  %v379_v55 = vrot.slane %v378_v47, 2  ;;  %v232_v56 = vpop.f32.mrb[4].mxu0  ;;  %v336_v59 = vadd.f32 %v335_v50, %v334_v42  ;;  %v391_v60 = vrot.slane %v390_v51, 2  ;;  %v273_v61 = vpop.f32.mrb[4].mxu1 }
 0x10b   :  { %v319_v57 = vrot.slane %v318_v48, 1  ;;  %v374_v58 = vadd.f32 %v373_v49, %v372_v41  ;;  %311 = vst [vmem:[#allocation8 + $0x20] sm:$0xff] %v232_v56  ;;  %v234_v62 = vpop.f32.mrb[5].mxu0  ;;  %v331_v63 = vrot.slane %v330_v52, 1  ;;  %v386_v0 = vadd.f32 %v385_v53, %v384_v45  ;;  %313 = vst [vmem:[#allocation8 + $0x30] sm:$0xff] %v273_v61  ;;  %v275_v3 = vpop.f32.mrb[5].mxu1 }
 0x10c   :  { %v325_v1 = vrot.slane %v324_v54, 1  ;;  %v380_v2 = vadd.f32 %v379_v55, %v378_v47  ;;  %312 = vst [vmem:[#allocation8 + $0x28] sm:$0xff] %v234_v62  ;;  %v236_v4 = vpop.f32.mrb[6].mxu0  ;;  %v337_v7 = vrot.slane %v336_v59, 1  ;;  %v392_v8 = vadd.f32 %v391_v60, %v390_v51  ;;  %314 = vst [vmem:[#allocation8 + $0x38] sm:$0xff] %v275_v3  ;;  %v277_v9 = vpop.f32.mrb[6].mxu1 }
 0x10d   :  { %v320_v5 = vadd.f32 %v319_v57, %v318_v48  ;;  %v375_v6 = vrot.slane %v374_v58, 1  ;;  %v237_v10 = vpop.f32.mrb[7].mxu0  ;;  %v332_v11 = vadd.f32 %v331_v63, %v330_v52  ;;  %v387_v12 = vrot.slane %v386_v0, 1  ;;  %v278_v15 = vpop.f32.mrb[7].mxu1 }
 0x10e   :  { %v326_v13 = vadd.f32 %v325_v1, %v324_v54  ;;  %v381_v14 = vrot.slane %v380_v2, 1 }
 0x10f   :  { %553 = shalt.err (!%p550_p6)
}
 0x110   :  { %s554_s18 = scalar_lea.hbm %s732_s2, 1024 }
 0x111   :  { %p555_p7 = scmp.ne.s32.totalorder %s732_s2, %s554_s18  ;;  %p558_p8 = scmp.lt.u32.totalorder %s554_s18, %s732_s2 }
 0x113   :  { %p560_p9 = pnand %p558_p8, %p555_p7 }
 0x115   :  { %563 = shalt.err (!%p560_p9)
}
 0x116   :  { %444 = dma.vmem_to_hbm [thread:$0]  %s680_s14, 1024, %s732_s2, [#allocation5]   ;;  %v376_v16 = vadd.f32 %v375_v6, %v374_v58  ;;  %419 = vst [vmem:[#allocation9] sm:$0xff] %v320_v5  ;;  %v338_v17 = vadd.f32 %v337_v7, %v336_v59  ;;  %v393_v18 = vrot.slane %v392_v8, 1  ;;  %v339_v19 = vrot.slane %v232_v56, 4  ;;  %421 = vst [vmem:[#allocation9 + $0x10] sm:$0xff] %v332_v11 }
 0x117   :  { %v388_v20 = vadd.f32 %v387_v12, %v386_v0  ;;  %v382_v21 = vadd.f32 %v381_v14, %v380_v2  ;;  %420 = vst [vmem:[#allocation9 + $0x8] sm:$0xff] %v326_v13  ;;  %v367_v22 = vmul.f32 %v232_v56, %v232_v56  ;;  %v351_v23 = vrot.slane %v273_v61, 4  ;;  %s622_s2 = smov [#allocation9]   ;;  %s623_s26 = smov [#allocation11]  }
 0x118   :  { %427 = vst [vmem:[#allocation11] sm:$0xff] %v376_v16  ;;  %v394_v24 = vadd.f32 %v393_v18, %v392_v8  ;;  %422 = vst [vmem:[#allocation9 + $0x18] sm:$0xff] %v338_v17  ;;  %v340_v25 = vadd.f32 %v339_v19, %v232_v56  ;;  %v369_v26 = vmul.f32 %v273_v61, %v273_v61  ;;  %v345_v27 = vrot.slane %v234_v62, 4  ;;  %s451_s25 = sshll.u32 %s622_s2, 4  ;;  %s461_s27 = sshll.u32 %s623_s26, 4  ;;  %s452_s25 = int_to_ptr.vmem [resolvable:$true] %s451_s25  ;;  %s699_s27 = int_to_ptr.vmem [resolvable:$true] %s461_s27 }
 0x119   :  { %429 = vst [vmem:[#allocation11 + $0x10] sm:$0xff] %v388_v20  ;;  %428 = vst [vmem:[#allocation11 + $0x8] sm:$0xff] %v382_v21  ;;  %v395_v28 = vrot.slane %v367_v22, 4  ;;  %v352_v29 = vadd.f32 %v351_v23, %v273_v61  ;;  %v368_v30 = vmul.f32 %v234_v62, %v234_v62  ;;  %v357_v31 = vrot.slane %v275_v3, 4  ;;  %s564_s28 = scalar_lea.vmem %s452_s25, 1024  ;;  %p569_p11 = scmp.lt.s32.totalorder %s452_s25, %s452_s25 }
 0x11a   :  { %430 = vst [vmem:[#allocation11 + $0x18] sm:$0xff] %v394_v24  ;;  %v341_v32 = vrot.slane %v340_v25, 2  ;;  %v407_v33 = vrot.slane %v369_v26, 4  ;;  %v346_v34 = vadd.f32 %v345_v27, %v234_v62  ;;  %v370_v35 = vmul.f32 %v275_v3, %v275_v3  ;;  %p565_p10 = scmp.ne.s32.totalorder %s452_s25, %s564_s28  ;;  %p570_p12 = scmp.lt.s32.totalorder %s564_s28, %s564_s28 }
 0x11b   :  { %v396_v36 = vadd.f32 %v395_v28, %v367_v22  ;;  %v353_v37 = vrot.slane %v352_v29, 2  ;;  %v401_v38 = vrot.slane %v368_v30, 4  ;;  %v358_v39 = vadd.f32 %v357_v31, %v275_v3 }
 0x11c   :  { %v342_v40 = vadd.f32 %v341_v32, %v340_v25  ;;  %v408_v41 = vadd.f32 %v407_v33, %v369_v26  ;;  %v347_v42 = vrot.slane %v346_v34, 2  ;;  %v413_v43 = vrot.slane %v370_v35, 4  ;;  %p571_p13 = por %p570_p12, %p569_p11 }
 0x11d   :  { %v397_v44 = vrot.slane %v396_v36, 2  ;;  %v354_v45 = vadd.f32 %v353_v37, %v352_v29  ;;  %v402_v46 = vadd.f32 %v401_v38, %v368_v30  ;;  %v359_v47 = vrot.slane %v358_v39, 2 }
 0x11e   :  { %v343_v48 = vrot.slane %v342_v40, 1  ;;  %v409_v49 = vrot.slane %v408_v41, 2  ;;  %v348_v50 = vadd.f32 %v347_v42, %v346_v34  ;;  %v414_v51 = vadd.f32 %v413_v43, %v370_v35  ;;  %p572_p0 = pnand %p571_p13, %p565_p10 }
 0x11f   :  { %v398_v52 = vadd.f32 %v397_v44, %v396_v36  ;;  %v355_v53 = vrot.slane %v354_v45, 1  ;;  %v403_v54 = vrot.slane %v402_v46, 2  ;;  %v360_v55 = vadd.f32 %v359_v47, %v358_v39 }
 0x120   :  { %v344_v56 = vadd.f32 %v343_v48, %v342_v40  ;;  %v410_v57 = vadd.f32 %v409_v49, %v408_v41  ;;  %v349_v58 = vrot.slane %v348_v50, 1  ;;  %v415_v59 = vrot.slane %v414_v51, 2 }
 0x121   :  { %v399_v60 = vrot.slane %v398_v52, 1  ;;  %v356_v61 = vadd.f32 %v355_v53, %v354_v45  ;;  %v404_v62 = vadd.f32 %v403_v54, %v402_v46  ;;  %v361_v63 = vrot.slane %v360_v55, 1 }
 0x122   :  { %423 = vst [vmem:[#allocation9 + $0x20] sm:$0xff] %v344_v56  ;;  %v411_v0 = vrot.slane %v410_v57, 1  ;;  %v350_v1 = vadd.f32 %v349_v58, %v348_v50  ;;  %v416_v2 = vadd.f32 %v415_v59, %v414_v51 }
 0x123   :  { %v400_v3 = vadd.f32 %v399_v60, %v398_v52  ;;  %425 = vst [vmem:[#allocation9 + $0x30] sm:$0xff] %v356_v61  ;;  %v405_v4 = vrot.slane %v404_v62, 1  ;;  %v362_v5 = vadd.f32 %v361_v63, %v360_v55 }
 0x124   :  { %v412_v6 = vadd.f32 %v411_v0, %v410_v57  ;;  %424 = vst [vmem:[#allocation9 + $0x28] sm:$0xff] %v350_v1  ;;  %v417_v7 = vrot.slane %v416_v2, 1 }
 0x125   :  { %431 = vst [vmem:[#allocation11 + $0x20] sm:$0xff] %v400_v3  ;;  %v406_v8 = vadd.f32 %v405_v4, %v404_v62  ;;  %426 = vst [vmem:[#allocation9 + $0x38] sm:$0xff] %v362_v5 }
 0x126   :  { %433 = vst [vmem:[#allocation11 + $0x30] sm:$0xff] %v412_v6  ;;  %v418_v9 = vadd.f32 %v417_v7, %v416_v2 }
 0x127   :  { %575 = shalt.err (!%p572_p0)
}
 0x128   :  { %s576_s5 = scalar_lea.hbm %s733_s3, 1024 }
 0x129   :  { %p577_p1 = scmp.ne.s32.totalorder %s733_s3, %s576_s5  ;;  %p580_p2 = scmp.lt.u32.totalorder %s576_s5, %s733_s3 }
 0x12b   :  { %p582_p3 = pnand %p580_p2, %p577_p1 }
 0x12d   :  { %585 = shalt.err (!%p582_p3)
}
 0x12e   :  { %454 = dma.vmem_to_hbm [thread:$0]  %s452_s25, 1024, %s733_s3, [#allocation10]   ;;  %432 = vst [vmem:[#allocation11 + $0x28] sm:$0xff] %v406_v8  ;;  %434 = vst [vmem:[#allocation11 + $0x38] sm:$0xff] %v418_v9 }
 0x12f   :  { %s586_s11 = scalar_lea.vmem %s699_s27, 1024  ;;  %p591_p5 = scmp.lt.s32.totalorder %s699_s27, %s699_s27 }
 0x130   :  { %p587_p4 = scmp.ne.s32.totalorder %s699_s27, %s586_s11  ;;  %p592_p6 = scmp.lt.s32.totalorder %s586_s11, %s586_s11 }
 0x132   :  { %p593_p7 = por %p592_p6, %p591_p5 }
 0x134   :  { %p594_p8 = pnand %p593_p7, %p587_p4 }
 0x136   :  { %597 = shalt.err (!%p594_p8)
}
 0x137   :  { %s598_s1 = scalar_lea.hbm %s734_s4, 1024 }
 0x138   :  { %p599_p9 = scmp.ne.s32.totalorder %s734_s4, %s598_s1  ;;  %p602_p10 = scmp.lt.u32.totalorder %s598_s1, %s734_s4 }
 0x13a   :  { %p604_p11 = pnand %p602_p10, %p599_p9 }
 0x13c   :  { %607 = shalt.err (!%p604_p11)
}
 0x13d   :  { %464 = dma.vmem_to_hbm [thread:$0]  %s699_s27, 1024, %s734_s4, [#allocation10]  }
 0x13e   :  { %612 = dma.done.wait [#allocation5], 1024  }
 0x13f   :  { %613 = vsyncadd [#allocation5], 4294966272 }
 0x140   :  { %614 = dma.done.wait [#allocation10], 2048  }
 0x141   :  { %615 = vsyncadd [#allocation10], 4294965248 }
 0x142   :  { %474 = vsyncpa [#allocation4], 1 }
 0x143   :  { %475 = vsyncpa [#allocation7], 1 }
 0x144   :  { %476 = vsyncpa [#allocation5], 1 }
 0x145   :  { %477 = vsyncpa [#allocation10], 1 }

// kernel: generator_forward.24
= control target key start
LH: loop header
LB: loop body
LE: loop exit
PB: predicated region body
PF: predicated region fallthrough
CT: control target
= control target key end

     0   :  { %10 = vsyncpa [#allocation4], 0  ;;  %s693_s0 = inlined_call_operand.hbm [shape: bf16[32,256], index: 0, kind: input, shape index: {}]   ;;  %s694_s1 = inlined_call_operand.hbm [shape: bf16[256,32], index: 1, kind: input, shape index: {}]   ;;  %s695_s2 = inlined_call_operand.hbm [shape: f32[32,32], index: 2, kind: output, shape index: {0}]   ;;  %s696_s3 = inlined_call_operand.hbm [shape: f32[8,32], index: 3, kind: output, shape index: {1}]   ;;  %s697_s4 = inlined_call_operand.hbm [shape: f32[8,32], index: 4, kind: output, shape index: {2}]  }
   0x1   :  { %11 = vsyncpa [#allocation7], 0 }
   0x2   :  { %12 = vsyncpa [#allocation5], 0 }
   0x3   :  { %13 = vsyncpa [#allocation10], 0  ;;  %s570_s15 = smov [#allocation3]   ;;  %s452_s19 = scalar_lea.hbm %s693_s0, 512 }
   0x4   :  { %s19_s16 = sshll.u32 %s570_s15, 4  ;;  %p453_p0 = scmp.ne.s32.totalorder %s693_s0, %s452_s19  ;;  %s20_s16 = int_to_ptr.vmem [resolvable:$true] %s19_s16 }
   0x5   :  { %p456_p1 = scmp.lt.u32.totalorder %s452_s19, %s693_s0 }
   0x7   :  { %p458_p2 = pnand %p456_p1, %p453_p0 }
   0x9   :  { %461 = shalt.err (!%p458_p2)
}
   0xa   :  { %s462_s24 = scalar_lea.vmem %s20_s16, 512  ;;  %p467_p4 = scmp.lt.s32.totalorder %s20_s16, %s20_s16 }
   0xb   :  { %p463_p3 = scmp.ne.s32.totalorder %s20_s16, %s462_s24  ;;  %p468_p5 = scmp.lt.s32.totalorder %s462_s24, %s462_s24 }
   0xd   :  { %p469_p6 = por %p468_p5, %p467_p4 }
   0xf   :  { %p470_p7 = pnand %p469_p6, %p463_p3 }
  0x11   :  { %473 = shalt.err (!%p470_p7)
}
  0x12   :  { %s571_s25 = smov 128   ;;  %s572_s26 = smov 8  }
  0x13   :  { %25 = dma.hbm_to_vmem [thread:$0]  %s693_s0, 512, %s20_s16, [#allocation4], %s571_s25, %s571_s25, %s572_s26  }
  0x14   :  { %s573_s29 = smov [#allocation6]   ;;  %s474_s7 = scalar_lea.hbm %s694_s1, 2048 }
  0x15   :  { %s31_s30 = sshll.u32 %s573_s29, 4  ;;  %p475_p8 = scmp.ne.s32.totalorder %s694_s1, %s474_s7  ;;  %s32_s30 = int_to_ptr.vmem [resolvable:$true] %s31_s30 }
  0x16   :  { %p478_p9 = scmp.lt.u32.totalorder %s474_s7, %s694_s1 }
  0x18   :  { %p480_p10 = pnand %p478_p9, %p475_p8 }
  0x1a   :  { %483 = shalt.err (!%p480_p10)
}
  0x1b   :  { %s484_s12 = scalar_lea.vmem %s32_s30, 2048  ;;  %p489_p12 = scmp.lt.s32.totalorder %s32_s30, %s32_s30 }
  0x1c   :  { %p485_p11 = scmp.ne.s32.totalorder %s32_s30, %s484_s12  ;;  %p490_p13 = scmp.lt.s32.totalorder %s484_s12, %s484_s12 }
  0x1e   :  { %p491_p0 = por %p490_p13, %p489_p12 }
  0x20   :  { %p492_p1 = pnand %p491_p0, %p485_p11 }
  0x22   :  { %495 = shalt.err (!%p492_p1)
}
  0x23   :  { %s574_s0 = smov 64   ;;  %s575_s13 = smov 4  }
  0x24   :  { %37 = dma.hbm_to_vmem [thread:$0]  %s694_s1, 2048, %s32_s30, [#allocation7], %s574_s0, %s574_s0, %s575_s13  }
  0x25   :  { %562 = dma.done.wait [#allocation4], 512  }
  0x26   :  { %563 = vsyncadd [#allocation4], 4294966784 }
  0x27   :  { %564 = dma.done.wait [#allocation7], 2048  }
  0x28   :  { %565 = vsyncadd [#allocation7], 4294965248  ;;  %v430_v0 = vld [vmem:[#allocation6 + $0x40] sm:$0xff]   ;;  %v432_v2 = vld [vmem:[#allocation6 + $0x48] sm:$0xff]   ;;  %vm49_vm0 = vcmask 261120   ;;  %v576_v20 = vmov 0.0  }
  0x29   :  { %v431_v1 = vld [vmem:[#allocation6] sm:$0xff]   ;;  %376 = vmatprep.subr.bf16.mxu0 %v430_v0  ;;  %404 = vmatprep.subr.bf16.mxu1 %v430_v0  ;;  %v433_v3 = vld [vmem:[#allocation6 + $0x8] sm:$0xff]   ;;  %v434_v4 = vld [vmem:[#allocation6 + $0x50] sm:$0xff]   ;;  %50 = vst.msk [vmem:[#allocation2] sm:$0xff] %vm49_vm0, %v576_v20  ;;  %s577_s1 = smov [#allocation8]  }
  0x2a   :  { %377 = vmatpush3.bf16.msra.mxu0 %v431_v1  ;;  %412 = vmatpush3.bf16.msra.mxu1 %v431_v1  ;;  %v435_v5 = vld [vmem:[#allocation6 + $0x10] sm:$0xff]   ;;  %v436_v6 = vld [vmem:[#allocation6 + $0x58] sm:$0xff]   ;;  %v438_v8 = vld [vmem:[#allocation6 + $0x60] sm:$0xff]   ;;  %51 = vst.msk [vmem:[#allocation2 + $0x8] sm:$0xff] %vm49_vm0, %v576_v20  ;;  %s316_s16 = sshll.u32 %s577_s1, 4  ;;  %s317_s16 = int_to_ptr.vmem [resolvable:$true] %s316_s16 }
  0x2b   :  { %378 = vmatprep.subr.bf16.mxu0 %v432_v2  ;;  %405 = vmatprep.subr.bf16.mxu1 %v432_v2  ;;  %v437_v7 = vld [vmem:[#allocation6 + $0x18] sm:$0xff]   ;;  %v439_v9 = vld [vmem:[#allocation6 + $0x20] sm:$0xff]   ;;  %v440_v10 = vld [vmem:[#allocation6 + $0x68] sm:$0xff]   ;;  %52 = vst.msk [vmem:[#allocation2 + $0x10] sm:$0xff] %vm49_vm0, %v576_v20  ;;  %s496_s17 = scalar_lea.vmem %s317_s16, 512  ;;  %p501_p3 = scmp.lt.s32.totalorder %s317_s16, %s317_s16 }
  0x2c   :  { %v448_v11 = vld [vmem:[#allocation3 + $0x4] ss:$8 sps:$4 sm:$0xff]   ;;  %v451_v12 = vld [vmem:[#allocation3 + $0x14] ss:$8 sps:$4 sm:$0xff]   ;;  %v446_v18 = vld [vmem:[#allocation3] ss:$8 sps:$4 sm:$0xff]   ;;  %p497_p2 = scmp.ne.s32.totalorder %s317_s16, %s496_s17  ;;  %p502_p4 = scmp.lt.s32.totalorder %s496_s17, %s496_s17 }
  0x2d   :  { %v441_v13 = vld [vmem:[#allocation6 + $0x28] sm:$0xff]   ;;  %v442_v14 = vld [vmem:[#allocation6 + $0x70] sm:$0xff]   ;;  %242 = vmatprep.mubr.bf16.mxu0 %v448_v11  ;;  %250 = vmatprep.mubr.bf16.mxu1 %v451_v12  ;;  %v444_v16 = vld [vmem:[#allocation6 + $0x78] sm:$0xff]   ;;  %53 = vst.msk [vmem:[#allocation2 + $0x18] sm:$0xff] %vm49_vm0, %v576_v20 }
  0x2e   :  { %379 = vmatpush3.bf16.msra.mxu0 %v433_v3  ;;  %413 = vmatpush3.bf16.msra.mxu1 %v433_v3  ;;  %v443_v15 = vld [vmem:[#allocation6 + $0x30] sm:$0xff]   ;;  %v445_v17 = vld [vmem:[#allocation6 + $0x38] sm:$0xff]   ;;  %p503_p5 = por %p502_p4, %p501_p3 }
  0x2f   :  { %380 = vmatprep.subr.bf16.mxu0 %v434_v4  ;;  %406 = vmatprep.subr.bf16.mxu1 %v434_v4  ;;  %v449_v19 = vld [vmem:[#allocation3 + $0x10] ss:$8 sps:$4 sm:$0xff]  }
  0x30   :  { %v54_v23 = vld [vmem:[#allocation2] sm:$0xff]  ;;  %p504_p6 = pnand %p503_p5, %p497_p2 }
  0x31   :  { %v55_v31 = vld [vmem:[#allocation2 + $0x8] sm:$0xff] }
  0x32   :  { %381 = vmatpush3.bf16.msra.mxu0 %v435_v5  ;;  %414 = vmatpush3.bf16.msra.mxu1 %v435_v5  ;;  %v56_v25 = vld [vmem:[#allocation2 + $0x10] sm:$0xff] }
  0x33   :  { %382 = vmatprep.subr.bf16.mxu0 %v436_v6  ;;  %407 = vmatprep.subr.bf16.mxu1 %v436_v6 }
  0x34   :  { %v57_v33 = vld [vmem:[#allocation2 + $0x18] sm:$0xff] }
  0x36   :  { %383 = vmatpush3.bf16.msra.mxu0 %v437_v7  ;;  %415 = vmatpush3.bf16.msra.mxu1 %v437_v7 }
  0x37   :  { %384 = vmatprep.subr.bf16.mxu0 %v438_v8  ;;  %408 = vmatprep.subr.bf16.mxu1 %v438_v8 }
  0x3a   :  { %385 = vmatpush3.bf16.msra.mxu0 %v439_v9  ;;  %416 = vmatpush3.bf16.msra.mxu1 %v439_v9 }
  0x3b   :  { %386 = vmatprep.subr.bf16.mxu0 %v440_v10  ;;  %409 = vmatprep.subr.bf16.mxu1 %v440_v10 }
  0x3e   :  { %387 = vmatpush3.bf16.msra.mxu0 %v441_v13  ;;  %417 = vmatpush3.bf16.msra.mxu1 %v441_v13 }
  0x3f   :  { %388 = vmatprep.subr.bf16.mxu0 %v442_v14  ;;  %410 = vmatprep.subr.bf16.mxu1 %v442_v14 }
  0x42   :  { %389 = vmatpush3.bf16.msra.mxu0 %v443_v15  ;;  %418 = vmatpush3.bf16.msra.mxu1 %v443_v15 }
  0x43   :  { %390 = vmatprep.subr.bf16.mxu0 %v444_v16  ;;  %411 = vmatprep.subr.bf16.mxu1 %v444_v16 }
  0x46   :  { %391 = vmatpush3.bf16.msra.mxu0 %v445_v17  ;;  %419 = vmatpush3.bf16.msra.mxu1 %v445_v17 }
  0x49   :  { %243 = vmatmul.mubr.bf16.vlgmr.msra.gmra.mrb[0].mxu0 %v446_v18  ;;  %251 = vmatmul.mubr.bf16.vlgmr.msra.gmra.mrb[0].mxu1 %v449_v19 }
 0x11c   :  { %v392_v21 = vpop.f32.mrb[0].mxu0  ;;  %v398_v22 = vpop.f32.mrb[0].mxu1 }
 0x11d   :  { %v393_v24 = vpop.f32.mrb[1].mxu0  ;;  %v399_v26 = vpop.f32.mrb[1].mxu1 }
 0x11e   :  { %v394_v27 = vadd.f32 %v393_v24, %v392_v21  ;;  %v395_v28 = vpop.f32.mrb[2].mxu0  ;;  %v400_v29 = vadd.f32 %v399_v26, %v398_v22  ;;  %v401_v30 = vpop.f32.mrb[2].mxu1 }
 0x11f   :  { %v396_v32 = vpop.f32.mrb[3].mxu0  ;;  %v402_v34 = vpop.f32.mrb[3].mxu1 }
 0x120   :  { %v259_v35 = vadd.f32 %v394_v27, %v54_v23  ;;  %v261_v36 = vadd.f32 %v400_v29, %v56_v25  ;;  %v397_v37 = vadd.f32 %v396_v32, %v395_v28  ;;  %v403_v38 = vadd.f32 %v402_v34, %v401_v30 }
 0x122   :  { %264 = vst.msk [vmem:[#allocation2] sm:$0xff] %vm49_vm0, %v259_v35  ;;  %266 = vst.msk [vmem:[#allocation2 + $0x10] sm:$0xff] %vm49_vm0, %v261_v36  ;;  %v260_v39 = vadd.f32 %v397_v37, %v55_v31  ;;  %v262_v40 = vadd.f32 %v403_v38, %v57_v33 }
 0x124   :  { %265 = vst.msk [vmem:[#allocation2 + $0x8] sm:$0xff] %vm49_vm0, %v260_v39  ;;  %267 = vst.msk [vmem:[#allocation2 + $0x18] sm:$0xff] %vm49_vm0, %v262_v40 }
 0x129   :  { %v271_v41 = vld [vmem:[#allocation2] sm:$0xff]  ;;  %v273_v42 = vld [vmem:[#allocation2 + $0x10] sm:$0xff] }
 0x12a   :  { %275 = vst.msk [vmem:[#allocation8] sm:$0xff] %vm49_vm0, %v271_v41  ;;  %277 = vst.msk [vmem:[#allocation8 + $0x10] sm:$0xff] %vm49_vm0, %v273_v42  ;;  %v292_v43 = vmul.f32 %v271_v41, %v271_v41  ;;  %v294_v44 = vmul.f32 %v273_v42, %v273_v42  ;;  %v279_v47 = vsel %vm49_vm0, %v271_v41, 0.0  ;;  %v282_v49 = vsel %vm49_vm0, %v273_v42, 0.0 }
 0x12b   :  { %v272_v45 = vld [vmem:[#allocation2 + $0x8] sm:$0xff]  ;;  %v274_v46 = vld [vmem:[#allocation2 + $0x18] sm:$0xff] }
 0x12c   :  { %v280_v48 = vsel %vm49_vm0, %v272_v45, 0.0  ;;  %276 = vst.msk [vmem:[#allocation8 + $0x8] sm:$0xff] %vm49_vm0, %v272_v45  ;;  %278 = vst.msk [vmem:[#allocation8 + $0x18] sm:$0xff] %vm49_vm0, %v274_v46  ;;  %v293_v50 = vmul.f32 %v272_v45, %v272_v45 }
 0x12d   :  { %v281_v51 = vadd.f32 %v280_v48, %v279_v47 }
 0x12e   :  { %507 = shalt.err (!%p504_p6)
}
 0x12f   :  { %s508_s20 = scalar_lea.hbm %s695_s2, 512 }
 0x130   :  { %p509_p7 = scmp.ne.s32.totalorder %s695_s2, %s508_s20  ;;  %p512_p8 = scmp.lt.u32.totalorder %s508_s20, %s695_s2 }
 0x132   :  { %p514_p9 = pnand %p512_p8, %p509_p7 }
 0x134   :  { %517 = shalt.err (!%p514_p9)
}
 0x135   :  { %322 = dma.vmem_to_hbm [thread:$0]  %s317_s16, 512, %s695_s2, [#allocation5], %s571_s25, %s571_s25, %s572_s26   ;;  %v295_v52 = vmul.f32 %v274_v46, %v274_v46  ;;  %v296_v53 = vsel %vm49_vm0, %v292_v43, 0.0  ;;  %v297_v54 = vsel %vm49_vm0, %v293_v50, 0.0  ;;  %v299_v55 = vsel %vm49_vm0, %v294_v44, 0.0 }
 0x136   :  { %v283_v56 = vadd.f32 %v282_v49, %v281_v51  ;;  %v298_v57 = vadd.f32 %v297_v54, %v296_v53  ;;  %v284_v58 = vsel %vm49_vm0, %v274_v46, 0.0  ;;  %s578_s2 = smov [#allocation9]   ;;  %s579_s26 = smov [#allocation11]  }
 0x137   :  { %v301_v61 = vsel %vm49_vm0, %v295_v52, 0.0  ;;  %s329_s25 = sshll.u32 %s578_s2, 4  ;;  %s339_s29 = sshll.u32 %s579_s26, 4  ;;  %s330_s25 = int_to_ptr.vmem [resolvable:$true] %s329_s25  ;;  %s340_s29 = int_to_ptr.vmem [resolvable:$true] %s339_s29 }
 0x138   :  { %v285_v59 = vadd.f32 %v284_v58, %v283_v56  ;;  %v300_v60 = vadd.f32 %v299_v55, %v298_v57  ;;  %s518_s30 = scalar_lea.vmem %s330_s25, 128  ;;  %p523_p11 = scmp.lt.s32.totalorder %s330_s25, %s330_s25 }
 0x139   :  { %p519_p10 = scmp.ne.s32.totalorder %s330_s25, %s518_s30  ;;  %p524_p12 = scmp.lt.s32.totalorder %s518_s30, %s518_s30 }
 0x13a   :  { %v286_v62 = vrot.slane %v285_v59, 4  ;;  %v302_v63 = vadd.f32 %v301_v61, %v300_v60 }
 0x13b   :  { %p525_p13 = por %p524_p12, %p523_p11 }
 0x13c   :  { %v287_v0 = vadd.f32 %v286_v62, %v285_v59  ;;  %v303_v1 = vrot.slane %v302_v63, 4 }
 0x13d   :  { %p526_p0 = pnand %p525_p13, %p519_p10 }
 0x13e   :  { %v288_v2 = vrot.slane %v287_v0, 2  ;;  %v304_v3 = vadd.f32 %v303_v1, %v302_v63 }
 0x140   :  { %v289_v4 = vadd.f32 %v288_v2, %v287_v0  ;;  %v305_v5 = vrot.slane %v304_v3, 2 }
 0x142   :  { %v290_v6 = vrot.slane %v289_v4, 1  ;;  %v306_v7 = vadd.f32 %v305_v5, %v304_v3 }
 0x144   :  { %v291_v8 = vadd.f32 %v290_v6, %v289_v4  ;;  %v307_v9 = vrot.slane %v306_v7, 1 }
 0x146   :  { %309 = vst.msk [vmem:[#allocation9] sm:$0xff] %vm49_vm0, %v291_v8  ;;  %v308_v10 = vadd.f32 %v307_v9, %v306_v7 }
 0x147   :  { %529 = shalt.err (!%p526_p0)
}
 0x148   :  { %s530_s7 = scalar_lea.hbm %s696_s3, 128 }
 0x149   :  { %p531_p1 = scmp.ne.s32.totalorder %s696_s3, %s530_s7  ;;  %p534_p2 = scmp.lt.u32.totalorder %s530_s7, %s696_s3 }
 0x14b   :  { %p536_p3 = pnand %p534_p2, %p531_p1 }
 0x14d   :  { %539 = shalt.err (!%p536_p3)
}
 0x14e   :  { %332 = dma.vmem_to_hbm [thread:$0]  %s330_s25, 128, %s696_s3, [#allocation10]   ;;  %310 = vst.msk [vmem:[#allocation11] sm:$0xff] %vm49_vm0, %v308_v10 }
 0x14f   :  { %s540_s13 = scalar_lea.vmem %s340_s29, 128  ;;  %p545_p5 = scmp.lt.s32.totalorder %s340_s29, %s340_s29 }
 0x150   :  { %p541_p4 = scmp.ne.s32.totalorder %s340_s29, %s540_s13  ;;  %p546_p6 = scmp.lt.s32.totalorder %s540_s13, %s540_s13 }
 0x152   :  { %p547_p7 = por %p546_p6, %p545_p5 }
 0x154   :  { %p548_p8 = pnand %p547_p7, %p541_p4 }
 0x156   :  { %551 = shalt.err (!%p548_p8)
}
 0x157   :  { %s552_s1 = scalar_lea.hbm %s697_s4, 128 }
 0x158   :  { %p553_p9 = scmp.ne.s32.totalorder %s697_s4, %s552_s1  ;;  %p556_p10 = scmp.lt.u32.totalorder %s552_s1, %s697_s4 }
 0x15a   :  { %p558_p11 = pnand %p556_p10, %p553_p9 }
 0x15c   :  { %561 = shalt.err (!%p558_p11)
}
 0x15d   :  { %342 = dma.vmem_to_hbm [thread:$0]  %s340_s29, 128, %s697_s4, [#allocation10]  }
 0x15e   :  { %566 = dma.done.wait [#allocation5], 512  }
 0x15f   :  { %567 = vsyncadd [#allocation5], 4294966784 }
 0x160   :  { %568 = dma.done.wait [#allocation10], 256  }
 0x161   :  { %569 = vsyncadd [#allocation10], 4294967040 }
 0x162   :  { %352 = vsyncpa [#allocation4], 1 }
 0x163   :  { %353 = vsyncpa [#allocation7], 1 }
 0x164   :  { %354 = vsyncpa [#allocation5], 1 }
 0x165   :  { %355 = vsyncpa [#allocation10], 1 }

// kernel: generator_forward.27
= control target key start
LH: loop header
LB: loop body
LE: loop exit
PB: predicated region body
PF: predicated region fallthrough
CT: control target
= control target key end

     0   :  { %10 = vsyncpa [#allocation3], 0  ;;  %s460_s0 = inlined_call_operand.hbm [shape: f32[32,128], index: 0, kind: input, shape index: {}]   ;;  %s461_s1 = inlined_call_operand.hbm [shape: f32[1,128], index: 1, kind: input, shape index: {}]   ;;  %s462_s2 = inlined_call_operand.hbm [shape: f32[1,128], index: 2, kind: input, shape index: {}]   ;;  %s463_s3 = inlined_call_operand.hbm [shape: f32[1,128], index: 3, kind: input, shape index: {}]   ;;  %s464_s4 = inlined_call_operand.hbm [shape: f32[1,128], index: 4, kind: input, shape index: {}]   ;;  %s465_s5 = inlined_call_operand.hbm [shape: bf16[32,128], index: 5, kind: output, shape index: {}]  }
   0x1   :  { %11 = vsyncpa [#allocation6], 0 }
   0x2   :  { %12 = vsyncpa [#allocation9], 0 }
   0x3   :  { %13 = vsyncpa [#allocation4], 0  ;;  %s348_s18 = smov [#allocation5]   ;;  %s349_s20 = smov [#allocation8]  }
   0x4   :  { %s32_s19 = sshll.u32 %s348_s18, 4  ;;  %s52_s21 = sshll.u32 %s349_s20, 4  ;;  %s33_s19 = int_to_ptr.vmem [resolvable:$true] %s32_s19  ;;  %s53_s21 = int_to_ptr.vmem [resolvable:$true] %s52_s21 }
   0x5   :  { %s208_s24 = scalar_lea.hbm %s461_s1, 16 }
   0x6   :  { %p209_p0 = scmp.ne.s32.totalorder %s461_s1, %s208_s24  ;;  %p212_p1 = scmp.lt.u32.totalorder %s208_s24, %s461_s1 }
   0x8   :  { %p214_p2 = pnand %p212_p1, %p209_p0 }
   0xa   :  { %217 = shalt.err (!%p214_p2)
}
   0xb   :  { %s218_s29 = scalar_lea.vmem %s33_s19, 16  ;;  %s222_s30 = scalar_lea.vmem %s33_s19, 32 }
   0xc   :  { %p219_p3 = scmp.ne.s32.totalorder %s33_s19, %s218_s29  ;;  %p223_p4 = scmp.lt.s32.totalorder %s33_s19, %s33_s19 }
   0xd   :  { %p224_p5 = scmp.lt.s32.totalorder %s222_s30, %s218_s29 }
   0xf   :  { %p225_p6 = por %p224_p5, %p223_p4 }
  0x11   :  { %p226_p7 = pnand %p225_p6, %p219_p3 }
  0x13   :  { %229 = shalt.err (!%p226_p7)
}
  0x14   :  { %35 = dma.hbm_to_vmem [thread:$0]  %s461_s1, 16, %s33_s19, [#allocation6]  }
  0x15   :  { %s230_s10 = scalar_lea.hbm %s463_s3, 16 }
  0x16   :  { %p231_p8 = scmp.ne.s32.totalorder %s463_s3, %s230_s10  ;;  %p234_p9 = scmp.lt.u32.totalorder %s230_s10, %s463_s3 }
  0x18   :  { %p236_p10 = pnand %p234_p9, %p231_p8 }
  0x1a   :  { %239 = shalt.err (!%p236_p10)
}
  0x1b   :  { %s240_s15 = scalar_lea.vmem %s53_s21, 16  ;;  %s244_s16 = scalar_lea.vmem %s53_s21, 32 }
  0x1c   :  { %p241_p11 = scmp.ne.s32.totalorder %s53_s21, %s240_s15  ;;  %p245_p12 = scmp.lt.s32.totalorder %s53_s21, %s53_s21 }
  0x1d   :  { %p246_p13 = scmp.lt.s32.totalorder %s244_s16, %s240_s15 }
  0x1f   :  { %p247_p0 = por %p246_p13, %p245_p12 }
  0x21   :  { %p248_p1 = pnand %p247_p0, %p241_p11 }
  0x23   :  { %251 = shalt.err (!%p248_p1)
}
  0x24   :  { %55 = dma.hbm_to_vmem [thread:$0]  %s463_s3, 16, %s53_s21, [#allocation9]  }
  0x25   :  { %s350_s18 = smov [#allocation2]   ;;  %s252_s23 = scalar_lea.hbm %s460_s0, 512 }
  0x26   :  { %s19_s19 = sshll.u32 %s350_s18, 4  ;;  %p253_p2 = scmp.ne.s32.totalorder %s460_s0, %s252_s23  ;;  %s20_s19 = int_to_ptr.vmem [resolvable:$true] %s19_s19 }
  0x27   :  { %p256_p3 = scmp.lt.u32.totalorder %s252_s23, %s460_s0 }
  0x29   :  { %p258_p4 = pnand %p256_p3, %p253_p2 }
  0x2b   :  { %261 = shalt.err (!%p258_p4)
}
  0x2c   :  { %s262_s28 = scalar_lea.vmem %s20_s19, 512  ;;  %p267_p6 = scmp.lt.s32.totalorder %s20_s19, %s20_s19 }
  0x2d   :  { %p263_p5 = scmp.ne.s32.totalorder %s20_s19, %s262_s28  ;;  %p268_p7 = scmp.lt.s32.totalorder %s262_s28, %s262_s28 }
  0x2f   :  { %p269_p8 = por %p268_p7, %p267_p6 }
  0x31   :  { %p270_p9 = pnand %p269_p8, %p263_p5 }
  0x33   :  { %273 = shalt.err (!%p270_p9)
}
  0x34   :  { %s351_s3 = smov 128   ;;  %s352_s21 = smov 8  }
  0x35   :  { %25 = dma.hbm_to_vmem [thread:$0]  %s460_s0, 512, %s20_s19, [#allocation3], %s351_s3, %s351_s3, %s352_s21  }
  0x36   :  { %s353_s6 = smov [#allocation7]   ;;  %s354_s8 = smov [#allocation10]  }
  0x37   :  { %s42_s7 = sshll.u32 %s353_s6, 4  ;;  %s62_s9 = sshll.u32 %s354_s8, 4  ;;  %s43_s7 = int_to_ptr.vmem [resolvable:$true] %s42_s7  ;;  %s63_s9 = int_to_ptr.vmem [resolvable:$true] %s62_s9 }
  0x38   :  { %s274_s12 = scalar_lea.hbm %s462_s2, 16 }
  0x39   :  { %p275_p10 = scmp.ne.s32.totalorder %s462_s2, %s274_s12  ;;  %p278_p11 = scmp.lt.u32.totalorder %s274_s12, %s462_s2 }
  0x3b   :  { %p280_p12 = pnand %p278_p11, %p275_p10 }
  0x3d   :  { %283 = shalt.err (!%p280_p12)
}
  0x3e   :  { %s284_s0 = scalar_lea.vmem %s43_s7, 16  ;;  %s288_s1 = scalar_lea.vmem %s43_s7, 32 }
  0x3f   :  { %p285_p13 = scmp.ne.s32.totalorder %s43_s7, %s284_s0  ;;  %p289_p0 = scmp.lt.s32.totalorder %s43_s7, %s43_s7 }
  0x40   :  { %p290_p1 = scmp.lt.s32.totalorder %s288_s1, %s284_s0 }
  0x42   :  { %p291_p2 = por %p290_p1, %p289_p0 }
  0x44   :  { %p292_p3 = pnand %p291_p2, %p285_p13 }
  0x46   :  { %295 = shalt.err (!%p292_p3)
}
  0x47   :  { %45 = dma.hbm_to_vmem [thread:$0]  %s462_s2, 16, %s43_s7, [#allocation6]  }
  0x48   :  { %s296_s22 = scalar_lea.hbm %s464_s4, 16 }
  0x49   :  { %p297_p4 = scmp.ne.s32.totalorder %s464_s4, %s296_s22  ;;  %p300_p5 = scmp.lt.u32.totalorder %s296_s22, %s464_s4 }
  0x4b   :  { %p302_p6 = pnand %p300_p5, %p297_p4 }
  0x4d   :  { %305 = shalt.err (!%p302_p6)
}
  0x4e   :  { %s306_s27 = scalar_lea.vmem %s63_s9, 16  ;;  %s310_s28 = scalar_lea.vmem %s63_s9, 32 }
  0x4f   :  { %p307_p7 = scmp.ne.s32.totalorder %s63_s9, %s306_s27  ;;  %p311_p8 = scmp.lt.s32.totalorder %s63_s9, %s63_s9 }
  0x50   :  { %p312_p9 = scmp.lt.s32.totalorder %s310_s28, %s306_s27 }
  0x52   :  { %p313_p10 = por %p312_p9, %p311_p8 }
  0x54   :  { %p314_p11 = pnand %p313_p10, %p307_p7 }
  0x56   :  { %317 = shalt.err (!%p314_p11)
}
  0x57   :  { %65 = dma.hbm_to_vmem [thread:$0]  %s464_s4, 16, %s63_s9, [#allocation9]  }
  0x58   :  { %340 = dma.done.wait [#allocation3], 512  }
  0x59   :  { %341 = vsyncadd [#allocation3], 4294966784 }
  0x5a   :  { %342 = dma.done.wait [#allocation6], 32  }
  0x5b   :  { %343 = vsyncadd [#allocation6], 4294967264 }
  0x5c   :  { %344 = dma.done.wait [#allocation9], 32  }
  0x5d   :  { %345 = vsyncadd [#allocation9], 4294967264  ;;  %v81_v0 = vld [vmem:[#allocation7] sm:$0x1]  ;;  %v100_v2 = vlaneseq  ;;  %v85_v5 = vld [vmem:[#allocation2 + $0x8] sm:$0xff]  ;;  %s355_s4 = smov [#allocation11]  }
  0x5e   :  { %v82_v1 = vadd.f32 1e-05, %v81_v0  ;;  %v84_v4 = vld [vmem:[#allocation2] sm:$0xff]  ;;  %v86_v7 = vld [vmem:[#allocation2 + $0x10] sm:$0xff]  ;;  %v87_v8 = vld [vmem:[#allocation2 + $0x18] sm:$0xff]  ;;  %s160_s21 = sshll.u32 %s355_s4, 4  ;;  %s161_s21 = int_to_ptr.vmem [resolvable:$true] %s160_s21 }
  0x5f   :  { %v101_v3 = vshrl.u32 %v100_v2, 7  ;;  %v174_v6 = vld [vmem:[#allocation5] ss:$0 sm:$0xff]  ;;  %v175_v16 = vld [vmem:[#allocation8] ss:$0 sm:$0xff]  ;;  %s318_s29 = scalar_lea.vmem %s161_s21, 256  ;;  %p323_p13 = scmp.lt.s32.totalorder %s161_s21, %s161_s21 }
  0x60   :  { %206 = vrsqrt.f32 %v82_v1  ;;  %v95_v10 = vsub.f32 %v84_v4, %v174_v6  ;;  %v96_v11 = vsub.f32 %v85_v5, %v174_v6  ;;  %v97_v12 = vsub.f32 %v86_v7, %v174_v6  ;;  %v176_v21 = vld [vmem:[#allocation10] ss:$0 sm:$0xff]  ;;  %p319_p12 = scmp.ne.s32.totalorder %s161_s21, %s318_s29  ;;  %p324_p0 = scmp.lt.s32.totalorder %s318_s29, %s318_s29 }
  0x61   :  { %v102_v9 = vsub.s32 0, %v101_v3  ;;  %v98_v13 = vsub.f32 %v87_v8, %v174_v6 }
  0x62   :  { %p325_p1 = por %p324_p0, %p323_p13 }
  0x64   :  { %p326_p2 = pnand %p325_p1, %p319_p12 }
  0x6a   :  { %v207_v14 = vpop.eup %206 }
  0x6b   :  { %v103_v15 = vrot.slane %v207_v14, %v102_v9 }
  0x6d   :  { %v105_v17 = vmul.f32 %v103_v15, %v95_v10  ;;  %v106_v18 = vmul.f32 %v103_v15, %v96_v11  ;;  %v107_v19 = vmul.f32 %v103_v15, %v97_v12  ;;  %v108_v20 = vmul.f32 %v103_v15, %v98_v13 }
  0x6f   :  { %v116_v22 = vmul.f32 %v175_v16, %v105_v17  ;;  %v117_v23 = vmul.f32 %v175_v16, %v106_v18  ;;  %v118_v24 = vmul.f32 %v175_v16, %v107_v19  ;;  %v119_v25 = vmul.f32 %v175_v16, %v108_v20 }
  0x71   :  { %v127_v26 = vadd.f32 %v176_v21, %v116_v22  ;;  %v128_v27 = vadd.f32 %v176_v21, %v117_v23  ;;  %v129_v28 = vadd.f32 %v176_v21, %v118_v24  ;;  %v130_v29 = vadd.f32 %v176_v21, %v119_v25 }
  0x73   :  { %v131_v30 = vmax.f32 %v127_v26, 0.0  ;;  %v132_v31 = vmax.f32 %v128_v27, 0.0  ;;  %v133_v32 = vmax.f32 %v129_v28, 0.0  ;;  %v134_v33 = vmax.f32 %v130_v29, 0.0 }
  0x75   :  { %v188_v34 = vpack.c.bf16 %v132_v31, %v131_v30  ;;  %v193_v35 = vpack.c.bf16 %v134_v33, %v133_v32 }
  0x77   :  { %189 = vst [vmem:[#allocation11] sm:$0xff] %v188_v34   ;;  %195 = vst [vmem:[#allocation11 + $0x8] sm:$0xff] %v193_v35  }
  0x78   :  { %329 = shalt.err (!%p326_p2)
}
  0x79   :  { %s330_s7 = scalar_lea.hbm %s465_s5, 256 }
  0x7a   :  { %p331_p3 = scmp.ne.s32.totalorder %s465_s5, %s330_s7  ;;  %p334_p4 = scmp.lt.u32.totalorder %s330_s7, %s465_s5 }
  0x7c   :  { %p336_p5 = pnand %p334_p4, %p331_p3 }
  0x7e   :  { %339 = shalt.err (!%p336_p5)
}
  0x7f   :  { %s356_s12 = smov 64   ;;  %s357_s13 = smov 4  }
  0x80   :  { %166 = dma.vmem_to_hbm [thread:$0]  %s161_s21, 256, %s465_s5, [#allocation4], %s356_s12, %s356_s12, %s357_s13  }
  0x81   :  { %346 = dma.done.wait [#allocation4], 256  }
  0x82   :  { %347 = vsyncadd [#allocation4], 4294967040 }
  0x83   :  { %170 = vsyncpa [#allocation3], 1 }
  0x84   :  { %171 = vsyncpa [#allocation6], 1 }
  0x85   :  { %172 = vsyncpa [#allocation9], 1 }
  0x86   :  { %173 = vsyncpa [#allocation4], 1 }

// kernel: generator_forward.28
= control target key start
LH: loop header
LB: loop body
LE: loop exit
PB: predicated region body
PF: predicated region fallthrough
CT: control target
= control target key end

     0   :  { %10 = vsyncpa [#allocation4], 0  ;;  %s968_s0 = inlined_call_operand.hbm [shape: bf16[128,128], index: 0, kind: input, shape index: {}]   ;;  %s969_s1 = inlined_call_operand.hbm [shape: bf16[128,16], index: 1, kind: input, shape index: {}]   ;;  %s970_s2 = inlined_call_operand.hbm [shape: f32[128,16], index: 2, kind: output, shape index: {0}]   ;;  %s971_s3 = inlined_call_operand.hbm [shape: f32[8,16], index: 3, kind: output, shape index: {1}]   ;;  %s972_s4 = inlined_call_operand.hbm [shape: f32[8,16], index: 4, kind: output, shape index: {2}]  }
   0x1   :  { %11 = vsyncpa [#allocation7], 0 }
   0x2   :  { %12 = vsyncpa [#allocation5], 0 }
   0x3   :  { %13 = vsyncpa [#allocation10], 0  ;;  %s736_s15 = smov [#allocation3]   ;;  %s618_s19 = scalar_lea.hbm %s968_s0, 1024 }
   0x4   :  { %s19_s16 = sshll.u32 %s736_s15, 4  ;;  %p619_p0 = scmp.ne.s32.totalorder %s968_s0, %s618_s19  ;;  %s20_s16 = int_to_ptr.vmem [resolvable:$true] %s19_s16 }
   0x5   :  { %p622_p1 = scmp.lt.u32.totalorder %s618_s19, %s968_s0 }
   0x7   :  { %p624_p2 = pnand %p622_p1, %p619_p0 }
   0x9   :  { %627 = shalt.err (!%p624_p2)
}
   0xa   :  { %s628_s24 = scalar_lea.vmem %s20_s16, 1024  ;;  %p633_p4 = scmp.lt.s32.totalorder %s20_s16, %s20_s16 }
   0xb   :  { %p629_p3 = scmp.ne.s32.totalorder %s20_s16, %s628_s24  ;;  %p634_p5 = scmp.lt.s32.totalorder %s628_s24, %s628_s24 }
   0xd   :  { %p635_p6 = por %p634_p5, %p633_p4 }
   0xf   :  { %p636_p7 = pnand %p635_p6, %p629_p3 }
  0x11   :  { %639 = shalt.err (!%p636_p7)
}
  0x12   :  { %s737_s25 = smov 64   ;;  %s738_s26 = smov 4  }
  0x13   :  { %25 = dma.hbm_to_vmem [thread:$0]  %s968_s0, 1024, %s20_s16, [#allocation4], %s737_s25, %s737_s25, %s738_s26  }
  0x14   :  { %s739_s29 = smov [#allocation6]   ;;  %s640_s7 = scalar_lea.hbm %s969_s1, 1024 }
  0x15   :  { %s31_s30 = sshll.u32 %s739_s29, 4  ;;  %p641_p8 = scmp.ne.s32.totalorder %s969_s1, %s640_s7  ;;  %s32_s30 = int_to_ptr.vmem [resolvable:$true] %s31_s30 }
  0x16   :  { %p644_p9 = scmp.lt.u32.totalorder %s640_s7, %s969_s1 }
  0x18   :  { %p646_p10 = pnand %p644_p9, %p641_p8 }
  0x1a   :  { %649 = shalt.err (!%p646_p10)
}
  0x1b   :  { %s650_s12 = scalar_lea.vmem %s32_s30, 1024  ;;  %p655_p12 = scmp.lt.s32.totalorder %s32_s30, %s32_s30 }
  0x1c   :  { %p651_p11 = scmp.ne.s32.totalorder %s32_s30, %s650_s12  ;;  %p656_p13 = scmp.lt.s32.totalorder %s650_s12, %s650_s12 }
  0x1e   :  { %p657_p0 = por %p656_p13, %p655_p12 }
  0x20   :  { %p658_p1 = pnand %p657_p0, %p651_p11 }
  0x22   :  { %661 = shalt.err (!%p658_p1)
}
  0x23   :  { %37 = dma.hbm_to_vmem [thread:$0]  %s969_s1, 1024, %s32_s30, [#allocation7], %s737_s25, %s737_s25, %s738_s26  }
  0x24   :  { %728 = dma.done.wait [#allocation4], 1024  }
  0x25   :  { %729 = vsyncadd [#allocation4], 4294966272 }
  0x26   :  { %730 = dma.done.wait [#allocation7], 1024  }
  0x27   :  { %731 = vsyncadd [#allocation7], 4294966272  ;;  %vm49_vm0 = vcmask 130048   ;;  %v740_v0 = vmov 0.0   ;;  %v602_v1 = vld [vmem:[#allocation6] sm:$0xff]   ;;  %v603_v2 = vld [vmem:[#allocation6 + $0x8] sm:$0xff]  }
  0x28   :  { %52 = vst.msk [vmem:[#allocation2 + $0x10] sm:$0xff] %vm49_vm0, %v740_v0  ;;  %50 = vst.msk [vmem:[#allocation2] sm:$0xff] %vm49_vm0, %v740_v0  ;;  %544 = vmatprep.subr.bf16.mxu0 %v602_v1  ;;  %576 = vmatprep.subr.bf16.mxu1 %v602_v1  ;;  %v604_v3 = vld [vmem:[#allocation6 + $0x10] sm:$0xff]   ;;  %v605_v4 = vld [vmem:[#allocation6 + $0x18] sm:$0xff]   ;;  %s741_s1 = smov [#allocation8]  }
  0x29   :  { %51 = vst.msk [vmem:[#allocation2 + $0x8] sm:$0xff] %vm49_vm0, %v740_v0  ;;  %53 = vst.msk [vmem:[#allocation2 + $0x18] sm:$0xff] %vm49_vm0, %v740_v0  ;;  %545 = vmatpush3.bf16.msra.mxu0 %v602_v1  ;;  %584 = vmatpush3.bf16.msra.mxu1 %v602_v1  ;;  %v610_v5 = vld [vmem:[#allocation3] sm:$0xff]   ;;  %v607_v8 = vld [vmem:[#allocation6 + $0x28] sm:$0xff]   ;;  %s472_s14 = sshll.u32 %s741_s1, 4  ;;  %s860_s14 = int_to_ptr.vmem [resolvable:$true] %s472_s14 }
  0x2a   :  { %54 = vst.msk [vmem:[#allocation2 + $0x20] sm:$0xff] %vm49_vm0, %v740_v0  ;;  %55 = vst.msk [vmem:[#allocation2 + $0x28] sm:$0xff] %vm49_vm0, %v740_v0  ;;  %546 = vmatprep.subr.bf16.mxu0 %v603_v2  ;;  %577 = vmatprep.subr.bf16.mxu1 %v603_v2  ;;  %v606_v6 = vld [vmem:[#allocation6 + $0x20] sm:$0xff]   ;;  %v608_v9 = vld [vmem:[#allocation6 + $0x30] sm:$0xff]   ;;  %s662_s15 = scalar_lea.vmem %s860_s14, 2048  ;;  %p667_p3 = scmp.lt.s32.totalorder %s860_s14, %s860_s14 }
  0x2b   :  { %56 = vst.msk [vmem:[#allocation2 + $0x30] sm:$0xff] %vm49_vm0, %v740_v0  ;;  %57 = vst.msk [vmem:[#allocation2 + $0x38] sm:$0xff] %vm49_vm0, %v740_v0  ;;  %560 = vmatprep.mubr.bf16.mxu0 %v610_v5  ;;  %v614_v7 = vld [vmem:[#allocation3 + $0x20] sm:$0xff]   ;;  %v609_v10 = vld [vmem:[#allocation6 + $0x38] sm:$0xff]   ;;  %p663_p2 = scmp.ne.s32.totalorder %s860_s14, %s662_s15  ;;  %p668_p4 = scmp.lt.s32.totalorder %s662_s15, %s662_s15 }
  0x2c   :  { %58 = vst.msk [vmem:[#allocation2 + $0x40] sm:$0xff] %vm49_vm0, %v740_v0  ;;  %59 = vst.msk [vmem:[#allocation2 + $0x48] sm:$0xff] %vm49_vm0, %v740_v0  ;;  %568 = vmatprep.mubr.bf16.mxu1 %v614_v7  ;;  %v611_v11 = vld [vmem:[#allocation3 + $0x8] sm:$0xff]   ;;  %v612_v13 = vld [vmem:[#allocation3 + $0x10] sm:$0xff]  }
  0x2d   :  { %60 = vst.msk [vmem:[#allocation2 + $0x50] sm:$0xff] %vm49_vm0, %v740_v0  ;;  %61 = vst.msk [vmem:[#allocation2 + $0x58] sm:$0xff] %vm49_vm0, %v740_v0  ;;  %547 = vmatpush3.bf16.msra.mxu0 %v603_v2  ;;  %585 = vmatpush3.bf16.msra.mxu1 %v603_v2  ;;  %v615_v12 = vld [vmem:[#allocation3 + $0x28] sm:$0xff]   ;;  %v616_v14 = vld [vmem:[#allocation3 + $0x30] sm:$0xff]   ;;  %p669_p5 = por %p668_p4, %p667_p3 }
  0x2e   :  { %62 = vst.msk [vmem:[#allocation2 + $0x60] sm:$0xff] %vm49_vm0, %v740_v0  ;;  %63 = vst.msk [vmem:[#allocation2 + $0x68] sm:$0xff] %vm49_vm0, %v740_v0  ;;  %548 = vmatprep.subr.bf16.mxu0 %v604_v3  ;;  %578 = vmatprep.subr.bf16.mxu1 %v604_v3  ;;  %v613_v15 = vld [vmem:[#allocation3 + $0x18] sm:$0xff]  }
  0x2f   :  { %64 = vst.msk [vmem:[#allocation2 + $0x70] sm:$0xff] %vm49_vm0, %v740_v0  ;;  %65 = vst.msk [vmem:[#allocation2 + $0x78] sm:$0xff] %vm49_vm0, %v740_v0  ;;  %v617_v16 = vld [vmem:[#allocation3 + $0x38] sm:$0xff]   ;;  %v68_v17 = vld [vmem:[#allocation2 + $0x10] sm:$0xff]  ;;  %p670_p6 = pnand %p669_p5, %p663_p2 }
  0x30   :  { %v66_v19 = vld [vmem:[#allocation2] sm:$0xff]  ;;  %v69_v22 = vld [vmem:[#allocation2 + $0x18] sm:$0xff]  ;;  %v67_v27 = vld [vmem:[#allocation2 + $0x8] sm:$0xff] }
  0x31   :  { %549 = vmatpush3.bf16.msra.mxu0 %v604_v3  ;;  %586 = vmatpush3.bf16.msra.mxu1 %v604_v3  ;;  %v70_v43 = vld [vmem:[#allocation2 + $0x20] sm:$0xff]  ;;  %v71_v51 = vld [vmem:[#allocation2 + $0x28] sm:$0xff] }
  0x32   :  { %550 = vmatprep.subr.bf16.mxu0 %v605_v4  ;;  %579 = vmatprep.subr.bf16.mxu1 %v605_v4  ;;  %v72_v41 = vld [vmem:[#allocation2 + $0x30] sm:$0xff]  ;;  %v73_v46 = vld [vmem:[#allocation2 + $0x38] sm:$0xff] }
  0x33   :  { %v74_v20 = vld [vmem:[#allocation2 + $0x40] sm:$0xff]  ;;  %v75_v30 = vld [vmem:[#allocation2 + $0x48] sm:$0xff] }
  0x34   :  { %v76_v18 = vld [vmem:[#allocation2 + $0x50] sm:$0xff]  ;;  %v77_v24 = vld [vmem:[#allocation2 + $0x58] sm:$0xff] }
  0x35   :  { %551 = vmatpush3.bf16.msra.mxu0 %v605_v4  ;;  %587 = vmatpush3.bf16.msra.mxu1 %v605_v4  ;;  %v78_v44 = vld [vmem:[#allocation2 + $0x60] sm:$0xff]  ;;  %v79_v54 = vld [vmem:[#allocation2 + $0x68] sm:$0xff] }
  0x36   :  { %552 = vmatprep.subr.bf16.mxu0 %v606_v6  ;;  %580 = vmatprep.subr.bf16.mxu1 %v606_v6  ;;  %v80_v42 = vld [vmem:[#allocation2 + $0x70] sm:$0xff]  ;;  %v81_v48 = vld [vmem:[#allocation2 + $0x78] sm:$0xff] }
  0x39   :  { %553 = vmatpush3.bf16.msra.mxu0 %v606_v6  ;;  %588 = vmatpush3.bf16.msra.mxu1 %v606_v6 }
  0x3a   :  { %554 = vmatprep.subr.bf16.mxu0 %v607_v8  ;;  %581 = vmatprep.subr.bf16.mxu1 %v607_v8 }
  0x3d   :  { %555 = vmatpush3.bf16.msra.mxu0 %v607_v8  ;;  %589 = vmatpush3.bf16.msra.mxu1 %v607_v8 }
  0x3e   :  { %556 = vmatprep.subr.bf16.mxu0 %v608_v9  ;;  %582 = vmatprep.subr.bf16.mxu1 %v608_v9 }
  0x41   :  { %557 = vmatpush3.bf16.msra.mxu0 %v608_v9  ;;  %590 = vmatpush3.bf16.msra.mxu1 %v608_v9 }
  0x42   :  { %558 = vmatprep.subr.bf16.mxu0 %v609_v10  ;;  %583 = vmatprep.subr.bf16.mxu1 %v609_v10 }
  0x45   :  { %559 = vmatpush3.bf16.msra.mxu0 %v609_v10  ;;  %591 = vmatpush3.bf16.msra.mxu1 %v609_v10 }
  0x48   :  { %561 = vmatmul.mubr.bf16.vlgmr.msra.gmra.mrb[0].mxu0 %v611_v11  ;;  %569 = vmatmul.mubr.bf16.vlgmr.msra.gmra.mrb[0].mxu1 %v615_v12 }
  0x49   :  { %564 = vmatprep.mubr.bf16.mxu0 %v612_v13  ;;  %572 = vmatprep.mubr.bf16.mxu1 %v616_v14 }
  0x50   :  { %565 = vmatmul.mubr.bf16.gmra.mrb[4].mxu0 %v613_v15  ;;  %573 = vmatmul.mubr.bf16.gmra.mrb[4].mxu1 %v617_v16 }
 0x11b   :  { %v562_v21 = vpop.f32.mrb[0].mxu0  ;;  %v570_v23 = vpop.f32.mrb[0].mxu1 }
 0x11c   :  { %v309_v25 = vadd.f32 %v562_v21, %v68_v17  ;;  %v244_v26 = vpop.f32.mrb[1].mxu0  ;;  %v317_v28 = vadd.f32 %v570_v23, %v76_v18  ;;  %v276_v29 = vpop.f32.mrb[1].mxu1 }
 0x11d   :  { %v307_v31 = vadd.f32 %v244_v26, %v66_v19  ;;  %v563_v32 = vpop.f32.mrb[2].mxu0  ;;  %v315_v33 = vadd.f32 %v276_v29, %v74_v20  ;;  %v571_v34 = vpop.f32.mrb[2].mxu1 }
 0x11e   :  { %326 = vst.msk [vmem:[#allocation2 + $0x10] sm:$0xff] %vm49_vm0, %v309_v25  ;;  %v310_v35 = vadd.f32 %v563_v32, %v69_v22  ;;  %v247_v36 = vpop.f32.mrb[3].mxu0  ;;  %334 = vst.msk [vmem:[#allocation2 + $0x50] sm:$0xff] %vm49_vm0, %v317_v28  ;;  %v318_v37 = vadd.f32 %v571_v34, %v77_v24  ;;  %v279_v38 = vpop.f32.mrb[3].mxu1 }
 0x11f   :  { %324 = vst.msk [vmem:[#allocation2] sm:$0xff] %vm49_vm0, %v307_v31  ;;  %v308_v39 = vadd.f32 %v247_v36, %v67_v27  ;;  %332 = vst.msk [vmem:[#allocation2 + $0x40] sm:$0xff] %vm49_vm0, %v315_v33  ;;  %v316_v40 = vadd.f32 %v279_v38, %v75_v30 }
 0x120   :  { %327 = vst.msk [vmem:[#allocation2 + $0x18] sm:$0xff] %vm49_vm0, %v310_v35  ;;  %335 = vst.msk [vmem:[#allocation2 + $0x58] sm:$0xff] %vm49_vm0, %v318_v37 }
 0x121   :  { %325 = vst.msk [vmem:[#allocation2 + $0x8] sm:$0xff] %vm49_vm0, %v308_v39  ;;  %333 = vst.msk [vmem:[#allocation2 + $0x48] sm:$0xff] %vm49_vm0, %v316_v40 }
 0x123   :  { %v566_v45 = vpop.f32.mrb[4].mxu0  ;;  %v574_v47 = vpop.f32.mrb[4].mxu1 }
 0x124   :  { %v313_v49 = vadd.f32 %v566_v45, %v72_v41  ;;  %v260_v50 = vpop.f32.mrb[5].mxu0  ;;  %v321_v52 = vadd.f32 %v574_v47, %v80_v42  ;;  %v292_v53 = vpop.f32.mrb[5].mxu1 }
 0x125   :  { %v345_v55 = vld [vmem:[#allocation2 + $0x10] sm:$0xff]  ;;  %v311_v56 = vadd.f32 %v260_v50, %v70_v43  ;;  %v567_v57 = vpop.f32.mrb[6].mxu0  ;;  %v319_v58 = vadd.f32 %v292_v53, %v78_v44  ;;  %v575_v59 = vpop.f32.mrb[6].mxu1 }
 0x126   :  { %v819_v60 = vld [vmem:[#allocation2 + $0x50] sm:$0xff]  ;;  %361 = vst.msk [vmem:[#allocation8 + $0x10] sm:$0xff] %vm49_vm0, %v345_v55  ;;  %v343_v61 = vld [vmem:[#allocation2] sm:$0xff]  ;;  %330 = vst.msk [vmem:[#allocation2 + $0x30] sm:$0xff] %vm49_vm0, %v313_v49  ;;  %v314_v62 = vadd.f32 %v567_v57, %v73_v46  ;;  %v263_v63 = vpop.f32.mrb[7].mxu0  ;;  %v322_v0 = vadd.f32 %v575_v59, %v81_v48  ;;  %v295_v1 = vpop.f32.mrb[7].mxu1  ;;  %v414_v17 = vmul.f32 %v345_v55, %v345_v55 }
 0x127   :  { %338 = vst.msk [vmem:[#allocation2 + $0x70] sm:$0xff] %vm49_vm0, %v321_v52  ;;  %v824_v2 = vld [vmem:[#allocation2 + $0x40] sm:$0xff]  ;;  %369 = vst.msk [vmem:[#allocation8 + $0x50] sm:$0xff] %vm49_vm0, %v819_v60  ;;  %v312_v3 = vadd.f32 %v263_v63, %v71_v51  ;;  %v320_v4 = vadd.f32 %v295_v1, %v79_v54  ;;  %v346_v5 = vld [vmem:[#allocation2 + $0x18] sm:$0xff]  ;;  %v412_v9 = vmul.f32 %v343_v61, %v343_v61  ;;  %v375_v11 = vsel %vm49_vm0, %v343_v61, 0.0 }
 0x128   :  { %359 = vst.msk [vmem:[#allocation8] sm:$0xff] %vm49_vm0, %v343_v61  ;;  %328 = vst.msk [vmem:[#allocation2 + $0x20] sm:$0xff] %vm49_vm0, %v311_v56  ;;  %v831_v6 = vld [vmem:[#allocation2 + $0x58] sm:$0xff]  ;;  %v344_v7 = vld [vmem:[#allocation2 + $0x8] sm:$0xff]  ;;  %v378_v14 = vsel %vm49_vm0, %v345_v55, 0.0  ;;  %v380_v20 = vsel %vm49_vm0, %v346_v5, 0.0  ;;  %v415_v29 = vmul.f32 %v346_v5, %v346_v5 }
 0x129   :  { %336 = vst.msk [vmem:[#allocation2 + $0x60] sm:$0xff] %vm49_vm0, %v319_v58  ;;  %367 = vst.msk [vmem:[#allocation8 + $0x40] sm:$0xff] %vm49_vm0, %v824_v2  ;;  %v837_v8 = vld [vmem:[#allocation2 + $0x48] sm:$0xff]  ;;  %v413_v10 = vmul.f32 %v344_v7, %v344_v7  ;;  %v376_v12 = vsel %vm49_vm0, %v344_v7, 0.0  ;;  %v428_v21 = vsel %vm49_vm0, %v412_v9, 0.0  ;;  %v431_v36 = vsel %vm49_vm0, %v414_v17, 0.0 }
 0x12a   :  { %331 = vst.msk [vmem:[#allocation2 + $0x38] sm:$0xff] %vm49_vm0, %v314_v62  ;;  %339 = vst.msk [vmem:[#allocation2 + $0x78] sm:$0xff] %vm49_vm0, %v322_v0  ;;  %v377_v13 = vadd.f32 %v376_v12, %v375_v11 }
 0x12b   :  { %362 = vst.msk [vmem:[#allocation8 + $0x18] sm:$0xff] %vm49_vm0, %v346_v5  ;;  %370 = vst.msk [vmem:[#allocation8 + $0x58] sm:$0xff] %vm49_vm0, %v831_v6  ;;  %v429_v15 = vsel %vm49_vm0, %v413_v10, 0.0 }
 0x12c   :  { %360 = vst.msk [vmem:[#allocation8 + $0x8] sm:$0xff] %vm49_vm0, %v344_v7  ;;  %329 = vst.msk [vmem:[#allocation2 + $0x28] sm:$0xff] %vm49_vm0, %v312_v3  ;;  %v379_v16 = vadd.f32 %v378_v14, %v377_v13  ;;  %v430_v25 = vadd.f32 %v429_v15, %v428_v21 }
 0x12d   :  { %337 = vst.msk [vmem:[#allocation2 + $0x68] sm:$0xff] %vm49_vm0, %v320_v4  ;;  %368 = vst.msk [vmem:[#allocation8 + $0x48] sm:$0xff] %vm49_vm0, %v837_v8  ;;  %v349_v18 = vld [vmem:[#allocation2 + $0x30] sm:$0xff] }
 0x12e   :  { %v851_v19 = vld [vmem:[#allocation2 + $0x70] sm:$0xff]  ;;  %365 = vst.msk [vmem:[#allocation8 + $0x30] sm:$0xff] %vm49_vm0, %v349_v18  ;;  %v381_v24 = vadd.f32 %v380_v20, %v379_v16 }
 0x12f   :  { %v347_v22 = vld [vmem:[#allocation2 + $0x20] sm:$0xff]  ;;  %373 = vst.msk [vmem:[#allocation8 + $0x70] sm:$0xff] %vm49_vm0, %v851_v19 }
 0x130   :  { %v855_v23 = vld [vmem:[#allocation2 + $0x60] sm:$0xff]  ;;  %363 = vst.msk [vmem:[#allocation8 + $0x20] sm:$0xff] %vm49_vm0, %v347_v22  ;;  %v382_v28 = vsel %vm49_vm0, %v347_v22, 0.0  ;;  %v416_v30 = vmul.f32 %v347_v22, %v347_v22 }
 0x131   :  { %v350_v26 = vld [vmem:[#allocation2 + $0x38] sm:$0xff]  ;;  %371 = vst.msk [vmem:[#allocation8 + $0x60] sm:$0xff] %vm49_vm0, %v855_v23  ;;  %v383_v33 = vadd.f32 %v382_v28, %v381_v24 }
 0x132   :  { %v862_v27 = vld [vmem:[#allocation2 + $0x78] sm:$0xff]  ;;  %366 = vst.msk [vmem:[#allocation8 + $0x38] sm:$0xff] %vm49_vm0, %v350_v26 }
 0x133   :  { %v348_v31 = vld [vmem:[#allocation2 + $0x28] sm:$0xff]  ;;  %374 = vst.msk [vmem:[#allocation8 + $0x78] sm:$0xff] %vm49_vm0, %v862_v27 }
 0x134   :  { %v868_v32 = vld [vmem:[#allocation2 + $0x68] sm:$0xff]  ;;  %364 = vst.msk [vmem:[#allocation8 + $0x28] sm:$0xff] %vm49_vm0, %v348_v31  ;;  %v384_v34 = vsel %vm49_vm0, %v348_v31, 0.0  ;;  %v417_v35 = vmul.f32 %v348_v31, %v348_v31 }
 0x135   :  { %372 = vst.msk [vmem:[#allocation8 + $0x68] sm:$0xff] %vm49_vm0, %v868_v32  ;;  %v385_v37 = vadd.f32 %v384_v34, %v383_v33 }
 0x136   :  { %673 = shalt.err (!%p670_p6)
}
 0x137   :  { %s674_s18 = scalar_lea.hbm %s970_s2, 2048 }
 0x138   :  { %p675_p7 = scmp.ne.s32.totalorder %s970_s2, %s674_s18  ;;  %p678_p8 = scmp.lt.u32.totalorder %s674_s18, %s970_s2 }
 0x13a   :  { %p680_p9 = pnand %p678_p8, %p675_p7 }
 0x13c   :  { %683 = shalt.err (!%p680_p9)
}
 0x13d   :  { %s742_s23 = smov 128   ;;  %s743_s24 = smov 8   ;;  %v432_v38 = vadd.f32 %v431_v36, %v430_v25  ;;  %v386_v39 = vsel %vm49_vm0, %v349_v18, 0.0  ;;  %v433_v40 = vsel %vm49_vm0, %v415_v29, 0.0  ;;  %v435_v41 = vsel %vm49_vm0, %v416_v30, 0.0 }
 0x13e   :  { %478 = dma.vmem_to_hbm [thread:$0]  %s860_s14, 2048, %s970_s2, [#allocation5], %s742_s23, %s742_s23, %s743_s24   ;;  %v387_v42 = vadd.f32 %v386_v39, %v385_v37  ;;  %v388_v44 = vsel %vm49_vm0, %v350_v26, 0.0  ;;  %v390_v45 = vsel %vm49_vm0, %v824_v2, 0.0  ;;  %v418_v46 = vmul.f32 %v349_v18, %v349_v18 }
 0x13f   :  { %v434_v43 = vadd.f32 %v433_v40, %v432_v38  ;;  %v437_v47 = vsel %vm49_vm0, %v417_v35, 0.0  ;;  %v419_v50 = vmul.f32 %v350_v26, %v350_v26  ;;  %v420_v51 = vmul.f32 %v824_v2, %v824_v2  ;;  %s744_s2 = smov [#allocation9]   ;;  %s745_s28 = smov [#allocation11]  }
 0x140   :  { %v389_v48 = vadd.f32 %v388_v44, %v387_v42  ;;  %v392_v54 = vsel %vm49_vm0, %v837_v8, 0.0  ;;  %v439_v55 = vsel %vm49_vm0, %v418_v46, 0.0  ;;  %v394_v58 = vsel %vm49_vm0, %v819_v60, 0.0  ;;  %s485_s27 = sshll.u32 %s744_s2, 4  ;;  %s495_s29 = sshll.u32 %s745_s28, 4  ;;  %s486_s27 = int_to_ptr.vmem [resolvable:$true] %s485_s27  ;;  %s496_s29 = int_to_ptr.vmem [resolvable:$true] %s495_s29 }
 0x141   :  { %v436_v49 = vadd.f32 %v435_v41, %v434_v43  ;;  %v421_v59 = vmul.f32 %v837_v8, %v837_v8  ;;  %v441_v61 = vsel %vm49_vm0, %v419_v50, 0.0  ;;  %v443_v62 = vsel %vm49_vm0, %v420_v51, 0.0  ;;  %s684_s30 = scalar_lea.vmem %s486_s27, 128  ;;  %p689_p11 = scmp.lt.s32.totalorder %s486_s27, %s486_s27 }
 0x142   :  { %v391_v52 = vadd.f32 %v390_v45, %v389_v48  ;;  %v396_v1 = vsel %vm49_vm0, %v831_v6, 0.0  ;;  %v398_v2 = vsel %vm49_vm0, %v855_v23, 0.0  ;;  %v422_v3 = vmul.f32 %v819_v60, %v819_v60  ;;  %p685_p10 = scmp.ne.s32.totalorder %s486_s27, %s684_s30  ;;  %p690_p12 = scmp.lt.s32.totalorder %s684_s30, %s684_s30 }
 0x143   :  { %v438_v53 = vadd.f32 %v437_v47, %v436_v49  ;;  %v423_v7 = vmul.f32 %v831_v6, %v831_v6  ;;  %v424_v8 = vmul.f32 %v855_v23, %v855_v23  ;;  %v445_v9 = vsel %vm49_vm0, %v421_v59, 0.0 }
 0x144   :  { %v393_v56 = vadd.f32 %v392_v54, %v391_v52  ;;  %v400_v12 = vsel %vm49_vm0, %v868_v32, 0.0  ;;  %v447_v13 = vsel %vm49_vm0, %v422_v3, 0.0  ;;  %v402_v60 = vsel %vm49_vm0, %v851_v19, 0.0  ;;  %p691_p13 = por %p690_p12, %p689_p11 }
 0x145   :  { %v440_v57 = vadd.f32 %v439_v55, %v438_v53  ;;  %v425_v6 = vmul.f32 %v868_v32, %v868_v32  ;;  %v449_v16 = vsel %vm49_vm0, %v423_v7, 0.0  ;;  %v451_v17 = vsel %vm49_vm0, %v424_v8, 0.0 }
 0x146   :  { %v395_v63 = vadd.f32 %v394_v58, %v393_v56  ;;  %v404_v21 = vsel %vm49_vm0, %v862_v27, 0.0  ;;  %v426_v22 = vmul.f32 %v851_v19, %v851_v19  ;;  %v427_v25 = vmul.f32 %v862_v27, %v862_v27  ;;  %p692_p0 = pnand %p691_p13, %p685_p10 }
 0x147   :  { %v442_v0 = vadd.f32 %v441_v61, %v440_v57  ;;  %v453_v26 = vsel %vm49_vm0, %v425_v6, 0.0 }
 0x148   :  { %v397_v4 = vadd.f32 %v396_v1, %v395_v63  ;;  %v455_v30 = vsel %vm49_vm0, %v426_v22, 0.0  ;;  %v457_v33 = vsel %vm49_vm0, %v427_v25, 0.0 }
 0x149   :  { %v444_v5 = vadd.f32 %v443_v62, %v442_v0 }
 0x14a   :  { %v399_v10 = vadd.f32 %v398_v2, %v397_v4 }
 0x14b   :  { %v446_v11 = vadd.f32 %v445_v9, %v444_v5 }
 0x14c   :  { %v401_v14 = vadd.f32 %v400_v12, %v399_v10 }
 0x14d   :  { %v448_v15 = vadd.f32 %v447_v13, %v446_v11 }
 0x14e   :  { %v403_v18 = vadd.f32 %v402_v60, %v401_v14 }
 0x14f   :  { %v450_v20 = vadd.f32 %v449_v16, %v448_v15 }
 0x150   :  { %v405_v23 = vadd.f32 %v404_v21, %v403_v18 }
 0x151   :  { %v452_v24 = vadd.f32 %v451_v17, %v450_v20 }
 0x152   :  { %v406_v28 = vrot.slane %v405_v23, 4 }
 0x153   :  { %v454_v29 = vadd.f32 %v453_v26, %v452_v24 }
 0x154   :  { %v407_v31 = vadd.f32 %v406_v28, %v405_v23 }
 0x155   :  { %v456_v32 = vadd.f32 %v455_v30, %v454_v29 }
 0x156   :  { %v408_v34 = vrot.slane %v407_v31, 2 }
 0x157   :  { %v458_v35 = vadd.f32 %v457_v33, %v456_v32 }
 0x158   :  { %v409_v36 = vadd.f32 %v408_v34, %v407_v31 }
 0x159   :  { %v459_v37 = vrot.slane %v458_v35, 4 }
 0x15a   :  { %v410_v19 = vrot.slane %v409_v36, 1 }
 0x15b   :  { %v460_v38 = vadd.f32 %v459_v37, %v458_v35 }
 0x15c   :  { %v411_v39 = vadd.f32 %v410_v19, %v409_v36 }
 0x15d   :  { %v461_v27 = vrot.slane %v460_v38, 2 }
 0x15e   :  { %465 = vst.msk [vmem:[#allocation9] sm:$0xff] %vm49_vm0, %v411_v39 }
 0x15f   :  { %v462_v40 = vadd.f32 %v461_v27, %v460_v38 }
 0x160   :  { %695 = shalt.err (!%p692_p0)
}
 0x161   :  { %s696_s7 = scalar_lea.hbm %s971_s3, 128 }
 0x162   :  { %p697_p1 = scmp.ne.s32.totalorder %s971_s3, %s696_s7  ;;  %p700_p2 = scmp.lt.u32.totalorder %s696_s7, %s971_s3 }
 0x164   :  { %p702_p3 = pnand %p700_p2, %p697_p1 }
 0x166   :  { %705 = shalt.err (!%p702_p3)
}
 0x167   :  { %488 = dma.vmem_to_hbm [thread:$0]  %s486_s27, 128, %s971_s3, [#allocation10]   ;;  %v463_v41 = vrot.slane %v462_v40, 1 }
 0x168   :  { %s706_s13 = scalar_lea.vmem %s496_s29, 128  ;;  %p711_p5 = scmp.lt.s32.totalorder %s496_s29, %s496_s29 }
 0x169   :  { %v464_v42 = vadd.f32 %v463_v41, %v462_v40  ;;  %p707_p4 = scmp.ne.s32.totalorder %s496_s29, %s706_s13  ;;  %p712_p6 = scmp.lt.s32.totalorder %s706_s13, %s706_s13 }
 0x16b   :  { %466 = vst.msk [vmem:[#allocation11] sm:$0xff] %vm49_vm0, %v464_v42  ;;  %p713_p7 = por %p712_p6, %p711_p5 }
 0x16d   :  { %p714_p8 = pnand %p713_p7, %p707_p4 }
 0x16f   :  { %717 = shalt.err (!%p714_p8)
}
 0x170   :  { %s718_s15 = scalar_lea.hbm %s972_s4, 128 }
 0x171   :  { %p719_p9 = scmp.ne.s32.totalorder %s972_s4, %s718_s15  ;;  %p722_p10 = scmp.lt.u32.totalorder %s718_s15, %s972_s4 }
 0x173   :  { %p724_p11 = pnand %p722_p10, %p719_p9 }
 0x175   :  { %727 = shalt.err (!%p724_p11)
}
 0x176   :  { %498 = dma.vmem_to_hbm [thread:$0]  %s496_s29, 128, %s972_s4, [#allocation10]  }
 0x177   :  { %732 = dma.done.wait [#allocation5], 2048  }
 0x178   :  { %733 = vsyncadd [#allocation5], 4294965248 }
 0x179   :  { %734 = dma.done.wait [#allocation10], 256  }
 0x17a   :  { %735 = vsyncadd [#allocation10], 4294967040 }
 0x17b   :  { %508 = vsyncpa [#allocation4], 1 }
 0x17c   :  { %509 = vsyncpa [#allocation7], 1 }
 0x17d   :  { %510 = vsyncpa [#allocation5], 1 }
 0x17e   :  { %511 = vsyncpa [#allocation10], 1 }

// kernel: generator_forward.32
= control target key start
LH: loop header
LB: loop body
LE: loop exit
PB: predicated region body
PF: predicated region fallthrough
CT: control target
= control target key end

     0   :  { %10 = vsyncpa [#allocation3], 0  ;;  %s524_s0 = inlined_call_operand.hbm [shape: f32[64,128], index: 0, kind: input, shape index: {}]   ;;  %s525_s1 = inlined_call_operand.hbm [shape: f32[1,128], index: 1, kind: input, shape index: {}]   ;;  %s526_s2 = inlined_call_operand.hbm [shape: f32[1,128], index: 2, kind: input, shape index: {}]   ;;  %s527_s3 = inlined_call_operand.hbm [shape: f32[1,128], index: 3, kind: input, shape index: {}]   ;;  %s528_s4 = inlined_call_operand.hbm [shape: f32[1,128], index: 4, kind: input, shape index: {}]   ;;  %s529_s5 = inlined_call_operand.hbm [shape: bf16[64,128], index: 5, kind: output, shape index: {}]  }
   0x1   :  { %11 = vsyncpa [#allocation6], 0 }
   0x2   :  { %12 = vsyncpa [#allocation9], 0 }
   0x3   :  { %13 = vsyncpa [#allocation4], 0  ;;  %s412_s18 = smov [#allocation5]   ;;  %s413_s20 = smov [#allocation8]  }
   0x4   :  { %s32_s19 = sshll.u32 %s412_s18, 4  ;;  %s52_s21 = sshll.u32 %s413_s20, 4  ;;  %s33_s19 = int_to_ptr.vmem [resolvable:$true] %s32_s19  ;;  %s53_s21 = int_to_ptr.vmem [resolvable:$true] %s52_s21 }
   0x5   :  { %s272_s24 = scalar_lea.hbm %s525_s1, 16 }
   0x6   :  { %p273_p0 = scmp.ne.s32.totalorder %s525_s1, %s272_s24  ;;  %p276_p1 = scmp.lt.u32.totalorder %s272_s24, %s525_s1 }
   0x8   :  { %p278_p2 = pnand %p276_p1, %p273_p0 }
   0xa   :  { %281 = shalt.err (!%p278_p2)
}
   0xb   :  { %s282_s29 = scalar_lea.vmem %s33_s19, 16  ;;  %s286_s30 = scalar_lea.vmem %s33_s19, 32 }
   0xc   :  { %p283_p3 = scmp.ne.s32.totalorder %s33_s19, %s282_s29  ;;  %p287_p4 = scmp.lt.s32.totalorder %s33_s19, %s33_s19 }
   0xd   :  { %p288_p5 = scmp.lt.s32.totalorder %s286_s30, %s282_s29 }
   0xf   :  { %p289_p6 = por %p288_p5, %p287_p4 }
  0x11   :  { %p290_p7 = pnand %p289_p6, %p283_p3 }
  0x13   :  { %293 = shalt.err (!%p290_p7)
}
  0x14   :  { %35 = dma.hbm_to_vmem [thread:$0]  %s525_s1, 16, %s33_s19, [#allocation6]  }
  0x15   :  { %s294_s10 = scalar_lea.hbm %s527_s3, 16 }
  0x16   :  { %p295_p8 = scmp.ne.s32.totalorder %s527_s3, %s294_s10  ;;  %p298_p9 = scmp.lt.u32.totalorder %s294_s10, %s527_s3 }
  0x18   :  { %p300_p10 = pnand %p298_p9, %p295_p8 }
  0x1a   :  { %303 = shalt.err (!%p300_p10)
}
  0x1b   :  { %s304_s15 = scalar_lea.vmem %s53_s21, 16  ;;  %s308_s16 = scalar_lea.vmem %s53_s21, 32 }
  0x1c   :  { %p305_p11 = scmp.ne.s32.totalorder %s53_s21, %s304_s15  ;;  %p309_p12 = scmp.lt.s32.totalorder %s53_s21, %s53_s21 }
  0x1d   :  { %p310_p13 = scmp.lt.s32.totalorder %s308_s16, %s304_s15 }
  0x1f   :  { %p311_p0 = por %p310_p13, %p309_p12 }
  0x21   :  { %p312_p1 = pnand %p311_p0, %p305_p11 }
  0x23   :  { %315 = shalt.err (!%p312_p1)
}
  0x24   :  { %55 = dma.hbm_to_vmem [thread:$0]  %s527_s3, 16, %s53_s21, [#allocation9]  }
  0x25   :  { %s414_s18 = smov [#allocation2]   ;;  %s316_s23 = scalar_lea.hbm %s524_s0, 1024 }
  0x26   :  { %s19_s19 = sshll.u32 %s414_s18, 4  ;;  %p317_p2 = scmp.ne.s32.totalorder %s524_s0, %s316_s23  ;;  %s20_s19 = int_to_ptr.vmem [resolvable:$true] %s19_s19 }
  0x27   :  { %p320_p3 = scmp.lt.u32.totalorder %s316_s23, %s524_s0 }
  0x29   :  { %p322_p4 = pnand %p320_p3, %p317_p2 }
  0x2b   :  { %325 = shalt.err (!%p322_p4)
}
  0x2c   :  { %s326_s28 = scalar_lea.vmem %s20_s19, 1024  ;;  %p331_p6 = scmp.lt.s32.totalorder %s20_s19, %s20_s19 }
  0x2d   :  { %p327_p5 = scmp.ne.s32.totalorder %s20_s19, %s326_s28  ;;  %p332_p7 = scmp.lt.s32.totalorder %s326_s28, %s326_s28 }
  0x2f   :  { %p333_p8 = por %p332_p7, %p331_p6 }
  0x31   :  { %p334_p9 = pnand %p333_p8, %p327_p5 }
  0x33   :  { %337 = shalt.err (!%p334_p9)
}
  0x34   :  { %s415_s3 = smov 128   ;;  %s416_s21 = smov 8  }
  0x35   :  { %25 = dma.hbm_to_vmem [thread:$0]  %s524_s0, 1024, %s20_s19, [#allocation3], %s415_s3, %s415_s3, %s416_s21  }
  0x36   :  { %s417_s6 = smov [#allocation7]   ;;  %s418_s8 = smov [#allocation10]  }
  0x37   :  { %s42_s7 = sshll.u32 %s417_s6, 4  ;;  %s62_s9 = sshll.u32 %s418_s8, 4  ;;  %s43_s7 = int_to_ptr.vmem [resolvable:$true] %s42_s7  ;;  %s63_s9 = int_to_ptr.vmem [resolvable:$true] %s62_s9 }
  0x38   :  { %s338_s12 = scalar_lea.hbm %s526_s2, 16 }
  0x39   :  { %p339_p10 = scmp.ne.s32.totalorder %s526_s2, %s338_s12  ;;  %p342_p11 = scmp.lt.u32.totalorder %s338_s12, %s526_s2 }
  0x3b   :  { %p344_p12 = pnand %p342_p11, %p339_p10 }
  0x3d   :  { %347 = shalt.err (!%p344_p12)
}
  0x3e   :  { %s348_s0 = scalar_lea.vmem %s43_s7, 16  ;;  %s352_s1 = scalar_lea.vmem %s43_s7, 32 }
  0x3f   :  { %p349_p13 = scmp.ne.s32.totalorder %s43_s7, %s348_s0  ;;  %p353_p0 = scmp.lt.s32.totalorder %s43_s7, %s43_s7 }
  0x40   :  { %p354_p1 = scmp.lt.s32.totalorder %s352_s1, %s348_s0 }
  0x42   :  { %p355_p2 = por %p354_p1, %p353_p0 }
  0x44   :  { %p356_p3 = pnand %p355_p2, %p349_p13 }
  0x46   :  { %359 = shalt.err (!%p356_p3)
}
  0x47   :  { %45 = dma.hbm_to_vmem [thread:$0]  %s526_s2, 16, %s43_s7, [#allocation6]  }
  0x48   :  { %s360_s22 = scalar_lea.hbm %s528_s4, 16 }
  0x49   :  { %p361_p4 = scmp.ne.s32.totalorder %s528_s4, %s360_s22  ;;  %p364_p5 = scmp.lt.u32.totalorder %s360_s22, %s528_s4 }
  0x4b   :  { %p366_p6 = pnand %p364_p5, %p361_p4 }
  0x4d   :  { %369 = shalt.err (!%p366_p6)
}
  0x4e   :  { %s370_s27 = scalar_lea.vmem %s63_s9, 16  ;;  %s374_s28 = scalar_lea.vmem %s63_s9, 32 }
  0x4f   :  { %p371_p7 = scmp.ne.s32.totalorder %s63_s9, %s370_s27  ;;  %p375_p8 = scmp.lt.s32.totalorder %s63_s9, %s63_s9 }
  0x50   :  { %p376_p9 = scmp.lt.s32.totalorder %s374_s28, %s370_s27 }
  0x52   :  { %p377_p10 = por %p376_p9, %p375_p8 }
  0x54   :  { %p378_p11 = pnand %p377_p10, %p371_p7 }
  0x56   :  { %381 = shalt.err (!%p378_p11)
}
  0x57   :  { %65 = dma.hbm_to_vmem [thread:$0]  %s528_s4, 16, %s63_s9, [#allocation9]  }
  0x58   :  { %404 = dma.done.wait [#allocation3], 1024  }
  0x59   :  { %405 = vsyncadd [#allocation3], 4294966272 }
  0x5a   :  { %406 = dma.done.wait [#allocation6], 32  }
  0x5b   :  { %407 = vsyncadd [#allocation6], 4294967264 }
  0x5c   :  { %408 = dma.done.wait [#allocation9], 32  }
  0x5d   :  { %409 = vsyncadd [#allocation9], 4294967264  ;;  %v81_v0 = vld [vmem:[#allocation7] sm:$0x1]  ;;  %v108_v2 = vlaneseq  ;;  %v85_v5 = vld [vmem:[#allocation2 + $0x8] sm:$0xff]  ;;  %s419_s4 = smov [#allocation11]  }
  0x5e   :  { %v82_v1 = vadd.f32 1e-05, %v81_v0  ;;  %v84_v4 = vld [vmem:[#allocation2] sm:$0xff]  ;;  %v86_v7 = vld [vmem:[#allocation2 + $0x10] sm:$0xff]  ;;  %v87_v8 = vld [vmem:[#allocation2 + $0x18] sm:$0xff]  ;;  %s204_s21 = sshll.u32 %s419_s4, 4  ;;  %s205_s21 = int_to_ptr.vmem [resolvable:$true] %s204_s21 }
  0x5f   :  { %v109_v3 = vshrl.u32 %v108_v2, 7  ;;  %v218_v6 = vld [vmem:[#allocation5] ss:$0 sm:$0xff]  ;;  %v89_v11 = vld [vmem:[#allocation2 + $0x28] sm:$0xff]  ;;  %v90_v12 = vld [vmem:[#allocation2 + $0x30] sm:$0xff]  ;;  %s382_s29 = scalar_lea.vmem %s205_s21, 512  ;;  %p387_p13 = scmp.lt.s32.totalorder %s205_s21, %s205_s21 }
  0x60   :  { %270 = vrsqrt.f32 %v82_v1  ;;  %v88_v9 = vld [vmem:[#allocation2 + $0x20] sm:$0xff]  ;;  %v91_v13 = vld [vmem:[#allocation2 + $0x38] sm:$0xff]  ;;  %v99_v14 = vsub.f32 %v84_v4, %v218_v6  ;;  %v100_v15 = vsub.f32 %v85_v5, %v218_v6  ;;  %v101_v16 = vsub.f32 %v86_v7, %v218_v6  ;;  %p383_p12 = scmp.ne.s32.totalorder %s205_s21, %s382_s29  ;;  %p388_p0 = scmp.lt.s32.totalorder %s382_s29, %s382_s29 }
  0x61   :  { %v110_v10 = vsub.s32 0, %v109_v3  ;;  %v102_v17 = vsub.f32 %v87_v8, %v218_v6  ;;  %v103_v19 = vsub.f32 %v88_v9, %v218_v6  ;;  %v104_v20 = vsub.f32 %v89_v11, %v218_v6  ;;  %v219_v24 = vld [vmem:[#allocation8] ss:$0 sm:$0xff]  ;;  %v220_v29 = vld [vmem:[#allocation10] ss:$0 sm:$0xff] }
  0x62   :  { %v105_v21 = vsub.f32 %v90_v12, %v218_v6  ;;  %v106_v22 = vsub.f32 %v91_v13, %v218_v6  ;;  %p389_p1 = por %p388_p0, %p387_p13 }
  0x64   :  { %p390_p2 = pnand %p389_p1, %p383_p12 }
  0x6a   :  { %v271_v18 = vpop.eup %270 }
  0x6b   :  { %v111_v23 = vrot.slane %v271_v18, %v110_v10 }
  0x6d   :  { %v113_v25 = vmul.f32 %v111_v23, %v99_v14  ;;  %v114_v26 = vmul.f32 %v111_v23, %v100_v15  ;;  %v115_v27 = vmul.f32 %v111_v23, %v101_v16  ;;  %v116_v28 = vmul.f32 %v111_v23, %v102_v17 }
  0x6e   :  { %v117_v30 = vmul.f32 %v111_v23, %v103_v19  ;;  %v118_v31 = vmul.f32 %v111_v23, %v104_v20  ;;  %v119_v32 = vmul.f32 %v111_v23, %v105_v21  ;;  %v120_v33 = vmul.f32 %v111_v23, %v106_v22 }
  0x6f   :  { %v128_v34 = vmul.f32 %v219_v24, %v113_v25  ;;  %v129_v35 = vmul.f32 %v219_v24, %v114_v26  ;;  %v130_v36 = vmul.f32 %v219_v24, %v115_v27  ;;  %v131_v37 = vmul.f32 %v219_v24, %v116_v28 }
  0x70   :  { %v132_v38 = vmul.f32 %v219_v24, %v117_v30  ;;  %v133_v39 = vmul.f32 %v219_v24, %v118_v31  ;;  %v134_v40 = vmul.f32 %v219_v24, %v119_v32  ;;  %v135_v41 = vmul.f32 %v219_v24, %v120_v33 }
  0x71   :  { %v143_v42 = vadd.f32 %v220_v29, %v128_v34  ;;  %v144_v43 = vadd.f32 %v220_v29, %v129_v35  ;;  %v145_v44 = vadd.f32 %v220_v29, %v130_v36  ;;  %v146_v45 = vadd.f32 %v220_v29, %v131_v37 }
  0x72   :  { %v147_v46 = vadd.f32 %v220_v29, %v132_v38  ;;  %v148_v47 = vadd.f32 %v220_v29, %v133_v39  ;;  %v149_v48 = vadd.f32 %v220_v29, %v134_v40  ;;  %v150_v49 = vadd.f32 %v220_v29, %v135_v41 }
  0x73   :  { %v151_v50 = vmax.f32 %v143_v42, 0.0  ;;  %v152_v51 = vmax.f32 %v144_v43, 0.0  ;;  %v153_v52 = vmax.f32 %v145_v44, 0.0  ;;  %v154_v53 = vmax.f32 %v146_v45, 0.0 }
  0x74   :  { %v155_v54 = vmax.f32 %v147_v46, 0.0  ;;  %v156_v55 = vmax.f32 %v148_v47, 0.0  ;;  %v157_v56 = vmax.f32 %v149_v48, 0.0  ;;  %v158_v57 = vmax.f32 %v150_v49, 0.0 }
  0x75   :  { %v240_v58 = vpack.c.bf16 %v152_v51, %v151_v50  ;;  %v245_v59 = vpack.c.bf16 %v154_v53, %v153_v52 }
  0x76   :  { %v250_v60 = vpack.c.bf16 %v156_v55, %v155_v54  ;;  %v255_v61 = vpack.c.bf16 %v158_v57, %v157_v56 }
  0x77   :  { %241 = vst [vmem:[#allocation11] sm:$0xff] %v240_v58   ;;  %257 = vst [vmem:[#allocation11 + $0x8] sm:$0xff] %v245_v59  }
  0x78   :  { %258 = vst [vmem:[#allocation11 + $0x10] sm:$0xff] %v250_v60   ;;  %259 = vst [vmem:[#allocation11 + $0x18] sm:$0xff] %v255_v61  }
  0x79   :  { %393 = shalt.err (!%p390_p2)
}
  0x7a   :  { %s394_s7 = scalar_lea.hbm %s529_s5, 512 }
  0x7b   :  { %p395_p3 = scmp.ne.s32.totalorder %s529_s5, %s394_s7  ;;  %p398_p4 = scmp.lt.u32.totalorder %s394_s7, %s529_s5 }
  0x7d   :  { %p400_p5 = pnand %p398_p4, %p395_p3 }
  0x7f   :  { %403 = shalt.err (!%p400_p5)
}
  0x80   :  { %s420_s12 = smov 64   ;;  %s421_s13 = smov 4  }
  0x81   :  { %210 = dma.vmem_to_hbm [thread:$0]  %s205_s21, 512, %s529_s5, [#allocation4], %s420_s12, %s420_s12, %s421_s13  }
  0x82   :  { %410 = dma.done.wait [#allocation4], 512  }
  0x83   :  { %411 = vsyncadd [#allocation4], 4294966784 }
  0x84   :  { %214 = vsyncpa [#allocation3], 1 }
  0x85   :  { %215 = vsyncpa [#allocation6], 1 }
  0x86   :  { %216 = vsyncpa [#allocation9], 1 }
  0x87   :  { %217 = vsyncpa [#allocation4], 1 }

// kernel: generator_forward.33
= control target key start
LH: loop header
LB: loop body
LE: loop exit
PB: predicated region body
PF: predicated region fallthrough
CT: control target
= control target key end

     0   :  { %10 = vsyncpa [#allocation4], 0  ;;  %s2598_s0 = inlined_call_operand.hbm [shape: bf16[512,64], index: 0, kind: input, shape index: {}]   ;;  %s2599_s1 = inlined_call_operand.hbm [shape: bf16[64,8], index: 1, kind: input, shape index: {}]   ;;  %s2600_s2 = inlined_call_operand.hbm [shape: f32[512,8], index: 2, kind: output, shape index: {0}]   ;;  %s2601_s3 = inlined_call_operand.hbm [shape: f32[8,8], index: 3, kind: output, shape index: {1}]   ;;  %s2602_s4 = inlined_call_operand.hbm [shape: f32[8,8], index: 4, kind: output, shape index: {2}]  }
   0x1   :  { %11 = vsyncpa [#allocation7], 0 }
   0x2   :  { %12 = vsyncpa [#allocation5], 0 }
   0x3   :  { %13 = vsyncpa [#allocation10], 0  ;;  %s1805_s15 = smov [#allocation3]   ;;  %s1687_s19 = scalar_lea.hbm %s2598_s0, 4096 }
   0x4   :  { %s19_s16 = sshll.u32 %s1805_s15, 4  ;;  %p1688_p0 = scmp.ne.s32.totalorder %s2598_s0, %s1687_s19  ;;  %s20_s16 = int_to_ptr.vmem [resolvable:$true] %s19_s16 }
   0x5   :  { %p1691_p1 = scmp.lt.u32.totalorder %s1687_s19, %s2598_s0 }
   0x7   :  { %p1693_p2 = pnand %p1691_p1, %p1688_p0 }
   0x9   :  { %1696 = shalt.err (!%p1693_p2)
}
   0xa   :  { %s1697_s24 = scalar_lea.vmem %s20_s16, 4096  ;;  %p1702_p4 = scmp.lt.s32.totalorder %s20_s16, %s20_s16 }
   0xb   :  { %p1698_p3 = scmp.ne.s32.totalorder %s20_s16, %s1697_s24  ;;  %p1703_p5 = scmp.lt.s32.totalorder %s1697_s24, %s1697_s24 }
   0xd   :  { %p1704_p6 = por %p1703_p5, %p1702_p4 }
   0xf   :  { %p1705_p7 = pnand %p1704_p6, %p1698_p3 }
  0x11   :  { %1708 = shalt.err (!%p1705_p7)
}
  0x12   :  { %s1806_s25 = smov 64   ;;  %s1807_s26 = smov 4  }
  0x13   :  { %25 = dma.hbm_to_vmem [thread:$0]  %s2598_s0, 4096, %s20_s16, [#allocation4], %s1806_s25, %s1806_s25, %s1807_s26  }
  0x14   :  { %s1808_s29 = smov [#allocation6]   ;;  %s1709_s7 = scalar_lea.hbm %s2599_s1, 512 }
  0x15   :  { %s31_s30 = sshll.u32 %s1808_s29, 4  ;;  %p1710_p8 = scmp.ne.s32.totalorder %s2599_s1, %s1709_s7  ;;  %s32_s30 = int_to_ptr.vmem [resolvable:$true] %s31_s30 }
  0x16   :  { %p1713_p9 = scmp.lt.u32.totalorder %s1709_s7, %s2599_s1 }
  0x18   :  { %p1715_p10 = pnand %p1713_p9, %p1710_p8 }
  0x1a   :  { %1718 = shalt.err (!%p1715_p10)
}
  0x1b   :  { %s1719_s12 = scalar_lea.vmem %s32_s30, 512  ;;  %p1724_p12 = scmp.lt.s32.totalorder %s32_s30, %s32_s30 }
  0x1c   :  { %p1720_p11 = scmp.ne.s32.totalorder %s32_s30, %s1719_s12  ;;  %p1725_p13 = scmp.lt.s32.totalorder %s1719_s12, %s1719_s12 }
  0x1e   :  { %p1726_p0 = por %p1725_p13, %p1724_p12 }
  0x20   :  { %p1727_p1 = pnand %p1726_p0, %p1720_p11 }
  0x22   :  { %1730 = shalt.err (!%p1727_p1)
}
  0x23   :  { %37 = dma.hbm_to_vmem [thread:$0]  %s2599_s1, 512, %s32_s30, [#allocation7], %s1806_s25, %s1806_s25, %s1807_s26  }
  0x24   :  { %1797 = dma.done.wait [#allocation4], 4096  }
  0x25   :  { %1798 = vsyncadd [#allocation4], 4294963200 }
  0x26   :  { %1799 = dma.done.wait [#allocation7], 512  }
  0x27   :  { %1800 = vsyncadd [#allocation7], 4294966784  ;;  %vm49_vm0 = vcmask 64512   ;;  %v1809_v0 = vmov 0.0   ;;  %v1651_v1 = vld [vmem:[#allocation6] sm:$0xff]   ;;  %v1652_v2 = vld [vmem:[#allocation6 + $0x8] sm:$0xff]  }
  0x28   :  { %52 = vst.msk [vmem:[#allocation2 + $0x10] sm:$0xff] %vm49_vm0, %v1809_v0  ;;  %50 = vst.msk [vmem:[#allocation2] sm:$0xff] %vm49_vm0, %v1809_v0  ;;  %1561 = vmatprep.subr.bf16.mxu0 %v1651_v1  ;;  %1633 = vmatprep.subr.bf16.mxu1 %v1651_v1  ;;  %v1653_v3 = vld [vmem:[#allocation6 + $0x10] sm:$0xff]   ;;  %vm434_vm1 = vcmask 523264   ;;  %v1655_v4 = vld [vmem:[#allocation3] sm:$0xff]   ;;  %s1810_s1 = smov [#allocation8]  }
  0x29   :  { %51 = vst.msk [vmem:[#allocation2 + $0x8] sm:$0xff] %vm49_vm0, %v1809_v0  ;;  %53 = vst.msk [vmem:[#allocation2 + $0x18] sm:$0xff] %vm49_vm0, %v1809_v0  ;;  %1562 = vmatpush3.bf16.msra.mxu0 %v1651_v1  ;;  %1637 = vmatpush3.bf16.msra.mxu1 %v1651_v1  ;;  %v1654_v5 = vld [vmem:[#allocation6 + $0x18] sm:$0xff]   ;;  %v1656_v6 = vld [vmem:[#allocation3 + $0x8] sm:$0xff]   ;;  %s1417_s14 = sshll.u32 %s1810_s1, 4  ;;  %s2392_s14 = int_to_ptr.vmem [resolvable:$true] %s1417_s14 }
  0x2a   :  { %54 = vst.msk [vmem:[#allocation2 + $0x20] sm:$0xff] %vm49_vm0, %v1809_v0  ;;  %55 = vst.msk [vmem:[#allocation2 + $0x28] sm:$0xff] %vm49_vm0, %v1809_v0  ;;  %1563 = vmatprep.subr.bf16.mxu0 %v1652_v2  ;;  %1634 = vmatprep.subr.bf16.mxu1 %v1652_v2  ;;  %v1657_v7 = vld [vmem:[#allocation3 + $0x10] sm:$0xff]   ;;  %v1658_v8 = vld [vmem:[#allocation3 + $0x18] sm:$0xff]   ;;  %s1731_s15 = scalar_lea.vmem %s2392_s14, 8192  ;;  %p1736_p3 = scmp.lt.s32.totalorder %s2392_s14, %s2392_s14 }
  0x2b   :  { %56 = vst.msk [vmem:[#allocation2 + $0x30] sm:$0xff] %vm49_vm0, %v1809_v0  ;;  %57 = vst.msk [vmem:[#allocation2 + $0x38] sm:$0xff] %vm49_vm0, %v1809_v0  ;;  %1569 = vmatprep.mubr.msk.bf16.mxu0 %vm434_vm1, %v1655_v4  ;;  %v1671_v9 = vld [vmem:[#allocation3 + $0x80] sm:$0xff]   ;;  %v1672_v10 = vld [vmem:[#allocation3 + $0x88] sm:$0xff]   ;;  %p1732_p2 = scmp.ne.s32.totalorder %s2392_s14, %s1731_s15  ;;  %p1737_p4 = scmp.lt.s32.totalorder %s1731_s15, %s1731_s15 }
  0x2c   :  { %58 = vst.msk [vmem:[#allocation2 + $0x40] sm:$0xff] %vm49_vm0, %v1809_v0  ;;  %59 = vst.msk [vmem:[#allocation2 + $0x48] sm:$0xff] %vm49_vm0, %v1809_v0  ;;  %1601 = vmatprep.mubr.msk.bf16.mxu1 %vm434_vm1, %v1671_v9  ;;  %v1673_v11 = vld [vmem:[#allocation3 + $0x90] sm:$0xff]   ;;  %v1659_v12 = vld [vmem:[#allocation3 + $0x20] sm:$0xff]  }
  0x2d   :  { %60 = vst.msk [vmem:[#allocation2 + $0x50] sm:$0xff] %vm49_vm0, %v1809_v0  ;;  %61 = vst.msk [vmem:[#allocation2 + $0x58] sm:$0xff] %vm49_vm0, %v1809_v0  ;;  %1564 = vmatpush3.bf16.msra.mxu0 %v1652_v2  ;;  %1638 = vmatpush3.bf16.msra.mxu1 %v1652_v2  ;;  %v1674_v13 = vld [vmem:[#allocation3 + $0x98] sm:$0xff]   ;;  %v1675_v14 = vld [vmem:[#allocation3 + $0xa0] sm:$0xff]   ;;  %p1738_p5 = por %p1737_p4, %p1736_p3 }
  0x2e   :  { %62 = vst.msk [vmem:[#allocation2 + $0x60] sm:$0xff] %vm49_vm0, %v1809_v0  ;;  %63 = vst.msk [vmem:[#allocation2 + $0x68] sm:$0xff] %vm49_vm0, %v1809_v0  ;;  %1565 = vmatprep.subr.bf16.mxu0 %v1653_v3  ;;  %1635 = vmatprep.subr.bf16.mxu1 %v1653_v3  ;;  %v1660_v15 = vld [vmem:[#allocation3 + $0x28] sm:$0xff]   ;;  %v1661_v16 = vld [vmem:[#allocation3 + $0x30] sm:$0xff]  }
  0x2f   :  { %64 = vst.msk [vmem:[#allocation2 + $0x70] sm:$0xff] %vm49_vm0, %v1809_v0  ;;  %65 = vst.msk [vmem:[#allocation2 + $0x78] sm:$0xff] %vm49_vm0, %v1809_v0  ;;  %v1676_v17 = vld [vmem:[#allocation3 + $0xa8] sm:$0xff]   ;;  %v1677_v18 = vld [vmem:[#allocation3 + $0xb0] sm:$0xff]   ;;  %p1739_p6 = pnand %p1738_p5, %p1732_p2 }
  0x30   :  { %66 = vst.msk [vmem:[#allocation2 + $0x80] sm:$0xff] %vm49_vm0, %v1809_v0  ;;  %67 = vst.msk [vmem:[#allocation2 + $0x88] sm:$0xff] %vm49_vm0, %v1809_v0  ;;  %v1662_v19 = vld [vmem:[#allocation3 + $0x38] sm:$0xff]   ;;  %v1663_v20 = vld [vmem:[#allocation3 + $0x40] sm:$0xff]  }
  0x31   :  { %68 = vst.msk [vmem:[#allocation2 + $0x90] sm:$0xff] %vm49_vm0, %v1809_v0  ;;  %69 = vst.msk [vmem:[#allocation2 + $0x98] sm:$0xff] %vm49_vm0, %v1809_v0  ;;  %1566 = vmatpush3.bf16.msra.mxu0 %v1653_v3  ;;  %1639 = vmatpush3.bf16.msra.mxu1 %v1653_v3  ;;  %v1678_v21 = vld [vmem:[#allocation3 + $0xb8] sm:$0xff]   ;;  %v1679_v22 = vld [vmem:[#allocation3 + $0xc0] sm:$0xff]  }
  0x32   :  { %70 = vst.msk [vmem:[#allocation2 + $0xa0] sm:$0xff] %vm49_vm0, %v1809_v0  ;;  %71 = vst.msk [vmem:[#allocation2 + $0xa8] sm:$0xff] %vm49_vm0, %v1809_v0  ;;  %1567 = vmatprep.subr.bf16.mxu0 %v1654_v5  ;;  %1636 = vmatprep.subr.bf16.mxu1 %v1654_v5  ;;  %v1664_v23 = vld [vmem:[#allocation3 + $0x48] sm:$0xff]   ;;  %v1665_v24 = vld [vmem:[#allocation3 + $0x50] sm:$0xff]  }
  0x33   :  { %72 = vst.msk [vmem:[#allocation2 + $0xb0] sm:$0xff] %vm49_vm0, %v1809_v0  ;;  %73 = vst.msk [vmem:[#allocation2 + $0xb8] sm:$0xff] %vm49_vm0, %v1809_v0  ;;  %v1680_v25 = vld [vmem:[#allocation3 + $0xc8] sm:$0xff]   ;;  %v1681_v26 = vld [vmem:[#allocation3 + $0xd0] sm:$0xff]  }
  0x34   :  { %74 = vst.msk [vmem:[#allocation2 + $0xc0] sm:$0xff] %vm49_vm0, %v1809_v0  ;;  %75 = vst.msk [vmem:[#allocation2 + $0xc8] sm:$0xff] %vm49_vm0, %v1809_v0  ;;  %v1666_v27 = vld [vmem:[#allocation3 + $0x58] sm:$0xff]   ;;  %v1667_v28 = vld [vmem:[#allocation3 + $0x60] sm:$0xff]  }
  0x35   :  { %76 = vst.msk [vmem:[#allocation2 + $0xd0] sm:$0xff] %vm49_vm0, %v1809_v0  ;;  %77 = vst.msk [vmem:[#allocation2 + $0xd8] sm:$0xff] %vm49_vm0, %v1809_v0  ;;  %1568 = vmatpush3.bf16.msra.mxu0 %v1654_v5  ;;  %1640 = vmatpush3.bf16.msra.mxu1 %v1654_v5  ;;  %v1682_v29 = vld [vmem:[#allocation3 + $0xd8] sm:$0xff]   ;;  %v1683_v30 = vld [vmem:[#allocation3 + $0xe0] sm:$0xff]  }
  0x36   :  { %78 = vst.msk [vmem:[#allocation2 + $0xe0] sm:$0xff] %vm49_vm0, %v1809_v0  ;;  %79 = vst.msk [vmem:[#allocation2 + $0xe8] sm:$0xff] %vm49_vm0, %v1809_v0  ;;  %v1668_v31 = vld [vmem:[#allocation3 + $0x68] sm:$0xff]   ;;  %v1669_v32 = vld [vmem:[#allocation3 + $0x70] sm:$0xff]  }
  0x37   :  { %80 = vst.msk [vmem:[#allocation2 + $0xf0] sm:$0xff] %vm49_vm0, %v1809_v0  ;;  %81 = vst.msk [vmem:[#allocation2 + $0xf8] sm:$0xff] %vm49_vm0, %v1809_v0  ;;  %v1684_v33 = vld [vmem:[#allocation3 + $0xe8] sm:$0xff]   ;;  %v1685_v34 = vld [vmem:[#allocation3 + $0xf0] sm:$0xff]  }
  0x38   :  { %82 = vst.msk [vmem:[#allocation2 + $0x100] sm:$0xff] %vm49_vm0, %v1809_v0  ;;  %83 = vst.msk [vmem:[#allocation2 + $0x108] sm:$0xff] %vm49_vm0, %v1809_v0  ;;  %1570 = vmatmul.mubr.msk.bf16.vlgmr.msra.gmra.mrb[0].mxu0 %vm434_vm1, %v1656_v6  ;;  %1602 = vmatmul.mubr.msk.bf16.vlgmr.msra.gmra.mrb[0].mxu1 %vm434_vm1, %v1672_v10  ;;  %v1670_v35 = vld [vmem:[#allocation3 + $0x78] sm:$0xff]   ;;  %v116_v37 = vld [vmem:[#allocation2 + $0x10] sm:$0xff] }
  0x39   :  { %84 = vst.msk [vmem:[#allocation2 + $0x110] sm:$0xff] %vm49_vm0, %v1809_v0  ;;  %85 = vst.msk [vmem:[#allocation2 + $0x118] sm:$0xff] %vm49_vm0, %v1809_v0  ;;  %1573 = vmatprep.mubr.msk.bf16.mxu0 %vm434_vm1, %v1657_v7  ;;  %1605 = vmatprep.mubr.msk.bf16.mxu1 %vm434_vm1, %v1673_v11  ;;  %v1686_v36 = vld [vmem:[#allocation3 + $0xf8] sm:$0xff]   ;;  %v114_v38 = vld [vmem:[#allocation2] sm:$0xff] }
  0x3a   :  { %86 = vst.msk [vmem:[#allocation2 + $0x120] sm:$0xff] %vm49_vm0, %v1809_v0  ;;  %87 = vst.msk [vmem:[#allocation2 + $0x128] sm:$0xff] %vm49_vm0, %v1809_v0  ;;  %v117_v40 = vld [vmem:[#allocation2 + $0x18] sm:$0xff]  ;;  %v115_v43 = vld [vmem:[#allocation2 + $0x8] sm:$0xff] }
  0x3b   :  { %88 = vst.msk [vmem:[#allocation2 + $0x130] sm:$0xff] %vm49_vm0, %v1809_v0  ;;  %89 = vst.msk [vmem:[#allocation2 + $0x138] sm:$0xff] %vm49_vm0, %v1809_v0  ;;  %v120_v53 = vld [vmem:[#allocation2 + $0x30] sm:$0xff]  ;;  %v118_v57 = vld [vmem:[#allocation2 + $0x20] sm:$0xff] }
  0x3c   :  { %90 = vst.msk [vmem:[#allocation2 + $0x140] sm:$0xff] %vm49_vm0, %v1809_v0  ;;  %91 = vst.msk [vmem:[#allocation2 + $0x148] sm:$0xff] %vm49_vm0, %v1809_v0  ;;  %v121_v61 = vld [vmem:[#allocation2 + $0x38] sm:$0xff]  ;;  %v119_v2 = vld [vmem:[#allocation2 + $0x28] sm:$0xff] }
  0x3d   :  { %92 = vst.msk [vmem:[#allocation2 + $0x150] sm:$0xff] %vm49_vm0, %v1809_v0  ;;  %93 = vst.msk [vmem:[#allocation2 + $0x158] sm:$0xff] %vm49_vm0, %v1809_v0 }
  0x3e   :  { %94 = vst.msk [vmem:[#allocation2 + $0x160] sm:$0xff] %vm49_vm0, %v1809_v0  ;;  %95 = vst.msk [vmem:[#allocation2 + $0x168] sm:$0xff] %vm49_vm0, %v1809_v0 }
  0x3f   :  { %96 = vst.msk [vmem:[#allocation2 + $0x170] sm:$0xff] %vm49_vm0, %v1809_v0  ;;  %97 = vst.msk [vmem:[#allocation2 + $0x178] sm:$0xff] %vm49_vm0, %v1809_v0  ;;  %v146_v50 = vld [vmem:[#allocation2 + $0x100] sm:$0xff]  ;;  %v147_v56 = vld [vmem:[#allocation2 + $0x108] sm:$0xff] }
  0x40   :  { %98 = vst.msk [vmem:[#allocation2 + $0x180] sm:$0xff] %vm49_vm0, %v1809_v0  ;;  %99 = vst.msk [vmem:[#allocation2 + $0x188] sm:$0xff] %vm49_vm0, %v1809_v0  ;;  %1574 = vmatmul.mubr.msk.bf16.gmra.mrb[4].mxu0 %vm434_vm1, %v1658_v8  ;;  %1606 = vmatmul.mubr.msk.bf16.gmra.mrb[4].mxu1 %vm434_vm1, %v1674_v13  ;;  %v148_v48 = vld [vmem:[#allocation2 + $0x110] sm:$0xff]  ;;  %v149_v52 = vld [vmem:[#allocation2 + $0x118] sm:$0xff] }
  0x41   :  { %100 = vst.msk [vmem:[#allocation2 + $0x190] sm:$0xff] %vm49_vm0, %v1809_v0  ;;  %101 = vst.msk [vmem:[#allocation2 + $0x198] sm:$0xff] %vm49_vm0, %v1809_v0  ;;  %1577 = vmatprep.mubr.msk.bf16.mxu0 %vm434_vm1, %v1659_v12  ;;  %1609 = vmatprep.mubr.msk.bf16.mxu1 %vm434_vm1, %v1675_v14  ;;  %v150_v14 = vld [vmem:[#allocation2 + $0x120] sm:$0xff] }
  0x42   :  { %102 = vst.msk [vmem:[#allocation2 + $0x1a0] sm:$0xff] %vm49_vm0, %v1809_v0  ;;  %103 = vst.msk [vmem:[#allocation2 + $0x1a8] sm:$0xff] %vm49_vm0, %v1809_v0  ;;  %v152_v10 = vld [vmem:[#allocation2 + $0x130] sm:$0xff] }
  0x43   :  { %104 = vst.msk [vmem:[#allocation2 + $0x1b0] sm:$0xff] %vm49_vm0, %v1809_v0  ;;  %105 = vst.msk [vmem:[#allocation2 + $0x1b8] sm:$0xff] %vm49_vm0, %v1809_v0 }
  0x44   :  { %106 = vst.msk [vmem:[#allocation2 + $0x1c0] sm:$0xff] %vm49_vm0, %v1809_v0  ;;  %107 = vst.msk [vmem:[#allocation2 + $0x1c8] sm:$0xff] %vm49_vm0, %v1809_v0 }
  0x45   :  { %108 = vst.msk [vmem:[#allocation2 + $0x1d0] sm:$0xff] %vm49_vm0, %v1809_v0  ;;  %109 = vst.msk [vmem:[#allocation2 + $0x1d8] sm:$0xff] %vm49_vm0, %v1809_v0 }
  0x46   :  { %110 = vst.msk [vmem:[#allocation2 + $0x1e0] sm:$0xff] %vm49_vm0, %v1809_v0  ;;  %111 = vst.msk [vmem:[#allocation2 + $0x1e8] sm:$0xff] %vm49_vm0, %v1809_v0 }
  0x47   :  { %112 = vst.msk [vmem:[#allocation2 + $0x1f0] sm:$0xff] %vm49_vm0, %v1809_v0  ;;  %113 = vst.msk [vmem:[#allocation2 + $0x1f8] sm:$0xff] %vm49_vm0, %v1809_v0 }
  0x48   :  { %1578 = vmatmul.mubr.msk.bf16.gmra.mrb[8].mxu0 %vm434_vm1, %v1660_v15  ;;  %1610 = vmatmul.mubr.msk.bf16.gmra.mrb[8].mxu1 %vm434_vm1, %v1676_v17 }
  0x49   :  { %1581 = vmatprep.mubr.msk.bf16.mxu0 %vm434_vm1, %v1661_v16  ;;  %1613 = vmatprep.mubr.msk.bf16.mxu1 %vm434_vm1, %v1677_v18  ;;  %v153_v18 = vld [vmem:[#allocation2 + $0x138] sm:$0xff] }
  0x50   :  { %1582 = vmatmul.mubr.msk.bf16.gmra.mrb[12].mxu0 %vm434_vm1, %v1662_v19  ;;  %1614 = vmatmul.mubr.msk.bf16.gmra.mrb[12].mxu1 %vm434_vm1, %v1678_v21 }
  0x51   :  { %1585 = vmatprep.mubr.msk.bf16.mxu0 %vm434_vm1, %v1663_v20  ;;  %1617 = vmatprep.mubr.msk.bf16.mxu1 %vm434_vm1, %v1679_v22  ;;  %v124_v22 = vld [vmem:[#allocation2 + $0x50] sm:$0xff] }
  0x58   :  { %1586 = vmatmul.mubr.msk.bf16.gmra.mrb[16].mxu0 %vm434_vm1, %v1664_v23  ;;  %1618 = vmatmul.mubr.msk.bf16.gmra.mrb[16].mxu1 %vm434_vm1, %v1680_v25 }
  0x59   :  { %1589 = vmatprep.mubr.msk.bf16.mxu0 %vm434_vm1, %v1665_v24  ;;  %1621 = vmatprep.mubr.msk.bf16.mxu1 %vm434_vm1, %v1681_v26 }
  0x60   :  { %1590 = vmatmul.mubr.msk.bf16.gmra.mrb[20].mxu0 %vm434_vm1, %v1666_v27  ;;  %1622 = vmatmul.mubr.msk.bf16.gmra.mrb[20].mxu1 %vm434_vm1, %v1682_v29  ;;  %v122_v27 = vld [vmem:[#allocation2 + $0x40] sm:$0xff] }
  0x61   :  { %1593 = vmatprep.mubr.msk.bf16.mxu0 %vm434_vm1, %v1667_v28  ;;  %1625 = vmatprep.mubr.msk.bf16.mxu1 %vm434_vm1, %v1683_v30 }
  0x68   :  { %1594 = vmatmul.mubr.msk.bf16.gmra.mrb[24].mxu0 %vm434_vm1, %v1668_v31  ;;  %1626 = vmatmul.mubr.msk.bf16.gmra.mrb[24].mxu1 %vm434_vm1, %v1684_v33 }
  0x69   :  { %1597 = vmatprep.mubr.msk.bf16.mxu0 %vm434_vm1, %v1669_v32  ;;  %1629 = vmatprep.mubr.msk.bf16.mxu1 %vm434_vm1, %v1685_v34 }
  0x70   :  { %1598 = vmatmul.mubr.msk.bf16.gmra.mrb[28].mxu0 %vm434_vm1, %v1670_v35  ;;  %1630 = vmatmul.mubr.msk.bf16.gmra.mrb[28].mxu1 %vm434_vm1, %v1686_v36 }
 0x10b   :  { %v1571_v39 = vpop.f32.mrb[0].mxu0  ;;  %v1603_v51 = vpop.f32.mrb[0].mxu1 }
 0x10c   :  { %v822_v41 = vadd.f32 %v1571_v39, %v116_v37  ;;  %v565_v42 = vpop.f32.mrb[1].mxu0  ;;  %v854_v54 = vadd.f32 %v1603_v51, %v148_v48  ;;  %v693_v55 = vpop.f32.mrb[1].mxu1 }
 0x10d   :  { %v820_v44 = vadd.f32 %v565_v42, %v114_v38  ;;  %v1572_v45 = vpop.f32.mrb[2].mxu0  ;;  %v852_v58 = vadd.f32 %v693_v55, %v146_v50  ;;  %v1604_v59 = vpop.f32.mrb[2].mxu1  ;;  %v125_v42 = vld [vmem:[#allocation2 + $0x58] sm:$0xff] }
 0x10e   :  { %887 = vst.msk [vmem:[#allocation2 + $0x10] sm:$0xff] %vm49_vm0, %v822_v41  ;;  %v823_v46 = vadd.f32 %v1572_v45, %v117_v40  ;;  %v568_v47 = vpop.f32.mrb[3].mxu0  ;;  %919 = vst.msk [vmem:[#allocation2 + $0x110] sm:$0xff] %vm49_vm0, %v854_v54  ;;  %v855_v62 = vadd.f32 %v1604_v59, %v149_v52  ;;  %v696_v63 = vpop.f32.mrb[3].mxu1 }
 0x10f   :  { %885 = vst.msk [vmem:[#allocation2] sm:$0xff] %vm49_vm0, %v820_v44  ;;  %v821_v49 = vadd.f32 %v568_v47, %v115_v43  ;;  %917 = vst.msk [vmem:[#allocation2 + $0x100] sm:$0xff] %vm49_vm0, %v852_v58  ;;  %v853_v3 = vadd.f32 %v696_v63, %v147_v56  ;;  %v123_v43 = vld [vmem:[#allocation2 + $0x48] sm:$0xff] }
 0x110   :  { %888 = vst.msk [vmem:[#allocation2 + $0x18] sm:$0xff] %vm49_vm0, %v823_v46  ;;  %920 = vst.msk [vmem:[#allocation2 + $0x118] sm:$0xff] %vm49_vm0, %v855_v62 }
 0x111   :  { %886 = vst.msk [vmem:[#allocation2 + $0x8] sm:$0xff] %vm49_vm0, %v821_v49  ;;  %918 = vst.msk [vmem:[#allocation2 + $0x108] sm:$0xff] %vm49_vm0, %v853_v3 }
 0x113   :  { %v1575_v60 = vpop.f32.mrb[4].mxu0  ;;  %v1607_v17 = vpop.f32.mrb[4].mxu1 }
 0x114   :  { %v826_v0 = vadd.f32 %v1575_v60, %v120_v53  ;;  %v581_v1 = vpop.f32.mrb[5].mxu0  ;;  %v858_v23 = vadd.f32 %v1607_v17, %v152_v10  ;;  %v709_v24 = vpop.f32.mrb[5].mxu1  ;;  %v126_v10 = vld [vmem:[#allocation2 + $0x60] sm:$0xff] }
 0x115   :  { %v954_v4 = vld [vmem:[#allocation2 + $0x10] sm:$0xff]  ;;  %v824_v5 = vadd.f32 %v581_v1, %v118_v57  ;;  %v1576_v6 = vpop.f32.mrb[6].mxu0  ;;  %v856_v29 = vadd.f32 %v709_v24, %v150_v14  ;;  %v1608_v30 = vpop.f32.mrb[6].mxu1 }
 0x116   :  { %1018 = vst.msk [vmem:[#allocation8 + $0x10] sm:$0xff] %vm49_vm0, %v954_v4  ;;  %v952_v7 = vld [vmem:[#allocation2] sm:$0xff]  ;;  %891 = vst.msk [vmem:[#allocation2 + $0x30] sm:$0xff] %vm49_vm0, %v826_v0  ;;  %v827_v8 = vadd.f32 %v1576_v6, %v121_v61  ;;  %v584_v9 = vpop.f32.mrb[7].mxu0  ;;  %v1215_v15 = vmul.f32 %v954_v4, %v954_v4  ;;  %v2042_v28 = vld [vmem:[#allocation2 + $0x110] sm:$0xff]  ;;  %v1083_v31 = vsel %vm49_vm0, %v954_v4, 0.0  ;;  %v859_v36 = vadd.f32 %v1608_v30, %v153_v18 }
 0x117   :  { %1016 = vst.msk [vmem:[#allocation8] sm:$0xff] %vm49_vm0, %v952_v7  ;;  %v1213_v11 = vmul.f32 %v952_v7, %v952_v7  ;;  %v955_v12 = vld [vmem:[#allocation2 + $0x18] sm:$0xff]  ;;  %889 = vst.msk [vmem:[#allocation2 + $0x20] sm:$0xff] %vm49_vm0, %v824_v5  ;;  %v825_v13 = vadd.f32 %v584_v9, %v119_v2  ;;  %v1080_v19 = vsel %vm49_vm0, %v952_v7, 0.0  ;;  %v2049_v35 = vld [vmem:[#allocation2 + $0x100] sm:$0xff]  ;;  %v2052_v37 = vpop.f32.mrb[7].mxu1 }
 0x118   :  { %1019 = vst.msk [vmem:[#allocation8 + $0x18] sm:$0xff] %vm49_vm0, %v955_v12  ;;  %v953_v16 = vld [vmem:[#allocation2 + $0x8] sm:$0xff]  ;;  %892 = vst.msk [vmem:[#allocation2 + $0x38] sm:$0xff] %vm49_vm0, %v827_v8  ;;  %v1216_v25 = vmul.f32 %v955_v12, %v955_v12  ;;  %v2056_v44 = vld [vmem:[#allocation2 + $0x118] sm:$0xff]  ;;  %v1280_v45 = vsel %vm49_vm0, %v1215_v15, 0.0  ;;  %v1085_v46 = vsel %vm49_vm0, %v955_v12, 0.0 }
 0x119   :  { %1017 = vst.msk [vmem:[#allocation8 + $0x8] sm:$0xff] %vm49_vm0, %v953_v16  ;;  %v1081_v20 = vsel %vm49_vm0, %v953_v16, 0.0  ;;  %v1214_v21 = vmul.f32 %v953_v16, %v953_v16  ;;  %890 = vst.msk [vmem:[#allocation2 + $0x28] sm:$0xff] %vm49_vm0, %v825_v13  ;;  %v1277_v32 = vsel %vm49_vm0, %v1213_v11, 0.0  ;;  %v2063_v50 = vld [vmem:[#allocation2 + $0x108] sm:$0xff]  ;;  %v128_v5 = vld [vmem:[#allocation2 + $0x70] sm:$0xff] }
 0x11a   :  { %v1082_v26 = vadd.f32 %v1081_v20, %v1080_v19  ;;  %1050 = vst.msk [vmem:[#allocation8 + $0x110] sm:$0xff] %vm49_vm0, %v2042_v28  ;;  %923 = vst.msk [vmem:[#allocation2 + $0x130] sm:$0xff] %vm49_vm0, %v858_v23  ;;  %v1282_v51 = vsel %vm49_vm0, %v1216_v25, 0.0  ;;  %v127_v23 = vld [vmem:[#allocation2 + $0x68] sm:$0xff] }
 0x11b   :  { %v1278_v33 = vsel %vm49_vm0, %v1214_v21, 0.0  ;;  %v1579_v34 = vpop.f32.mrb[8].mxu0  ;;  %1048 = vst.msk [vmem:[#allocation8 + $0x100] sm:$0xff] %vm49_vm0, %v2049_v35  ;;  %921 = vst.msk [vmem:[#allocation2 + $0x120] sm:$0xff] %vm49_vm0, %v856_v29  ;;  %v2075_v0 = vpop.f32.mrb[8].mxu1 }
 0x11c   :  { %v1084_v38 = vadd.f32 %v1083_v31, %v1082_v26  ;;  %v1279_v39 = vadd.f32 %v1278_v33, %v1277_v32  ;;  %v830_v40 = vadd.f32 %v1579_v34, %v124_v22  ;;  %v597_v41 = vpop.f32.mrb[9].mxu0  ;;  %1051 = vst.msk [vmem:[#allocation8 + $0x118] sm:$0xff] %vm49_vm0, %v2056_v44  ;;  %924 = vst.msk [vmem:[#allocation2 + $0x138] sm:$0xff] %vm49_vm0, %v859_v36  ;;  %v2082_v6 = vpop.f32.mrb[9].mxu1  ;;  %v129_v22 = vld [vmem:[#allocation2 + $0x78] sm:$0xff] }
 0x11d   :  { %v958_v47 = vld [vmem:[#allocation2 + $0x30] sm:$0xff]  ;;  %v828_v48 = vadd.f32 %v597_v41, %v122_v27  ;;  %v1580_v49 = vpop.f32.mrb[10].mxu0  ;;  %1049 = vst.msk [vmem:[#allocation8 + $0x108] sm:$0xff] %vm49_vm0, %v2063_v50  ;;  %v2086_v12 = vpop.f32.mrb[10].mxu1 }
 0x11e   :  { %v1281_v52 = vadd.f32 %v1280_v45, %v1279_v39  ;;  %1022 = vst.msk [vmem:[#allocation8 + $0x30] sm:$0xff] %vm49_vm0, %v958_v47  ;;  %v956_v53 = vld [vmem:[#allocation2 + $0x20] sm:$0xff]  ;;  %v1086_v54 = vadd.f32 %v1085_v46, %v1084_v38  ;;  %895 = vst.msk [vmem:[#allocation2 + $0x50] sm:$0xff] %vm49_vm0, %v830_v40  ;;  %v600_v55 = vpop.f32.mrb[11].mxu0  ;;  %v831_v59 = vadd.f32 %v1580_v49, %v125_v42  ;;  %v1091_v13 = vsel %vm49_vm0, %v958_v47, 0.0  ;;  %v2094_v17 = vpop.f32.mrb[11].mxu1 }
 0x11f   :  { %1020 = vst.msk [vmem:[#allocation8 + $0x20] sm:$0xff] %vm49_vm0, %v956_v53  ;;  %v1087_v56 = vsel %vm49_vm0, %v956_v53, 0.0  ;;  %v1217_v57 = vmul.f32 %v956_v53, %v956_v53  ;;  %v959_v58 = vld [vmem:[#allocation2 + $0x38] sm:$0xff]  ;;  %893 = vst.msk [vmem:[#allocation2 + $0x40] sm:$0xff] %vm49_vm0, %v828_v48  ;;  %v829_v60 = vadd.f32 %v600_v55, %v123_v43  ;;  %v1219_v1 = vmul.f32 %v958_v47, %v958_v47 }
 0x120   :  { %v1088_v61 = vadd.f32 %v1087_v56, %v1086_v54  ;;  %v1283_v62 = vadd.f32 %v1282_v51, %v1281_v52  ;;  %1023 = vst.msk [vmem:[#allocation8 + $0x38] sm:$0xff] %vm49_vm0, %v959_v58  ;;  %v957_v63 = vld [vmem:[#allocation2 + $0x28] sm:$0xff]  ;;  %896 = vst.msk [vmem:[#allocation2 + $0x58] sm:$0xff] %vm49_vm0, %v831_v59  ;;  %v1220_v8 = vmul.f32 %v959_v58, %v959_v58  ;;  %v1093_v26 = vsel %vm49_vm0, %v959_v58, 0.0  ;;  %v132_v51 = vld [vmem:[#allocation2 + $0x90] sm:$0xff] }
 0x121   :  { %v1284_v2 = vsel %vm49_vm0, %v1217_v57, 0.0  ;;  %1021 = vst.msk [vmem:[#allocation8 + $0x28] sm:$0xff] %vm49_vm0, %v957_v63  ;;  %v1089_v3 = vsel %vm49_vm0, %v957_v63, 0.0  ;;  %v1218_v4 = vmul.f32 %v957_v63, %v957_v63  ;;  %894 = vst.msk [vmem:[#allocation2 + $0x48] sm:$0xff] %vm49_vm0, %v829_v60  ;;  %v2084_v11 = vld [vmem:[#allocation2 + $0x130] sm:$0xff]  ;;  %v1288_v25 = vsel %vm49_vm0, %v1219_v1, 0.0 }
 0x122   :  { %v1285_v7 = vadd.f32 %v1284_v2, %v1283_v62  ;;  %v1090_v9 = vadd.f32 %v1089_v3, %v1088_v61  ;;  %1054 = vst.msk [vmem:[#allocation8 + $0x130] sm:$0xff] %vm49_vm0, %v2084_v11  ;;  %v2092_v16 = vld [vmem:[#allocation2 + $0x120] sm:$0xff]  ;;  %v1290_v31 = vsel %vm49_vm0, %v1220_v8, 0.0  ;;  %v151_v52 = vld [vmem:[#allocation2 + $0x128] sm:$0xff]  ;;  %v133_v63 = vld [vmem:[#allocation2 + $0x98] sm:$0xff] }
 0x123   :  { %v1286_v14 = vsel %vm49_vm0, %v1218_v4, 0.0  ;;  %v1583_v15 = vpop.f32.mrb[12].mxu0  ;;  %1052 = vst.msk [vmem:[#allocation8 + $0x120] sm:$0xff] %vm49_vm0, %v2092_v16  ;;  %v2098_v24 = vld [vmem:[#allocation2 + $0x138] sm:$0xff]  ;;  %v2110_v47 = vpop.f32.mrb[12].mxu1  ;;  %v130_v58 = vld [vmem:[#allocation2 + $0x80] sm:$0xff]  ;;  %v857_v8 = vadd.f32 %v2052_v37, %v151_v52 }
 0x124   :  { %v1092_v18 = vadd.f32 %v1091_v13, %v1090_v9  ;;  %v1287_v19 = vadd.f32 %v1286_v14, %v1285_v7  ;;  %v834_v20 = vadd.f32 %v1583_v15, %v128_v5  ;;  %v613_v21 = vpop.f32.mrb[13].mxu0  ;;  %1055 = vst.msk [vmem:[#allocation8 + $0x138] sm:$0xff] %vm49_vm0, %v2098_v24  ;;  %v2118_v53 = vpop.f32.mrb[13].mxu1  ;;  %v131_v7 = vld [vmem:[#allocation2 + $0x88] sm:$0xff] }
 0x125   :  { %v962_v27 = vld [vmem:[#allocation2 + $0x50] sm:$0xff]  ;;  %v832_v29 = vadd.f32 %v613_v21, %v126_v10  ;;  %v1584_v30 = vpop.f32.mrb[14].mxu0  ;;  %v2120_v59 = vpop.f32.mrb[14].mxu1  ;;  %922 = vst.msk [vmem:[#allocation2 + $0x128] sm:$0xff] %vm49_vm0, %v857_v8 }
 0x126   :  { %v1289_v32 = vadd.f32 %v1288_v25, %v1287_v19  ;;  %1026 = vst.msk [vmem:[#allocation8 + $0x50] sm:$0xff] %vm49_vm0, %v962_v27  ;;  %v960_v33 = vld [vmem:[#allocation2 + $0x40] sm:$0xff]  ;;  %v1094_v34 = vadd.f32 %v1093_v26, %v1092_v18  ;;  %899 = vst.msk [vmem:[#allocation2 + $0x70] sm:$0xff] %vm49_vm0, %v834_v20  ;;  %v616_v36 = vpop.f32.mrb[15].mxu0  ;;  %v835_v40 = vadd.f32 %v1584_v30, %v129_v22  ;;  %v1099_v60 = vsel %vm49_vm0, %v962_v27, 0.0  ;;  %v2123_v1 = vpop.f32.mrb[15].mxu1 }
 0x127   :  { %1024 = vst.msk [vmem:[#allocation8 + $0x40] sm:$0xff] %vm49_vm0, %v960_v33  ;;  %v1095_v38 = vsel %vm49_vm0, %v960_v33, 0.0  ;;  %v1221_v39 = vmul.f32 %v960_v33, %v960_v33  ;;  %897 = vst.msk [vmem:[#allocation2 + $0x60] sm:$0xff] %vm49_vm0, %v832_v29  ;;  %v833_v41 = vadd.f32 %v616_v36, %v127_v23  ;;  %v963_v45 = vld [vmem:[#allocation2 + $0x58] sm:$0xff]  ;;  %v1223_v54 = vmul.f32 %v962_v27, %v962_v27  ;;  %v156_v18 = vld [vmem:[#allocation2 + $0x150] sm:$0xff] }
 0x128   :  { %v1096_v42 = vadd.f32 %v1095_v38, %v1094_v34  ;;  %v1291_v43 = vadd.f32 %v1290_v31, %v1289_v32  ;;  %v961_v46 = vld [vmem:[#allocation2 + $0x48] sm:$0xff]  ;;  %1027 = vst.msk [vmem:[#allocation8 + $0x58] sm:$0xff] %vm49_vm0, %v963_v45  ;;  %900 = vst.msk [vmem:[#allocation2 + $0x78] sm:$0xff] %vm49_vm0, %v835_v40  ;;  %v1224_v61 = vmul.f32 %v963_v45, %v963_v45  ;;  %v1101_v9 = vsel %vm49_vm0, %v963_v45, 0.0  ;;  %v154_v19 = vld [vmem:[#allocation2 + $0x140] sm:$0xff] }
 0x129   :  { %v1292_v48 = vsel %vm49_vm0, %v1221_v39, 0.0  ;;  %1025 = vst.msk [vmem:[#allocation8 + $0x48] sm:$0xff] %vm49_vm0, %v961_v46  ;;  %v1097_v49 = vsel %vm49_vm0, %v961_v46, 0.0  ;;  %898 = vst.msk [vmem:[#allocation2 + $0x68] sm:$0xff] %vm49_vm0, %v833_v41  ;;  %v1222_v57 = vmul.f32 %v961_v46, %v961_v46  ;;  %v1296_v20 = vsel %vm49_vm0, %v1223_v54, 0.0  ;;  %v157_v30 = vld [vmem:[#allocation2 + $0x158] sm:$0xff] }
 0x12a   :  { %v1293_v55 = vadd.f32 %v1292_v48, %v1291_v43  ;;  %v1098_v56 = vadd.f32 %v1097_v49, %v1096_v42  ;;  %v155_v31 = vld [vmem:[#allocation2 + $0x148] sm:$0xff]  ;;  %v1298_v32 = vsel %vm49_vm0, %v1224_v61, 0.0  ;;  %v862_v38 = vadd.f32 %v2075_v0, %v156_v18  ;;  %v160_v40 = vld [vmem:[#allocation2 + $0x170] sm:$0xff]  ;;  %v158_v49 = vld [vmem:[#allocation2 + $0x160] sm:$0xff] }
 0x12b   :  { %v1587_v62 = vpop.f32.mrb[16].mxu0  ;;  %v1294_v3 = vsel %vm49_vm0, %v1222_v57, 0.0  ;;  %v860_v39 = vadd.f32 %v2082_v6, %v154_v19  ;;  %v2139_v41 = vpop.f32.mrb[16].mxu1  ;;  %v136_v48 = vld [vmem:[#allocation2 + $0xb0] sm:$0xff]  ;;  %v161_v0 = vld [vmem:[#allocation2 + $0x178] sm:$0xff]  ;;  %v134_v54 = vld [vmem:[#allocation2 + $0xa0] sm:$0xff] }
 0x12c   :  { %v1100_v2 = vadd.f32 %v1099_v60, %v1098_v56  ;;  %v838_v4 = vadd.f32 %v1587_v62, %v132_v51  ;;  %v629_v5 = vpop.f32.mrb[17].mxu0  ;;  %v1295_v10 = vadd.f32 %v1294_v3, %v1293_v55  ;;  %v2146_v51 = vpop.f32.mrb[17].mxu1  ;;  %927 = vst.msk [vmem:[#allocation2 + $0x150] sm:$0xff] %vm49_vm0, %v862_v38  ;;  %v863_v55 = vadd.f32 %v2086_v12, %v157_v30  ;;  %v159_v57 = vld [vmem:[#allocation2 + $0x168] sm:$0xff]  ;;  %v140_v38 = vld [vmem:[#allocation2 + $0xd0] sm:$0xff] }
 0x12d   :  { %v966_v13 = vld [vmem:[#allocation2 + $0x70] sm:$0xff]  ;;  %v836_v14 = vadd.f32 %v629_v5, %v130_v58  ;;  %v1588_v15 = vpop.f32.mrb[18].mxu0  ;;  %925 = vst.msk [vmem:[#allocation2 + $0x140] sm:$0xff] %vm49_vm0, %v860_v39  ;;  %v861_v56 = vadd.f32 %v2094_v17, %v155_v31  ;;  %v2153_v58 = vpop.f32.mrb[18].mxu1  ;;  %v866_v3 = vadd.f32 %v2110_v47, %v160_v40  ;;  %v864_v12 = vadd.f32 %v2118_v53, %v158_v49  ;;  %v135_v47 = vld [vmem:[#allocation2 + $0xa8] sm:$0xff] }
 0x12e   :  { %1030 = vst.msk [vmem:[#allocation8 + $0x70] sm:$0xff] %vm49_vm0, %v966_v13  ;;  %v964_v21 = vld [vmem:[#allocation2 + $0x60] sm:$0xff]  ;;  %v1102_v22 = vadd.f32 %v1101_v9, %v1100_v2  ;;  %903 = vst.msk [vmem:[#allocation2 + $0x90] sm:$0xff] %vm49_vm0, %v838_v4  ;;  %v839_v23 = vadd.f32 %v1588_v15, %v133_v63  ;;  %v632_v25 = vpop.f32.mrb[19].mxu0  ;;  %v1297_v37 = vadd.f32 %v1296_v20, %v1295_v10  ;;  %v1107_v42 = vsel %vm49_vm0, %v966_v13, 0.0  ;;  %v137_v2 = vld [vmem:[#allocation2 + $0xb8] sm:$0xff] }
 0x12f   :  { %1028 = vst.msk [vmem:[#allocation8 + $0x60] sm:$0xff] %vm49_vm0, %v964_v21  ;;  %v1103_v26 = vsel %vm49_vm0, %v964_v21, 0.0  ;;  %v1225_v27 = vmul.f32 %v964_v21, %v964_v21  ;;  %901 = vst.msk [vmem:[#allocation2 + $0x80] sm:$0xff] %vm49_vm0, %v836_v14  ;;  %v837_v29 = vadd.f32 %v632_v25, %v131_v7  ;;  %v967_v34 = vld [vmem:[#allocation2 + $0x78] sm:$0xff]  ;;  %v1227_v43 = vmul.f32 %v966_v13, %v966_v13  ;;  %v2156_v4 = vpop.f32.mrb[19].mxu1  ;;  %v2163_v18 = vld [vmem:[#allocation2 + $0x128] sm:$0xff] }
 0x130   :  { %v1104_v33 = vadd.f32 %v1103_v26, %v1102_v22  ;;  %v965_v36 = vld [vmem:[#allocation2 + $0x68] sm:$0xff]  ;;  %904 = vst.msk [vmem:[#allocation2 + $0x98] sm:$0xff] %vm49_vm0, %v839_v23  ;;  %v1299_v45 = vadd.f32 %v1298_v32, %v1297_v37  ;;  %1031 = vst.msk [vmem:[#allocation8 + $0x78] sm:$0xff] %vm49_vm0, %v967_v34  ;;  %v1228_v61 = vmul.f32 %v967_v34, %v967_v34  ;;  %v1109_v21 = vsel %vm49_vm0, %v967_v34, 0.0 }
 0x131   :  { %v1300_v46 = vsel %vm49_vm0, %v1225_v27, 0.0  ;;  %1029 = vst.msk [vmem:[#allocation8 + $0x68] sm:$0xff] %vm49_vm0, %v965_v36  ;;  %902 = vst.msk [vmem:[#allocation2 + $0x88] sm:$0xff] %vm49_vm0, %v837_v29  ;;  %v1105_v6 = vsel %vm49_vm0, %v965_v36, 0.0  ;;  %v1226_v52 = vmul.f32 %v965_v36, %v965_v36  ;;  %v867_v17 = vadd.f32 %v2120_v59, %v161_v0 }
 0x132   :  { %v1301_v60 = vadd.f32 %v1300_v46, %v1299_v45  ;;  %v1106_v62 = vadd.f32 %v1105_v6, %v1104_v33  ;;  %928 = vst.msk [vmem:[#allocation2 + $0x158] sm:$0xff] %vm49_vm0, %v863_v55  ;;  %926 = vst.msk [vmem:[#allocation2 + $0x148] sm:$0xff] %vm49_vm0, %v861_v56  ;;  %v865_v19 = vadd.f32 %v2123_v1, %v159_v57  ;;  %v1304_v20 = vsel %vm49_vm0, %v1227_v43, 0.0  ;;  %v138_v46 = vld [vmem:[#allocation2 + $0xc0] sm:$0xff] }
 0x133   :  { %v1591_v63 = vpop.f32.mrb[20].mxu0  ;;  %v1302_v5 = vsel %vm49_vm0, %v1226_v52, 0.0  ;;  %931 = vst.msk [vmem:[#allocation2 + $0x170] sm:$0xff] %vm49_vm0, %v866_v3  ;;  %1053 = vst.msk [vmem:[#allocation8 + $0x128] sm:$0xff] %vm49_vm0, %v2163_v18  ;;  %v1306_v27 = vsel %vm49_vm0, %v1228_v61, 0.0  ;;  %v2182_v31 = vpop.f32.mrb[20].mxu1 }
 0x134   :  { %v842_v7 = vadd.f32 %v1591_v63, %v136_v48  ;;  %v645_v8 = vpop.f32.mrb[21].mxu0  ;;  %v1108_v9 = vadd.f32 %v1107_v42, %v1106_v62  ;;  %v1303_v10 = vadd.f32 %v1302_v5, %v1301_v60  ;;  %929 = vst.msk [vmem:[#allocation2 + $0x160] sm:$0xff] %vm49_vm0, %v864_v12  ;;  %932 = vst.msk [vmem:[#allocation2 + $0x178] sm:$0xff] %vm49_vm0, %v867_v17  ;;  %v2187_v39 = vld [vmem:[#allocation2 + $0x150] sm:$0xff]  ;;  %v2189_v40 = vld [vmem:[#allocation2 + $0x140] sm:$0xff]  ;;  %v2191_v42 = vpop.f32.mrb[21].mxu1 }
 0x135   :  { %v970_v13 = vld [vmem:[#allocation2 + $0x90] sm:$0xff]  ;;  %v840_v14 = vadd.f32 %v645_v8, %v134_v54  ;;  %v1592_v15 = vpop.f32.mrb[22].mxu0  ;;  %930 = vst.msk [vmem:[#allocation2 + $0x168] sm:$0xff] %vm49_vm0, %v865_v19  ;;  %1058 = vst.msk [vmem:[#allocation8 + $0x150] sm:$0xff] %vm49_vm0, %v2187_v39  ;;  %v2198_v48 = vpop.f32.mrb[22].mxu1  ;;  %v141_v52 = vld [vmem:[#allocation2 + $0xd8] sm:$0xff] }
 0x136   :  { %1034 = vst.msk [vmem:[#allocation8 + $0x90] sm:$0xff] %vm49_vm0, %v970_v13  ;;  %v968_v53 = vld [vmem:[#allocation2 + $0x80] sm:$0xff]  ;;  %907 = vst.msk [vmem:[#allocation2 + $0xb0] sm:$0xff] %vm49_vm0, %v842_v7  ;;  %v843_v59 = vadd.f32 %v1592_v15, %v137_v2  ;;  %v648_v22 = vpop.f32.mrb[23].mxu0  ;;  %v1305_v23 = vadd.f32 %v1304_v20, %v1303_v10  ;;  %v1110_v1 = vadd.f32 %v1109_v21, %v1108_v9  ;;  %v2204_v56 = vpop.f32.mrb[23].mxu1  ;;  %v1115_v57 = vsel %vm49_vm0, %v970_v13, 0.0 }
 0x137   :  { %1032 = vst.msk [vmem:[#allocation8 + $0x80] sm:$0xff] %vm49_vm0, %v968_v53  ;;  %v1111_v25 = vsel %vm49_vm0, %v968_v53, 0.0  ;;  %v1229_v37 = vmul.f32 %v968_v53, %v968_v53  ;;  %v971_v26 = vld [vmem:[#allocation2 + $0x98] sm:$0xff]  ;;  %905 = vst.msk [vmem:[#allocation2 + $0xa0] sm:$0xff] %vm49_vm0, %v840_v14  ;;  %v841_v30 = vadd.f32 %v648_v22, %v135_v47  ;;  %v1231_v43 = vmul.f32 %v970_v13, %v970_v13  ;;  %v139_v2 = vld [vmem:[#allocation2 + $0xc8] sm:$0xff] }
 0x138   :  { %1035 = vst.msk [vmem:[#allocation8 + $0x98] sm:$0xff] %vm49_vm0, %v971_v26  ;;  %v969_v29 = vld [vmem:[#allocation2 + $0x88] sm:$0xff]  ;;  %908 = vst.msk [vmem:[#allocation2 + $0xb8] sm:$0xff] %vm49_vm0, %v843_v59  ;;  %v1112_v32 = vadd.f32 %v1111_v25, %v1110_v1  ;;  %v1307_v33 = vadd.f32 %v1306_v27, %v1305_v23  ;;  %v1232_v60 = vmul.f32 %v971_v26, %v971_v26  ;;  %v1117_v14 = vsel %vm49_vm0, %v971_v26, 0.0 }
 0x139   :  { %v1308_v34 = vsel %vm49_vm0, %v1229_v37, 0.0  ;;  %1033 = vst.msk [vmem:[#allocation8 + $0x88] sm:$0xff] %vm49_vm0, %v969_v29  ;;  %v1113_v36 = vsel %vm49_vm0, %v969_v29, 0.0  ;;  %v1230_v45 = vmul.f32 %v969_v29, %v969_v29  ;;  %906 = vst.msk [vmem:[#allocation2 + $0xa8] sm:$0xff] %vm49_vm0, %v841_v30  ;;  %v2200_v54 = vld [vmem:[#allocation2 + $0x158] sm:$0xff]  ;;  %v2202_v55 = vld [vmem:[#allocation2 + $0x148] sm:$0xff] }
 0x13a   :  { %1056 = vst.msk [vmem:[#allocation8 + $0x140] sm:$0xff] %vm49_vm0, %v2189_v40  ;;  %v1309_v49 = vadd.f32 %v1308_v34, %v1307_v33  ;;  %v1114_v0 = vadd.f32 %v1113_v36, %v1112_v32  ;;  %1059 = vst.msk [vmem:[#allocation8 + $0x158] sm:$0xff] %vm49_vm0, %v2200_v54  ;;  %v2212_v3 = vld [vmem:[#allocation2 + $0x170] sm:$0xff]  ;;  %v1312_v13 = vsel %vm49_vm0, %v1231_v43, 0.0  ;;  %v1314_v1 = vsel %vm49_vm0, %v1232_v60, 0.0  ;;  %v142_v43 = vld [vmem:[#allocation2 + $0xe0] sm:$0xff] }
 0x13b   :  { %v1595_v6 = vpop.f32.mrb[24].mxu0  ;;  %v1310_v61 = vsel %vm49_vm0, %v1230_v45, 0.0  ;;  %1057 = vst.msk [vmem:[#allocation8 + $0x148] sm:$0xff] %vm49_vm0, %v2202_v55  ;;  %1062 = vst.msk [vmem:[#allocation8 + $0x170] sm:$0xff] %vm49_vm0, %v2212_v3  ;;  %v2216_v9 = vld [vmem:[#allocation2 + $0x160] sm:$0xff]  ;;  %v2218_v10 = vld [vmem:[#allocation2 + $0x178] sm:$0xff] }
 0x13c   :  { %v846_v62 = vadd.f32 %v1595_v6, %v140_v38  ;;  %v661_v63 = vpop.f32.mrb[25].mxu0  ;;  %v1116_v5 = vadd.f32 %v1115_v57, %v1114_v0  ;;  %v1311_v7 = vadd.f32 %v1310_v61, %v1309_v49  ;;  %1060 = vst.msk [vmem:[#allocation8 + $0x160] sm:$0xff] %vm49_vm0, %v2216_v9  ;;  %1063 = vst.msk [vmem:[#allocation8 + $0x178] sm:$0xff] %vm49_vm0, %v2218_v10  ;;  %v2228_v20 = vld [vmem:[#allocation2 + $0x168] sm:$0xff]  ;;  %v2238_v37 = vpop.f32.mrb[24].mxu1  ;;  %v144_v32 = vld [vmem:[#allocation2 + $0xf0] sm:$0xff] }
 0x13d   :  { %v974_v8 = vld [vmem:[#allocation2 + $0xb0] sm:$0xff]  ;;  %v844_v12 = vadd.f32 %v661_v63, %v138_v46  ;;  %v1596_v17 = vpop.f32.mrb[26].mxu0  ;;  %1061 = vst.msk [vmem:[#allocation8 + $0x168] sm:$0xff] %vm49_vm0, %v2228_v20  ;;  %v2241_v33 = vpop.f32.mrb[25].mxu1  ;;  %v145_v6 = vld [vmem:[#allocation2 + $0xf8] sm:$0xff] }
 0x13e   :  { %1038 = vst.msk [vmem:[#allocation8 + $0xb0] sm:$0xff] %vm49_vm0, %v974_v8  ;;  %v972_v15 = vld [vmem:[#allocation2 + $0xa0] sm:$0xff]  ;;  %911 = vst.msk [vmem:[#allocation2 + $0xd0] sm:$0xff] %vm49_vm0, %v846_v62  ;;  %v847_v47 = vadd.f32 %v1596_v17, %v141_v52  ;;  %v664_v19 = vpop.f32.mrb[27].mxu0  ;;  %v1313_v21 = vadd.f32 %v1312_v13, %v1311_v7  ;;  %v1118_v53 = vadd.f32 %v1117_v14, %v1116_v5  ;;  %v2246_v45 = vpop.f32.mrb[26].mxu1  ;;  %v1123_v57 = vsel %vm49_vm0, %v974_v8, 0.0 }
 0x13f   :  { %1036 = vst.msk [vmem:[#allocation8 + $0xa0] sm:$0xff] %vm49_vm0, %v972_v15  ;;  %v1119_v59 = vsel %vm49_vm0, %v972_v15, 0.0  ;;  %v1233_v22 = vmul.f32 %v972_v15, %v972_v15  ;;  %v975_v23 = vld [vmem:[#allocation2 + $0xb8] sm:$0xff]  ;;  %909 = vst.msk [vmem:[#allocation2 + $0xc0] sm:$0xff] %vm49_vm0, %v844_v12  ;;  %v845_v25 = vadd.f32 %v664_v19, %v139_v2  ;;  %v1235_v34 = vmul.f32 %v974_v8, %v974_v8  ;;  %v2248_v52 = vpop.f32.mrb[27].mxu1  ;;  %v143_v13 = vld [vmem:[#allocation2 + $0xe8] sm:$0xff] }
 0x140   :  { %1039 = vst.msk [vmem:[#allocation8 + $0xb8] sm:$0xff] %vm49_vm0, %v975_v23  ;;  %912 = vst.msk [vmem:[#allocation2 + $0xd8] sm:$0xff] %vm49_vm0, %v847_v47  ;;  %v1120_v26 = vadd.f32 %v1119_v59, %v1118_v53  ;;  %v1315_v27 = vadd.f32 %v1314_v1, %v1313_v21  ;;  %v973_v30 = vld [vmem:[#allocation2 + $0xa8] sm:$0xff]  ;;  %v1236_v60 = vmul.f32 %v975_v23, %v975_v23  ;;  %v1125_v15 = vsel %vm49_vm0, %v975_v23, 0.0 }
 0x141   :  { %v1316_v29 = vsel %vm49_vm0, %v1233_v22, 0.0  ;;  %1037 = vst.msk [vmem:[#allocation8 + $0xa8] sm:$0xff] %vm49_vm0, %v973_v30  ;;  %v1121_v36 = vsel %vm49_vm0, %v973_v30, 0.0  ;;  %v1234_v38 = vmul.f32 %v973_v30, %v973_v30  ;;  %910 = vst.msk [vmem:[#allocation2 + $0xc8] sm:$0xff] %vm49_vm0, %v845_v25  ;;  %v1320_v14 = vsel %vm49_vm0, %v1235_v34, 0.0 }
 0x142   :  { %v1317_v46 = vadd.f32 %v1316_v29, %v1315_v27  ;;  %v1122_v49 = vadd.f32 %v1121_v36, %v1120_v26  ;;  %v1322_v25 = vsel %vm49_vm0, %v1236_v60, 0.0 }
 0x143   :  { %v1599_v0 = vpop.f32.mrb[28].mxu0  ;;  %v1318_v61 = vsel %vm49_vm0, %v1234_v38, 0.0  ;;  %v2262_v26 = vpop.f32.mrb[28].mxu1 }
 0x144   :  { %v850_v62 = vadd.f32 %v1599_v0, %v144_v32  ;;  %v677_v63 = vpop.f32.mrb[29].mxu0  ;;  %v1124_v2 = vadd.f32 %v1123_v57, %v1122_v49  ;;  %v1319_v5 = vadd.f32 %v1318_v61, %v1317_v46  ;;  %v2265_v34 = vpop.f32.mrb[29].mxu1  ;;  %v164_v49 = vld [vmem:[#allocation2 + $0x190] sm:$0xff] }
 0x145   :  { %v978_v7 = vld [vmem:[#allocation2 + $0xd0] sm:$0xff]  ;;  %v848_v12 = vadd.f32 %v677_v63, %v142_v43  ;;  %v1600_v17 = vpop.f32.mrb[30].mxu0  ;;  %v2270_v0 = vpop.f32.mrb[30].mxu1  ;;  %v2278_v63 = vsel %vm49_vm0, %v2049_v35, 0.0 }
 0x146   :  { %1042 = vst.msk [vmem:[#allocation8 + $0xd0] sm:$0xff] %vm49_vm0, %v978_v7  ;;  %v976_v47 = vld [vmem:[#allocation2 + $0xc0] sm:$0xff]  ;;  %915 = vst.msk [vmem:[#allocation2 + $0xf0] sm:$0xff] %vm49_vm0, %v850_v62  ;;  %v851_v8 = vadd.f32 %v1600_v17, %v145_v6  ;;  %v680_v19 = vpop.f32.mrb[31].mxu0  ;;  %v1321_v21 = vadd.f32 %v1320_v14, %v1319_v5  ;;  %v1126_v53 = vadd.f32 %v1125_v15, %v1124_v2  ;;  %v2272_v60 = vpop.f32.mrb[31].mxu1  ;;  %v1131_v61 = vsel %vm49_vm0, %v978_v7, 0.0 }
 0x147   :  { %1040 = vst.msk [vmem:[#allocation8 + $0xc0] sm:$0xff] %vm49_vm0, %v976_v47  ;;  %v1127_v59 = vsel %vm49_vm0, %v976_v47, 0.0  ;;  %v1237_v22 = vmul.f32 %v976_v47, %v976_v47  ;;  %v979_v1 = vld [vmem:[#allocation2 + $0xd8] sm:$0xff]  ;;  %913 = vst.msk [vmem:[#allocation2 + $0xe0] sm:$0xff] %vm49_vm0, %v848_v12  ;;  %v849_v23 = vadd.f32 %v680_v19, %v143_v13  ;;  %v1239_v36 = vmul.f32 %v978_v7, %v978_v7  ;;  %v162_v14 = vld [vmem:[#allocation2 + $0x180] sm:$0xff] }
 0x148   :  { %1043 = vst.msk [vmem:[#allocation8 + $0xd8] sm:$0xff] %vm49_vm0, %v979_v1  ;;  %916 = vst.msk [vmem:[#allocation2 + $0xf8] sm:$0xff] %vm49_vm0, %v851_v8  ;;  %v1128_v27 = vadd.f32 %v1127_v59, %v1126_v53  ;;  %v1323_v29 = vadd.f32 %v1322_v25, %v1321_v21  ;;  %v977_v32 = vld [vmem:[#allocation2 + $0xc8] sm:$0xff]  ;;  %v1240_v38 = vmul.f32 %v979_v1, %v979_v1  ;;  %v1133_v7 = vsel %vm49_vm0, %v979_v1, 0.0  ;;  %v165_v21 = vld [vmem:[#allocation2 + $0x198] sm:$0xff] }
 0x149   :  { %v1324_v30 = vsel %vm49_vm0, %v1237_v22, 0.0  ;;  %1041 = vst.msk [vmem:[#allocation8 + $0xc8] sm:$0xff] %vm49_vm0, %v977_v32  ;;  %v1129_v43 = vsel %vm49_vm0, %v977_v32, 0.0  ;;  %v1238_v46 = vmul.f32 %v977_v32, %v977_v32  ;;  %914 = vst.msk [vmem:[#allocation2 + $0xe8] sm:$0xff] %vm49_vm0, %v849_v23  ;;  %v2282_v17 = vmul.f32 %v2049_v35, %v2049_v35  ;;  %v163_v25 = vld [vmem:[#allocation2 + $0x188] sm:$0xff]  ;;  %v166_v32 = vld [vmem:[#allocation2 + $0x1a0] sm:$0xff] }
 0x14a   :  { %v1325_v6 = vadd.f32 %v1324_v30, %v1323_v29  ;;  %v1130_v57 = vadd.f32 %v1129_v43, %v1128_v27  ;;  %v870_v13 = vadd.f32 %v2139_v41, %v164_v49  ;;  %v1328_v15 = vsel %vm49_vm0, %v1239_v36, 0.0  ;;  %v168_v30 = vld [vmem:[#allocation2 + $0x1b0] sm:$0xff]  ;;  %v169_v36 = vld [vmem:[#allocation2 + $0x1b8] sm:$0xff] }
 0x14b   :  { %v1326_v62 = vsel %vm49_vm0, %v1238_v46, 0.0  ;;  %v1330_v47 = vsel %vm49_vm0, %v1240_v38, 0.0  ;;  %v868_v29 = vadd.f32 %v2146_v51, %v162_v14  ;;  %v869_v51 = vadd.f32 %v2156_v4, %v163_v25  ;;  %v171_v14 = vld [vmem:[#allocation2 + $0x1c8] sm:$0xff] }
 0x14c   :  { %v1132_v2 = vadd.f32 %v1131_v61, %v1130_v57  ;;  %v1327_v5 = vadd.f32 %v1326_v62, %v1325_v6  ;;  %935 = vst.msk [vmem:[#allocation2 + $0x190] sm:$0xff] %vm49_vm0, %v870_v13  ;;  %v871_v6 = vadd.f32 %v2153_v58, %v165_v21  ;;  %v167_v57 = vld [vmem:[#allocation2 + $0x1a8] sm:$0xff]  ;;  %v172_v61 = vld [vmem:[#allocation2 + $0x1d0] sm:$0xff]  ;;  %v173_v13 = vld [vmem:[#allocation2 + $0x1d8] sm:$0xff]  ;;  %v874_v58 = vadd.f32 %v2182_v31, %v168_v30 }
 0x14d   :  { %v982_v12 = vld [vmem:[#allocation2 + $0xf0] sm:$0xff]  ;;  %933 = vst.msk [vmem:[#allocation2 + $0x180] sm:$0xff] %vm49_vm0, %v868_v29  ;;  %v177_v21 = vld [vmem:[#allocation2 + $0x1f8] sm:$0xff]  ;;  %934 = vst.msk [vmem:[#allocation2 + $0x188] sm:$0xff] %vm49_vm0, %v869_v51  ;;  %v875_v4 = vadd.f32 %v2198_v48, %v169_v36  ;;  %v877_v48 = vadd.f32 %v2248_v52, %v171_v14  ;;  %v1340_v52 = vsel %vm49_vm0, %v2282_v17, 0.0  ;;  %v1247_v17 = vmul.f32 %v2042_v28, %v2042_v28 }
 0x14e   :  { %1046 = vst.msk [vmem:[#allocation8 + $0xf0] sm:$0xff] %vm49_vm0, %v982_v12  ;;  %v1243_v8 = vmul.f32 %v982_v12, %v982_v12  ;;  %v980_v19 = vld [vmem:[#allocation2 + $0xe0] sm:$0xff]  ;;  %v1329_v53 = vadd.f32 %v1328_v15, %v1327_v5  ;;  %v1134_v59 = vadd.f32 %v1133_v7, %v1132_v2  ;;  %v1139_v1 = vsel %vm49_vm0, %v982_v12, 0.0  ;;  %936 = vst.msk [vmem:[#allocation2 + $0x198] sm:$0xff] %vm49_vm0, %v871_v6 }
 0x14f   :  { %1044 = vst.msk [vmem:[#allocation8 + $0xe0] sm:$0xff] %vm49_vm0, %v980_v19  ;;  %v1135_v35 = vsel %vm49_vm0, %v980_v19, 0.0  ;;  %v1241_v22 = vmul.f32 %v980_v19, %v980_v19  ;;  %v983_v41 = vld [vmem:[#allocation2 + $0xf8] sm:$0xff]  ;;  %v170_v12 = vld [vmem:[#allocation2 + $0x1c0] sm:$0xff]  ;;  %939 = vst.msk [vmem:[#allocation2 + $0x1b0] sm:$0xff] %vm49_vm0, %v874_v58  ;;  %v1344_v51 = vsel %vm49_vm0, %v1247_v17, 0.0 }
 0x150   :  { %v1336_v23 = vsel %vm49_vm0, %v1243_v8, 0.0  ;;  %1047 = vst.msk [vmem:[#allocation8 + $0xf8] sm:$0xff] %vm49_vm0, %v983_v41  ;;  %v1141_v27 = vsel %vm49_vm0, %v983_v41, 0.0  ;;  %v1136_v38 = vadd.f32 %v1135_v35, %v1134_v59  ;;  %v1331_v43 = vadd.f32 %v1330_v47, %v1329_v53  ;;  %v981_v49 = vld [vmem:[#allocation2 + $0xe8] sm:$0xff]  ;;  %v176_v8 = vld [vmem:[#allocation2 + $0x1f0] sm:$0xff]  ;;  %v174_v19 = vld [vmem:[#allocation2 + $0x1e0] sm:$0xff] }
 0x151   :  { %v1332_v46 = vsel %vm49_vm0, %v1241_v22, 0.0  ;;  %v1244_v62 = vmul.f32 %v983_v41, %v983_v41  ;;  %1045 = vst.msk [vmem:[#allocation8 + $0xe8] sm:$0xff] %vm49_vm0, %v981_v49  ;;  %v1137_v2 = vsel %vm49_vm0, %v981_v49, 0.0  ;;  %v1242_v5 = vmul.f32 %v981_v49, %v981_v49  ;;  %v175_v22 = vld [vmem:[#allocation2 + $0x1e8] sm:$0xff]  ;;  %940 = vst.msk [vmem:[#allocation2 + $0x1b8] sm:$0xff] %vm49_vm0, %v875_v4 }
 0x152   :  { %v1333_v15 = vadd.f32 %v1332_v46, %v1331_v43  ;;  %v1138_v7 = vadd.f32 %v1137_v2, %v1136_v38  ;;  %v872_v47 = vadd.f32 %v2191_v42, %v166_v32  ;;  %v873_v59 = vadd.f32 %v2204_v56, %v167_v57  ;;  %942 = vst.msk [vmem:[#allocation2 + $0x1c8] sm:$0xff] %vm49_vm0, %v877_v48 }
 0x153   :  { %v1334_v53 = vsel %vm49_vm0, %v1242_v5, 0.0  ;;  %v878_v35 = vadd.f32 %v2238_v37, %v172_v61  ;;  %v876_v31 = vadd.f32 %v2241_v33, %v170_v12  ;;  %v879_v42 = vadd.f32 %v2246_v45, %v173_v13  ;;  %v2315_v29 = vld [vmem:[#allocation2 + $0x190] sm:$0xff] }
 0x154   :  { %v1140_v41 = vadd.f32 %v1139_v1, %v1138_v7  ;;  %v1335_v25 = vadd.f32 %v1334_v53, %v1333_v15  ;;  %937 = vst.msk [vmem:[#allocation2 + $0x1a0] sm:$0xff] %vm49_vm0, %v872_v47  ;;  %938 = vst.msk [vmem:[#allocation2 + $0x1a8] sm:$0xff] %vm49_vm0, %v873_v59  ;;  %v882_v56 = vadd.f32 %v2262_v26, %v176_v8  ;;  %v1338_v32 = vsel %vm49_vm0, %v1244_v62, 0.0  ;;  %v2350_v43 = vld [vmem:[#allocation2 + $0x188] sm:$0xff] }
 0x155   :  { %943 = vst.msk [vmem:[#allocation2 + $0x1d0] sm:$0xff] %vm49_vm0, %v878_v35  ;;  %v880_v37 = vadd.f32 %v2265_v34, %v174_v19  ;;  %v883_v1 = vadd.f32 %v2270_v0, %v177_v21  ;;  %1066 = vst.msk [vmem:[#allocation8 + $0x190] sm:$0xff] %vm49_vm0, %v2315_v29  ;;  %v881_v45 = vadd.f32 %v2272_v60, %v175_v22  ;;  %v2339_v60 = vld [vmem:[#allocation2 + $0x180] sm:$0xff]  ;;  %v1149_v12 = vsel %vm49_vm0, %v2056_v44, 0.0 }
 0x156   :  { %v1337_v30 = vadd.f32 %v1336_v23, %v1335_v25  ;;  %v1142_v33 = vadd.f32 %v1141_v27, %v1140_v41  ;;  %941 = vst.msk [vmem:[#allocation2 + $0x1c0] sm:$0xff] %vm49_vm0, %v876_v31  ;;  %944 = vst.msk [vmem:[#allocation2 + $0x1d8] sm:$0xff] %vm49_vm0, %v879_v42  ;;  %v1246_v26 = vmul.f32 %v2063_v50, %v2063_v50  ;;  %v1145_v23 = vsel %vm49_vm0, %v2063_v50, 0.0  ;;  %v2348_v27 = vld [vmem:[#allocation2 + $0x198] sm:$0xff]  ;;  %v2365_v57 = vld [vmem:[#allocation2 + $0x1b0] sm:$0xff] }
 0x157   :  { %947 = vst.msk [vmem:[#allocation2 + $0x1f0] sm:$0xff] %vm49_vm0, %v882_v56  ;;  %945 = vst.msk [vmem:[#allocation2 + $0x1e0] sm:$0xff] %vm49_vm0, %v880_v37  ;;  %v1248_v50 = vmul.f32 %v2056_v44, %v2056_v44  ;;  %v1249_v49 = vmul.f32 %v2092_v16, %v2092_v16  ;;  %v1151_v13 = vsel %vm49_vm0, %v2092_v16, 0.0  ;;  %v1250_v21 = vmul.f32 %v2163_v18, %v2163_v18 }
 0x158   :  { %948 = vst.msk [vmem:[#allocation2 + $0x1f8] sm:$0xff] %vm49_vm0, %v883_v1  ;;  %v1144_v34 = vadd.f32 %v2278_v63, %v1142_v33  ;;  %v1339_v0 = vadd.f32 %v1338_v32, %v1337_v30  ;;  %946 = vst.msk [vmem:[#allocation2 + $0x1e8] sm:$0xff] %vm49_vm0, %v881_v45  ;;  %v1147_v63 = vsel %vm49_vm0, %v2042_v28, 0.0  ;;  %v1342_v46 = vsel %vm49_vm0, %v1246_v26, 0.0  ;;  %v2369_v28 = vld [vmem:[#allocation2 + $0x1b8] sm:$0xff] }
 0x159   :  { %1064 = vst.msk [vmem:[#allocation8 + $0x180] sm:$0xff] %vm49_vm0, %v2339_v60  ;;  %1067 = vst.msk [vmem:[#allocation8 + $0x198] sm:$0xff] %vm49_vm0, %v2348_v27  ;;  %v2394_v58 = vld [vmem:[#allocation2 + $0x1c8] sm:$0xff]  ;;  %v1346_v8 = vsel %vm49_vm0, %v1248_v50, 0.0  ;;  %v1348_v19 = vsel %vm49_vm0, %v1249_v49, 0.0  ;;  %v1251_v22 = vmul.f32 %v2084_v11, %v2084_v11  ;;  %v1153_v41 = vsel %vm49_vm0, %v2163_v18, 0.0 }
 0x15a   :  { %v1341_v36 = vadd.f32 %v1340_v52, %v1339_v0  ;;  %v1146_v38 = vadd.f32 %v1145_v23, %v1144_v34  ;;  %1065 = vst.msk [vmem:[#allocation8 + $0x188] sm:$0xff] %vm49_vm0, %v2350_v43  ;;  %1070 = vst.msk [vmem:[#allocation8 + $0x1b0] sm:$0xff] %vm49_vm0, %v2365_v57 }
 0x15b   :  { %v2363_v6 = vld [vmem:[#allocation2 + $0x1a0] sm:$0xff]  ;;  %v2367_v2 = vld [vmem:[#allocation2 + $0x1a8] sm:$0xff]  ;;  %1071 = vst.msk [vmem:[#allocation8 + $0x1b8] sm:$0xff] %vm49_vm0, %v2369_v28  ;;  %1073 = vst.msk [vmem:[#allocation8 + $0x1c8] sm:$0xff] %vm49_vm0, %v2394_v58 }
 0x15c   :  { %v1148_v61 = vadd.f32 %v1147_v63, %v1146_v38  ;;  %v1343_v62 = vadd.f32 %v1342_v46, %v1341_v36  ;;  %v2371_v5 = vld [vmem:[#allocation2 + $0x1d0] sm:$0xff]  ;;  %1068 = vst.msk [vmem:[#allocation8 + $0x1a0] sm:$0xff] %vm49_vm0, %v2363_v6  ;;  %1069 = vst.msk [vmem:[#allocation8 + $0x1a8] sm:$0xff] %vm49_vm0, %v2367_v2 }
 0x15d   :  { %v2382_v14 = vld [vmem:[#allocation2 + $0x1c0] sm:$0xff]  ;;  %v2384_v15 = vld [vmem:[#allocation2 + $0x1d8] sm:$0xff]  ;;  %1074 = vst.msk [vmem:[#allocation8 + $0x1d0] sm:$0xff] %vm49_vm0, %v2371_v5 }
 0x15e   :  { %v1345_v7 = vadd.f32 %v1344_v51, %v1343_v62  ;;  %v1150_v44 = vadd.f32 %v1149_v12, %v1148_v61  ;;  %v2396_v16 = vld [vmem:[#allocation2 + $0x1e0] sm:$0xff]  ;;  %v2398_v47 = vld [vmem:[#allocation2 + $0x1f0] sm:$0xff]  ;;  %1072 = vst.msk [vmem:[#allocation8 + $0x1c0] sm:$0xff] %vm49_vm0, %v2382_v14  ;;  %1075 = vst.msk [vmem:[#allocation8 + $0x1d8] sm:$0xff] %vm49_vm0, %v2384_v15 }
 0x15f   :  { %v2408_v53 = vld [vmem:[#allocation2 + $0x1e8] sm:$0xff]  ;;  %v2410_v4 = vld [vmem:[#allocation2 + $0x1f8] sm:$0xff]  ;;  %1076 = vst.msk [vmem:[#allocation8 + $0x1e0] sm:$0xff] %vm49_vm0, %v2396_v16  ;;  %1078 = vst.msk [vmem:[#allocation8 + $0x1f0] sm:$0xff] %vm49_vm0, %v2398_v47 }
 0x160   :  { %v1152_v59 = vadd.f32 %v1151_v13, %v1150_v44  ;;  %v1347_v35 = vadd.f32 %v1346_v8, %v1345_v7  ;;  %1077 = vst.msk [vmem:[#allocation8 + $0x1e8] sm:$0xff] %vm49_vm0, %v2408_v53  ;;  %1079 = vst.msk [vmem:[#allocation8 + $0x1f8] sm:$0xff] %vm49_vm0, %v2410_v4 }
 0x161   :  { %1742 = shalt.err (!%p1739_p6)
}
 0x162   :  { %s1743_s18 = scalar_lea.hbm %s2600_s2, 8192 }
 0x163   :  { %p1744_p7 = scmp.ne.s32.totalorder %s2600_s2, %s1743_s18  ;;  %p1747_p8 = scmp.lt.u32.totalorder %s1743_s18, %s2600_s2 }
 0x165   :  { %p1749_p9 = pnand %p1747_p8, %p1744_p7 }
 0x167   :  { %1752 = shalt.err (!%p1749_p9)
}
 0x168   :  { %s1811_s23 = smov 128   ;;  %s1812_s24 = smov 8   ;;  %v1349_v18 = vadd.f32 %v1348_v19, %v1347_v35  ;;  %v1154_v25 = vadd.f32 %v1153_v41, %v1152_v59  ;;  %v1155_v31 = vsel %vm49_vm0, %v2084_v11, 0.0  ;;  %v1252_v42 = vmul.f32 %v2098_v24, %v2098_v24 }
 0x169   :  { %1423 = dma.vmem_to_hbm [thread:$0]  %s2392_s14, 8192, %s2600_s2, [#allocation5], %s1811_s23, %s1811_s23, %s1812_s24   ;;  %v1350_v48 = vsel %vm49_vm0, %v1250_v21, 0.0  ;;  %v1253_v56 = vmul.f32 %v2189_v40, %v2189_v40  ;;  %v1352_v30 = vsel %vm49_vm0, %v1251_v22, 0.0  ;;  %v1157_v33 = vsel %vm49_vm0, %v2098_v24, 0.0 }
 0x16a   :  { %v1156_v37 = vadd.f32 %v1155_v31, %v1154_v25  ;;  %v1351_v1 = vadd.f32 %v1350_v48, %v1349_v18  ;;  %v1159_v45 = vsel %vm49_vm0, %v2189_v40, 0.0  ;;  %v1354_v52 = vsel %vm49_vm0, %v1252_v42, 0.0  ;;  %s1813_s2 = smov [#allocation9]   ;;  %s1814_s28 = smov [#allocation11]  }
 0x16b   :  { %v1356_v26 = vsel %vm49_vm0, %v1253_v56, 0.0  ;;  %v1254_v34 = vmul.f32 %v2202_v55, %v2202_v55  ;;  %v1255_v23 = vmul.f32 %v2187_v39, %v2187_v39  ;;  %v1161_v24 = vsel %vm49_vm0, %v2202_v55, 0.0  ;;  %s1430_s27 = sshll.u32 %s1813_s2, 4  ;;  %s1440_s29 = sshll.u32 %s1814_s28, 4  ;;  %s1431_s27 = int_to_ptr.vmem [resolvable:$true] %s1430_s27  ;;  %s1441_s29 = int_to_ptr.vmem [resolvable:$true] %s1440_s29 }
 0x16c   :  { %v1353_v32 = vadd.f32 %v1352_v30, %v1351_v1  ;;  %v1158_v11 = vadd.f32 %v1157_v33, %v1156_v37  ;;  %v1163_v40 = vsel %vm49_vm0, %v2187_v39, 0.0  ;;  %v1256_v63 = vmul.f32 %v2200_v54, %v2200_v54  ;;  %s1753_s30 = scalar_lea.vmem %s1431_s27, 128  ;;  %p1758_p11 = scmp.lt.s32.totalorder %s1431_s27, %s1431_s27 }
 0x16d   :  { %v1358_v50 = vsel %vm49_vm0, %v1254_v34, 0.0  ;;  %v1257_v46 = vmul.f32 %v2216_v9, %v2216_v9  ;;  %v1360_v62 = vsel %vm49_vm0, %v1255_v23, 0.0  ;;  %v1165_v55 = vsel %vm49_vm0, %v2200_v54, 0.0  ;;  %p1754_p10 = scmp.ne.s32.totalorder %s1431_s27, %s1753_s30  ;;  %p1759_p12 = scmp.lt.s32.totalorder %s1753_s30, %s1753_s30 }
 0x16e   :  { %v1160_v0 = vadd.f32 %v1159_v45, %v1158_v11  ;;  %v1355_v17 = vadd.f32 %v1354_v52, %v1353_v32  ;;  %v1167_v51 = vsel %vm49_vm0, %v2216_v9, 0.0  ;;  %v1362_v13 = vsel %vm49_vm0, %v1256_v63, 0.0 }
 0x16f   :  { %v1364_v7 = vsel %vm49_vm0, %v1257_v46, 0.0  ;;  %v1258_v44 = vmul.f32 %v2228_v20, %v2228_v20  ;;  %v1259_v21 = vmul.f32 %v2212_v3, %v2212_v3  ;;  %v1169_v54 = vsel %vm49_vm0, %v2228_v20, 0.0  ;;  %p1760_p13 = por %p1759_p12, %p1758_p11 }
 0x170   :  { %v1357_v36 = vadd.f32 %v1356_v26, %v1355_v17  ;;  %v1162_v38 = vadd.f32 %v1161_v24, %v1160_v0  ;;  %v1171_v9 = vsel %vm49_vm0, %v2212_v3, 0.0  ;;  %v1260_v22 = vmul.f32 %v2218_v10, %v2218_v10 }
 0x171   :  { %v1366_v41 = vsel %vm49_vm0, %v1258_v44, 0.0  ;;  %v1261_v18 = vmul.f32 %v2339_v60, %v2339_v60  ;;  %v1368_v42 = vsel %vm49_vm0, %v1259_v21, 0.0  ;;  %v1173_v20 = vsel %vm49_vm0, %v2218_v10, 0.0  ;;  %p1761_p0 = pnand %p1760_p13, %p1754_p10 }
 0x172   :  { %v1164_v49 = vadd.f32 %v1163_v40, %v1162_v38  ;;  %v1359_v61 = vadd.f32 %v1358_v50, %v1357_v36  ;;  %v1175_v48 = vsel %vm49_vm0, %v2339_v60, 0.0  ;;  %v1370_v37 = vsel %vm49_vm0, %v1260_v22, 0.0 }
 0x173   :  { %v1372_v1 = vsel %vm49_vm0, %v1261_v18, 0.0  ;;  %v1262_v30 = vmul.f32 %v2350_v43, %v2350_v43  ;;  %v1263_v32 = vmul.f32 %v2315_v29, %v2315_v29  ;;  %v1177_v10 = vsel %vm49_vm0, %v2350_v43, 0.0 }
 0x174   :  { %v1361_v12 = vadd.f32 %v1360_v62, %v1359_v61  ;;  %v1166_v39 = vadd.f32 %v1165_v55, %v1164_v49  ;;  %v1179_v60 = vsel %vm49_vm0, %v2315_v29, 0.0  ;;  %v1264_v26 = vmul.f32 %v2348_v27, %v2348_v27 }
 0x175   :  { %v1265_v34 = vmul.f32 %v2363_v6, %v2363_v6  ;;  %v1374_v0 = vsel %vm49_vm0, %v1262_v30, 0.0  ;;  %v1181_v24 = vsel %vm49_vm0, %v2348_v27, 0.0  ;;  %v1183_v43 = vsel %vm49_vm0, %v2363_v6, 0.0 }
 0x176   :  { %v1168_v8 = vadd.f32 %v1167_v51, %v1166_v39  ;;  %v1363_v19 = vadd.f32 %v1362_v13, %v1361_v12  ;;  %v1376_v36 = vsel %vm49_vm0, %v1263_v32, 0.0  ;;  %v1266_v40 = vmul.f32 %v2367_v2, %v2367_v2 }
 0x177   :  { %v1378_v63 = vsel %vm49_vm0, %v1264_v26, 0.0  ;;  %v1380_v50 = vsel %vm49_vm0, %v1265_v34, 0.0  ;;  %v1185_v61 = vsel %vm49_vm0, %v2367_v2, 0.0  ;;  %v1267_v27 = vmul.f32 %v2365_v57, %v2365_v57 }
 0x178   :  { %v1365_v59 = vadd.f32 %v1364_v7, %v1363_v19  ;;  %v1170_v35 = vadd.f32 %v1169_v54, %v1168_v8  ;;  %v1187_v55 = vsel %vm49_vm0, %v2365_v57, 0.0  ;;  %v1268_v51 = vmul.f32 %v2369_v28, %v2369_v28 }
 0x179   :  { %v1269_v12 = vmul.f32 %v2382_v14, %v2382_v14  ;;  %v1382_v39 = vsel %vm49_vm0, %v1266_v40, 0.0  ;;  %v1189_v2 = vsel %vm49_vm0, %v2369_v28, 0.0  ;;  %v1191_v44 = vsel %vm49_vm0, %v2382_v14, 0.0 }
 0x17a   :  { %v1172_v25 = vadd.f32 %v1171_v9, %v1170_v35  ;;  %v1367_v31 = vadd.f32 %v1366_v41, %v1365_v59  ;;  %v1384_v8 = vsel %vm49_vm0, %v1267_v27, 0.0  ;;  %v1270_v21 = vmul.f32 %v2394_v58, %v2394_v58 }
 0x17b   :  { %v1386_v54 = vsel %vm49_vm0, %v1268_v51, 0.0  ;;  %v1388_v59 = vsel %vm49_vm0, %v1269_v12, 0.0  ;;  %v1193_v22 = vsel %vm49_vm0, %v2394_v58, 0.0  ;;  %v1271_v28 = vmul.f32 %v2371_v5, %v2371_v5 }
 0x17c   :  { %v1369_v56 = vadd.f32 %v1368_v42, %v1367_v31  ;;  %v1174_v3 = vadd.f32 %v1173_v20, %v1172_v25  ;;  %v1195_v18 = vsel %vm49_vm0, %v2371_v5, 0.0  ;;  %v1272_v25 = vmul.f32 %v2384_v15, %v2384_v15 }
 0x17d   :  { %v1273_v31 = vmul.f32 %v2396_v16, %v2396_v16  ;;  %v1390_v42 = vsel %vm49_vm0, %v1270_v21, 0.0  ;;  %v1197_v58 = vsel %vm49_vm0, %v2384_v15, 0.0  ;;  %v1275_v15 = vmul.f32 %v2398_v47, %v2398_v47 }
 0x17e   :  { %v1176_v33 = vadd.f32 %v1175_v48, %v1174_v3  ;;  %v1371_v45 = vadd.f32 %v1370_v37, %v1369_v56  ;;  %v1199_v56 = vsel %vm49_vm0, %v2396_v16, 0.0  ;;  %v1392_v3 = vsel %vm49_vm0, %v1271_v28, 0.0 }
 0x17f   :  { %v1394_v30 = vsel %vm49_vm0, %v1272_v25, 0.0 }
 0x180   :  { %v1178_v11 = vadd.f32 %v1177_v10, %v1176_v33  ;;  %v1373_v52 = vadd.f32 %v1372_v1, %v1371_v45  ;;  %v1274_v1 = vmul.f32 %v2408_v53, %v2408_v53  ;;  %v1396_v33 = vsel %vm49_vm0, %v1273_v31, 0.0 }
 0x181   :  { %v1201_v10 = vsel %vm49_vm0, %v2408_v53, 0.0  ;;  %v1400_v53 = vsel %vm49_vm0, %v1275_v15, 0.0 }
 0x182   :  { %v1180_v17 = vadd.f32 %v1179_v60, %v1178_v11  ;;  %v1375_v23 = vadd.f32 %v1374_v0, %v1373_v52  ;;  %v1203_v52 = vsel %vm49_vm0, %v2398_v47, 0.0  ;;  %v1276_v60 = vmul.f32 %v2410_v4, %v2410_v4 }
 0x183   :  { %v1398_v26 = vsel %vm49_vm0, %v1274_v1, 0.0 }
 0x184   :  { %v1182_v38 = vadd.f32 %v1181_v24, %v1180_v17  ;;  %v1377_v29 = vadd.f32 %v1376_v36, %v1375_v23  ;;  %v1205_v17 = vsel %vm49_vm0, %v2410_v4, 0.0 }
 0x186   :  { %v1184_v46 = vadd.f32 %v1183_v43, %v1182_v38  ;;  %v1379_v49 = vadd.f32 %v1378_v63, %v1377_v29  ;;  %v1402_v43 = vsel %vm49_vm0, %v1276_v60, 0.0 }
 0x188   :  { %v1186_v6 = vadd.f32 %v1185_v61, %v1184_v46  ;;  %v1381_v62 = vadd.f32 %v1380_v50, %v1379_v49 }
 0x18a   :  { %v1188_v13 = vadd.f32 %v1187_v55, %v1186_v6  ;;  %v1383_v7 = vadd.f32 %v1382_v39, %v1381_v62 }
 0x18c   :  { %v1190_v19 = vadd.f32 %v1189_v2, %v1188_v13  ;;  %v1385_v57 = vadd.f32 %v1384_v8, %v1383_v7 }
 0x18e   :  { %v1192_v35 = vadd.f32 %v1191_v44, %v1190_v19  ;;  %v1387_v9 = vadd.f32 %v1386_v54, %v1385_v57 }
 0x190   :  { %v1194_v14 = vadd.f32 %v1193_v22, %v1192_v35  ;;  %v1389_v41 = vadd.f32 %v1388_v59, %v1387_v9 }
 0x192   :  { %v1196_v20 = vadd.f32 %v1195_v18, %v1194_v14  ;;  %v1391_v48 = vadd.f32 %v1390_v42, %v1389_v41 }
 0x194   :  { %v1198_v37 = vadd.f32 %v1197_v58, %v1196_v20  ;;  %v1393_v5 = vadd.f32 %v1392_v3, %v1391_v48 }
 0x196   :  { %v1200_v45 = vadd.f32 %v1199_v56, %v1198_v37  ;;  %v1395_v32 = vadd.f32 %v1394_v30, %v1393_v5 }
 0x198   :  { %v1202_v16 = vadd.f32 %v1201_v10, %v1200_v45  ;;  %v1397_v11 = vadd.f32 %v1396_v33, %v1395_v32 }
 0x19a   :  { %v1204_v34 = vadd.f32 %v1203_v52, %v1202_v16  ;;  %v1399_v0 = vadd.f32 %v1398_v26, %v1397_v11 }
 0x19c   :  { %v1206_v23 = vadd.f32 %v1205_v17, %v1204_v34  ;;  %v1401_v24 = vadd.f32 %v1400_v53, %v1399_v0 }
 0x19e   :  { %v1207_v36 = vrot.slane %v1206_v23, 4  ;;  %v1403_v38 = vadd.f32 %v1402_v43, %v1401_v24 }
 0x1a0   :  { %v1208_v29 = vadd.f32 %v1207_v36, %v1206_v23  ;;  %v1404_v47 = vrot.slane %v1403_v38, 4 }
 0x1a2   :  { %v1209_v40 = vrot.slane %v1208_v29, 2  ;;  %v1405_v63 = vadd.f32 %v1404_v47, %v1403_v38 }
 0x1a4   :  { %v1210_v50 = vadd.f32 %v1209_v40, %v1208_v29  ;;  %v1406_v46 = vrot.slane %v1405_v63, 2 }
 0x1a6   :  { %v1211_v49 = vrot.slane %v1210_v50, 1  ;;  %v1407_v61 = vadd.f32 %v1406_v46, %v1405_v63 }
 0x1a8   :  { %v1212_v4 = vadd.f32 %v1211_v49, %v1210_v50  ;;  %v1408_v27 = vrot.slane %v1407_v61, 1 }
 0x1aa   :  { %1410 = vst.msk [vmem:[#allocation9] sm:$0xff] %vm49_vm0, %v1212_v4  ;;  %v1409_v6 = vadd.f32 %v1408_v27, %v1407_v61 }
 0x1ab   :  { %1764 = shalt.err (!%p1761_p0)
}
 0x1ac   :  { %s1765_s7 = scalar_lea.hbm %s2601_s3, 128 }
 0x1ad   :  { %p1766_p1 = scmp.ne.s32.totalorder %s2601_s3, %s1765_s7  ;;  %p1769_p2 = scmp.lt.u32.totalorder %s1765_s7, %s2601_s3 }
 0x1af   :  { %p1771_p3 = pnand %p1769_p2, %p1766_p1 }
 0x1b1   :  { %1774 = shalt.err (!%p1771_p3)
}
 0x1b2   :  { %1433 = dma.vmem_to_hbm [thread:$0]  %s1431_s27, 128, %s2601_s3, [#allocation10]   ;;  %1411 = vst.msk [vmem:[#allocation11] sm:$0xff] %vm49_vm0, %v1409_v6 }
 0x1b3   :  { %s1775_s13 = scalar_lea.vmem %s1441_s29, 128  ;;  %p1780_p5 = scmp.lt.s32.totalorder %s1441_s29, %s1441_s29 }
 0x1b4   :  { %p1776_p4 = scmp.ne.s32.totalorder %s1441_s29, %s1775_s13  ;;  %p1781_p6 = scmp.lt.s32.totalorder %s1775_s13, %s1775_s13 }
 0x1b6   :  { %p1782_p7 = por %p1781_p6, %p1780_p5 }
 0x1b8   :  { %p1783_p8 = pnand %p1782_p7, %p1776_p4 }
 0x1ba   :  { %1786 = shalt.err (!%p1783_p8)
}
 0x1bb   :  { %s1787_s15 = scalar_lea.hbm %s2602_s4, 128 }
 0x1bc   :  { %p1788_p9 = scmp.ne.s32.totalorder %s2602_s4, %s1787_s15  ;;  %p1791_p10 = scmp.lt.u32.totalorder %s1787_s15, %s2602_s4 }
 0x1be   :  { %p1793_p11 = pnand %p1791_p10, %p1788_p9 }
 0x1c0   :  { %1796 = shalt.err (!%p1793_p11)
}
 0x1c1   :  { %1443 = dma.vmem_to_hbm [thread:$0]  %s1441_s29, 128, %s2602_s4, [#allocation10]  }
 0x1c2   :  { %1801 = dma.done.wait [#allocation5], 8192  }
 0x1c3   :  { %1802 = vsyncadd [#allocation5], 4294959104 }
 0x1c4   :  { %1803 = dma.done.wait [#allocation10], 256  }
 0x1c5   :  { %1804 = vsyncadd [#allocation10], 4294967040 }
 0x1c6   :  { %1453 = vsyncpa [#allocation4], 1 }
 0x1c7   :  { %1454 = vsyncpa [#allocation7], 1 }
 0x1c8   :  { %1455 = vsyncpa [#allocation5], 1 }
 0x1c9   :  { %1456 = vsyncpa [#allocation10], 1 }

// kernel: generator_forward.37
= control target key start
LH: loop header
LB: loop body
LE: loop exit
PB: predicated region body
PF: predicated region fallthrough
CT: control target
= control target key end

     0   :  { %10 = vsyncpa [#allocation3], 0  ;;  %s730_s0 = inlined_call_operand.hbm [shape: f32[128,128], index: 0, kind: input, shape index: {}]   ;;  %s731_s1 = inlined_call_operand.hbm [shape: f32[1,128], index: 1, kind: input, shape index: {}]   ;;  %s732_s2 = inlined_call_operand.hbm [shape: f32[1,128], index: 2, kind: input, shape index: {}]   ;;  %s733_s3 = inlined_call_operand.hbm [shape: f32[1,128], index: 3, kind: input, shape index: {}]   ;;  %s734_s4 = inlined_call_operand.hbm [shape: f32[1,128], index: 4, kind: input, shape index: {}]   ;;  %s735_s5 = inlined_call_operand.hbm [shape: bf16[128,128], index: 5, kind: output, shape index: {}]  }
   0x1   :  { %11 = vsyncpa [#allocation6], 0 }
   0x2   :  { %12 = vsyncpa [#allocation9], 0 }
   0x3   :  { %13 = vsyncpa [#allocation4], 0  ;;  %s540_s18 = smov [#allocation5]   ;;  %s541_s20 = smov [#allocation8]  }
   0x4   :  { %s32_s19 = sshll.u32 %s540_s18, 4  ;;  %s52_s21 = sshll.u32 %s541_s20, 4  ;;  %s33_s19 = int_to_ptr.vmem [resolvable:$true] %s32_s19  ;;  %s53_s21 = int_to_ptr.vmem [resolvable:$true] %s52_s21 }
   0x5   :  { %s400_s24 = scalar_lea.hbm %s731_s1, 16 }
   0x6   :  { %p401_p0 = scmp.ne.s32.totalorder %s731_s1, %s400_s24  ;;  %p404_p1 = scmp.lt.u32.totalorder %s400_s24, %s731_s1 }
   0x8   :  { %p406_p2 = pnand %p404_p1, %p401_p0 }
   0xa   :  { %409 = shalt.err (!%p406_p2)
}
   0xb   :  { %s410_s29 = scalar_lea.vmem %s33_s19, 16  ;;  %s414_s30 = scalar_lea.vmem %s33_s19, 32 }
   0xc   :  { %p411_p3 = scmp.ne.s32.totalorder %s33_s19, %s410_s29  ;;  %p415_p4 = scmp.lt.s32.totalorder %s33_s19, %s33_s19 }
   0xd   :  { %p416_p5 = scmp.lt.s32.totalorder %s414_s30, %s410_s29 }
   0xf   :  { %p417_p6 = por %p416_p5, %p415_p4 }
  0x11   :  { %p418_p7 = pnand %p417_p6, %p411_p3 }
  0x13   :  { %421 = shalt.err (!%p418_p7)
}
  0x14   :  { %35 = dma.hbm_to_vmem [thread:$0]  %s731_s1, 16, %s33_s19, [#allocation6]  }
  0x15   :  { %s422_s10 = scalar_lea.hbm %s733_s3, 16 }
  0x16   :  { %p423_p8 = scmp.ne.s32.totalorder %s733_s3, %s422_s10  ;;  %p426_p9 = scmp.lt.u32.totalorder %s422_s10, %s733_s3 }
  0x18   :  { %p428_p10 = pnand %p426_p9, %p423_p8 }
  0x1a   :  { %431 = shalt.err (!%p428_p10)
}
  0x1b   :  { %s432_s15 = scalar_lea.vmem %s53_s21, 16  ;;  %s436_s16 = scalar_lea.vmem %s53_s21, 32 }
  0x1c   :  { %p433_p11 = scmp.ne.s32.totalorder %s53_s21, %s432_s15  ;;  %p437_p12 = scmp.lt.s32.totalorder %s53_s21, %s53_s21 }
  0x1d   :  { %p438_p13 = scmp.lt.s32.totalorder %s436_s16, %s432_s15 }
  0x1f   :  { %p439_p0 = por %p438_p13, %p437_p12 }
  0x21   :  { %p440_p1 = pnand %p439_p0, %p433_p11 }
  0x23   :  { %443 = shalt.err (!%p440_p1)
}
  0x24   :  { %55 = dma.hbm_to_vmem [thread:$0]  %s733_s3, 16, %s53_s21, [#allocation9]  }
  0x25   :  { %s542_s18 = smov [#allocation2]   ;;  %s444_s23 = scalar_lea.hbm %s730_s0, 2048 }
  0x26   :  { %s19_s19 = sshll.u32 %s542_s18, 4  ;;  %p445_p2 = scmp.ne.s32.totalorder %s730_s0, %s444_s23  ;;  %s20_s19 = int_to_ptr.vmem [resolvable:$true] %s19_s19 }
  0x27   :  { %p448_p3 = scmp.lt.u32.totalorder %s444_s23, %s730_s0 }
  0x29   :  { %p450_p4 = pnand %p448_p3, %p445_p2 }
  0x2b   :  { %453 = shalt.err (!%p450_p4)
}
  0x2c   :  { %s454_s28 = scalar_lea.vmem %s20_s19, 2048  ;;  %p459_p6 = scmp.lt.s32.totalorder %s20_s19, %s20_s19 }
  0x2d   :  { %p455_p5 = scmp.ne.s32.totalorder %s20_s19, %s454_s28  ;;  %p460_p7 = scmp.lt.s32.totalorder %s454_s28, %s454_s28 }
  0x2f   :  { %p461_p8 = por %p460_p7, %p459_p6 }
  0x31   :  { %p462_p9 = pnand %p461_p8, %p455_p5 }
  0x33   :  { %465 = shalt.err (!%p462_p9)
}
  0x34   :  { %s543_s3 = smov 128   ;;  %s544_s21 = smov 8  }
  0x35   :  { %25 = dma.hbm_to_vmem [thread:$0]  %s730_s0, 2048, %s20_s19, [#allocation3], %s543_s3, %s543_s3, %s544_s21  }
  0x36   :  { %s545_s6 = smov [#allocation7]   ;;  %s546_s8 = smov [#allocation10]  }
  0x37   :  { %s42_s7 = sshll.u32 %s545_s6, 4  ;;  %s62_s9 = sshll.u32 %s546_s8, 4  ;;  %s43_s7 = int_to_ptr.vmem [resolvable:$true] %s42_s7  ;;  %s63_s9 = int_to_ptr.vmem [resolvable:$true] %s62_s9 }
  0x38   :  { %s466_s12 = scalar_lea.hbm %s732_s2, 16 }
  0x39   :  { %p467_p10 = scmp.ne.s32.totalorder %s732_s2, %s466_s12  ;;  %p470_p11 = scmp.lt.u32.totalorder %s466_s12, %s732_s2 }
  0x3b   :  { %p472_p12 = pnand %p470_p11, %p467_p10 }
  0x3d   :  { %475 = shalt.err (!%p472_p12)
}
  0x3e   :  { %s476_s0 = scalar_lea.vmem %s43_s7, 16  ;;  %s480_s1 = scalar_lea.vmem %s43_s7, 32 }
  0x3f   :  { %p477_p13 = scmp.ne.s32.totalorder %s43_s7, %s476_s0  ;;  %p481_p0 = scmp.lt.s32.totalorder %s43_s7, %s43_s7 }
  0x40   :  { %p482_p1 = scmp.lt.s32.totalorder %s480_s1, %s476_s0 }
  0x42   :  { %p483_p2 = por %p482_p1, %p481_p0 }
  0x44   :  { %p484_p3 = pnand %p483_p2, %p477_p13 }
  0x46   :  { %487 = shalt.err (!%p484_p3)
}
  0x47   :  { %45 = dma.hbm_to_vmem [thread:$0]  %s732_s2, 16, %s43_s7, [#allocation6]  }
  0x48   :  { %s488_s22 = scalar_lea.hbm %s734_s4, 16 }
  0x49   :  { %p489_p4 = scmp.ne.s32.totalorder %s734_s4, %s488_s22  ;;  %p492_p5 = scmp.lt.u32.totalorder %s488_s22, %s734_s4 }
  0x4b   :  { %p494_p6 = pnand %p492_p5, %p489_p4 }
  0x4d   :  { %497 = shalt.err (!%p494_p6)
}
  0x4e   :  { %s498_s27 = scalar_lea.vmem %s63_s9, 16  ;;  %s502_s28 = scalar_lea.vmem %s63_s9, 32 }
  0x4f   :  { %p499_p7 = scmp.ne.s32.totalorder %s63_s9, %s498_s27  ;;  %p503_p8 = scmp.lt.s32.totalorder %s63_s9, %s63_s9 }
  0x50   :  { %p504_p9 = scmp.lt.s32.totalorder %s502_s28, %s498_s27 }
  0x52   :  { %p505_p10 = por %p504_p9, %p503_p8 }
  0x54   :  { %p506_p11 = pnand %p505_p10, %p499_p7 }
  0x56   :  { %509 = shalt.err (!%p506_p11)
}
  0x57   :  { %65 = dma.hbm_to_vmem [thread:$0]  %s734_s4, 16, %s63_s9, [#allocation9]  }
  0x58   :  { %532 = dma.done.wait [#allocation3], 2048  }
  0x59   :  { %533 = vsyncadd [#allocation3], 4294965248 }
  0x5a   :  { %534 = dma.done.wait [#allocation6], 32  }
  0x5b   :  { %535 = vsyncadd [#allocation6], 4294967264 }
  0x5c   :  { %536 = dma.done.wait [#allocation9], 32  }
  0x5d   :  { %537 = vsyncadd [#allocation9], 4294967264  ;;  %v81_v0 = vld [vmem:[#allocation7] sm:$0x1]  ;;  %v124_v2 = vlaneseq  ;;  %v85_v5 = vld [vmem:[#allocation2 + $0x8] sm:$0xff]  ;;  %s547_s4 = smov [#allocation11]  }
  0x5e   :  { %v82_v1 = vadd.f32 1e-05, %v81_v0  ;;  %v84_v4 = vld [vmem:[#allocation2] sm:$0xff]  ;;  %v86_v7 = vld [vmem:[#allocation2 + $0x10] sm:$0xff]  ;;  %v87_v8 = vld [vmem:[#allocation2 + $0x18] sm:$0xff]  ;;  %s292_s21 = sshll.u32 %s547_s4, 4  ;;  %s293_s21 = int_to_ptr.vmem [resolvable:$true] %s292_s21 }
  0x5f   :  { %v125_v3 = vshrl.u32 %v124_v2, 7  ;;  %v640_v6 = vld [vmem:[#allocation5] ss:$0 sm:$0xff]  ;;  %v89_v10 = vld [vmem:[#allocation2 + $0x28] sm:$0xff]  ;;  %v90_v11 = vld [vmem:[#allocation2 + $0x30] sm:$0xff]  ;;  %s510_s29 = scalar_lea.vmem %s293_s21, 1024  ;;  %p515_p13 = scmp.lt.s32.totalorder %s293_s21, %s293_s21 }
  0x60   :  { %398 = vrsqrt.f32 %v82_v1  ;;  %v88_v9 = vld [vmem:[#allocation2 + $0x20] sm:$0xff]  ;;  %v91_v13 = vld [vmem:[#allocation2 + $0x38] sm:$0xff]  ;;  %v644_v15 = vld [vmem:[#allocation2 + $0x48] sm:$0xff]  ;;  %v107_v16 = vsub.f32 %v84_v4, %v640_v6  ;;  %v108_v20 = vsub.f32 %v85_v5, %v640_v6  ;;  %v109_v21 = vsub.f32 %v86_v7, %v640_v6  ;;  %p511_p12 = scmp.ne.s32.totalorder %s293_s21, %s510_s29  ;;  %p516_p0 = scmp.lt.s32.totalorder %s510_s29, %s510_s29 }
  0x61   :  { %v126_v12 = vsub.s32 0, %v125_v3  ;;  %v642_v14 = vld [vmem:[#allocation2 + $0x40] sm:$0xff]  ;;  %v647_v17 = vld [vmem:[#allocation2 + $0x50] sm:$0xff]  ;;  %v649_v18 = vld [vmem:[#allocation2 + $0x58] sm:$0xff]  ;;  %v110_v22 = vsub.f32 %v87_v8, %v640_v6  ;;  %v111_v23 = vsub.f32 %v88_v9, %v640_v6  ;;  %v112_v28 = vsub.f32 %v89_v10, %v640_v6 }
  0x62   :  { %v651_v19 = vld [vmem:[#allocation2 + $0x60] sm:$0xff]  ;;  %v657_v24 = vld [vmem:[#allocation2 + $0x68] sm:$0xff]  ;;  %v659_v25 = vld [vmem:[#allocation2 + $0x70] sm:$0xff]  ;;  %v113_v29 = vsub.f32 %v90_v11, %v640_v6  ;;  %v114_v30 = vsub.f32 %v91_v13, %v640_v6  ;;  %v115_v31 = vsub.f32 %v642_v14, %v640_v6  ;;  %v116_v33 = vsub.f32 %v644_v15, %v640_v6  ;;  %p517_p1 = por %p516_p0, %p515_p13 }
  0x63   :  { %v661_v26 = vld [vmem:[#allocation2 + $0x78] sm:$0xff]  ;;  %v117_v34 = vsub.f32 %v647_v17, %v640_v6  ;;  %v118_v35 = vsub.f32 %v649_v18, %v640_v6  ;;  %v674_v36 = vld [vmem:[#allocation8] ss:$0 sm:$0xff]  ;;  %v119_v37 = vsub.f32 %v651_v19, %v640_v6  ;;  %v120_v38 = vsub.f32 %v657_v24, %v640_v6  ;;  %v684_v45 = vld [vmem:[#allocation10] ss:$0 sm:$0xff] }
  0x64   :  { %v121_v39 = vsub.f32 %v659_v25, %v640_v6  ;;  %v122_v40 = vsub.f32 %v661_v26, %v640_v6  ;;  %p518_p2 = pnand %p517_p1, %p511_p12 }
  0x6a   :  { %v399_v27 = vpop.eup %398 }
  0x6b   :  { %v127_v32 = vrot.slane %v399_v27, %v126_v12 }
  0x6d   :  { %v129_v41 = vmul.f32 %v127_v32, %v107_v16  ;;  %v130_v42 = vmul.f32 %v127_v32, %v108_v20  ;;  %v131_v43 = vmul.f32 %v127_v32, %v109_v21  ;;  %v132_v44 = vmul.f32 %v127_v32, %v110_v22 }
  0x6e   :  { %v133_v46 = vmul.f32 %v127_v32, %v111_v23  ;;  %v134_v47 = vmul.f32 %v127_v32, %v112_v28  ;;  %v135_v48 = vmul.f32 %v127_v32, %v113_v29  ;;  %v136_v49 = vmul.f32 %v127_v32, %v114_v30 }
  0x6f   :  { %v152_v50 = vmul.f32 %v674_v36, %v129_v41  ;;  %v153_v51 = vmul.f32 %v674_v36, %v130_v42  ;;  %v154_v52 = vmul.f32 %v674_v36, %v131_v43  ;;  %v155_v53 = vmul.f32 %v674_v36, %v132_v44 }
  0x70   :  { %v156_v54 = vmul.f32 %v674_v36, %v133_v46  ;;  %v157_v55 = vmul.f32 %v674_v36, %v134_v47  ;;  %v158_v56 = vmul.f32 %v674_v36, %v135_v48  ;;  %v159_v57 = vmul.f32 %v674_v36, %v136_v49 }
  0x71   :  { %v175_v58 = vadd.f32 %v684_v45, %v152_v50  ;;  %v176_v59 = vadd.f32 %v684_v45, %v153_v51  ;;  %v177_v60 = vadd.f32 %v684_v45, %v154_v52  ;;  %v178_v61 = vadd.f32 %v684_v45, %v155_v53 }
  0x72   :  { %v179_v62 = vadd.f32 %v684_v45, %v156_v54  ;;  %v180_v63 = vadd.f32 %v684_v45, %v157_v55  ;;  %v181_v0 = vadd.f32 %v684_v45, %v158_v56  ;;  %v182_v1 = vadd.f32 %v684_v45, %v159_v57 }
  0x73   :  { %v191_v2 = vmax.f32 %v175_v58, 0.0  ;;  %v192_v3 = vmax.f32 %v176_v59, 0.0  ;;  %v193_v4 = vmax.f32 %v177_v60, 0.0  ;;  %v194_v5 = vmax.f32 %v178_v61, 0.0 }
  0x74   :  { %v195_v6 = vmax.f32 %v179_v62, 0.0  ;;  %v196_v7 = vmax.f32 %v180_v63, 0.0  ;;  %v197_v8 = vmax.f32 %v181_v0, 0.0  ;;  %v198_v9 = vmax.f32 %v182_v1, 0.0 }
  0x75   :  { %v344_v10 = vpack.c.bf16 %v192_v3, %v191_v2  ;;  %v349_v11 = vpack.c.bf16 %v194_v5, %v193_v4  ;;  %v137_v12 = vmul.f32 %v127_v32, %v115_v31  ;;  %v138_v13 = vmul.f32 %v127_v32, %v116_v33 }
  0x76   :  { %v354_v14 = vpack.c.bf16 %v196_v7, %v195_v6  ;;  %v359_v15 = vpack.c.bf16 %v198_v9, %v197_v8  ;;  %v139_v16 = vmul.f32 %v127_v32, %v117_v34  ;;  %v140_v17 = vmul.f32 %v127_v32, %v118_v35 }
  0x77   :  { %345 = vst [vmem:[#allocation11] sm:$0xff] %v344_v10   ;;  %381 = vst [vmem:[#allocation11 + $0x8] sm:$0xff] %v349_v11   ;;  %v160_v18 = vmul.f32 %v674_v36, %v137_v12  ;;  %v161_v19 = vmul.f32 %v674_v36, %v138_v13  ;;  %v141_v20 = vmul.f32 %v127_v32, %v119_v37 }
  0x78   :  { %v142_v21 = vmul.f32 %v127_v32, %v120_v38  ;;  %382 = vst [vmem:[#allocation11 + $0x10] sm:$0xff] %v354_v14   ;;  %383 = vst [vmem:[#allocation11 + $0x18] sm:$0xff] %v359_v15   ;;  %v162_v22 = vmul.f32 %v674_v36, %v139_v16  ;;  %v163_v23 = vmul.f32 %v674_v36, %v140_v17 }
  0x79   :  { %v143_v24 = vmul.f32 %v127_v32, %v121_v39  ;;  %v144_v25 = vmul.f32 %v127_v32, %v122_v40  ;;  %v183_v26 = vadd.f32 %v684_v45, %v160_v18  ;;  %v184_v27 = vadd.f32 %v684_v45, %v161_v19 }
  0x7a   :  { %v164_v28 = vmul.f32 %v674_v36, %v141_v20  ;;  %v165_v29 = vmul.f32 %v674_v36, %v142_v21  ;;  %v185_v30 = vadd.f32 %v684_v45, %v162_v22  ;;  %v186_v31 = vadd.f32 %v684_v45, %v163_v23 }
  0x7b   :  { %v166_v33 = vmul.f32 %v674_v36, %v143_v24  ;;  %v167_v34 = vmul.f32 %v674_v36, %v144_v25  ;;  %v199_v35 = vmax.f32 %v183_v26, 0.0  ;;  %v200_v37 = vmax.f32 %v184_v27, 0.0 }
  0x7c   :  { %v187_v32 = vadd.f32 %v684_v45, %v164_v28  ;;  %v188_v38 = vadd.f32 %v684_v45, %v165_v29  ;;  %v201_v39 = vmax.f32 %v185_v30, 0.0  ;;  %v202_v40 = vmax.f32 %v186_v31, 0.0 }
  0x7d   :  { %v189_v41 = vadd.f32 %v684_v45, %v166_v33  ;;  %v190_v42 = vadd.f32 %v684_v45, %v167_v34  ;;  %v364_v43 = vpack.c.bf16 %v200_v37, %v199_v35 }
  0x7e   :  { %v203_v44 = vmax.f32 %v187_v32, 0.0  ;;  %v204_v46 = vmax.f32 %v188_v38, 0.0  ;;  %v369_v47 = vpack.c.bf16 %v202_v40, %v201_v39 }
  0x7f   :  { %v205_v48 = vmax.f32 %v189_v41, 0.0  ;;  %v206_v36 = vmax.f32 %v190_v42, 0.0  ;;  %384 = vst [vmem:[#allocation11 + $0x20] sm:$0xff] %v364_v43  }
  0x80   :  { %v374_v49 = vpack.c.bf16 %v204_v46, %v203_v44  ;;  %385 = vst [vmem:[#allocation11 + $0x28] sm:$0xff] %v369_v47  }
  0x81   :  { %v379_v50 = vpack.c.bf16 %v206_v36, %v205_v48 }
  0x82   :  { %386 = vst [vmem:[#allocation11 + $0x30] sm:$0xff] %v374_v49  }
  0x83   :  { %387 = vst [vmem:[#allocation11 + $0x38] sm:$0xff] %v379_v50  }
  0x84   :  { %521 = shalt.err (!%p518_p2)
}
  0x85   :  { %s522_s7 = scalar_lea.hbm %s735_s5, 1024 }
  0x86   :  { %p523_p3 = scmp.ne.s32.totalorder %s735_s5, %s522_s7  ;;  %p526_p4 = scmp.lt.u32.totalorder %s522_s7, %s735_s5 }
  0x88   :  { %p528_p5 = pnand %p526_p4, %p523_p3 }
  0x8a   :  { %531 = shalt.err (!%p528_p5)
}
  0x8b   :  { %s548_s12 = smov 64   ;;  %s549_s13 = smov 4  }
  0x8c   :  { %298 = dma.vmem_to_hbm [thread:$0]  %s293_s21, 1024, %s735_s5, [#allocation4], %s548_s12, %s548_s12, %s549_s13  }
  0x8d   :  { %538 = dma.done.wait [#allocation4], 1024  }
  0x8e   :  { %539 = vsyncadd [#allocation4], 4294966272 }
  0x8f   :  { %302 = vsyncpa [#allocation3], 1 }
  0x90   :  { %303 = vsyncpa [#allocation6], 1 }
  0x91   :  { %304 = vsyncpa [#allocation9], 1 }
  0x92   :  { %305 = vsyncpa [#allocation4], 1 }

// kernel: generator_forward.38
= control target key start
LH: loop header
LB: loop body
LE: loop exit
PB: predicated region body
PF: predicated region fallthrough
CT: control target
= control target key end

     0   :  { %8 = vsyncpa [#allocation4], 0  ;;  %s4223_s0 = inlined_call_operand.hbm [shape: bf16[2048,32], index: 0, kind: input, shape index: {}]   ;;  %s4224_s1 = inlined_call_operand.hbm [shape: bf16[32,128], index: 1, kind: input, shape index: {}]   ;;  %s4225_s2 = inlined_call_operand.hbm [shape: f32[1,128], index: 2, kind: input, shape index: {}]   ;;  %s4226_s3 = inlined_call_operand.hbm [shape: f32[2048,128], index: 3, kind: output, shape index: {}]  }
   0x1   :  { %10 = vsyncpa [#allocation4 + $0x1], 0 }
   0x2   :  { %11 = vsyncpa [#allocation7], 0 }
   0x3   :  { %12 = vsyncpa [#allocation5], 0 }
   0x4   :  { %14 = vsyncpa [#allocation5 + $0x1], 0  ;;  %s3567_s12 = smov 0   ;;  %s3569_s13 = smov 0  }
   0x5   :  { %s3571_s14 = smov 0   ;;  %s3573_s15 = smov 0  }
   0x6   :  { %s3575_s16 = smov 0   ;;  %s3577_s17 = smov 0  }
   0x7 LB: > { %s2601_s18 = sadd.s32 4294967295, %s3537_s17   ;;  %s2602_s19 = sadd.s32 4294967294, %s3537_s17   ;;  %s3537_s17 = sphi %s3577_s17, %s20_s17   ;;  %s3533_s16 = sphi %s3575_s16, %s4248_s16   ;;  %s3529_s15 = sphi %s3573_s15, %s4247_s15   ;;  %s3525_s14 = sphi %s3571_s14, %s4246_s14   ;;  %s3521_s13 = sphi %s3569_s13, %s4245_s13   ;;  %s3517_s12 = sphi %s3567_s12, %s4244_s12  }
   0x8   : > { %p54_p0 = scmp.ne.s32.totalorder %s3521_s13, %s3517_s12  ;;  %p3601_p1 = scmp.eq.s32.totalorder %s2601_s18, 0 }
   0x9   : > { %p3605_p2 = scmp.eq.s32.totalorder %s2601_s18, 1  ;;  %p131_p3 = scmp.eq.s32.totalorder %s2602_s19, 1 }
   0xa   : > { %s4231_s20 = scalar_select %p3601_p1, 1, 0 }
   0xb   : > { %p3611_p4 = por %p3601_p1, %p54_p0  ;;  %p2603_p5 = scmp.ge.s32.totalorder %s3537_s17, 1 }
   0xc   : > { %p3616_p6 = por %p131_p3, %p54_p0  ;;  %p138_p7 = scmp.lt.s32.totalorder %s3537_s17, 3 }
   0xd   : > { %s4233_s22 = scalar_select %p3611_p4, 1, 0 }
   0xe   : > { %s4234_s23 = scalar_select %p3616_p6, 1, 0 }
   0xf   : > { %p3621_p8 = pnand %p2603_p5, %p138_p7  ;;  %s3539_s25 = smov [#allocation6]  }
  0x10   : > { %s153_s26 = sshll.u32 %s3539_s25, 4  ;;  %s3540_s28 = smov [#allocation8]   ;;  %s3625_s26 = int_to_ptr.vmem [resolvable:$true] %s153_s26 }
  0x11   : > { %p2967_p9 = pneg %p3621_p8  ;;  %s167_s29 = sshll.u32 %s3540_s28, 4  ;;  %s3636_s29 = int_to_ptr.vmem [resolvable:$true] %s167_s29 }
  0x12   : > { %s3365_s5 = scalar_lea.hbm %s4224_s1, 256 }
  0x13   : > { %p3632_p11 = pnand %p2967_p9, %p3601_p1  ;;  %p3366_p12 = scmp.ne.s32.totalorder %s4224_s1, %s3365_s5 }
  0x14   : > { %p3372_p5 = scmp.lt.u32.totalorder %s3365_s5, %s4224_s1 }
  0x15   : > { %p3367_p13 = pneg %p3632_p11 }
  0x17   : > { %p3368_p0 = pnand %p3367_p13, %p3366_p12 }
  0x19   : > { %p3369_p3 = pneg %p3368_p0 }
  0x1b   : > { %p3374_p7 = pnand %p3372_p5, %p3369_p3 }
  0x1d   : > { %3377 = shalt.err (!%p3374_p7)
}
  0x1e   : > { %s3378_s10 = scalar_lea.vmem %s3625_s26, 256  ;;  %p3386_p1 = scmp.lt.s32.totalorder %s3625_s26, %s3625_s26 }
  0x1f   : > { %p3379_p9 = scmp.ne.s32.totalorder %s3625_s26, %s3378_s10  ;;  %p3387_p12 = scmp.lt.s32.totalorder %s3378_s10, %s3378_s10 }
  0x21   : > { %p3381_p10 = pnand %p3379_p9, %p3367_p13  ;;  %p3388_p0 = por %p3387_p12, %p3386_p1 }
  0x23   : > { %p3382_p6 = pneg %p3381_p10 }
  0x25   : > { %p3389_p4 = pnand %p3388_p0, %p3382_p6 }
  0x27   : > { %3392 = shalt.err (!%p3389_p4)
}
  0x28   : > { %s3541_s11 = smov 64   ;;  %s3542_s18 = smov 4  }
  0x29   : > { %2970 = dma.hbm_to_vmem [thread:$0]  (!%p3632_p11), %s4224_s1, 256, %s3625_s26, [#allocation7], %s3541_s11, %s3541_s11, %s3542_s18  }
  0x2a   : > { %s3393_s4 = scalar_lea.hbm %s4225_s2, 16 }
  0x2b   : > { %p3394_p1 = scmp.ne.s32.totalorder %s4225_s2, %s3393_s4  ;;  %p3400_p10 = scmp.lt.u32.totalorder %s3393_s4, %s4225_s2 }
  0x2d   : > { %p3396_p4 = pnand %p3394_p1, %p3367_p13 }
  0x2f   : > { %p3397_p6 = pneg %p3396_p4 }
  0x31   : > { %p3402_p3 = pnand %p3400_p10, %p3397_p6 }
  0x33   : > { %3405 = shalt.err (!%p3402_p3)
}
  0x34   : > { %s3406_s26 = scalar_lea.vmem %s3636_s29, 16  ;;  %s3413_s9 = scalar_lea.vmem %s3636_s29, 32 }
  0x35   : > { %p3407_p5 = scmp.ne.s32.totalorder %s3636_s29, %s3406_s26  ;;  %p3414_p12 = scmp.lt.s32.totalorder %s3636_s29, %s3636_s29 }
  0x36   : > { %p3415_p0 = scmp.lt.s32.totalorder %s3413_s9, %s3406_s26 }
  0x37   : > { %p3409_p7 = pnand %p3407_p5, %p3367_p13 }
  0x38   : > { %p3416_p1 = por %p3415_p0, %p3414_p12 }
  0x39   : > { %p3410_p9 = pneg %p3409_p7 }
  0x3b   : > { %p3417_p4 = pnand %p3416_p1, %p3410_p9 }
  0x3d   : > { %3420 = shalt.err (!%p3417_p4)
}
  0x3e   : > { %2973 = dma.hbm_to_vmem [thread:$0]  (!%p3632_p11), %s4225_s2, 16, %s3636_s29, [#allocation7]  }
  0x3f   : > { %s32_s25 = sadd.s32 1, %s3533_s16  ;;  %s41_s28 = sadd.s32 1, %s3525_s14 }
  0x40   : > { %p34_p13 = scmp.ge.s32.totalorder %s32_s25, 2  ;;  %p48_p6 = scmp.ne.s32.totalorder %s3525_s14, %s3521_s13 }
  0x41   : > { %p49_p10 = scmp.eq.s32.totalorder %s3537_s17, 0  ;;  %p2984_p3 = scmp.lt.s32.totalorder %s3537_s17, 2 }
  0x42   : > { %s4250_s25 = smov (%p34_p13, %s32_s25), 0  ;;  %p3704_p7 = por %p3605_p2, %p48_p6 }
  0x43   : > { %p50_p5 = por %p49_p10, %p48_p6  ;;  %s36_s30 = ssub.s32 %s3533_s16, %s4250_s25 }
  0x44   : > { %s4237_s27 = scalar_select %p3704_p7, 1, 0 }
  0x45   : > { %s178_s4 = sand.u32 1, %s3525_s14   ;;  %p39_p9 = scmp.eq.s32.totalorder %s36_s30, 0 }
  0x46   : > { %s2607_s29 = sshll.u32 %s178_s4, 9  ;;  %s2751_s5 = sshll.u32 %s3533_s16, 13 }
  0x47   : > { %s3713_s6 = scalar_select %p39_p9, %s3525_s14, %s41_s28  }
  0x48   : > { %s3718_s26 = scalar_lea.hbm %s4223_s0, %s2751_s5  ;;  %s182_s21 = scalar_lea.vmem [#allocation3], %s2607_s29 }
  0x49   : > { %s190_s9 = sshll.u32 %s182_s21, 4  ;;  %p3722_p2 = pnand %p2984_p3, %p50_p5  ;;  %s3726_s9 = int_to_ptr.vmem [resolvable:$true] %s190_s9 }
  0x4a   : > { %s3728_s19 = scalar_lea.sflag [#allocation4], %s178_s4  ;;  %s3421_s28 = scalar_lea.hbm %s3718_s26, 8192 }
  0x4b   : > { %p3422_p11 = scmp.ne.s32.totalorder %s3718_s26, %s3421_s28  ;;  %p3423_p12 = pneg %p3722_p2 }
  0x4c   : > { %s3426_s5 = scalar_lea.hbm %s4223_s0, 16384  ;;  %p3427_p4 = scmp.lt.u32.totalorder %s3718_s26, %s4223_s0 }
  0x4d   : > { %p3424_p0 = pnand %p3423_p12, %p3422_p11  ;;  %p3428_p13 = scmp.lt.u32.totalorder %s3426_s5, %s3421_s28 }
  0x4e   : > { %p3430_p10 = scmp.lt.u32.totalorder %s3421_s28, %s3718_s26 }
  0x4f   : > { %p3425_p1 = pneg %p3424_p0  ;;  %p3429_p6 = por %p3428_p13, %p3427_p4 }
  0x51   : > { %p3431_p3 = por %p3430_p10, %p3429_p6 }
  0x53   : > { %p3432_p5 = pnand %p3431_p3, %p3425_p1 }
  0x55   : > { %3435 = shalt.err (!%p3432_p5)
}
  0x56   : > { %s3436_s4 = scalar_lea.vmem %s3726_s9, 8192  ;;  %s3543_s21 = smov [#allocation3]  }
  0x57   : > { %p3437_p9 = scmp.ne.s32.totalorder %s3726_s9, %s3436_s4  ;;  %s3441_s30 = sshll.u32 %s3543_s21, 4  ;;  %s3442_s30 = int_to_ptr.vmem [resolvable:$false] %s3441_s30 }
  0x58   : > { %s3443_s29 = scalar_lea.vmem %s3442_s30, 16384  ;;  %p3444_p7 = scmp.lt.s32.totalorder %s3726_s9, %s3442_s30 }
  0x59   : > { %p3439_p11 = pnand %p3437_p9, %p3423_p12  ;;  %p3445_p4 = scmp.lt.s32.totalorder %s3443_s29, %s3436_s4 }
  0x5b   : > { %p3440_p0 = pneg %p3439_p11  ;;  %p3446_p13 = por %p3445_p4, %p3444_p7 }
  0x5d   : > { %p3447_p6 = pnand %p3446_p13, %p3440_p0 }
  0x5f   : > { %3450 = shalt.err (!%p3447_p6)
}
  0x60   : > { %2977 = dma.hbm_to_vmem [thread:$0]  (!%p3722_p2), %s3718_s26, 8192, %s3726_s9, %s3728_s19, %s3541_s11, %s3541_s11, %s3542_s18  }
  0x61   : > { %202 = sbr.rel (%p3621_p8) target bundleno = 487 (0x1e7), region = 32  ;;  %s3762_s28 = sand.u32 (!%p3621_p8), 1, %s3521_s13  }
  0x62   : > { %s2611_s5 = sshll.u32 (!%p3621_p8), %s3762_s28, 9  ;;  %s205_s7 = scalar_lea.sflag (!%p3621_p8), [#allocation4], %s3762_s28 }
  0x63   : > { %s3766_s8 = scalar_lea.vmem (!%p3621_p8), [#allocation3], %s2611_s5  ;;  %p4239_p7 = scmp.ne.s32.totalorder (!%p3621_p8), %s4233_s22, 0 }
  0x68   : > { %3504 = dma.done.wait (%p4239_p7), %s205_s7, 8192  }
  0x69   : > { %3506 = vsyncadd (%p4239_p7), %s205_s7, 4294959104  ;;  %p4240_p2 = scmp.ne.s32.totalorder %s4231_s20, 0 }
  0x6b   : > { %3508 = dma.done.wait (%p4240_p2), [#allocation7], 272  }
  0x6c   : > { %3510 = vsyncadd (%p4240_p2), [#allocation7], 4294967024  ;;  %v3042_v0 = vld [vmem:[#allocation6] sm:$0xff]   ;;  %v3043_v1 = vld [vmem:[#allocation6 + $0x8] sm:$0xff]   ;;  %vm967_vm0 = vcmask 261120   ;;  %s2614_s20 = sshll.u32 %s3762_s28, 10 }
  0x6d   : > { %2819 = vmatprep.subr.bf16.mxu0 %v3042_v0  ;;  %2951 = vmatprep.subr.bf16.mxu1 %v3042_v0  ;;  %v3044_v2 = vld [vmem:[%s3766_s8] sm:$0xff]   ;;  %v3046_v4 = vld [vmem:[%s3766_s8 + $0x8] sm:$0xff]   ;;  %v3048_v6 = vld [vmem:[%s3766_s8 + $0x10] sm:$0xff]   ;;  %s3922_s22 = scalar_lea.vmem [#allocation9], %s2614_s20  ;;  %s2752_s24 = sshll.u32 %s3529_s15, 14 }
  0x6e   : > { %2820 = vmatpush3.bf16.msra.mxu0 %v3042_v0  ;;  %2953 = vmatpush3.bf16.msra.mxu1 %v3042_v0  ;;  %v3045_v3 = vld [vmem:[%s3766_s8 + $0x100] sm:$0xff]   ;;  %v3047_v5 = vld [vmem:[%s3766_s8 + $0x108] sm:$0xff]   ;;  %v3049_v7 = vld [vmem:[%s3766_s8 + $0x110] sm:$0xff]   ;;  %s2497_s11 = sshll.u32 %s3922_s22, 4  ;;  %s4169_s9 = scalar_lea.hbm %s4226_s3, %s2752_s24  ;;  %s4171_s11 = int_to_ptr.vmem [resolvable:$true] %s2497_s11 }
  0x6f   : > { %2821 = vmatprep.subr.bf16.mxu0 %v3043_v1  ;;  %2952 = vmatprep.subr.bf16.mxu1 %v3043_v1  ;;  %v3050_v8 = vld [vmem:[%s3766_s8 + $0x18] sm:$0xff]   ;;  %v3052_v10 = vld [vmem:[%s3766_s8 + $0x20] sm:$0xff]   ;;  %v3054_v12 = vld [vmem:[%s3766_s8 + $0x28] sm:$0xff]   ;;  %s2484_s15 = scalar_lea.sflag [#allocation5], %s3762_s28  ;;  %s3451_s10 = scalar_lea.vmem %s4171_s11, 16384 }
  0x70   : > { %2823 = vmatprep.mubr.msk.bf16.mxu0 %vm967_vm0, %v3044_v2  ;;  %2887 = vmatprep.mubr.msk.bf16.mxu1 %vm967_vm0, %v3045_v3  ;;  %v3051_v9 = vld [vmem:[%s3766_s8 + $0x118] sm:$0xff]   ;;  %v3053_v11 = vld [vmem:[%s3766_s8 + $0x120] sm:$0xff]   ;;  %v3055_v13 = vld [vmem:[%s3766_s8 + $0x128] sm:$0xff]   ;;  %p3452_p8 = scmp.ne.s32.totalorder %s4171_s11, %s3451_s10  ;;  %p4241_p12 = scmp.ne.s32.totalorder %s4237_s27, 0 }
  0x71   : > { %v3056_v14 = vld [vmem:[%s3766_s8 + $0x30] sm:$0xff]   ;;  %v3058_v16 = vld [vmem:[%s3766_s8 + $0x38] sm:$0xff]   ;;  %v3060_v18 = vld [vmem:[%s3766_s8 + $0x40] sm:$0xff]   ;;  %s3544_s19 = smov [#allocation9]  }
  0x72   : > { %2822 = vmatpush3.bf16.msra.mxu0 %v3043_v1  ;;  %2954 = vmatpush3.bf16.msra.mxu1 %v3043_v1  ;;  %v3057_v15 = vld [vmem:[%s3766_s8 + $0x130] sm:$0xff]   ;;  %v3059_v17 = vld [vmem:[%s3766_s8 + $0x138] sm:$0xff]   ;;  %v3061_v19 = vld [vmem:[%s3766_s8 + $0x140] sm:$0xff]   ;;  %p3453_p1 = pnand %p3452_p8, %p4241_p12  ;;  %s3455_s4 = sshll.u32 %s3544_s19, 4  ;;  %s3456_s4 = int_to_ptr.vmem [resolvable:$false] %s3455_s4 }
  0x73   : > { %v3062_v20 = vld [vmem:[%s3766_s8 + $0x48] sm:$0xff]   ;;  %v3064_v22 = vld [vmem:[%s3766_s8 + $0x50] sm:$0xff]   ;;  %v3066_v24 = vld [vmem:[%s3766_s8 + $0x58] sm:$0xff]   ;;  %s3457_s21 = scalar_lea.vmem %s3456_s4, 32768  ;;  %p3458_p3 = scmp.lt.s32.totalorder %s4171_s11, %s3456_s4 }
  0x74   : > { %v3063_v21 = vld [vmem:[%s3766_s8 + $0x148] sm:$0xff]   ;;  %v3065_v23 = vld [vmem:[%s3766_s8 + $0x150] sm:$0xff]   ;;  %v3067_v25 = vld [vmem:[%s3766_s8 + $0x158] sm:$0xff]   ;;  %p3454_p10 = pneg %p3453_p1  ;;  %p3459_p5 = scmp.lt.s32.totalorder %s3457_s21, %s3451_s10 }
  0x75   : > { %2824 = vmatmul.mubr.msk.bf16.vlgmr.msra.gmra.mrb[0].mxu0 %vm967_vm0, %v3046_v4  ;;  %2888 = vmatmul.mubr.msk.bf16.vlgmr.msra.gmra.mrb[0].mxu1 %vm967_vm0, %v3047_v5  ;;  %v3068_v26 = vld [vmem:[%s3766_s8 + $0x60] sm:$0xff]   ;;  %v3070_v28 = vld [vmem:[%s3766_s8 + $0x68] sm:$0xff]   ;;  %v3072_v30 = vld [vmem:[%s3766_s8 + $0x70] sm:$0xff]  }
  0x76   : > { %2827 = vmatprep.mubr.msk.bf16.mxu0 %vm967_vm0, %v3048_v6  ;;  %2891 = vmatprep.mubr.msk.bf16.mxu1 %vm967_vm0, %v3049_v7  ;;  %v3069_v27 = vld [vmem:[%s3766_s8 + $0x160] sm:$0xff]   ;;  %v3071_v29 = vld [vmem:[%s3766_s8 + $0x168] sm:$0xff]   ;;  %v3073_v31 = vld [vmem:[%s3766_s8 + $0x170] sm:$0xff]   ;;  %p3460_p9 = por %p3459_p5, %p3458_p3 }
  0x77   : > { %v3074_v32 = vld [vmem:[%s3766_s8 + $0x78] sm:$0xff]   ;;  %v3076_v34 = vld [vmem:[%s3766_s8 + $0x80] sm:$0xff]   ;;  %v3078_v36 = vld [vmem:[%s3766_s8 + $0x88] sm:$0xff]  }
  0x78   : > { %v3075_v33 = vld [vmem:[%s3766_s8 + $0x178] sm:$0xff]   ;;  %v3077_v35 = vld [vmem:[%s3766_s8 + $0x180] sm:$0xff]   ;;  %v3079_v37 = vld [vmem:[%s3766_s8 + $0x188] sm:$0xff]   ;;  %p3461_p11 = pnand %p3460_p9, %p3454_p10 }
  0x79   : > { %v3080_v38 = vld [vmem:[%s3766_s8 + $0x90] sm:$0xff]   ;;  %v3082_v40 = vld [vmem:[%s3766_s8 + $0x98] sm:$0xff]   ;;  %v3084_v42 = vld [vmem:[%s3766_s8 + $0xa0] sm:$0xff]  }
  0x7a   : > { %v3081_v39 = vld [vmem:[%s3766_s8 + $0x190] sm:$0xff]   ;;  %v3083_v41 = vld [vmem:[%s3766_s8 + $0x198] sm:$0xff]   ;;  %v3085_v43 = vld [vmem:[%s3766_s8 + $0x1a0] sm:$0xff]  }
  0x7b   : > { %v3086_v44 = vld [vmem:[%s3766_s8 + $0xa8] sm:$0xff]   ;;  %v3088_v46 = vld [vmem:[%s3766_s8 + $0xb0] sm:$0xff]   ;;  %v3090_v48 = vld [vmem:[%s3766_s8 + $0xb8] sm:$0xff]  }
  0x7c   : > { %v3087_v45 = vld [vmem:[%s3766_s8 + $0x1a8] sm:$0xff]   ;;  %v3089_v47 = vld [vmem:[%s3766_s8 + $0x1b0] sm:$0xff]   ;;  %v3091_v49 = vld [vmem:[%s3766_s8 + $0x1b8] sm:$0xff]  }
  0x7d   : > { %2828 = vmatmul.mubr.msk.bf16.gmra.mrb[4].mxu0 %vm967_vm0, %v3050_v8  ;;  %2892 = vmatmul.mubr.msk.bf16.gmra.mrb[4].mxu1 %vm967_vm0, %v3051_v9  ;;  %v3092_v50 = vld [vmem:[%s3766_s8 + $0xc0] sm:$0xff]   ;;  %v3094_v52 = vld [vmem:[%s3766_s8 + $0xc8] sm:$0xff]   ;;  %v3096_v54 = vld [vmem:[%s3766_s8 + $0xd0] sm:$0xff]  }
  0x7e   : > { %2831 = vmatprep.mubr.msk.bf16.mxu0 %vm967_vm0, %v3052_v10  ;;  %2895 = vmatprep.mubr.msk.bf16.mxu1 %vm967_vm0, %v3053_v11  ;;  %v3093_v51 = vld [vmem:[%s3766_s8 + $0x1c0] sm:$0xff]   ;;  %v3095_v53 = vld [vmem:[%s3766_s8 + $0x1c8] sm:$0xff]   ;;  %v3097_v55 = vld [vmem:[%s3766_s8 + $0x1d0] sm:$0xff]  }
  0x7f   : > { %v3098_v56 = vld [vmem:[%s3766_s8 + $0xd8] sm:$0xff]   ;;  %v3100_v58 = vld [vmem:[%s3766_s8 + $0xe0] sm:$0xff]   ;;  %v3102_v60 = vld [vmem:[%s3766_s8 + $0xe8] sm:$0xff]  }
  0x80   : > { %v3099_v57 = vld [vmem:[%s3766_s8 + $0x1d8] sm:$0xff]   ;;  %v3101_v59 = vld [vmem:[%s3766_s8 + $0x1e0] sm:$0xff]   ;;  %v3103_v61 = vld [vmem:[%s3766_s8 + $0x1e8] sm:$0xff]  }
  0x81   : > { %v3104_v62 = vld [vmem:[%s3766_s8 + $0xf0] sm:$0xff]   ;;  %v3106_v0 = vld [vmem:[%s3766_s8 + $0xf8] sm:$0xff]  }
  0x82   : > { %v3105_v63 = vld [vmem:[%s3766_s8 + $0x1f0] sm:$0xff]   ;;  %v3107_v1 = vld [vmem:[%s3766_s8 + $0x1f8] sm:$0xff]  }
  0x83   : > { %v3904_v2 = vld [vmem:[#allocation8] ss:$0 sm:$0xff] }
  0x85   : > { %2832 = vmatmul.mubr.msk.bf16.gmra.mrb[8].mxu0 %vm967_vm0, %v3054_v12  ;;  %2896 = vmatmul.mubr.msk.bf16.gmra.mrb[8].mxu1 %vm967_vm0, %v3055_v13 }
  0x86   : > { %2835 = vmatprep.mubr.msk.bf16.mxu0 %vm967_vm0, %v3056_v14  ;;  %2899 = vmatprep.mubr.msk.bf16.mxu1 %vm967_vm0, %v3057_v15 }
  0x8d   : > { %2836 = vmatmul.mubr.msk.bf16.gmra.mrb[12].mxu0 %vm967_vm0, %v3058_v16  ;;  %2900 = vmatmul.mubr.msk.bf16.gmra.mrb[12].mxu1 %vm967_vm0, %v3059_v17 }
  0x8e   : > { %2839 = vmatprep.mubr.msk.bf16.mxu0 %vm967_vm0, %v3060_v18  ;;  %2903 = vmatprep.mubr.msk.bf16.mxu1 %vm967_vm0, %v3061_v19 }
  0x95   : > { %2840 = vmatmul.mubr.msk.bf16.gmra.mrb[16].mxu0 %vm967_vm0, %v3062_v20  ;;  %2904 = vmatmul.mubr.msk.bf16.gmra.mrb[16].mxu1 %vm967_vm0, %v3063_v21 }
  0x96   : > { %2843 = vmatprep.mubr.msk.bf16.mxu0 %vm967_vm0, %v3064_v22  ;;  %2907 = vmatprep.mubr.msk.bf16.mxu1 %vm967_vm0, %v3065_v23 }
  0x9d   : > { %2844 = vmatmul.mubr.msk.bf16.gmra.mrb[20].mxu0 %vm967_vm0, %v3066_v24  ;;  %2908 = vmatmul.mubr.msk.bf16.gmra.mrb[20].mxu1 %vm967_vm0, %v3067_v25 }
  0x9e   : > { %2847 = vmatprep.mubr.msk.bf16.mxu0 %vm967_vm0, %v3068_v26  ;;  %2911 = vmatprep.mubr.msk.bf16.mxu1 %vm967_vm0, %v3069_v27 }
  0xa5   : > { %2848 = vmatmul.mubr.msk.bf16.gmra.mrb[24].mxu0 %vm967_vm0, %v3070_v28  ;;  %2912 = vmatmul.mubr.msk.bf16.gmra.mrb[24].mxu1 %vm967_vm0, %v3071_v29 }
  0xa6   : > { %2851 = vmatprep.mubr.msk.bf16.mxu0 %vm967_vm0, %v3072_v30  ;;  %2915 = vmatprep.mubr.msk.bf16.mxu1 %vm967_vm0, %v3073_v31 }
  0xad   : > { %2852 = vmatmul.mubr.msk.bf16.gmra.mrb[28].mxu0 %vm967_vm0, %v3074_v32  ;;  %2916 = vmatmul.mubr.msk.bf16.gmra.mrb[28].mxu1 %vm967_vm0, %v3075_v33 }
  0xae   : > { %2855 = vmatprep.mubr.msk.bf16.mxu0 %vm967_vm0, %v3076_v34  ;;  %2919 = vmatprep.mubr.msk.bf16.mxu1 %vm967_vm0, %v3077_v35 }
  0xb5   : > { %2856 = vmatmul.mubr.msk.bf16.gmra.mrb[32].mxu0 %vm967_vm0, %v3078_v36  ;;  %2920 = vmatmul.mubr.msk.bf16.gmra.mrb[32].mxu1 %vm967_vm0, %v3079_v37 }
  0xb6   : > { %2859 = vmatprep.mubr.msk.bf16.mxu0 %vm967_vm0, %v3080_v38  ;;  %2923 = vmatprep.mubr.msk.bf16.mxu1 %vm967_vm0, %v3081_v39 }
  0xbd   : > { %2860 = vmatmul.mubr.msk.bf16.gmra.mrb[36].mxu0 %vm967_vm0, %v3082_v40  ;;  %2924 = vmatmul.mubr.msk.bf16.gmra.mrb[36].mxu1 %vm967_vm0, %v3083_v41 }
  0xbe   : > { %2863 = vmatprep.mubr.msk.bf16.mxu0 %vm967_vm0, %v3084_v42  ;;  %2927 = vmatprep.mubr.msk.bf16.mxu1 %vm967_vm0, %v3085_v43 }
  0xc5   : > { %2864 = vmatmul.mubr.msk.bf16.gmra.mrb[40].mxu0 %vm967_vm0, %v3086_v44  ;;  %2928 = vmatmul.mubr.msk.bf16.gmra.mrb[40].mxu1 %vm967_vm0, %v3087_v45 }
  0xc6   : > { %2867 = vmatprep.mubr.msk.bf16.mxu0 %vm967_vm0, %v3088_v46  ;;  %2931 = vmatprep.mubr.msk.bf16.mxu1 %vm967_vm0, %v3089_v47 }
  0xcd   : > { %2868 = vmatmul.mubr.msk.bf16.gmra.mrb[44].mxu0 %vm967_vm0, %v3090_v48  ;;  %2932 = vmatmul.mubr.msk.bf16.gmra.mrb[44].mxu1 %vm967_vm0, %v3091_v49 }
  0xce   : > { %2871 = vmatprep.mubr.msk.bf16.mxu0 %vm967_vm0, %v3092_v50  ;;  %2935 = vmatprep.mubr.msk.bf16.mxu1 %vm967_vm0, %v3093_v51 }
  0xd5   : > { %2872 = vmatmul.mubr.msk.bf16.gmra.mrb[48].mxu0 %vm967_vm0, %v3094_v52  ;;  %2936 = vmatmul.mubr.msk.bf16.gmra.mrb[48].mxu1 %vm967_vm0, %v3095_v53 }
  0xd6   : > { %2875 = vmatprep.mubr.msk.bf16.mxu0 %vm967_vm0, %v3096_v54  ;;  %2939 = vmatprep.mubr.msk.bf16.mxu1 %vm967_vm0, %v3097_v55 }
  0xdd   : > { %2876 = vmatmul.mubr.msk.bf16.gmra.mrb[52].mxu0 %vm967_vm0, %v3098_v56  ;;  %2940 = vmatmul.mubr.msk.bf16.gmra.mrb[52].mxu1 %vm967_vm0, %v3099_v57 }
  0xde   : > { %2879 = vmatprep.mubr.msk.bf16.mxu0 %vm967_vm0, %v3100_v58  ;;  %2943 = vmatprep.mubr.msk.bf16.mxu1 %vm967_vm0, %v3101_v59 }
  0xe5   : > { %2880 = vmatmul.mubr.msk.bf16.gmra.mrb[56].mxu0 %vm967_vm0, %v3102_v60  ;;  %2944 = vmatmul.mubr.msk.bf16.gmra.mrb[56].mxu1 %vm967_vm0, %v3103_v61 }
  0xe6   : > { %2883 = vmatprep.mubr.msk.bf16.mxu0 %vm967_vm0, %v3104_v62  ;;  %2947 = vmatprep.mubr.msk.bf16.mxu1 %vm967_vm0, %v3105_v63 }
  0xed   : > { %2884 = vmatmul.mubr.msk.bf16.gmra.mrb[60].mxu0 %vm967_vm0, %v3106_v0  ;;  %2948 = vmatmul.mubr.msk.bf16.gmra.mrb[60].mxu1 %vm967_vm0, %v3107_v1 }
 0x148   : > { %v2825_v3 = vpop.f32.mrb[0].mxu0  ;;  %v2889_v4 = vpop.f32.mrb[0].mxu1 }
 0x149   : > { %v2101_v5 = vadd.f32 %v2825_v3, %v3904_v2  ;;  %v2165_v6 = vadd.f32 %v2889_v4, %v3904_v2  ;;  %v1194_v7 = vpop.f32.mrb[1].mxu0  ;;  %v1450_v8 = vpop.f32.mrb[1].mxu1 }
 0x14a   : > { %v2099_v9 = vadd.f32 %v3904_v2, %v1194_v7  ;;  %v2163_v10 = vadd.f32 %v3904_v2, %v1450_v8  ;;  %v2826_v11 = vpop.f32.mrb[2].mxu0  ;;  %v2890_v12 = vpop.f32.mrb[2].mxu1 }
 0x14b   : > { %3108 = vtanh.f32 %v2101_v5  ;;  %v2102_v13 = vadd.f32 %v2826_v11, %v3904_v2  ;;  %v1197_v14 = vpop.f32.mrb[3].mxu0  ;;  %v1453_v15 = vpop.f32.mrb[3].mxu1  ;;  %v2166_v16 = vadd.f32 %v2890_v12, %v3904_v2 }
 0x14c   : > { %3110 = vtanh.f32 %v2165_v6  ;;  %v2100_v17 = vadd.f32 %v3904_v2, %v1197_v14  ;;  %v2164_v18 = vadd.f32 %v3904_v2, %v1453_v15 }
 0x14d   : > { %3112 = vtanh.f32 %v2099_v9 }
 0x14e   : > { %3114 = vtanh.f32 %v2163_v10 }
 0x14f   : > { %3116 = vtanh.f32 %v2102_v13 }
 0x150   : > { %3118 = vtanh.f32 %v2166_v16  ;;  %v2829_v19 = vpop.f32.mrb[4].mxu0  ;;  %v2893_v20 = vpop.f32.mrb[4].mxu1 }
 0x151   : > { %3120 = vtanh.f32 %v2100_v17  ;;  %v2105_v21 = vadd.f32 %v2829_v19, %v3904_v2  ;;  %v2169_v22 = vadd.f32 %v2893_v20, %v3904_v2  ;;  %v1210_v23 = vpop.f32.mrb[5].mxu0  ;;  %v1466_v24 = vpop.f32.mrb[5].mxu1 }
 0x152   : > { %3122 = vtanh.f32 %v2164_v18  ;;  %v2103_v25 = vadd.f32 %v3904_v2, %v1210_v23  ;;  %v2167_v26 = vadd.f32 %v3904_v2, %v1466_v24  ;;  %v2830_v27 = vpop.f32.mrb[6].mxu0  ;;  %v2894_v28 = vpop.f32.mrb[6].mxu1 }
 0x153   : > { %3124 = vtanh.f32 %v2105_v21  ;;  %v2106_v29 = vadd.f32 %v2830_v27, %v3904_v2  ;;  %v1213_v30 = vpop.f32.mrb[7].mxu0  ;;  %v1469_v31 = vpop.f32.mrb[7].mxu1  ;;  %v2170_v32 = vadd.f32 %v2894_v28, %v3904_v2 }
 0x154   : > { %3126 = vtanh.f32 %v2169_v22  ;;  %v2104_v34 = vadd.f32 %v3904_v2, %v1213_v30  ;;  %v2168_v36 = vadd.f32 %v3904_v2, %v1469_v31 }
 0x155   : > { %v3109_v33 = vpop.eup %3108  ;;  %3128 = vtanh.f32 %v2103_v25 }
 0x156   : > { %v3111_v35 = vpop.eup %3110  ;;  %2357 = vst [vmem:[%s3922_s22 + $0x10] sm:$0xff] %v3109_v33  ;;  %3130 = vtanh.f32 %v2167_v26 }
 0x157   : > { %v3113_v37 = vpop.eup %3112  ;;  %2421 = vst [vmem:[%s3922_s22 + $0x210] sm:$0xff] %v3111_v35  ;;  %3132 = vtanh.f32 %v2106_v29 }
 0x158   : > { %v3115_v38 = vpop.eup %3114  ;;  %2355 = vst [vmem:[%s3922_s22] sm:$0xff] %v3113_v37  ;;  %3134 = vtanh.f32 %v2170_v32  ;;  %v2833_v39 = vpop.f32.mrb[8].mxu0 }
 0x159   : > { %v2897_v40 = vpop.f32.mrb[8].mxu1  ;;  %v3117_v41 = vpop.eup %3116  ;;  %2419 = vst [vmem:[%s3922_s22 + $0x200] sm:$0xff] %v3115_v38  ;;  %3136 = vtanh.f32 %v2104_v34  ;;  %v2109_v42 = vadd.f32 %v2833_v39, %v3904_v2 }
 0x15a   : > { %v2173_v43 = vadd.f32 %v2897_v40, %v3904_v2  ;;  %v1226_v44 = vpop.f32.mrb[9].mxu0  ;;  %v1482_v45 = vpop.f32.mrb[9].mxu1  ;;  %2358 = vst [vmem:[%s3922_s22 + $0x18] sm:$0xff] %v3117_v41  ;;  %3138 = vtanh.f32 %v2168_v36 }
 0x15b   : > { %v3119_v46 = vpop.eup %3118  ;;  %v2107_v47 = vadd.f32 %v3904_v2, %v1226_v44  ;;  %v2171_v48 = vadd.f32 %v3904_v2, %v1482_v45  ;;  %v2834_v49 = vpop.f32.mrb[10].mxu0  ;;  %3140 = vtanh.f32 %v2109_v42 }
 0x15c   : > { %v2898_v50 = vpop.f32.mrb[10].mxu1  ;;  %v3121_v51 = vpop.eup %3120  ;;  %2422 = vst [vmem:[%s3922_s22 + $0x218] sm:$0xff] %v3119_v46  ;;  %v2110_v52 = vadd.f32 %v2834_v49, %v3904_v2  ;;  %3142 = vtanh.f32 %v2173_v43 }
 0x15d   : > { %v1229_v53 = vpop.f32.mrb[11].mxu0  ;;  %v1485_v54 = vpop.f32.mrb[11].mxu1  ;;  %2356 = vst [vmem:[%s3922_s22 + $0x8] sm:$0xff] %v3121_v51  ;;  %v2174_v56 = vadd.f32 %v2898_v50, %v3904_v2  ;;  %3144 = vtanh.f32 %v2107_v47 }
 0x15e   : > { %v3123_v55 = vpop.eup %3122  ;;  %v2108_v58 = vadd.f32 %v3904_v2, %v1229_v53  ;;  %3146 = vtanh.f32 %v2171_v48  ;;  %v2172_v60 = vadd.f32 %v3904_v2, %v1485_v54 }
 0x15f   : > { %v3125_v57 = vpop.eup %3124  ;;  %2420 = vst [vmem:[%s3922_s22 + $0x208] sm:$0xff] %v3123_v55  ;;  %3148 = vtanh.f32 %v2110_v52 }
 0x160   : > { %v3127_v59 = vpop.eup %3126  ;;  %2361 = vst [vmem:[%s3922_s22 + $0x30] sm:$0xff] %v3125_v57  ;;  %3150 = vtanh.f32 %v2174_v56  ;;  %v2837_v63 = vpop.f32.mrb[12].mxu0 }
 0x161   : > { %v3129_v61 = vpop.eup %3128  ;;  %2425 = vst [vmem:[%s3922_s22 + $0x230] sm:$0xff] %v3127_v59  ;;  %v2901_v0 = vpop.f32.mrb[12].mxu1  ;;  %3152 = vtanh.f32 %v2108_v58  ;;  %v2113_v3 = vadd.f32 %v2837_v63, %v3904_v2 }
 0x162   : > { %v3131_v62 = vpop.eup %3130  ;;  %2359 = vst [vmem:[%s3922_s22 + $0x20] sm:$0xff] %v3129_v61  ;;  %v2177_v4 = vadd.f32 %v2901_v0, %v3904_v2  ;;  %v1242_v5 = vpop.f32.mrb[13].mxu0  ;;  %3154 = vtanh.f32 %v2172_v60 }
 0x163   : > { %v3133_v1 = vpop.eup %3132  ;;  %2423 = vst [vmem:[%s3922_s22 + $0x220] sm:$0xff] %v3131_v62  ;;  %v1498_v6 = vpop.f32.mrb[13].mxu1  ;;  %v2111_v8 = vadd.f32 %v3904_v2, %v1242_v5  ;;  %3156 = vtanh.f32 %v2113_v3 }
 0x164   : > { %v3135_v7 = vpop.eup %3134  ;;  %2362 = vst [vmem:[%s3922_s22 + $0x38] sm:$0xff] %v3133_v1  ;;  %v2175_v9 = vadd.f32 %v3904_v2, %v1498_v6  ;;  %v2838_v10 = vpop.f32.mrb[14].mxu0  ;;  %3158 = vtanh.f32 %v2177_v4 }
 0x165   : > { %v2902_v11 = vpop.f32.mrb[14].mxu1  ;;  %v3137_v12 = vpop.eup %3136  ;;  %2426 = vst [vmem:[%s3922_s22 + $0x238] sm:$0xff] %v3135_v7  ;;  %v2114_v13 = vadd.f32 %v2838_v10, %v3904_v2  ;;  %3160 = vtanh.f32 %v2111_v8 }
 0x166   : > { %v1245_v14 = vpop.f32.mrb[15].mxu0  ;;  %v1501_v15 = vpop.f32.mrb[15].mxu1  ;;  %2360 = vst [vmem:[%s3922_s22 + $0x28] sm:$0xff] %v3137_v12  ;;  %v2178_v17 = vadd.f32 %v2902_v11, %v3904_v2  ;;  %3162 = vtanh.f32 %v2175_v9 }
 0x167   : > { %v3139_v16 = vpop.eup %3138  ;;  %v2112_v19 = vadd.f32 %v3904_v2, %v1245_v14  ;;  %v2176_v21 = vadd.f32 %v3904_v2, %v1501_v15  ;;  %3164 = vtanh.f32 %v2114_v13 }
 0x168   : > { %v3141_v18 = vpop.eup %3140  ;;  %2424 = vst [vmem:[%s3922_s22 + $0x228] sm:$0xff] %v3139_v16  ;;  %3166 = vtanh.f32 %v2178_v17  ;;  %v2841_v24 = vpop.f32.mrb[16].mxu0 }
 0x169   : > { %v3143_v20 = vpop.eup %3142  ;;  %2365 = vst [vmem:[%s3922_s22 + $0x50] sm:$0xff] %v3141_v18  ;;  %v2905_v25 = vpop.f32.mrb[16].mxu1  ;;  %3168 = vtanh.f32 %v2112_v19  ;;  %v2117_v27 = vadd.f32 %v2841_v24, %v3904_v2 }
 0x16a   : > { %v3145_v22 = vpop.eup %3144  ;;  %2429 = vst [vmem:[%s3922_s22 + $0x250] sm:$0xff] %v3143_v20  ;;  %v2181_v28 = vadd.f32 %v2905_v25, %v3904_v2  ;;  %v1258_v29 = vpop.f32.mrb[17].mxu0  ;;  %3170 = vtanh.f32 %v2176_v21 }
 0x16b   : > { %v3147_v23 = vpop.eup %3146  ;;  %2363 = vst [vmem:[%s3922_s22 + $0x40] sm:$0xff] %v3145_v22  ;;  %v1514_v30 = vpop.f32.mrb[17].mxu1  ;;  %v2115_v32 = vadd.f32 %v3904_v2, %v1258_v29  ;;  %3172 = vtanh.f32 %v2117_v27 }
 0x16c   : > { %v3149_v26 = vpop.eup %3148  ;;  %2427 = vst [vmem:[%s3922_s22 + $0x240] sm:$0xff] %v3147_v23  ;;  %v2179_v33 = vadd.f32 %v3904_v2, %v1514_v30  ;;  %v2842_v34 = vpop.f32.mrb[18].mxu0  ;;  %3174 = vtanh.f32 %v2181_v28 }
 0x16d   : > { %v3151_v31 = vpop.eup %3150  ;;  %2366 = vst [vmem:[%s3922_s22 + $0x58] sm:$0xff] %v3149_v26  ;;  %v2906_v35 = vpop.f32.mrb[18].mxu1  ;;  %v2118_v37 = vadd.f32 %v2842_v34, %v3904_v2  ;;  %3176 = vtanh.f32 %v2115_v32 }
 0x16e   : > { %v3153_v36 = vpop.eup %3152  ;;  %2430 = vst [vmem:[%s3922_s22 + $0x258] sm:$0xff] %v3151_v31  ;;  %v1261_v38 = vpop.f32.mrb[19].mxu0  ;;  %v2182_v41 = vadd.f32 %v2906_v35, %v3904_v2  ;;  %3178 = vtanh.f32 %v2179_v33 }
 0x16f   : > { %v1517_v39 = vpop.f32.mrb[19].mxu1  ;;  %v3155_v40 = vpop.eup %3154  ;;  %2364 = vst [vmem:[%s3922_s22 + $0x48] sm:$0xff] %v3153_v36  ;;  %v2116_v43 = vadd.f32 %v3904_v2, %v1261_v38  ;;  %3180 = vtanh.f32 %v2118_v37 }
 0x170   : > { %v3157_v42 = vpop.eup %3156  ;;  %2428 = vst [vmem:[%s3922_s22 + $0x248] sm:$0xff] %v3155_v40  ;;  %v2180_v45 = vadd.f32 %v3904_v2, %v1517_v39  ;;  %3182 = vtanh.f32 %v2182_v41  ;;  %v2845_v48 = vpop.f32.mrb[20].mxu0 }
 0x171   : > { %v3159_v44 = vpop.eup %3158  ;;  %2369 = vst [vmem:[%s3922_s22 + $0x70] sm:$0xff] %v3157_v42  ;;  %v2909_v49 = vpop.f32.mrb[20].mxu1  ;;  %3184 = vtanh.f32 %v2116_v43  ;;  %v2121_v51 = vadd.f32 %v2845_v48, %v3904_v2 }
 0x172   : > { %v3161_v46 = vpop.eup %3160  ;;  %2433 = vst [vmem:[%s3922_s22 + $0x270] sm:$0xff] %v3159_v44  ;;  %v2185_v52 = vadd.f32 %v2909_v49, %v3904_v2  ;;  %v1274_v53 = vpop.f32.mrb[21].mxu0  ;;  %3186 = vtanh.f32 %v2180_v45 }
 0x173   : > { %v3163_v47 = vpop.eup %3162  ;;  %2367 = vst [vmem:[%s3922_s22 + $0x60] sm:$0xff] %v3161_v46  ;;  %v1530_v54 = vpop.f32.mrb[21].mxu1  ;;  %v2119_v56 = vadd.f32 %v3904_v2, %v1274_v53  ;;  %3188 = vtanh.f32 %v2121_v51 }
 0x174   : > { %v3165_v50 = vpop.eup %3164  ;;  %2431 = vst [vmem:[%s3922_s22 + $0x260] sm:$0xff] %v3163_v47  ;;  %v2183_v57 = vadd.f32 %v3904_v2, %v1530_v54  ;;  %v2846_v58 = vpop.f32.mrb[22].mxu0  ;;  %3190 = vtanh.f32 %v2185_v52 }
 0x175   : > { %v3167_v55 = vpop.eup %3166  ;;  %2370 = vst [vmem:[%s3922_s22 + $0x78] sm:$0xff] %v3165_v50  ;;  %v2910_v59 = vpop.f32.mrb[22].mxu1  ;;  %v2122_v61 = vadd.f32 %v2846_v58, %v3904_v2  ;;  %3192 = vtanh.f32 %v2119_v56 }
 0x176   : > { %v3169_v60 = vpop.eup %3168  ;;  %2434 = vst [vmem:[%s3922_s22 + $0x278] sm:$0xff] %v3167_v55  ;;  %v1277_v62 = vpop.f32.mrb[23].mxu0  ;;  %v2186_v1 = vadd.f32 %v2910_v59, %v3904_v2  ;;  %3194 = vtanh.f32 %v2183_v57 }
 0x177   : > { %v1533_v63 = vpop.f32.mrb[23].mxu1  ;;  %v3171_v0 = vpop.eup %3170  ;;  %2368 = vst [vmem:[%s3922_s22 + $0x68] sm:$0xff] %v3169_v60  ;;  %v2120_v4 = vadd.f32 %v3904_v2, %v1277_v62  ;;  %3196 = vtanh.f32 %v2122_v61 }
 0x178   : > { %v3173_v3 = vpop.eup %3172  ;;  %2432 = vst [vmem:[%s3922_s22 + $0x268] sm:$0xff] %v3171_v0  ;;  %v2184_v6 = vadd.f32 %v3904_v2, %v1533_v63  ;;  %3198 = vtanh.f32 %v2186_v1  ;;  %v2849_v9 = vpop.f32.mrb[24].mxu0 }
 0x179   : > { %v3175_v5 = vpop.eup %3174  ;;  %2373 = vst [vmem:[%s3922_s22 + $0x90] sm:$0xff] %v3173_v3  ;;  %v2913_v10 = vpop.f32.mrb[24].mxu1  ;;  %3200 = vtanh.f32 %v2120_v4  ;;  %v2125_v12 = vadd.f32 %v2849_v9, %v3904_v2 }
 0x17a   : > { %v3177_v7 = vpop.eup %3176  ;;  %2437 = vst [vmem:[%s3922_s22 + $0x290] sm:$0xff] %v3175_v5  ;;  %v2189_v13 = vadd.f32 %v2913_v10, %v3904_v2  ;;  %v1290_v14 = vpop.f32.mrb[25].mxu0  ;;  %3202 = vtanh.f32 %v2184_v6 }
 0x17b   : > { %v3179_v8 = vpop.eup %3178  ;;  %2371 = vst [vmem:[%s3922_s22 + $0x80] sm:$0xff] %v3177_v7  ;;  %v1546_v15 = vpop.f32.mrb[25].mxu1  ;;  %v2123_v17 = vadd.f32 %v3904_v2, %v1290_v14  ;;  %3204 = vtanh.f32 %v2125_v12 }
 0x17c   : > { %v3181_v11 = vpop.eup %3180  ;;  %2435 = vst [vmem:[%s3922_s22 + $0x280] sm:$0xff] %v3179_v8  ;;  %v2187_v18 = vadd.f32 %v3904_v2, %v1546_v15  ;;  %v2850_v19 = vpop.f32.mrb[26].mxu0  ;;  %3206 = vtanh.f32 %v2189_v13 }
 0x17d   : > { %v3183_v16 = vpop.eup %3182  ;;  %2374 = vst [vmem:[%s3922_s22 + $0x98] sm:$0xff] %v3181_v11  ;;  %v2914_v20 = vpop.f32.mrb[26].mxu1  ;;  %v2126_v22 = vadd.f32 %v2850_v19, %v3904_v2  ;;  %3208 = vtanh.f32 %v2123_v17 }
 0x17e   : > { %v3185_v21 = vpop.eup %3184  ;;  %2438 = vst [vmem:[%s3922_s22 + $0x298] sm:$0xff] %v3183_v16  ;;  %v1293_v23 = vpop.f32.mrb[27].mxu0  ;;  %v2190_v26 = vadd.f32 %v2914_v20, %v3904_v2  ;;  %3210 = vtanh.f32 %v2187_v18 }
 0x17f   : > { %v1549_v24 = vpop.f32.mrb[27].mxu1  ;;  %v3187_v25 = vpop.eup %3186  ;;  %2372 = vst [vmem:[%s3922_s22 + $0x88] sm:$0xff] %v3185_v21  ;;  %v2124_v28 = vadd.f32 %v3904_v2, %v1293_v23  ;;  %3212 = vtanh.f32 %v2126_v22 }
 0x180   : > { %v3189_v27 = vpop.eup %3188  ;;  %2436 = vst [vmem:[%s3922_s22 + $0x288] sm:$0xff] %v3187_v25  ;;  %v2188_v30 = vadd.f32 %v3904_v2, %v1549_v24  ;;  %3214 = vtanh.f32 %v2190_v26  ;;  %v2853_v33 = vpop.f32.mrb[28].mxu0 }
 0x181   : > { %v3191_v29 = vpop.eup %3190  ;;  %2377 = vst [vmem:[%s3922_s22 + $0xb0] sm:$0xff] %v3189_v27  ;;  %v2917_v34 = vpop.f32.mrb[28].mxu1  ;;  %3216 = vtanh.f32 %v2124_v28  ;;  %v2129_v36 = vadd.f32 %v2853_v33, %v3904_v2 }
 0x182   : > { %v3193_v31 = vpop.eup %3192  ;;  %2441 = vst [vmem:[%s3922_s22 + $0x2b0] sm:$0xff] %v3191_v29  ;;  %v2193_v37 = vadd.f32 %v2917_v34, %v3904_v2  ;;  %v1306_v38 = vpop.f32.mrb[29].mxu0  ;;  %3218 = vtanh.f32 %v2188_v30 }
 0x183   : > { %v3195_v32 = vpop.eup %3194  ;;  %2375 = vst [vmem:[%s3922_s22 + $0xa0] sm:$0xff] %v3193_v31  ;;  %v1562_v39 = vpop.f32.mrb[29].mxu1  ;;  %v2127_v41 = vadd.f32 %v3904_v2, %v1306_v38  ;;  %3220 = vtanh.f32 %v2129_v36 }
 0x184   : > { %v3197_v35 = vpop.eup %3196  ;;  %2439 = vst [vmem:[%s3922_s22 + $0x2a0] sm:$0xff] %v3195_v32  ;;  %v2191_v42 = vadd.f32 %v3904_v2, %v1562_v39  ;;  %v2854_v43 = vpop.f32.mrb[30].mxu0  ;;  %3222 = vtanh.f32 %v2193_v37 }
 0x185   : > { %v3199_v40 = vpop.eup %3198  ;;  %2378 = vst [vmem:[%s3922_s22 + $0xb8] sm:$0xff] %v3197_v35  ;;  %v2918_v44 = vpop.f32.mrb[30].mxu1  ;;  %v2130_v46 = vadd.f32 %v2854_v43, %v3904_v2  ;;  %3224 = vtanh.f32 %v2127_v41 }
 0x186   : > { %v3201_v45 = vpop.eup %3200  ;;  %2442 = vst [vmem:[%s3922_s22 + $0x2b8] sm:$0xff] %v3199_v40  ;;  %v1309_v47 = vpop.f32.mrb[31].mxu0  ;;  %v2194_v50 = vadd.f32 %v2918_v44, %v3904_v2  ;;  %3226 = vtanh.f32 %v2191_v42 }
 0x187   : > { %v1565_v48 = vpop.f32.mrb[31].mxu1  ;;  %v3203_v49 = vpop.eup %3202  ;;  %2376 = vst [vmem:[%s3922_s22 + $0xa8] sm:$0xff] %v3201_v45  ;;  %v2128_v52 = vadd.f32 %v3904_v2, %v1309_v47  ;;  %3228 = vtanh.f32 %v2130_v46 }
 0x188   : > { %v3205_v51 = vpop.eup %3204  ;;  %2440 = vst [vmem:[%s3922_s22 + $0x2a8] sm:$0xff] %v3203_v49  ;;  %v2192_v54 = vadd.f32 %v3904_v2, %v1565_v48  ;;  %3230 = vtanh.f32 %v2194_v50  ;;  %v2857_v57 = vpop.f32.mrb[32].mxu0 }
 0x189   : > { %v3207_v53 = vpop.eup %3206  ;;  %2381 = vst [vmem:[%s3922_s22 + $0xd0] sm:$0xff] %v3205_v51  ;;  %v2921_v58 = vpop.f32.mrb[32].mxu1  ;;  %3232 = vtanh.f32 %v2128_v52  ;;  %v2133_v60 = vadd.f32 %v2857_v57, %v3904_v2 }
 0x18a   : > { %v3209_v55 = vpop.eup %3208  ;;  %2445 = vst [vmem:[%s3922_s22 + $0x2d0] sm:$0xff] %v3207_v53  ;;  %v2197_v61 = vadd.f32 %v2921_v58, %v3904_v2  ;;  %v1322_v62 = vpop.f32.mrb[33].mxu0  ;;  %3234 = vtanh.f32 %v2192_v54 }
 0x18b   : > { %v3211_v56 = vpop.eup %3210  ;;  %2379 = vst [vmem:[%s3922_s22 + $0xc0] sm:$0xff] %v3209_v55  ;;  %v1578_v63 = vpop.f32.mrb[33].mxu1  ;;  %v2131_v1 = vadd.f32 %v3904_v2, %v1322_v62  ;;  %3236 = vtanh.f32 %v2133_v60 }
 0x18c   : > { %v3213_v59 = vpop.eup %3212  ;;  %2443 = vst [vmem:[%s3922_s22 + $0x2c0] sm:$0xff] %v3211_v56  ;;  %v2195_v3 = vadd.f32 %v3904_v2, %v1578_v63  ;;  %v2858_v4 = vpop.f32.mrb[34].mxu0  ;;  %3238 = vtanh.f32 %v2197_v61 }
 0x18d   : > { %v3215_v0 = vpop.eup %3214  ;;  %2382 = vst [vmem:[%s3922_s22 + $0xd8] sm:$0xff] %v3213_v59  ;;  %v2922_v5 = vpop.f32.mrb[34].mxu1  ;;  %v2134_v7 = vadd.f32 %v2858_v4, %v3904_v2  ;;  %3240 = vtanh.f32 %v2131_v1 }
 0x18e   : > { %v3217_v6 = vpop.eup %3216  ;;  %2446 = vst [vmem:[%s3922_s22 + $0x2d8] sm:$0xff] %v3215_v0  ;;  %v1325_v8 = vpop.f32.mrb[35].mxu0  ;;  %v2198_v11 = vadd.f32 %v2922_v5, %v3904_v2  ;;  %3242 = vtanh.f32 %v2195_v3 }
 0x18f   : > { %v1581_v9 = vpop.f32.mrb[35].mxu1  ;;  %v3219_v10 = vpop.eup %3218  ;;  %2380 = vst [vmem:[%s3922_s22 + $0xc8] sm:$0xff] %v3217_v6  ;;  %v2132_v13 = vadd.f32 %v3904_v2, %v1325_v8  ;;  %3244 = vtanh.f32 %v2134_v7 }
 0x190   : > { %v3221_v12 = vpop.eup %3220  ;;  %2444 = vst [vmem:[%s3922_s22 + $0x2c8] sm:$0xff] %v3219_v10  ;;  %v2196_v15 = vadd.f32 %v3904_v2, %v1581_v9  ;;  %3246 = vtanh.f32 %v2198_v11  ;;  %v2861_v18 = vpop.f32.mrb[36].mxu0 }
 0x191   : > { %v3223_v14 = vpop.eup %3222  ;;  %2385 = vst [vmem:[%s3922_s22 + $0xf0] sm:$0xff] %v3221_v12  ;;  %v2925_v19 = vpop.f32.mrb[36].mxu1  ;;  %3248 = vtanh.f32 %v2132_v13  ;;  %v2137_v21 = vadd.f32 %v2861_v18, %v3904_v2 }
 0x192   : > { %v3225_v16 = vpop.eup %3224  ;;  %2449 = vst [vmem:[%s3922_s22 + $0x2f0] sm:$0xff] %v3223_v14  ;;  %v2201_v22 = vadd.f32 %v2925_v19, %v3904_v2  ;;  %v1338_v23 = vpop.f32.mrb[37].mxu0  ;;  %3250 = vtanh.f32 %v2196_v15 }
 0x193   : > { %v3227_v17 = vpop.eup %3226  ;;  %2383 = vst [vmem:[%s3922_s22 + $0xe0] sm:$0xff] %v3225_v16  ;;  %v1594_v24 = vpop.f32.mrb[37].mxu1  ;;  %v2135_v26 = vadd.f32 %v3904_v2, %v1338_v23  ;;  %3252 = vtanh.f32 %v2137_v21 }
 0x194   : > { %v3229_v20 = vpop.eup %3228  ;;  %2447 = vst [vmem:[%s3922_s22 + $0x2e0] sm:$0xff] %v3227_v17  ;;  %v2199_v27 = vadd.f32 %v3904_v2, %v1594_v24  ;;  %v2862_v28 = vpop.f32.mrb[38].mxu0  ;;  %3254 = vtanh.f32 %v2201_v22 }
 0x195   : > { %v3231_v25 = vpop.eup %3230  ;;  %2386 = vst [vmem:[%s3922_s22 + $0xf8] sm:$0xff] %v3229_v20  ;;  %v2926_v29 = vpop.f32.mrb[38].mxu1  ;;  %v2138_v31 = vadd.f32 %v2862_v28, %v3904_v2  ;;  %3256 = vtanh.f32 %v2135_v26 }
 0x196   : > { %v3233_v30 = vpop.eup %3232  ;;  %2450 = vst [vmem:[%s3922_s22 + $0x2f8] sm:$0xff] %v3231_v25  ;;  %v1341_v32 = vpop.f32.mrb[39].mxu0  ;;  %v2202_v35 = vadd.f32 %v2926_v29, %v3904_v2  ;;  %3258 = vtanh.f32 %v2199_v27 }
 0x197   : > { %v1597_v33 = vpop.f32.mrb[39].mxu1  ;;  %v3235_v34 = vpop.eup %3234  ;;  %2384 = vst [vmem:[%s3922_s22 + $0xe8] sm:$0xff] %v3233_v30  ;;  %v2136_v37 = vadd.f32 %v3904_v2, %v1341_v32  ;;  %3260 = vtanh.f32 %v2138_v31 }
 0x198   : > { %v3237_v36 = vpop.eup %3236  ;;  %2448 = vst [vmem:[%s3922_s22 + $0x2e8] sm:$0xff] %v3235_v34  ;;  %v2200_v39 = vadd.f32 %v3904_v2, %v1597_v33  ;;  %3262 = vtanh.f32 %v2202_v35  ;;  %v2865_v42 = vpop.f32.mrb[40].mxu0 }
 0x199   : > { %v3239_v38 = vpop.eup %3238  ;;  %2389 = vst [vmem:[%s3922_s22 + $0x110] sm:$0xff] %v3237_v36  ;;  %v2929_v43 = vpop.f32.mrb[40].mxu1  ;;  %3264 = vtanh.f32 %v2136_v37  ;;  %v2141_v45 = vadd.f32 %v2865_v42, %v3904_v2 }
 0x19a   : > { %v3241_v40 = vpop.eup %3240  ;;  %2453 = vst [vmem:[%s3922_s22 + $0x310] sm:$0xff] %v3239_v38  ;;  %v2205_v46 = vadd.f32 %v2929_v43, %v3904_v2  ;;  %v1354_v47 = vpop.f32.mrb[41].mxu0  ;;  %3266 = vtanh.f32 %v2200_v39 }
 0x19b   : > { %v3243_v41 = vpop.eup %3242  ;;  %2387 = vst [vmem:[%s3922_s22 + $0x100] sm:$0xff] %v3241_v40  ;;  %v1610_v48 = vpop.f32.mrb[41].mxu1  ;;  %v2139_v50 = vadd.f32 %v3904_v2, %v1354_v47  ;;  %3268 = vtanh.f32 %v2141_v45 }
 0x19c   : > { %v3245_v44 = vpop.eup %3244  ;;  %2451 = vst [vmem:[%s3922_s22 + $0x300] sm:$0xff] %v3243_v41  ;;  %v2203_v51 = vadd.f32 %v3904_v2, %v1610_v48  ;;  %v2866_v52 = vpop.f32.mrb[42].mxu0  ;;  %3270 = vtanh.f32 %v2205_v46 }
 0x19d   : > { %v3247_v49 = vpop.eup %3246  ;;  %2390 = vst [vmem:[%s3922_s22 + $0x118] sm:$0xff] %v3245_v44  ;;  %v2930_v53 = vpop.f32.mrb[42].mxu1  ;;  %v2142_v55 = vadd.f32 %v2866_v52, %v3904_v2  ;;  %3272 = vtanh.f32 %v2139_v50 }
 0x19e   : > { %v3249_v54 = vpop.eup %3248  ;;  %2454 = vst [vmem:[%s3922_s22 + $0x318] sm:$0xff] %v3247_v49  ;;  %v1357_v56 = vpop.f32.mrb[43].mxu0  ;;  %v2206_v59 = vadd.f32 %v2930_v53, %v3904_v2  ;;  %3274 = vtanh.f32 %v2203_v51 }
 0x19f   : > { %v1613_v57 = vpop.f32.mrb[43].mxu1  ;;  %v3251_v58 = vpop.eup %3250  ;;  %2388 = vst [vmem:[%s3922_s22 + $0x108] sm:$0xff] %v3249_v54  ;;  %v2140_v61 = vadd.f32 %v3904_v2, %v1357_v56  ;;  %3276 = vtanh.f32 %v2142_v55 }
 0x1a0   : > { %v3253_v60 = vpop.eup %3252  ;;  %2452 = vst [vmem:[%s3922_s22 + $0x308] sm:$0xff] %v3251_v58  ;;  %v2204_v63 = vadd.f32 %v3904_v2, %v1613_v57  ;;  %3278 = vtanh.f32 %v2206_v59  ;;  %v2869_v3 = vpop.f32.mrb[44].mxu0 }
 0x1a1   : > { %v3255_v62 = vpop.eup %3254  ;;  %2393 = vst [vmem:[%s3922_s22 + $0x130] sm:$0xff] %v3253_v60  ;;  %v2933_v4 = vpop.f32.mrb[44].mxu1  ;;  %3280 = vtanh.f32 %v2140_v61  ;;  %v2145_v6 = vadd.f32 %v2869_v3, %v3904_v2 }
 0x1a2   : > { %v3257_v0 = vpop.eup %3256  ;;  %2457 = vst [vmem:[%s3922_s22 + $0x330] sm:$0xff] %v3255_v62  ;;  %v2209_v7 = vadd.f32 %v2933_v4, %v3904_v2  ;;  %v1370_v8 = vpop.f32.mrb[45].mxu0  ;;  %3282 = vtanh.f32 %v2204_v63 }
 0x1a3   : > { %v3259_v1 = vpop.eup %3258  ;;  %2391 = vst [vmem:[%s3922_s22 + $0x120] sm:$0xff] %v3257_v0  ;;  %v1626_v9 = vpop.f32.mrb[45].mxu1  ;;  %v2143_v11 = vadd.f32 %v3904_v2, %v1370_v8  ;;  %3284 = vtanh.f32 %v2145_v6  ;;  %v4111_v0 = vld [vmem:[#allocation8] ss:$0 sm:$0xff] }
 0x1a4   : > { %v3261_v5 = vpop.eup %3260  ;;  %2455 = vst [vmem:[%s3922_s22 + $0x320] sm:$0xff] %v3259_v1  ;;  %v2207_v12 = vadd.f32 %v3904_v2, %v1626_v9  ;;  %v2870_v13 = vpop.f32.mrb[46].mxu0  ;;  %3286 = vtanh.f32 %v2209_v7 }
 0x1a5   : > { %v3263_v10 = vpop.eup %3262  ;;  %2394 = vst [vmem:[%s3922_s22 + $0x138] sm:$0xff] %v3261_v5  ;;  %v2934_v14 = vpop.f32.mrb[46].mxu1  ;;  %v2146_v16 = vadd.f32 %v2870_v13, %v3904_v2  ;;  %3288 = vtanh.f32 %v2143_v11 }
 0x1a6   : > { %v3265_v15 = vpop.eup %3264  ;;  %2458 = vst [vmem:[%s3922_s22 + $0x338] sm:$0xff] %v3263_v10  ;;  %v1373_v17 = vpop.f32.mrb[47].mxu0  ;;  %v2210_v20 = vadd.f32 %v2934_v14, %v3904_v2  ;;  %3290 = vtanh.f32 %v2207_v12 }
 0x1a7   : > { %v1629_v18 = vpop.f32.mrb[47].mxu1  ;;  %v3267_v19 = vpop.eup %3266  ;;  %2392 = vst [vmem:[%s3922_s22 + $0x128] sm:$0xff] %v3265_v15  ;;  %v2144_v22 = vadd.f32 %v3904_v2, %v1373_v17  ;;  %3292 = vtanh.f32 %v2146_v16 }
 0x1a8   : > { %v3269_v21 = vpop.eup %3268  ;;  %2456 = vst [vmem:[%s3922_s22 + $0x328] sm:$0xff] %v3267_v19  ;;  %v2208_v24 = vadd.f32 %v3904_v2, %v1629_v18  ;;  %3294 = vtanh.f32 %v2210_v20  ;;  %v2873_v27 = vpop.f32.mrb[48].mxu0 }
 0x1a9   : > { %v3271_v23 = vpop.eup %3270  ;;  %2397 = vst [vmem:[%s3922_s22 + $0x150] sm:$0xff] %v3269_v21  ;;  %v2937_v28 = vpop.f32.mrb[48].mxu1  ;;  %3296 = vtanh.f32 %v2144_v22  ;;  %v2149_v30 = vadd.f32 %v2873_v27, %v3904_v2 }
 0x1aa   : > { %v3273_v25 = vpop.eup %3272  ;;  %2461 = vst [vmem:[%s3922_s22 + $0x350] sm:$0xff] %v3271_v23  ;;  %v2213_v31 = vadd.f32 %v2937_v28, %v3904_v2  ;;  %v1386_v32 = vpop.f32.mrb[49].mxu0  ;;  %3298 = vtanh.f32 %v2208_v24 }
 0x1ab   : > { %v3275_v26 = vpop.eup %3274  ;;  %2395 = vst [vmem:[%s3922_s22 + $0x140] sm:$0xff] %v3273_v25  ;;  %v1642_v33 = vpop.f32.mrb[49].mxu1  ;;  %v2147_v35 = vadd.f32 %v3904_v2, %v1386_v32  ;;  %3300 = vtanh.f32 %v2149_v30 }
 0x1ac   : > { %v3277_v29 = vpop.eup %3276  ;;  %2459 = vst [vmem:[%s3922_s22 + $0x340] sm:$0xff] %v3275_v26  ;;  %v2211_v36 = vadd.f32 %v3904_v2, %v1642_v33  ;;  %v2874_v37 = vpop.f32.mrb[50].mxu0  ;;  %3302 = vtanh.f32 %v2213_v31 }
 0x1ad   : > { %v3279_v34 = vpop.eup %3278  ;;  %2398 = vst [vmem:[%s3922_s22 + $0x158] sm:$0xff] %v3277_v29  ;;  %v2938_v38 = vpop.f32.mrb[50].mxu1  ;;  %v2150_v40 = vadd.f32 %v2874_v37, %v3904_v2  ;;  %3304 = vtanh.f32 %v2147_v35 }
 0x1ae   : > { %v3281_v39 = vpop.eup %3280  ;;  %2462 = vst [vmem:[%s3922_s22 + $0x358] sm:$0xff] %v3279_v34  ;;  %v1389_v41 = vpop.f32.mrb[51].mxu0  ;;  %v2214_v44 = vadd.f32 %v2938_v38, %v3904_v2  ;;  %3306 = vtanh.f32 %v2211_v36 }
 0x1af   : > { %v1645_v42 = vpop.f32.mrb[51].mxu1  ;;  %v3283_v43 = vpop.eup %3282  ;;  %2396 = vst [vmem:[%s3922_s22 + $0x148] sm:$0xff] %v3281_v39  ;;  %v2148_v46 = vadd.f32 %v3904_v2, %v1389_v41  ;;  %3308 = vtanh.f32 %v2150_v40 }
 0x1b0   : > { %v3285_v45 = vpop.eup %3284  ;;  %2460 = vst [vmem:[%s3922_s22 + $0x348] sm:$0xff] %v3283_v43  ;;  %v2212_v48 = vadd.f32 %v3904_v2, %v1645_v42  ;;  %3310 = vtanh.f32 %v2214_v44  ;;  %v2877_v51 = vpop.f32.mrb[52].mxu0 }
 0x1b1   : > { %v3287_v47 = vpop.eup %3286  ;;  %2401 = vst [vmem:[%s3922_s22 + $0x170] sm:$0xff] %v3285_v45  ;;  %v2941_v52 = vpop.f32.mrb[52].mxu1  ;;  %3312 = vtanh.f32 %v2148_v46  ;;  %v2153_v54 = vadd.f32 %v2877_v51, %v3904_v2 }
 0x1b2   : > { %v3289_v49 = vpop.eup %3288  ;;  %2465 = vst [vmem:[%s3922_s22 + $0x370] sm:$0xff] %v3287_v47  ;;  %v2217_v55 = vadd.f32 %v2941_v52, %v3904_v2  ;;  %v1402_v56 = vpop.f32.mrb[53].mxu0  ;;  %3314 = vtanh.f32 %v2212_v48 }
 0x1b3   : > { %v3291_v50 = vpop.eup %3290  ;;  %2399 = vst [vmem:[%s3922_s22 + $0x160] sm:$0xff] %v3289_v49  ;;  %v1658_v57 = vpop.f32.mrb[53].mxu1  ;;  %v2151_v59 = vadd.f32 %v3904_v2, %v1402_v56  ;;  %3316 = vtanh.f32 %v2153_v54 }
 0x1b4   : > { %v3293_v53 = vpop.eup %3292  ;;  %2463 = vst [vmem:[%s3922_s22 + $0x360] sm:$0xff] %v3291_v50  ;;  %v2215_v60 = vadd.f32 %v3904_v2, %v1658_v57  ;;  %v2878_v61 = vpop.f32.mrb[54].mxu0  ;;  %3318 = vtanh.f32 %v2217_v55 }
 0x1b5   : > { %v3295_v58 = vpop.eup %3294  ;;  %2402 = vst [vmem:[%s3922_s22 + $0x178] sm:$0xff] %v3293_v53  ;;  %v2942_v62 = vpop.f32.mrb[54].mxu1  ;;  %v2154_v1 = vadd.f32 %v4111_v0, %v2878_v61  ;;  %3320 = vtanh.f32 %v2151_v59 }
 0x1b6   : > { %v3297_v63 = vpop.eup %3296  ;;  %2466 = vst [vmem:[%s3922_s22 + $0x378] sm:$0xff] %v3295_v58  ;;  %v1405_v3 = vpop.f32.mrb[55].mxu0  ;;  %v2218_v6 = vadd.f32 %v4111_v0, %v2942_v62  ;;  %3322 = vtanh.f32 %v2215_v60 }
 0x1b7   : > { %v1661_v4 = vpop.f32.mrb[55].mxu1  ;;  %v3299_v5 = vpop.eup %3298  ;;  %2400 = vst [vmem:[%s3922_s22 + $0x168] sm:$0xff] %v3297_v63  ;;  %v2152_v7 = vadd.f32 %v4111_v0, %v1405_v3  ;;  %3324 = vtanh.f32 %v2154_v1 }
 0x1b8   : > { %v3301_v2 = vpop.eup %3300  ;;  %2464 = vst [vmem:[%s3922_s22 + $0x368] sm:$0xff] %v3299_v5  ;;  %v2216_v9 = vadd.f32 %v4111_v0, %v1661_v4  ;;  %3326 = vtanh.f32 %v2218_v6  ;;  %v2881_v12 = vpop.f32.mrb[56].mxu0 }
 0x1b9   : > { %v3303_v8 = vpop.eup %3302  ;;  %2405 = vst [vmem:[%s3922_s22 + $0x190] sm:$0xff] %v3301_v2  ;;  %v2945_v13 = vpop.f32.mrb[56].mxu1  ;;  %3328 = vtanh.f32 %v2152_v7  ;;  %v2157_v15 = vadd.f32 %v4111_v0, %v2881_v12 }
 0x1ba   : > { %v3305_v10 = vpop.eup %3304  ;;  %2469 = vst [vmem:[%s3922_s22 + $0x390] sm:$0xff] %v3303_v8  ;;  %v2221_v16 = vadd.f32 %v4111_v0, %v2945_v13  ;;  %v1418_v17 = vpop.f32.mrb[57].mxu0  ;;  %3330 = vtanh.f32 %v2216_v9 }
 0x1bb   : > { %v3307_v11 = vpop.eup %3306  ;;  %2403 = vst [vmem:[%s3922_s22 + $0x180] sm:$0xff] %v3305_v10  ;;  %v1674_v18 = vpop.f32.mrb[57].mxu1  ;;  %v2155_v20 = vadd.f32 %v4111_v0, %v1418_v17  ;;  %3332 = vtanh.f32 %v2157_v15 }
 0x1bc   : > { %v3309_v14 = vpop.eup %3308  ;;  %2467 = vst [vmem:[%s3922_s22 + $0x380] sm:$0xff] %v3307_v11  ;;  %v2219_v21 = vadd.f32 %v4111_v0, %v1674_v18  ;;  %v2882_v22 = vpop.f32.mrb[58].mxu0  ;;  %3334 = vtanh.f32 %v2221_v16 }
 0x1bd   : > { %v3311_v19 = vpop.eup %3310  ;;  %2406 = vst [vmem:[%s3922_s22 + $0x198] sm:$0xff] %v3309_v14  ;;  %v2946_v23 = vpop.f32.mrb[58].mxu1  ;;  %v2158_v25 = vadd.f32 %v4111_v0, %v2882_v22  ;;  %3336 = vtanh.f32 %v2155_v20 }
 0x1be   : > { %v3313_v24 = vpop.eup %3312  ;;  %2470 = vst [vmem:[%s3922_s22 + $0x398] sm:$0xff] %v3311_v19  ;;  %v1421_v26 = vpop.f32.mrb[59].mxu0  ;;  %v2222_v29 = vadd.f32 %v4111_v0, %v2946_v23  ;;  %3338 = vtanh.f32 %v2219_v21 }
 0x1bf   : > { %v1677_v27 = vpop.f32.mrb[59].mxu1  ;;  %v3315_v28 = vpop.eup %3314  ;;  %2404 = vst [vmem:[%s3922_s22 + $0x188] sm:$0xff] %v3313_v24  ;;  %v2156_v31 = vadd.f32 %v4111_v0, %v1421_v26  ;;  %3340 = vtanh.f32 %v2158_v25 }
 0x1c0   : > { %v3317_v30 = vpop.eup %3316  ;;  %2468 = vst [vmem:[%s3922_s22 + $0x388] sm:$0xff] %v3315_v28  ;;  %v2220_v33 = vadd.f32 %v4111_v0, %v1677_v27  ;;  %3342 = vtanh.f32 %v2222_v29  ;;  %v2885_v36 = vpop.f32.mrb[60].mxu0 }
 0x1c1   : > { %v3319_v32 = vpop.eup %3318  ;;  %2409 = vst [vmem:[%s3922_s22 + $0x1b0] sm:$0xff] %v3317_v30  ;;  %v2949_v37 = vpop.f32.mrb[60].mxu1  ;;  %3344 = vtanh.f32 %v2156_v31  ;;  %v2161_v39 = vadd.f32 %v4111_v0, %v2885_v36 }
 0x1c2   : > { %v3321_v34 = vpop.eup %3320  ;;  %2473 = vst [vmem:[%s3922_s22 + $0x3b0] sm:$0xff] %v3319_v32  ;;  %v2225_v40 = vadd.f32 %v4111_v0, %v2949_v37  ;;  %v1434_v41 = vpop.f32.mrb[61].mxu0  ;;  %3346 = vtanh.f32 %v2220_v33 }
 0x1c3   : > { %v3323_v35 = vpop.eup %3322  ;;  %2407 = vst [vmem:[%s3922_s22 + $0x1a0] sm:$0xff] %v3321_v34  ;;  %v1690_v42 = vpop.f32.mrb[61].mxu1  ;;  %v2159_v44 = vadd.f32 %v4111_v0, %v1434_v41  ;;  %3348 = vtanh.f32 %v2161_v39 }
 0x1c4   : > { %v3325_v38 = vpop.eup %3324  ;;  %2471 = vst [vmem:[%s3922_s22 + $0x3a0] sm:$0xff] %v3323_v35  ;;  %v2223_v45 = vadd.f32 %v4111_v0, %v1690_v42  ;;  %v2886_v46 = vpop.f32.mrb[62].mxu0  ;;  %3350 = vtanh.f32 %v2225_v40 }
 0x1c5   : > { %v3327_v43 = vpop.eup %3326  ;;  %2410 = vst [vmem:[%s3922_s22 + $0x1b8] sm:$0xff] %v3325_v38  ;;  %v2950_v47 = vpop.f32.mrb[62].mxu1  ;;  %v2162_v49 = vadd.f32 %v4111_v0, %v2886_v46  ;;  %3352 = vtanh.f32 %v2159_v44 }
 0x1c6   : > { %v3329_v48 = vpop.eup %3328  ;;  %2474 = vst [vmem:[%s3922_s22 + $0x3b8] sm:$0xff] %v3327_v43  ;;  %v1437_v50 = vpop.f32.mrb[63].mxu0  ;;  %v2226_v53 = vadd.f32 %v4111_v0, %v2950_v47  ;;  %3354 = vtanh.f32 %v2223_v45 }
 0x1c7   : > { %v1693_v51 = vpop.f32.mrb[63].mxu1  ;;  %v3331_v52 = vpop.eup %3330  ;;  %2408 = vst [vmem:[%s3922_s22 + $0x1a8] sm:$0xff] %v3329_v48  ;;  %v2160_v55 = vadd.f32 %v4111_v0, %v1437_v50  ;;  %3356 = vtanh.f32 %v2162_v49 }
 0x1c8   : > { %v3333_v54 = vpop.eup %3332  ;;  %2472 = vst [vmem:[%s3922_s22 + $0x3a8] sm:$0xff] %v3331_v52  ;;  %v2224_v57 = vadd.f32 %v4111_v0, %v1693_v51  ;;  %3358 = vtanh.f32 %v2226_v53 }
 0x1c9   : > { %v3335_v56 = vpop.eup %3334  ;;  %2413 = vst [vmem:[%s3922_s22 + $0x1d0] sm:$0xff] %v3333_v54  ;;  %3360 = vtanh.f32 %v2160_v55 }
 0x1ca   : > { %v3337_v58 = vpop.eup %3336  ;;  %2477 = vst [vmem:[%s3922_s22 + $0x3d0] sm:$0xff] %v3335_v56  ;;  %3362 = vtanh.f32 %v2224_v57 }
 0x1cb   : > { %v3339_v59 = vpop.eup %3338  ;;  %2411 = vst [vmem:[%s3922_s22 + $0x1c0] sm:$0xff] %v3337_v58 }
 0x1cc   : > { %v3341_v60 = vpop.eup %3340  ;;  %2475 = vst [vmem:[%s3922_s22 + $0x3c0] sm:$0xff] %v3339_v59 }
 0x1cd   : > { %v3343_v61 = vpop.eup %3342  ;;  %2414 = vst [vmem:[%s3922_s22 + $0x1d8] sm:$0xff] %v3341_v60 }
 0x1ce   : > { %v3345_v62 = vpop.eup %3344  ;;  %2478 = vst [vmem:[%s3922_s22 + $0x3d8] sm:$0xff] %v3343_v61 }
 0x1cf   : > { %v3347_v63 = vpop.eup %3346  ;;  %2412 = vst [vmem:[%s3922_s22 + $0x1c8] sm:$0xff] %v3345_v62 }
 0x1d0   : > { %v3349_v0 = vpop.eup %3348  ;;  %2476 = vst [vmem:[%s3922_s22 + $0x3c8] sm:$0xff] %v3347_v63 }
 0x1d1   : > { %v3351_v1 = vpop.eup %3350  ;;  %2417 = vst [vmem:[%s3922_s22 + $0x1f0] sm:$0xff] %v3349_v0 }
 0x1d2   : > { %v3353_v3 = vpop.eup %3352  ;;  %2481 = vst [vmem:[%s3922_s22 + $0x3f0] sm:$0xff] %v3351_v1 }
 0x1d3   : > { %v3355_v4 = vpop.eup %3354  ;;  %2415 = vst [vmem:[%s3922_s22 + $0x1e0] sm:$0xff] %v3353_v3 }
 0x1d4   : > { %v3357_v5 = vpop.eup %3356  ;;  %2479 = vst [vmem:[%s3922_s22 + $0x3e0] sm:$0xff] %v3355_v4 }
 0x1d5   : > { %v3359_v6 = vpop.eup %3358  ;;  %2418 = vst [vmem:[%s3922_s22 + $0x1f8] sm:$0xff] %v3357_v5 }
 0x1d6   : > { %v3361_v2 = vpop.eup %3360  ;;  %2482 = vst [vmem:[%s3922_s22 + $0x3f8] sm:$0xff] %v3359_v6 }
 0x1d7   : > { %v3363_v7 = vpop.eup %3362  ;;  %2416 = vst [vmem:[%s3922_s22 + $0x1e8] sm:$0xff] %v3361_v2 }
 0x1d8   : > { %2480 = vst [vmem:[%s3922_s22 + $0x3e8] sm:$0xff] %v3363_v7 }
 0x1d9   : > { %3464 = shalt.err (!%p3461_p11)
}
 0x1da   : > { %s3465_s30 = scalar_lea.hbm %s4169_s9, 16384  ;;  %s3469_s7 = scalar_lea.hbm %s4226_s3, 32768 }
 0x1db   : > { %p3466_p0 = scmp.ne.s32.totalorder %s4169_s9, %s3465_s30  ;;  %p3470_p6 = scmp.lt.u32.totalorder %s4169_s9, %s4226_s3 }
 0x1dc   : > { %p3471_p7 = scmp.lt.u32.totalorder %s3469_s7, %s3465_s30  ;;  %p3473_p8 = scmp.lt.u32.totalorder %s3465_s30, %s4169_s9 }
 0x1dd   : > { %p3467_p4 = pnand %p3466_p0, %p4241_p12 }
 0x1de   : > { %p3472_p2 = por %p3471_p7, %p3470_p6 }
 0x1df   : > { %p3468_p13 = pneg %p3467_p4 }
 0x1e0   : > { %p3474_p1 = por %p3473_p8, %p3472_p2 }
 0x1e2   : > { %p3475_p10 = pnand %p3474_p1, %p3468_p13 }
 0x1e4   : > { %3478 = shalt.err (!%p3475_p10)
}
 0x1e5   : > { %s3545_s22 = smov 128   ;;  %s3546_s24 = smov 8  }
 0x1e6   : > { %2965 = dma.vmem_to_hbm [thread:$0]  (%p4241_p12), %s4171_s11, 16384, %s4169_s9, %s2484_s15, %s3545_s22, %s3545_s22, %s3546_s24  }
 0x1e7 PF: > { %s2512_s18 = sand.u32 1, %s3517_s12   ;;  %p4242_p3 = scmp.ne.s32.totalorder %s4234_s23, 0 }
 0x1e8   : > { %p4243_p5 = scmp.ge.s32.totalorder %s3537_s17, 2  ;;  %s2513_s26 = scalar_lea.sflag [#allocation5], %s2512_s18 }
 0x1ea   : > { %p2979_p9 = pnand %p4243_p5, %p4242_p3 }
 0x1ec   : > { %3512 = dma.done.wait (!%p2979_p9), %s2513_s26, 16384  }
 0x1ed   : > { %3514 = vsyncadd (!%p2979_p9), %s2513_s26, 4294950912  ;;  %s20_s17 = sadd.s32 1, %s3537_s17   ;;  %s4244_s12 = smov %s3521_s13 }
 0x1ee   : > { %p17_p11 = scmp.ge.s32.totalorder %s20_s17, 4   ;;  %s4245_s13 = smov %s3525_s14 }
 0x1ef   : > { %s4246_s14 = smov %s3713_s6  ;;  %s4247_s15 = smov %s3533_s16 }
 0x1f0   : > { %s4248_s16 = smov %s4250_s25  ;;  %19 = sbr.rel (!%p17_p11) target bundleno = 7 (0x7), region = 94 }
 0x1f7   :  { %2518 = vsyncpa [#allocation4], 1 }
 0x1f8   :  { %2520 = vsyncpa [#allocation4 + $0x1], 1 }
 0x1f9   :  { %2521 = vsyncpa [#allocation7], 1 }
 0x1fa   :  { %2522 = vsyncpa [#allocation5], 1 }
 0x1fb   :  { %2524 = vsyncpa [#allocation5 + $0x1], 1 }

</bundles_post_ra>
